<compile_context>
chip_gen: v5e
topology: v5e:2x2
jax: 0.10.0
libtpu: 0.0.40
codegen_flags: <defaults>
</compile_context>

<pallas_src>
import math
from itertools import combinations

import numpy as np
import jax
import jax.numpy as jnp
from jax import lax
from jax.experimental import pallas as pl
from jax.experimental.pallas import tpu as pltpu

# ---------------- configuration (small, consistent with the module) ----------------
SEQ_LEN = 8            # cfg.DATA.SEQ_LEN
D_IN = 32              # cfg.trans_linear_in_dim
D_OUT = 32             # cfg.trans_linear_out_dim
TEMP_SET = 3           # temporal_set_size
WAY = 2                # cfg.TRAIN.WAY
SHOT = 2               # support shots per class
N_QUERIES = 4
PE_SCALE = 0.1

TUPLES = np.array(list(combinations(range(SEQ_LEN), TEMP_SET)), dtype=np.int32)  # [Tt, 3]
TT = TUPLES.shape[0]       # C(8,3) = 56
ST = SHOT * TT             # support tuples per class = 112
OUT_LANES = 128            # lane-dense output width


# ---------------- glue: positional encoding table ----------------
def positional_encoding(seq_len, d_model, scale=PE_SCALE):
    pos = np.arange(seq_len, dtype=np.float32)[:, None]
    div = np.exp(np.arange(0, d_model, 2, dtype=np.float32) * -(math.log(10000.0) / d_model))
    pe = np.zeros((seq_len, d_model), dtype=np.float32)
    pe[:, 0::2] = np.sin(pos * div) * scale
    pe[:, 1::2] = np.cos(pos * div) * scale
    return jnp.asarray(pe)


# ---------------- fused Pallas kernel: projection + LN + attention + distance ----------------
def _fused_kernel(s_ref, q_ref, wk_ref, bk_ref, wv_ref, bv_ref, g_ref, beta_ref, out_ref):
    # s_ref    : [WAY*ST, 3*D_IN]  support tuples, grouped by class (class 0 rows first)
    # q_ref    : [nq*Tt,  3*D_IN]  query tuples
    # wk/wv    : [3*D_IN, D_OUT]   resident weights;  bk/bv/g/beta : [1, D_OUT]
    # out_ref  : [8, 128]          lane-dense logits tile (rows = queries, lanes = classes)
    d = g_ref.shape[1]
    n_s = s_ref.shape[0]                 # WAY * ST
    qt = q_ref.shape[0]                  # nq * TT
    nq = qt // TT
    inv_sqrt_d = 1.0 / math.sqrt(d)
    inv_tt = 1.0 / TT

    def layernorm_k(k):                  # nn.LayerNorm (eps=1e-5, biased variance)
        mu = jnp.mean(k, axis=-1, keepdims=True)
        var = jnp.mean((k - mu) ** 2, axis=-1, keepdims=True)
        return (k - mu) * lax.rsqrt(var + 1e-5) * g_ref[...] + beta_ref[...]

    sx = s_ref[...]
    qx = q_ref[...]
    wk = wk_ref[...]
    wv = wv_ref[...]

    # project every support / query tuple exactly once (two resident-weight dots, no lane split)
    skn = layernorm_k(jnp.dot(sx, wk, preferred_element_type=jnp.float32) + bk_ref[...])
    qkn = layernorm_k(jnp.dot(qx, wk, preferred_element_type=jnp.float32) + bk_ref[...])
    sv = jnp.dot(sx, wv, preferred_element_type=jnp.float32) + bv_ref[...]
    qv = jnp.dot(qx, wv, preferred_element_type=jnp.float32) + bv_ref[...]

    # one NT scores matmul covering both classes (no explicit transpose, no XLU relayout)
    scores = lax.dot_general(qkn, skn, (((1,), (1,)), ((), ())),
                             preferred_element_type=jnp.float32) * inv_sqrt_d   # [qt, WAY*ST]

    lane = lax.broadcasted_iota(jnp.int32, (qt, n_s), 1)
    neg = jnp.float32(-1e30)

    out_ref[...] = jnp.zeros_like(out_ref)            # single full-tile (unmasked) store
    for c in range(WAY):                               # static Python loop, WAY = 2
        # per-class softmax over the flattened (shot, tuple) support axis via a lane mask;
        # attn is zero outside class-c columns, so the full-V matmul == block-diagonal V.
        mask = (lane >= c * ST) & (lane < (c + 1) * ST)
        s_c = jnp.where(mask, scores, neg)
        m = jnp.max(s_c, axis=-1, keepdims=True)
        e = jnp.where(mask, jnp.exp(s_c - m), 0.0)
        attn = e * pl.reciprocal(jnp.sum(e, axis=-1, keepdims=True), approx=True)
        proto = jnp.dot(attn, sv, preferred_element_type=jnp.float32)           # [qt, D]

        # -||q_v - proto||^2 / Tt per query
        diff = qv - proto
        sq = (diff * diff).reshape(nq, TT, d)
        d2 = jnp.sum(jnp.sum(sq, axis=-1), axis=-1, keepdims=True)              # [nq, 1]
        out_ref[0:nq, c:c + 1] = -inv_tt * d2


def fused_pallas(s_x, q_x, wk, bk, wv, bv, gamma, beta):
    # s_x: [WAY*ST, 3*D_IN] support tuples grouped by class; q_x: [nq*Tt, 3*D_IN]
    n_s, feat = s_x.shape
    qt = q_x.shape[0]
    d = gamma.shape[1]
    nq = qt // TT
    out_rows = max(8, ((nq + 7) // 8) * 8)

    flops = int(2 * feat * d * 2 * (n_s + qt)      # k and v projections
                + 2 * qt * d * n_s                 # scores (both classes)
                + WAY * 2 * qt * n_s * d)          # prototypes (masked full-width attn)
    transcendentals = int(WAY * qt * n_s + (n_s + qt) + WAY * qt)
    bytes_accessed = int(4 * (s_x.size + q_x.size + wk.size + wv.size + bk.size + bv.size
                              + gamma.size + beta.size + out_rows * OUT_LANES))

    return pl.pallas_call(
        _fused_kernel,
        out_shape=jax.ShapeDtypeStruct((out_rows, OUT_LANES), jnp.float32),
        grid_spec=pltpu.PrefetchScalarGridSpec(
            num_scalar_prefetch=0,
            grid=(1,),
            in_specs=[
                pl.BlockSpec((n_s, feat), lambda i: (0, 0)),     # support tuples
                pl.BlockSpec((qt, feat), lambda i: (0, 0)),      # query tuples (single copy)
                pl.BlockSpec((feat, d), lambda i: (0, 0)),       # Wk (resident)
                pl.BlockSpec((1, d), lambda i: (0, 0)),          # bk
                pl.BlockSpec((feat, d), lambda i: (0, 0)),       # Wv (resident)
                pl.BlockSpec((1, d), lambda i: (0, 0)),          # bv
                pl.BlockSpec((1, d), lambda i: (0, 0)),          # LN gamma
                pl.BlockSpec((1, d), lambda i: (0, 0)),          # LN beta
            ],
            out_specs=pl.BlockSpec((out_rows, OUT_LANES), lambda i: (0, 0)),
        ),
        compiler_params=pltpu.CompilerParams(dimension_semantics=("arbitrary",)),
        cost_estimate=pl.CostEstimate(flops=flops, transcendentals=transcendentals,
                                      bytes_accessed=bytes_accessed),
    )(s_x, q_x, wk, bk, wv, bv, gamma, beta)


# ---------------- full forward (thin glue + single fused kernel), jitted ----------------
@jax.jit
def _forward(support_set, queries, order, params):
    pe = positional_encoding(SEQ_LEN, D_IN)
    s = jnp.take(support_set, order, axis=0) + pe[None]    # support reordered: grouped by class
    q = queries + pe[None]                                 # PositionalEncoding (eval: dropout=id)

    n_support = s.shape[0]
    nq = q.shape[0]

    # gather frame tuples and flatten: [n, Tt, 3, D_in] -> [n*Tt, 3*D_in]
    s_t = s[:, TUPLES, :].reshape(n_support * TT, TEMP_SET * D_IN)   # [WAY*ST, 96]
    q_t = q[:, TUPLES, :].reshape(nq * TT, TEMP_SET * D_IN)          # [nq*Tt, 96]

    out = fused_pallas(s_t, q_t,
                       params["wk"], params["bk"],
                       params["wv"], params["bv"],
                       params["gk"], params["bk_ln"])                # [8, 128] lane-dense
    return out[:nq, :WAY]                                            # logits [nq, WAY]


def temporal_cross_transformer(support_set, support_labels, queries, params):
    # class grouping (labels assumed in {0..WAY-1}, SHOT examples each; concrete at trace time)
    labels_np = np.asarray(support_labels)
    order = np.concatenate([np.nonzero(labels_np == c)[0] for c in range(WAY)]).astype(np.int32)
    logits = _forward(support_set, queries, jnp.asarray(order), params)
    return {"logits": logits}


# ---------------- pure NumPy reference (for validation only) ----------------
def reference_forward(support_set, support_labels, queries, params):
    pe = np.asarray(positional_encoding(SEQ_LEN, D_IN))
    s = np.asarray(support_set) + pe[None]
    q = np.asarray(queries) + pe[None]
    s_t = s[:, TUPLES, :].reshape(s.shape[0], TT, -1)
    q_t = q[:, TUPLES, :].reshape(q.shape[0], TT, -1)

    wk, bk = np.asarray(params["wk"]), np.asarray(params["bk"])
    wv, bv = np.asarray(params["wv"]), np.asarray(params["bv"])
    gk, bln = np.asarray(params["gk"]), np.asarray(params["bk_ln"])

    def ln(x):
        mu = x.mean(-1, keepdims=True)
        var = ((x - mu) ** 2).mean(-1, keepdims=True)
        return (x - mu) / np.sqrt(var + 1e-5) * gk + bln

    s_ks = ln(s_t @ wk + bk)
    q_ks = ln(q_t @ wk + bk)
    s_vs = s_t @ wv + bv
    q_vs = q_t @ wv + bv

    nq = q.shape[0]
    logits = np.zeros((nq, WAY), dtype=np.float32)
    labels_np = np.asarray(support_labels)
    for c in range(WAY):
        idx = np.nonzero(labels_np == c)[0]
        ck = s_ks[idx].reshape(-1, D_OUT)
        cv = s_vs[idx].reshape(-1, D_OUT)
        for qi in range(nq):
            scores = q_ks[qi] @ ck.T / math.sqrt(D_OUT)
            scores = scores - scores.max(-1, keepdims=True)
            e = np.exp(scores)
            attn = e / e.sum(-1, keepdims=True)
            proto = attn @ cv
            diff = q_vs[qi] - proto
            logits[qi, c] = -float((diff ** 2).sum()) / TT
    return logits


# ---------------- deterministic parameter init ----------------
def make_params(seed=42):
    keys = jax.random.split(jax.random.PRNGKey(seed), 4)
    fan_in = D_IN * TEMP_SET
    lim = 1.0 / math.sqrt(fan_in)
    wk = jax.random.uniform(keys[0], (fan_in, D_OUT), jnp.float32, -lim, lim)
    bk = jax.random.uniform(keys[1], (1, D_OUT), jnp.float32, -lim, lim)
    wv = jax.random.uniform(keys[2], (fan_in, D_OUT), jnp.float32, -lim, lim)
    bv = jax.random.uniform(keys[3], (1, D_OUT), jnp.float32, -lim, lim)
    gk = jnp.ones((1, D_OUT), jnp.float32)       # nn.LayerNorm default init
    bk_ln = jnp.zeros((1, D_OUT), jnp.float32)
    return {"wk": wk, "bk": bk, "wv": wv, "bv": bv, "gk": gk, "bk_ln": bk_ln}


if __name__ == "__main__":
    key = jax.random.PRNGKey(0)
    k1, k2 = jax.random.split(key)
    support_set = jax.random.normal(k1, (WAY * SHOT, SEQ_LEN, D_IN), jnp.float32)
    queries = jax.random.normal(k2, (N_QUERIES, SEQ_LEN, D_IN), jnp.float32)
    support_labels = np.array([0, 1, 0, 1], dtype=np.int32)   # WAY=2, SHOT=2

    params = make_params()

    out = temporal_cross_transformer(support_set, support_labels, queries, params)
    logits = jax.block_until_ready(out["logits"])

    ref = reference_forward(support_set, support_labels, queries, params)
    np.testing.assert_allclose(np.asarray(logits), ref, rtol=5e-2, atol=5e-2)

    print("KERNEL_OK")
</pallas_src>

<mosaic_0001>
module attributes {stable_mosaic.version = 11 : i64} {
  func.func @_fused_kernel(%arg0: i32, %arg1: memref<224x96xf32, #tpu.memory_space<vmem>>, %arg2: memref<224x96xf32, #tpu.memory_space<vmem>>, %arg3: memref<96x32xf32, #tpu.memory_space<vmem>>, %arg4: memref<1x32xf32, #tpu.memory_space<vmem>>, %arg5: memref<96x32xf32, #tpu.memory_space<vmem>>, %arg6: memref<1x32xf32, #tpu.memory_space<vmem>>, %arg7: memref<1x32xf32, #tpu.memory_space<vmem>>, %arg8: memref<1x32xf32, #tpu.memory_space<vmem>>, %arg9: memref<8x128xf32, #tpu.memory_space<vmem>>) attributes {dimension_semantics = [#tpu.dimension_semantics<arbitrary>], iteration_bounds = array<i64: 1>, scalar_prefetch = 0 : i64, scratch_operands = 0 : i64, tpu.core_type = #tpu.core_type<tc>, window_params = [{pipeline_mode = #tpu.pipeline_mode<synchronous>, transform_indices = @transform_0, window_bounds = array<i64: 224, 96>}, {pipeline_mode = #tpu.pipeline_mode<synchronous>, transform_indices = @transform_1, window_bounds = array<i64: 224, 96>}, {pipeline_mode = #tpu.pipeline_mode<synchronous>, transform_indices = @transform_2, window_bounds = array<i64: 96, 32>}, {pipeline_mode = #tpu.pipeline_mode<synchronous>, transform_indices = @transform_3, window_bounds = array<i64: 1, 32>}, {pipeline_mode = #tpu.pipeline_mode<synchronous>, transform_indices = @transform_4, window_bounds = array<i64: 96, 32>}, {pipeline_mode = #tpu.pipeline_mode<synchronous>, transform_indices = @transform_5, window_bounds = array<i64: 1, 32>}, {pipeline_mode = #tpu.pipeline_mode<synchronous>, transform_indices = @transform_6, window_bounds = array<i64: 1, 32>}, {pipeline_mode = #tpu.pipeline_mode<synchronous>, transform_indices = @transform_7, window_bounds = array<i64: 1, 32>}, {pipeline_mode = #tpu.pipeline_mode<synchronous>, transform_indices = @transform_8, window_bounds = array<i64: 8, 128>}]} {
    %c0 = arith.constant 0 : index
    %c0_0 = arith.constant 0 : index
    %0 = vector.load %arg1[%c0, %c0_0] : memref<224x96xf32, #tpu.memory_space<vmem>>, vector<224x96xf32>
    %c0_1 = arith.constant 0 : index
    %c0_2 = arith.constant 0 : index
    %1 = vector.load %arg2[%c0_1, %c0_2] : memref<224x96xf32, #tpu.memory_space<vmem>>, vector<224x96xf32>
    %c0_3 = arith.constant 0 : index
    %c0_4 = arith.constant 0 : index
    %2 = vector.load %arg3[%c0_3, %c0_4] : memref<96x32xf32, #tpu.memory_space<vmem>>, vector<96x32xf32>
    %c0_5 = arith.constant 0 : index
    %c0_6 = arith.constant 0 : index
    %3 = vector.load %arg5[%c0_5, %c0_6] : memref<96x32xf32, #tpu.memory_space<vmem>>, vector<96x32xf32>
    %cst = arith.constant dense<0.000000e+00> : vector<224x32xf32>
    %4 = tpu.matmul %0, %2, %cst {dimension_numbers = #tpu.dot_dimension_numbers<[1], [0], [0], [1], [0, 0, 1, 1], [], []>} : vector<224x96xf32>, vector<96x32xf32>, vector<224x32xf32> -> vector<224x32xf32>
    %c0_7 = arith.constant 0 : index
    %c0_8 = arith.constant 0 : index
    %5 = vector.load %arg4[%c0_7, %c0_8] : memref<1x32xf32, #tpu.memory_space<vmem>>, vector<1x32xf32>
    %6 = vector.broadcast %5 : vector<1x32xf32> to vector<224x32xf32>
    %7 = arith.addf %4, %6 : vector<224x32xf32>
    %cst_9 = arith.constant dense<0.000000e+00> : vector<224xf32>
    %8 = vector.multi_reduction <add>, %7, %cst_9 [1] : vector<224x32xf32> to vector<224xf32>
    %9 = vector.shape_cast %8 : vector<224xf32> to vector<224x1xf32>
    %cst_10 = arith.constant 3.200000e+01 : f32
    %10 = vector.broadcast %cst_10 : f32 to vector<224x1xf32>
    %11 = arith.divf %9, %10 : vector<224x1xf32>
    %12 = vector.broadcast %11 : vector<224x1xf32> to vector<224x32xf32>
    %13 = arith.subf %7, %12 : vector<224x32xf32>
    %14 = arith.mulf %13, %13 : vector<224x32xf32>
    %cst_11 = arith.constant dense<0.000000e+00> : vector<224xf32>
    %15 = vector.multi_reduction <add>, %14, %cst_11 [1] : vector<224x32xf32> to vector<224xf32>
    %16 = vector.shape_cast %15 : vector<224xf32> to vector<224x1xf32>
    %cst_12 = arith.constant 3.200000e+01 : f32
    %17 = vector.broadcast %cst_12 : f32 to vector<224x1xf32>
    %18 = arith.divf %16, %17 : vector<224x1xf32>
    %19 = vector.broadcast %11 : vector<224x1xf32> to vector<224x32xf32>
    %20 = arith.subf %7, %19 : vector<224x32xf32>
    %cst_13 = arith.constant 9.99999974E-6 : f32
    %21 = vector.broadcast %cst_13 : f32 to vector<224x1xf32>
    %22 = arith.addf %18, %21 : vector<224x1xf32>
    %23 = math.rsqrt %22 : vector<224x1xf32>
    %24 = vector.broadcast %23 : vector<224x1xf32> to vector<224x32xf32>
    %25 = arith.mulf %20, %24 : vector<224x32xf32>
    %c0_14 = arith.constant 0 : index
    %c0_15 = arith.constant 0 : index
    %26 = vector.load %arg7[%c0_14, %c0_15] : memref<1x32xf32, #tpu.memory_space<vmem>>, vector<1x32xf32>
    %27 = vector.broadcast %26 : vector<1x32xf32> to vector<224x32xf32>
    %28 = arith.mulf %25, %27 : vector<224x32xf32>
    %c0_16 = arith.constant 0 : index
    %c0_17 = arith.constant 0 : index
    %29 = vector.load %arg8[%c0_16, %c0_17] : memref<1x32xf32, #tpu.memory_space<vmem>>, vector<1x32xf32>
    %30 = vector.broadcast %29 : vector<1x32xf32> to vector<224x32xf32>
    %31 = arith.addf %28, %30 : vector<224x32xf32>
    %cst_18 = arith.constant dense<0.000000e+00> : vector<224x32xf32>
    %32 = tpu.matmul %1, %2, %cst_18 {dimension_numbers = #tpu.dot_dimension_numbers<[1], [0], [0], [1], [0, 0, 1, 1], [], []>} : vector<224x96xf32>, vector<96x32xf32>, vector<224x32xf32> -> vector<224x32xf32>
    %c0_19 = arith.constant 0 : index
    %c0_20 = arith.constant 0 : index
    %33 = vector.load %arg4[%c0_19, %c0_20] : memref<1x32xf32, #tpu.memory_space<vmem>>, vector<1x32xf32>
    %34 = vector.broadcast %33 : vector<1x32xf32> to vector<224x32xf32>
    %35 = arith.addf %32, %34 : vector<224x32xf32>
    %cst_21 = arith.constant dense<0.000000e+00> : vector<224xf32>
    %36 = vector.multi_reduction <add>, %35, %cst_21 [1] : vector<224x32xf32> to vector<224xf32>
    %37 = vector.shape_cast %36 : vector<224xf32> to vector<224x1xf32>
    %cst_22 = arith.constant 3.200000e+01 : f32
    %38 = vector.broadcast %cst_22 : f32 to vector<224x1xf32>
    %39 = arith.divf %37, %38 : vector<224x1xf32>
    %40 = vector.broadcast %39 : vector<224x1xf32> to vector<224x32xf32>
    %41 = arith.subf %35, %40 : vector<224x32xf32>
    %42 = arith.mulf %41, %41 : vector<224x32xf32>
    %cst_23 = arith.constant dense<0.000000e+00> : vector<224xf32>
    %43 = vector.multi_reduction <add>, %42, %cst_23 [1] : vector<224x32xf32> to vector<224xf32>
    %44 = vector.shape_cast %43 : vector<224xf32> to vector<224x1xf32>
    %cst_24 = arith.constant 3.200000e+01 : f32
    %45 = vector.broadcast %cst_24 : f32 to vector<224x1xf32>
    %46 = arith.divf %44, %45 : vector<224x1xf32>
    %47 = vector.broadcast %39 : vector<224x1xf32> to vector<224x32xf32>
    %48 = arith.subf %35, %47 : vector<224x32xf32>
    %cst_25 = arith.constant 9.99999974E-6 : f32
    %49 = vector.broadcast %cst_25 : f32 to vector<224x1xf32>
    %50 = arith.addf %46, %49 : vector<224x1xf32>
    %51 = math.rsqrt %50 : vector<224x1xf32>
    %52 = vector.broadcast %51 : vector<224x1xf32> to vector<224x32xf32>
    %53 = arith.mulf %48, %52 : vector<224x32xf32>
    %c0_26 = arith.constant 0 : index
    %c0_27 = arith.constant 0 : index
    %54 = vector.load %arg7[%c0_26, %c0_27] : memref<1x32xf32, #tpu.memory_space<vmem>>, vector<1x32xf32>
    %55 = vector.broadcast %54 : vector<1x32xf32> to vector<224x32xf32>
    %56 = arith.mulf %53, %55 : vector<224x32xf32>
    %c0_28 = arith.constant 0 : index
    %c0_29 = arith.constant 0 : index
    %57 = vector.load %arg8[%c0_28, %c0_29] : memref<1x32xf32, #tpu.memory_space<vmem>>, vector<1x32xf32>
    %58 = vector.broadcast %57 : vector<1x32xf32> to vector<224x32xf32>
    %59 = arith.addf %56, %58 : vector<224x32xf32>
    %cst_30 = arith.constant dense<0.000000e+00> : vector<224x32xf32>
    %60 = tpu.matmul %0, %3, %cst_30 {dimension_numbers = #tpu.dot_dimension_numbers<[1], [0], [0], [1], [0, 0, 1, 1], [], []>} : vector<224x96xf32>, vector<96x32xf32>, vector<224x32xf32> -> vector<224x32xf32>
    %c0_31 = arith.constant 0 : index
    %c0_32 = arith.constant 0 : index
    %61 = vector.load %arg6[%c0_31, %c0_32] : memref<1x32xf32, #tpu.memory_space<vmem>>, vector<1x32xf32>
    %62 = vector.broadcast %61 : vector<1x32xf32> to vector<224x32xf32>
    %63 = arith.addf %60, %62 : vector<224x32xf32>
    %cst_33 = arith.constant dense<0.000000e+00> : vector<224x32xf32>
    %64 = tpu.matmul %1, %3, %cst_33 {dimension_numbers = #tpu.dot_dimension_numbers<[1], [0], [0], [1], [0, 0, 1, 1], [], []>} : vector<224x96xf32>, vector<96x32xf32>, vector<224x32xf32> -> vector<224x32xf32>
    %c0_34 = arith.constant 0 : index
    %c0_35 = arith.constant 0 : index
    %65 = vector.load %arg6[%c0_34, %c0_35] : memref<1x32xf32, #tpu.memory_space<vmem>>, vector<1x32xf32>
    %66 = vector.broadcast %65 : vector<1x32xf32> to vector<224x32xf32>
    %67 = arith.addf %64, %66 : vector<224x32xf32>
    %cst_36 = arith.constant dense<0.000000e+00> : vector<224x224xf32>
    %68 = tpu.matmul %59, %31, %cst_36 {dimension_numbers = #tpu.dot_dimension_numbers<[1], [1], [0], [0], [0, 0, 1, 0], [], []>} : vector<224x32xf32>, vector<224x32xf32>, vector<224x224xf32> -> vector<224x224xf32>
    %cst_37 = arith.constant 0.176776692 : f32
    %69 = vector.broadcast %cst_37 : f32 to vector<224x224xf32>
    %70 = arith.mulf %68, %69 : vector<224x224xf32>
    %71 = tpu.iota {dimensions = array<i32: 1>} : vector<224x224xi32>
    %cst_38 = arith.constant 0.000000e+00 : f32
    %72 = vector.broadcast %cst_38 : f32 to vector<8x128xf32>
    %c0_39 = arith.constant 0 : index
    %c0_40 = arith.constant 0 : index
    %73 = vector.load %arg9[%c0_39, %c0_40] : memref<8x128xf32, #tpu.memory_space<vmem>>, vector<8x128xf32>
    tpu.vector_store %arg9[%c0_39, %c0_40], %72 {strides = array<i32>} : memref<8x128xf32, #tpu.memory_space<vmem>>, vector<8x128xf32>,
    %c0_i32 = arith.constant 0 : i32
    %74 = vector.broadcast %c0_i32 : i32 to vector<224x224xi32>
    %75 = arith.cmpi sge, %71, %74 : vector<224x224xi32>
    %c112_i32 = arith.constant 112 : i32
    %76 = vector.broadcast %c112_i32 : i32 to vector<224x224xi32>
    %77 = arith.cmpi slt, %71, %76 : vector<224x224xi32>
    %78 = arith.andi %75, %77 : vector<224x224xi1>
    %cst_41 = arith.constant -1.000000e+30 : f32
    %79 = vector.broadcast %cst_41 : f32 to vector<224x224xf32>
    %80 = arith.select %78, %70, %79 : vector<224x224xi1>, vector<224x224xf32>
    %cst_42 = arith.constant dense<0xFF800000> : vector<224xf32>
    %81 = vector.multi_reduction <maximumf>, %80, %cst_42 [1] : vector<224x224xf32> to vector<224xf32>
    %82 = vector.shape_cast %81 : vector<224xf32> to vector<224x1xf32>
    %83 = vector.broadcast %82 : vector<224x1xf32> to vector<224x224xf32>
    %84 = arith.subf %80, %83 : vector<224x224xf32>
    %85 = math.exp %84 : vector<224x224xf32>
    %cst_43 = arith.constant 0.000000e+00 : f32
    %86 = vector.broadcast %cst_43 : f32 to vector<224x224xf32>
    %87 = arith.select %78, %85, %86 : vector<224x224xi1>, vector<224x224xf32>
    %cst_44 = arith.constant dense<0.000000e+00> : vector<224xf32>
    %88 = vector.multi_reduction <add>, %87, %cst_44 [1] : vector<224x224xf32> to vector<224xf32>
    %89 = vector.shape_cast %88 : vector<224xf32> to vector<224x1xf32>
    %90 = tpu.reciprocal %89 {approx = true} : vector<224x1xf32> -> vector<224x1xf32>
    %91 = vector.broadcast %90 : vector<224x1xf32> to vector<224x224xf32>
    %92 = arith.mulf %87, %91 : vector<224x224xf32>
    %cst_45 = arith.constant dense<0.000000e+00> : vector<224x32xf32>
    %93 = tpu.matmul %92, %63, %cst_45 {dimension_numbers = #tpu.dot_dimension_numbers<[1], [0], [0], [1], [0, 0, 1, 1], [], []>} : vector<224x224xf32>, vector<224x32xf32>, vector<224x32xf32> -> vector<224x32xf32>
    %94 = arith.subf %67, %93 : vector<224x32xf32>
    %95 = arith.mulf %94, %94 : vector<224x32xf32>
    %96 = vector.shape_cast %95 : vector<224x32xf32> to vector<4x56x32xf32>
    %cst_46 = arith.constant dense<0.000000e+00> : vector<4x56xf32>
    %97 = vector.multi_reduction <add>, %96, %cst_46 [2] : vector<4x56x32xf32> to vector<4x56xf32>
    %cst_47 = arith.constant dense<0.000000e+00> : vector<4xf32>
    %98 = vector.multi_reduction <add>, %97, %cst_47 [1] : vector<4x56xf32> to vector<4xf32>
    %99 = vector.shape_cast %98 : vector<4xf32> to vector<4x1xf32>
    %cst_48 = arith.constant -0.0178571437 : f32
    %100 = vector.broadcast %cst_48 : f32 to vector<4x1xf32>
    %101 = arith.mulf %100, %99 : vector<4x1xf32>
    %c0_49 = arith.constant 0 : index
    %c0_50 = arith.constant 0 : index
    %102 = vector.load %arg9[%c0_49, %c0_50] : memref<8x128xf32, #tpu.memory_space<vmem>>, vector<4x1xf32>
    tpu.vector_store %arg9[%c0_49, %c0_50], %101 {strides = array<i32>} : memref<8x128xf32, #tpu.memory_space<vmem>>, vector<4x1xf32>,
    %c112_i32_51 = arith.constant 112 : i32
    %103 = vector.broadcast %c112_i32_51 : i32 to vector<224x224xi32>
    %104 = arith.cmpi sge, %71, %103 : vector<224x224xi32>
    %c224_i32 = arith.constant 224 : i32
    %105 = vector.broadcast %c224_i32 : i32 to vector<224x224xi32>
    %106 = arith.cmpi slt, %71, %105 : vector<224x224xi32>
    %107 = arith.andi %104, %106 : vector<224x224xi1>
    %cst_52 = arith.constant -1.000000e+30 : f32
    %108 = vector.broadcast %cst_52 : f32 to vector<224x224xf32>
    %109 = arith.select %107, %70, %108 : vector<224x224xi1>, vector<224x224xf32>
    %cst_53 = arith.constant dense<0xFF800000> : vector<224xf32>
    %110 = vector.multi_reduction <maximumf>, %109, %cst_53 [1] : vector<224x224xf32> to vector<224xf32>
    %111 = vector.shape_cast %110 : vector<224xf32> to vector<224x1xf32>
    %112 = vector.broadcast %111 : vector<224x1xf32> to vector<224x224xf32>
    %113 = arith.subf %109, %112 : vector<224x224xf32>
    %114 = math.exp %113 : vector<224x224xf32>
    %cst_54 = arith.constant 0.000000e+00 : f32
    %115 = vector.broadcast %cst_54 : f32 to vector<224x224xf32>
    %116 = arith.select %107, %114, %115 : vector<224x224xi1>, vector<224x224xf32>
    %cst_55 = arith.constant dense<0.000000e+00> : vector<224xf32>
    %117 = vector.multi_reduction <add>, %116, %cst_55 [1] : vector<224x224xf32> to vector<224xf32>
    %118 = vector.shape_cast %117 : vector<224xf32> to vector<224x1xf32>
    %119 = tpu.reciprocal %118 {approx = true} : vector<224x1xf32> -> vector<224x1xf32>
    %120 = vector.broadcast %119 : vector<224x1xf32> to vector<224x224xf32>
    %121 = arith.mulf %116, %120 : vector<224x224xf32>
    %cst_56 = arith.constant dense<0.000000e+00> : vector<224x32xf32>
    %122 = tpu.matmul %121, %63, %cst_56 {dimension_numbers = #tpu.dot_dimension_numbers<[1], [0], [0], [1], [0, 0, 1, 1], [], []>} : vector<224x224xf32>, vector<224x32xf32>, vector<224x32xf32> -> vector<224x32xf32>
    %123 = arith.subf %67, %122 : vector<224x32xf32>
    %124 = arith.mulf %123, %123 : vector<224x32xf32>
    %125 = vector.shape_cast %124 : vector<224x32xf32> to vector<4x56x32xf32>
    %cst_57 = arith.constant dense<0.000000e+00> : vector<4x56xf32>
    %126 = vector.multi_reduction <add>, %125, %cst_57 [2] : vector<4x56x32xf32> to vector<4x56xf32>
    %cst_58 = arith.constant dense<0.000000e+00> : vector<4xf32>
    %127 = vector.multi_reduction <add>, %126, %cst_58 [1] : vector<4x56xf32> to vector<4xf32>
    %128 = vector.shape_cast %127 : vector<4xf32> to vector<4x1xf32>
    %cst_59 = arith.constant -0.0178571437 : f32
    %129 = vector.broadcast %cst_59 : f32 to vector<4x1xf32>
    %130 = arith.mulf %129, %128 : vector<4x1xf32>
    %c0_60 = arith.constant 0 : index
    %c1 = arith.constant 1 : index
    %131 = vector.load %arg9[%c0_60, %c1] : memref<8x128xf32, #tpu.memory_space<vmem>>, vector<4x1xf32>
    tpu.vector_store %arg9[%c0_60, %c1], %130 {strides = array<i32>} : memref<8x128xf32, #tpu.memory_space<vmem>>, vector<4x1xf32>,
    return
  }
  func.func @transform_0(%arg0: i32) -> (i32, i32) {
    %c0_i32 = arith.constant 0 : i32
    %c0_i32_0 = arith.constant 0 : i32
    %c0_i32_1 = arith.constant 0 : i32
    return %c0_i32, %c0_i32_0 : i32, i32
  }
  func.func @transform_1(%arg0: i32) -> (i32, i32) {
    %c0_i32 = arith.constant 0 : i32
    %c0_i32_0 = arith.constant 0 : i32
    %c0_i32_1 = arith.constant 0 : i32
    return %c0_i32, %c0_i32_0 : i32, i32
  }
  func.func @transform_2(%arg0: i32) -> (i32, i32) {
    %c0_i32 = arith.constant 0 : i32
    %c0_i32_0 = arith.constant 0 : i32
    %c0_i32_1 = arith.constant 0 : i32
    return %c0_i32, %c0_i32_0 : i32, i32
  }
  func.func @transform_3(%arg0: i32) -> (i32, i32) {
    %c0_i32 = arith.constant 0 : i32
    %c0_i32_0 = arith.constant 0 : i32
    %c0_i32_1 = arith.constant 0 : i32
    return %c0_i32, %c0_i32_0 : i32, i32
  }
  func.func @transform_4(%arg0: i32) -> (i32, i32) {
    %c0_i32 = arith.constant 0 : i32
    %c0_i32_0 = arith.constant 0 : i32
    %c0_i32_1 = arith.constant 0 : i32
    return %c0_i32, %c0_i32_0 : i32, i32
  }
  func.func @transform_5(%arg0: i32) -> (i32, i32) {
    %c0_i32 = arith.constant 0 : i32
    %c0_i32_0 = arith.constant 0 : i32
    %c0_i32_1 = arith.constant 0 : i32
    return %c0_i32, %c0_i32_0 : i32, i32
  }
  func.func @transform_6(%arg0: i32) -> (i32, i32) {
    %c0_i32 = arith.constant 0 : i32
    %c0_i32_0 = arith.constant 0 : i32
    %c0_i32_1 = arith.constant 0 : i32
    return %c0_i32, %c0_i32_0 : i32, i32
  }
  func.func @transform_7(%arg0: i32) -> (i32, i32) {
    %c0_i32 = arith.constant 0 : i32
    %c0_i32_0 = arith.constant 0 : i32
    %c0_i32_1 = arith.constant 0 : i32
    return %c0_i32, %c0_i32_0 : i32, i32
  }
  func.func @transform_8(%arg0: i32) -> (i32, i32) {
    %c0_i32 = arith.constant 0 : i32
    %c0_i32_0 = arith.constant 0 : i32
    %c0_i32_1 = arith.constant 0 : i32
    return %c0_i32, %c0_i32_0 : i32, i32
  }
}

</mosaic_0001>

<bundles_post_ra>
// kernel: _forward.1
= control target key start
LH: loop header
LB: loop body
LE: loop exit
PB: predicated region body
PF: predicated region fallthrough
CT: control target
= control target key end

     0   :  { %vm113_vm0 = vcmask 785408   ;;  %vm299_vm1 = vcmask 261120   ;;  %s9839_s2 = inlined_call_operand.vmem [shape: f32[96,32], index: 2, kind: input, shape index: {}]   ;;  %s9840_s3 = inlined_call_operand.vmem [shape: f32[1,32], index: 3, kind: input, shape index: {}]   ;;  %s9841_s0 = inlined_call_operand.vmem [shape: f32[224,96], index: 0, kind: input, shape index: {}]   ;;  %s9842_s1 = inlined_call_operand.vmem [shape: f32[224,96], index: 1, kind: input, shape index: {}]   ;;  %s9843_s6 = inlined_call_operand.vmem [shape: f32[1,32], index: 6, kind: input, shape index: {}]   ;;  %s9844_s7 = inlined_call_operand.vmem [shape: f32[1,32], index: 7, kind: input, shape index: {}]   ;;  %s9845_s4 = inlined_call_operand.vmem [shape: f32[96,32], index: 4, kind: input, shape index: {}]   ;;  %s9846_s5 = inlined_call_operand.vmem [shape: f32[1,32], index: 5, kind: input, shape index: {}]   ;;  %s9847_s8 = inlined_call_operand.vmem [shape: f32[8,128], index: 8, kind: output, shape index: {}]  }
   0x1   :  { %v96_v0 = vld [vmem:[%s9839_s2 + $0x58] sm:$0xff]  ;;  %v95_v1 = vld [vmem:[%s9839_s2 + $0x50] sm:$0xff]  ;;  %v94_v2 = vld [vmem:[%s9839_s2 + $0x48] sm:$0xff] }
   0x2   :  { %202 = vmatpush.msra.mxu0 %v96_v0  ;;  %4972 = vmatpush.msra.mxu2 %v96_v0  ;;  %v93_v3 = vld [vmem:[%s9839_s2 + $0x40] sm:$0xff]  ;;  %v92_v4 = vld [vmem:[%s9839_s2 + $0x38] sm:$0xff]  ;;  %v91_v5 = vld [vmem:[%s9839_s2 + $0x30] sm:$0xff] }
   0x3   :  { %1075 = vmatpush.msra.mxu1 %v96_v0  ;;  %4984 = vmatpush.msra.mxu3 %v96_v0  ;;  %v90_v6 = vld [vmem:[%s9839_s2 + $0x28] sm:$0xff]  ;;  %v89_v7 = vld [vmem:[%s9839_s2 + $0x20] sm:$0xff]  ;;  %v88_v8 = vld [vmem:[%s9839_s2 + $0x18] sm:$0xff] }
   0x4   :  { %203 = vmatpush.msra.mxu0 %v95_v1  ;;  %4973 = vmatpush.msra.mxu2 %v95_v1  ;;  %v87_v9 = vld [vmem:[%s9839_s2 + $0x10] sm:$0xff]  ;;  %v86_v10 = vld [vmem:[%s9839_s2 + $0x8] sm:$0xff]  ;;  %v85_v11 = vld [vmem:[%s9839_s2] sm:$0xff] }
   0x5   :  { %1076 = vmatpush.msra.mxu1 %v95_v1  ;;  %4985 = vmatpush.msra.mxu3 %v95_v1  ;;  %v29_v12 = vld [vmem:[%s9841_s0] sm:$0xff]  ;;  %v43_v13 = vld [vmem:[%s9841_s0 + $0x70] sm:$0xff]  ;;  %v30_v14 = vld [vmem:[%s9841_s0 + $0x8] sm:$0xff] }
   0x6   :  { %204 = vmatpush.msra.mxu0 %v94_v2  ;;  %4974 = vmatpush.msra.mxu2 %v94_v2  ;;  %v44_v15 = vld [vmem:[%s9841_s0 + $0x78] sm:$0xff]  ;;  %v31_v16 = vld [vmem:[%s9841_s0 + $0x10] sm:$0xff]  ;;  %v45_v17 = vld [vmem:[%s9841_s0 + $0x80] sm:$0xff] }
   0x7   :  { %1077 = vmatpush.msra.mxu1 %v94_v2  ;;  %4986 = vmatpush.msra.mxu3 %v94_v2  ;;  %v32_v18 = vld [vmem:[%s9841_s0 + $0x18] sm:$0xff]  ;;  %v46_v19 = vld [vmem:[%s9841_s0 + $0x88] sm:$0xff]  ;;  %v33_v20 = vld [vmem:[%s9841_s0 + $0x20] sm:$0xff] }
   0x8   :  { %205 = vmatpush.msra.mxu0 %v93_v3  ;;  %4975 = vmatpush.msra.mxu2 %v93_v3  ;;  %v47_v21 = vld [vmem:[%s9841_s0 + $0x90] sm:$0xff]  ;;  %v34_v22 = vld [vmem:[%s9841_s0 + $0x28] sm:$0xff]  ;;  %v48_v23 = vld [vmem:[%s9841_s0 + $0x98] sm:$0xff] }
   0x9   :  { %1078 = vmatpush.msra.mxu1 %v93_v3  ;;  %4987 = vmatpush.msra.mxu3 %v93_v3  ;;  %v35_v24 = vld [vmem:[%s9841_s0 + $0x30] sm:$0xff]  ;;  %v49_v25 = vld [vmem:[%s9841_s0 + $0xa0] sm:$0xff]  ;;  %v36_v26 = vld [vmem:[%s9841_s0 + $0x38] sm:$0xff] }
   0xa   :  { %206 = vmatpush.msra.mxu0 %v92_v4  ;;  %4976 = vmatpush.msra.mxu2 %v92_v4  ;;  %v50_v27 = vld [vmem:[%s9841_s0 + $0xa8] sm:$0xff]  ;;  %v57_v28 = vld [vmem:[%s9842_s1] sm:$0xff]  ;;  %v51_v30 = vld [vmem:[%s9841_s0 + $0xb0] sm:$0xff] }
   0xb   :  { %1079 = vmatpush.msra.mxu1 %v92_v4  ;;  %4988 = vmatpush.msra.mxu3 %v92_v4  ;;  %v37_v29 = vld [vmem:[%s9841_s0 + $0x40] sm:$0xff]  ;;  %v58_v31 = vld [vmem:[%s9842_s1 + $0x8] sm:$0xff]  ;;  %v52_v33 = vld [vmem:[%s9841_s0 + $0xb8] sm:$0xff] }
   0xc   :  { %207 = vmatpush.msra.mxu0 %v91_v5  ;;  %4977 = vmatpush.msra.mxu2 %v91_v5  ;;  %v38_v32 = vld [vmem:[%s9841_s0 + $0x48] sm:$0xff]  ;;  %v39_v34 = vld [vmem:[%s9841_s0 + $0x50] sm:$0xff]  ;;  %v53_v35 = vld [vmem:[%s9841_s0 + $0xc0] sm:$0xff] }
   0xd   :  { %1080 = vmatpush.msra.mxu1 %v91_v5  ;;  %4989 = vmatpush.msra.mxu3 %v91_v5  ;;  %v40_v36 = vld [vmem:[%s9841_s0 + $0x58] sm:$0xff]  ;;  %v54_v37 = vld [vmem:[%s9841_s0 + $0xc8] sm:$0xff]  ;;  %v41_v38 = vld [vmem:[%s9841_s0 + $0x60] sm:$0xff] }
   0xe   :  { %208 = vmatpush.msra.mxu0 %v90_v6  ;;  %4978 = vmatpush.msra.mxu2 %v90_v6  ;;  %v55_v39 = vld [vmem:[%s9841_s0 + $0xd0] sm:$0xff]  ;;  %v56_v40 = vld [vmem:[%s9841_s0 + $0xd8] sm:$0xff]  ;;  %v42_v41 = vld [vmem:[%s9841_s0 + $0x68] sm:$0xff] }
   0xf   :  { %1081 = vmatpush.msra.mxu1 %v90_v6  ;;  %4990 = vmatpush.msra.mxu3 %v90_v6  ;;  %v59_v42 = vld [vmem:[%s9842_s1 + $0x10] sm:$0xff]  ;;  %v5676_v44 = vld [vmem:[%s9840_s3] ss:$0 sm:$0xff] }
  0x10   :  { %209 = vmatpush.msra.mxu0 %v89_v7  ;;  %4979 = vmatpush.msra.mxu2 %v89_v7 }
  0x11   :  { %1082 = vmatpush.msra.mxu1 %v89_v7  ;;  %4991 = vmatpush.msra.mxu3 %v89_v7 }
  0x12   :  { %210 = vmatpush.msra.mxu0 %v88_v8  ;;  %4980 = vmatpush.msra.mxu2 %v88_v8 }
  0x13   :  { %1083 = vmatpush.msra.mxu1 %v88_v8  ;;  %4992 = vmatpush.msra.mxu3 %v88_v8 }
  0x14   :  { %211 = vmatpush.msra.mxu0 %v87_v9  ;;  %4981 = vmatpush.msra.mxu2 %v87_v9 }
  0x15   :  { %1084 = vmatpush.msra.mxu1 %v87_v9  ;;  %4993 = vmatpush.msra.mxu3 %v87_v9 }
  0x16   :  { %212 = vmatpush.msra.mxu0 %v86_v10  ;;  %4982 = vmatpush.msra.mxu2 %v86_v10 }
  0x17   :  { %1085 = vmatpush.msra.mxu1 %v86_v10  ;;  %4994 = vmatpush.msra.mxu3 %v86_v10 }
  0x18   :  { %213 = vmatpush.msra.mxu0 %v85_v11  ;;  %4983 = vmatpush.msra.mxu2 %v85_v11 }
  0x19   :  { %4720 = vmatmul.msk.f32.vlgmr.msra.gmra.mxu0 %vm113_vm0, %v29_v12  ;;  %4734 = vmatmul.msk.f32.vlgmr.msra.gmra.mxu2 %vm113_vm0, %v43_v13 }
  0x1a   :  { %1086 = vmatpush.msra.mxu1 %v85_v11  ;;  %4995 = vmatpush.msra.mxu3 %v85_v11 }
  0x1b   :  { %4748 = vmatmul.msk.f32.vlgmr.msra.gmra.mxu1 %vm113_vm0, %v57_v28 }
  0x21   :  { %4721 = vmatmul.msk.f32.gmra.mxu0 %vm113_vm0, %v30_v14  ;;  %4735 = vmatmul.msk.f32.gmra.mxu2 %vm113_vm0, %v44_v15 }
  0x23   :  { %4749 = vmatmul.msk.f32.gmra.mxu1 %vm113_vm0, %v58_v31 }
  0x29   :  { %4722 = vmatmul.msk.f32.gmra.mxu0 %vm113_vm0, %v31_v16  ;;  %4736 = vmatmul.msk.f32.gmra.mxu2 %vm113_vm0, %v45_v17 }
  0x2b   :  { %4750 = vmatmul.msk.f32.gmra.mxu1 %vm113_vm0, %v59_v42 }
  0x31   :  { %4723 = vmatmul.msk.f32.gmra.mxu0 %vm113_vm0, %v32_v18  ;;  %4737 = vmatmul.msk.f32.gmra.mxu2 %vm113_vm0, %v46_v19 }
  0x39   :  { %4724 = vmatmul.msk.f32.gmra.mxu0 %vm113_vm0, %v33_v20  ;;  %4738 = vmatmul.msk.f32.gmra.mxu2 %vm113_vm0, %v47_v21 }
  0x41   :  { %4725 = vmatmul.msk.f32.gmra.mxu0 %vm113_vm0, %v34_v22  ;;  %4739 = vmatmul.msk.f32.gmra.mxu2 %vm113_vm0, %v48_v23 }
  0x49   :  { %4726 = vmatmul.msk.f32.gmra.mxu0 %vm113_vm0, %v35_v24  ;;  %4740 = vmatmul.msk.f32.gmra.mxu2 %vm113_vm0, %v49_v25 }
  0x51   :  { %4727 = vmatmul.msk.f32.gmra.mxu0 %vm113_vm0, %v36_v26  ;;  %4741 = vmatmul.msk.f32.gmra.mxu2 %vm113_vm0, %v50_v27 }
  0x59   :  { %4728 = vmatmul.msk.f32.gmra.mxu0 %vm113_vm0, %v37_v29  ;;  %4742 = vmatmul.msk.f32.gmra.mxu2 %vm113_vm0, %v51_v30 }
  0x61   :  { %4729 = vmatmul.msk.f32.gmra.mxu0 %vm113_vm0, %v38_v32  ;;  %4743 = vmatmul.msk.f32.gmra.mxu2 %vm113_vm0, %v52_v33  ;;  %v60_v33 = vld [vmem:[%s9842_s1 + $0x18] sm:$0xff] }
  0x62   :  { %4751 = vmatmul.msk.f32.gmra.mxu1 %vm113_vm0, %v60_v33 }
  0x69   :  { %4730 = vmatmul.msk.f32.gmra.mxu0 %vm113_vm0, %v39_v34  ;;  %4744 = vmatmul.msk.f32.gmra.mxu2 %vm113_vm0, %v53_v35 }
  0x71   :  { %4731 = vmatmul.msk.f32.gmra.mxu0 %vm113_vm0, %v40_v36  ;;  %4745 = vmatmul.msk.f32.gmra.mxu2 %vm113_vm0, %v54_v37 }
  0x79   :  { %4732 = vmatmul.msk.f32.gmra.mxu0 %vm113_vm0, %v41_v38  ;;  %4746 = vmatmul.msk.f32.gmra.mxu2 %vm113_vm0, %v55_v39 }
  0x81   :  { %4747 = vmatmul.msk.f32.gmra.mxu2 %vm113_vm0, %v56_v40  ;;  %4733 = vmatmul.msk.f32.gmra.mxu0 %vm113_vm0, %v42_v41 }
  0x96   :  { %v5671_v43 = vpop.f32.mrf.mxu0 }
  0x98   :  { %v1088_v35 = vpop.f32.mrf.mxu1 }
  0x9c   :  { %v257_v45 = vpop.f32.mrf.mxu2 }
  0x9d   :  { %v5679_v46 = vadd.f32 %v5676_v44, %v257_v45 }
  0x9e   :  { %v5681_v47 = vpop.f32.mrf.mxu0 }
  0x9f   :  { %v342_v48 = vsel %vm299_vm1, %v5679_v46, 0.0 }
  0xa0   :  { %343 = vadd.xlane.f32.xlu0 %v342_v48  ;;  %v1091_v45 = vpop.f32.mrf.mxu1 }
  0xa4   :  { %v260_v49 = vpop.f32.mrf.mxu2 }
  0xa5   :  { %v5686_v50 = vadd.f32 %v5676_v44, %v260_v49 }
  0xa6   :  { %v221_v51 = vpop.f32.mrf.mxu0 }
  0xa7   :  { %v345_v52 = vsel %vm299_vm1, %v5686_v50, 0.0  ;;  %v5691_v53 = vadd.f32 %v5676_v44, %v221_v51 }
  0xa8   :  { %346 = vadd.xlane.f32.xlu0 %v345_v52  ;;  %v5463_v52 = vmov 32.0  }
  0xa9   :  { %v306_v56 = vsel %vm299_vm1, %v5691_v53, 0.0  ;;  %5003 = vrcp.f32 %v5463_v52 }
  0xac   :  { %v5693_v54 = vpop.f32.mrf.mxu2 }
  0xae   :  { %v224_v55 = vpop.f32.mrf.mxu0 }
  0xaf   :  { %v5698_v57 = vadd.f32 %v5676_v44, %v224_v55 }
  0xb0   :  { %307 = vadd.xlane.f32.xlu0 %v306_v56  ;;  %v5791_v56 = vadd.f32 %v5676_v44, %v1091_v45 }
  0xb1   :  { %v309_v60 = vsel %vm299_vm1, %v5698_v57, 0.0 }
  0xb4   :  { %v5700_v58 = vpop.f32.mrf.mxu2 }
  0xb6   :  { %v227_v59 = vpop.f32.mrf.mxu0 }
  0xb7   :  { %v5705_v61 = vadd.f32 %v5676_v44, %v227_v59  ;;  %v5795_v59 = vadd.f32 %v5676_v44, %v5681_v47 }
  0xb8   :  { %310 = vadd.xlane.f32.xlu0 %v309_v60  ;;  %v61_v60 = vld [vmem:[%s9842_s1 + $0x20] sm:$0xff] }
  0xb9   :  { %v312_v0 = vsel %vm299_vm1, %v5705_v61, 0.0  ;;  %4752 = vmatmul.msk.f32.gmra.mxu1 %vm113_vm0, %v61_v60 }
  0xbc   :  { %v5707_v62 = vpop.f32.mrf.mxu2 }
  0xbe   :  { %v230_v63 = vpop.f32.mrf.mxu0 }
  0xbf   :  { %v5712_v1 = vadd.f32 %v5676_v44, %v230_v63 }
  0xc0   :  { %313 = vadd.xlane.f32.xlu0 %v312_v0 }
  0xc1   :  { %v315_v2 = vsel %vm299_vm1, %v5712_v1, 0.0 }
  0xc2   :  { %316 = vadd.xlane.f32.xlu1 %v315_v2  ;;  %v1175_v2 = vsel %vm299_vm1, %v5791_v56, 0.0 }
  0xc4   :  { %v272_v3 = vpop.f32.mrf.mxu2 }
  0xc5   :  { %v5717_v4 = vadd.f32 %v5676_v44, %v272_v3  ;;  %v5004_v3 = vpop.eup %5003 }
  0xc6   :  { %v233_v5 = vpop.f32.mrf.mxu0  ;;  %vm389_vm2 = vweird.f32 %v5004_v3 }
  0xc7   :  { %v5720_v6 = vadd.f32 %v5676_v44, %v233_v5  ;;  %v357_v7 = vsel %vm299_vm1, %v5717_v4, 0.0  ;;  %v303_v5 = vsel %vm299_vm1, %v5795_v59, 0.0 }
  0xc9   :  { %v318_v8 = vsel %vm299_vm1, %v5720_v6, 0.0 }
  0xca   :  { %319 = vadd.xlane.f32.xlu2 %v318_v8  ;;  %358 = vadd.xlane.f32.xlu1 %v357_v7  ;;  %v385_v8 = vmul.f32 32.0, %v5004_v3 }
  0xcc   :  { %v275_v9 = vpop.f32.mrf.mxu2 }
  0xcd   :  { %v5727_v10 = vadd.f32 %v5676_v44, %v275_v9  ;;  %v5812_v9 = vadd.f32 %v5676_v44, %v5671_v43 }
  0xce   :  { %v236_v11 = vpop.f32.mrf.mxu0 }
  0xcf   :  { %v5730_v12 = vadd.f32 %v5676_v44, %v236_v11  ;;  %v360_v13 = vsel %vm299_vm1, %v5727_v10, 0.0  ;;  %v300_v43 = vsel %vm299_vm1, %v5812_v9, 0.0 }
  0xd1   :  { %v321_v14 = vsel %vm299_vm1, %v5730_v12, 0.0 }
  0xd2   :  { %361 = vadd.xlane.f32.xlu1 %v360_v13  ;;  %322 = vadd.xlane.f32.xlu0 %v321_v14  ;;  %v62_v13 = vld [vmem:[%s9842_s1 + $0x28] sm:$0xff] }
  0xd3   :  { %4753 = vmatmul.msk.f32.gmra.mxu1 %vm113_vm0, %v62_v13 }
  0xd4   :  { %v278_v15 = vpop.f32.mrf.mxu2 }
  0xd5   :  { %v5737_v16 = vadd.f32 %v5676_v44, %v278_v15 }
  0xd6   :  { %v239_v17 = vpop.f32.mrf.mxu0 }
  0xd7   :  { %v5740_v18 = vadd.f32 %v5676_v44, %v239_v17  ;;  %v363_v19 = vsel %vm299_vm1, %v5737_v16, 0.0  ;;  %v386_v17 = vsub.f32 1.0, %v385_v8 }
  0xd8   :  { %364 = vadd.xlane.f32.xlu2 %v363_v19 }
  0xd9   :  { %v324_v20 = vsel %vm299_vm1, %v5740_v18, 0.0 }
  0xda   :  { %325 = vadd.xlane.f32.xlu1 %v324_v20 }
  0xdc   :  { %v281_v21 = vpop.f32.mrf.mxu2 }
  0xdd   :  { %v5747_v22 = vadd.f32 %v5676_v44, %v281_v21  ;;  %v387_v21 = vmul.f32 %v5004_v3, %v386_v17 }
  0xde   :  { %v242_v23 = vpop.f32.mrf.mxu0 }
  0xdf   :  { %v5750_v24 = vadd.f32 %v5676_v44, %v242_v23  ;;  %v366_v25 = vsel %vm299_vm1, %v5747_v22, 0.0  ;;  %v5831_v23 = vadd.f32 %v5676_v44, %v1088_v35  ;;  %v5854_v35 = vadd.f32 %v5676_v44, %v5700_v58 }
  0xe0   :  { %367 = vadd.xlane.f32.xlu0 %v366_v25  ;;  %v63_v25 = vld [vmem:[%s9842_s1 + $0x30] sm:$0xff] }
  0xe1   :  { %v327_v26 = vsel %vm299_vm1, %v5750_v24, 0.0  ;;  %4754 = vmatmul.msk.f32.gmra.mxu1 %vm113_vm0, %v63_v25 }
  0xe2   :  { %328 = vadd.xlane.f32.xlu2 %v327_v26  ;;  %v5839_v26 = vadd.f32 %v5676_v44, %v5707_v62 }
  0xe4   :  { %v284_v27 = vpop.f32.mrf.mxu2 }
  0xe5   :  { %v5757_v28 = vadd.f32 %v5676_v44, %v284_v27  ;;  %v388_v27 = vadd.f32 %v5004_v3, %v387_v21 }
  0xe6   :  { %v245_v29 = vpop.f32.mrf.mxu0 }
  0xe7   :  { %v5760_v30 = vadd.f32 %v5676_v44, %v245_v29  ;;  %v369_v31 = vsel %vm299_vm1, %v5757_v28, 0.0  ;;  %v1172_v29 = vsel %vm299_vm1, %v5831_v23, 0.0 }
  0xe8   :  { %370 = vadd.xlane.f32.xlu1 %v369_v31  ;;  %v354_v31 = vsel %vm299_vm1, %v5839_v26, 0.0 }
  0xe9   :  { %v330_v32 = vsel %vm299_vm1, %v5760_v30, 0.0 }
  0xea   :  { %331 = vadd.xlane.f32.xlu0 %v330_v32  ;;  %v5845_v32 = vsel %vm389_vm2, %v5004_v3, %v388_v27 }
  0xec   :  { %v287_v34 = vpop.f32.mrf.mxu2 }
  0xed   :  { %v5771_v36 = vadd.f32 %v5676_v44, %v287_v34  ;;  %v64_v34 = vld [vmem:[%s9842_s1 + $0x38] sm:$0xff] }
  0xee   :  { %v248_v37 = vpop.f32.mrf.mxu0  ;;  %4755 = vmatmul.msk.f32.gmra.mxu1 %vm113_vm0, %v64_v34 }
  0xef   :  { %v372_v38 = vsel %vm299_vm1, %v5771_v36, 0.0  ;;  %v5776_v39 = vadd.f32 %v5676_v44, %v248_v37 }
  0xf0   :  { %373 = vadd.xlane.f32.xlu2 %v372_v38 }
  0xf1   :  { %v333_v49 = vsel %vm299_vm1, %v5776_v39, 0.0 }
  0xf4   :  { %v290_v40 = vpop.f32.mrf.mxu2 }
  0xf5   :  { %v5779_v41 = vadd.f32 %v5676_v44, %v290_v40  ;;  %v351_v40 = vsel %vm299_vm1, %v5854_v35, 0.0 }
  0xf6   :  { %v251_v42 = vpop.f32.mrf.mxu0 }
  0xf7   :  { %v5782_v48 = vadd.f32 %v5676_v44, %v251_v42  ;;  %v375_v51 = vsel %vm299_vm1, %v5779_v41, 0.0  ;;  %v65_v42 = vld [vmem:[%s9842_s1 + $0x40] sm:$0xff] }
  0xf8   :  { %334 = vadd.xlane.f32.xlu2 %v333_v49  ;;  %376 = vadd.xlane.f32.xlu0 %v375_v51 }
  0xf9   :  { %v336_v55 = vsel %vm299_vm1, %v5782_v48, 0.0  ;;  %4756 = vmatmul.msk.f32.gmra.mxu1 %vm113_vm0, %v65_v42 }
  0xfa   :  { %337 = vadd.xlane.f32.xlu1 %v336_v55  ;;  %v1094_v55 = vpop.f32.mrf.mxu1 }
  0xfc   :  { %v293_v63 = vpop.f32.mrf.mxu2 }
  0xfd   :  { %v5802_v0 = vadd.f32 %v5676_v44, %v293_v63  ;;  %v66_v63 = vld [vmem:[%s9842_s1 + $0x48] sm:$0xff] }
  0xfe   :  { %v254_v7 = vpop.f32.mrf.mxu0 }
  0xff   :  { %v378_v47 = vsel %vm299_vm1, %v5802_v0, 0.0  ;;  %v5815_v11 = vadd.f32 %v5676_v44, %v254_v7 }
 0x100   :  { %1176 = vadd.xlane.f32.xlu2 %v1175_v2  ;;  %304 = vadd.xlane.f32.xlu0 %v303_v5 }
 0x101   :  { %v339_v20 = vsel %vm299_vm1, %v5815_v11, 0.0  ;;  %4757 = vmatmul.msk.f32.gmra.mxu1 %vm113_vm0, %v66_v63 }
 0x102   :  { %379 = vadd.xlane.f32.xlu1 %v378_v47 }
 0x104   :  { %v296_v14 = vpop.f32.mrf.mxu2 }
 0x105   :  { %v5822_v15 = vadd.f32 %v5676_v44, %v296_v14 }
 0x107   :  { %v381_v19 = vsel %vm299_vm1, %v5822_v15, 0.0 }
 0x108   :  { %382 = vadd.xlane.f32.xlu2 %v381_v19  ;;  %301 = vadd.xlane.f32.xlu0 %v300_v43 }
 0x10a   :  { %340 = vadd.xlane.f32.xlu1 %v339_v20 }
 0x110   :  { %1173 = vadd.xlane.f32.xlu0 %v1172_v29 }
 0x112   :  { %355 = vadd.xlane.f32.xlu1 %v354_v31 }
 0x113   :  { %v344_v33 = vpop.xlane.xlu0 %343 }
 0x114   :  { %v405_v62 = vmul.f32 %v5845_v32, %v344_v33 }
 0x116   :  { %v5857_v37 = vsub.f32 %v5679_v46, %v405_v62  ;;  %v5871_v46 = vadd.f32 %v5676_v44, %v5693_v54  ;;  %v5885_v54 = vadd.f32 %v5676_v44, %v1094_v55 }
 0x118   :  { %v461_v38 = vmul.f32 %v5857_v37, %v5857_v37  ;;  %v348_v60 = vsel %vm299_vm1, %v5871_v46, 0.0 }
 0x11a   :  { %352 = vadd.xlane.f32.xlu1 %v351_v40  ;;  %v517_v45 = vsel %vm299_vm1, %v461_v38, 0.0 }
 0x11b   :  { %v347_v49 = vpop.xlane.xlu0 %346  ;;  %518 = vadd.xlane.f32.xlu2 %v517_v45 }
 0x11c   :  { %v406_v58 = vmul.f32 %v5845_v32, %v347_v49 }
 0x11e   :  { %v5874_v51 = vsub.f32 %v5686_v50, %v406_v58  ;;  %v1178_v50 = vsel %vm299_vm1, %v5885_v54, 0.0 }
 0x120   :  { %v462_v52 = vmul.f32 %v5874_v51, %v5874_v51 }
 0x122   :  { %349 = vadd.xlane.f32.xlu1 %v348_v60  ;;  %v520_v2 = vsel %vm299_vm1, %v462_v52, 0.0 }
 0x123   :  { %521 = vadd.xlane.f32.xlu2 %v520_v2  ;;  %v5890_v3 = vpop.xlane.xlu0 %307 }
 0x12a   :  { %1179 = vadd.xlane.f32.xlu1 %v1178_v50 }
 0x12b   :  { %v5892_v5 = vpop.xlane.xlu0 %310 }
 0x133   :  { %v5896_v7 = vpop.xlane.xlu0 %313 }
 0x135   :  { %v5894_v47 = vpop.xlane.xlu1 %316 }
 0x13d   :  { %v5898_v8 = vpop.xlane.xlu1 %358  ;;  %v320_v13 = vpop.xlane.xlu2 %319 }
 0x145   :  { %v5900_v14 = vpop.xlane.xlu1 %361  ;;  %v323_v17 = vpop.xlane.xlu0 %322 }
 0x146   :  { %v398_v19 = vmul.f32 %v5845_v32, %v323_v17 }
 0x148   :  { %v5904_v43 = vsub.f32 %v5730_v12, %v398_v19 }
 0x14a   :  { %v454_v20 = vmul.f32 %v5904_v43, %v5904_v43 }
 0x14b   :  { %v5909_v25 = vpop.xlane.xlu2 %364 }
 0x14c   :  { %v496_v21 = vsel %vm299_vm1, %v454_v20, 0.0 }
 0x14d   :  { %v326_v27 = vpop.xlane.xlu1 %325  ;;  %497 = vadd.xlane.f32.xlu0 %v496_v21 }
 0x14e   :  { %v399_v29 = vmul.f32 %v5845_v32, %v326_v27 }
 0x150   :  { %v5913_v31 = vsub.f32 %v5740_v18, %v399_v29 }
 0x152   :  { %v455_v33 = vmul.f32 %v5913_v31, %v5913_v31 }
 0x153   :  { %v368_v34 = vpop.xlane.xlu0 %367 }
 0x154   :  { %v499_v12 = vsel %vm299_vm1, %v455_v33, 0.0 }
 0x155   :  { %v329_v62 = vpop.xlane.xlu2 %328  ;;  %500 = vadd.xlane.f32.xlu1 %v499_v12 }
 0x156   :  { %v400_v38 = vmul.f32 %v5845_v32, %v329_v62 }
 0x158   :  { %v5920_v40 = vsub.f32 %v5750_v24, %v400_v38 }
 0x15a   :  { %v456_v42 = vmul.f32 %v5920_v40, %v5920_v40 }
 0x15b   :  { %v371_v63 = vpop.xlane.xlu1 %370 }
 0x15c   :  { %v502_v45 = vsel %vm299_vm1, %v456_v42, 0.0 }
 0x15d   :  { %503 = vadd.xlane.f32.xlu1 %v502_v45  ;;  %v332_v18 = vpop.xlane.xlu0 %331 }
 0x15e   :  { %v401_v49 = vmul.f32 %v5845_v32, %v332_v18 }
 0x160   :  { %v5927_v58 = vsub.f32 %v5760_v30, %v401_v49 }
 0x162   :  { %v457_v52 = vmul.f32 %v5927_v58, %v5927_v58 }
 0x163   :  { %v374_v55 = vpop.xlane.xlu2 %373 }
 0x164   :  { %v415_v60 = vmul.f32 %v5845_v32, %v374_v55  ;;  %v505_v24 = vsel %vm299_vm1, %v457_v52, 0.0  ;;  %v397_v52 = vmul.f32 %v5845_v32, %v320_v13 }
 0x165   :  { %506 = vadd.xlane.f32.xlu2 %v505_v24 }
 0x166   :  { %v5934_v2 = vsub.f32 %v5771_v36, %v415_v60  ;;  %v67_v36 = vld [vmem:[%s9842_s1 + $0x50] sm:$0xff] }
 0x167   :  { %4758 = vmatmul.msk.f32.gmra.mxu1 %vm113_vm0, %v67_v36 }
 0x168   :  { %v471_v50 = vmul.f32 %v5934_v2, %v5934_v2 }
 0x16a   :  { %v547_v21 = vsel %vm299_vm1, %v471_v50, 0.0 }
 0x16b   :  { %v335_v17 = vpop.xlane.xlu2 %334  ;;  %v377_v19 = vpop.xlane.xlu0 %376 }
 0x16c   :  { %v402_v30 = vmul.f32 %v5845_v32, %v335_v17  ;;  %v416_v20 = vmul.f32 %v5845_v32, %v377_v19 }
 0x16d   :  { %v338_v27 = vpop.xlane.xlu1 %337  ;;  %548 = vadd.xlane.f32.xlu2 %v547_v21 }
 0x16e   :  { %v5942_v29 = vsub.f32 %v5776_v39, %v402_v30  ;;  %v5945_v33 = vsub.f32 %v5779_v41, %v416_v20  ;;  %v403_v12 = vmul.f32 %v5845_v32, %v338_v27  ;;  %v414_v27 = vmul.f32 %v5845_v32, %v371_v63 }
 0x170   :  { %v472_v62 = vmul.f32 %v5945_v33, %v5945_v33  ;;  %v458_v38 = vmul.f32 %v5942_v29, %v5942_v29  ;;  %v5960_v41 = vsub.f32 %v5782_v48, %v403_v12  ;;  %v5973_v48 = vsub.f32 %v5720_v6, %v397_v52 }
 0x171   :  { %v5998_v63 = vsub.f32 %v5757_v28, %v414_v27  ;;  %v411_v52 = vmul.f32 %v5845_v32, %v5900_v14  ;;  %v395_v27 = vmul.f32 %v5845_v32, %v5896_v7 }
 0x172   :  { %v550_v39 = vsel %vm299_vm1, %v472_v62, 0.0  ;;  %v508_v45 = vsel %vm299_vm1, %v458_v38, 0.0  ;;  %v459_v60 = vmul.f32 %v5960_v41, %v5960_v41  ;;  %v453_v12 = vmul.f32 %v5973_v48, %v5973_v48  ;;  %v1097_v62 = vpop.f32.mrf.mxu1 }
 0x173   :  { %v5957_v42 = vpop.xlane.xlu2 %1176  ;;  %551 = vadd.xlane.f32.xlu0 %v550_v39 }
 0x174   :  { %v511_v19 = vsel %vm299_vm1, %v459_v60, 0.0  ;;  %v493_v39 = vsel %vm299_vm1, %v453_v12, 0.0  ;;  %v470_v60 = vmul.f32 %v5998_v63, %v5998_v63 }
 0x175   :  { %v380_v18 = vpop.xlane.xlu1 %379  ;;  %509 = vadd.xlane.f32.xlu2 %v508_v45  ;;  %v68_v45 = vld [vmem:[%s9842_s1 + $0x58] sm:$0xff] }
 0x176   :  { %v417_v49 = vmul.f32 %v5845_v32, %v380_v18  ;;  %v6008_v18 = vadd.f32 %v5676_v44, %v1097_v62  ;;  %4759 = vmatmul.msk.f32.gmra.mxu1 %vm113_vm0, %v68_v45 }
 0x178   :  { %v5966_v55 = vsub.f32 %v5802_v0, %v417_v49  ;;  %v413_v0 = vmul.f32 %v5845_v32, %v368_v34  ;;  %v396_v49 = vmul.f32 %v5845_v32, %v5894_v47  ;;  %v69_v47 = vld [vmem:[%s9842_s1 + $0x60] sm:$0xff] }
 0x17a   :  { %v473_v24 = vmul.f32 %v5966_v55, %v5966_v55  ;;  %v5992_v38 = vsub.f32 %v5747_v22, %v413_v0  ;;  %v412_v22 = vmul.f32 %v5845_v32, %v5909_v25  ;;  %v6031_v14 = vsub.f32 %v5712_v1, %v396_v49 }
 0x17b   :  { %v383_v50 = vpop.xlane.xlu2 %382 }
 0x17c   :  { %v418_v17 = vmul.f32 %v5845_v32, %v383_v50  ;;  %v553_v30 = vsel %vm299_vm1, %v473_v24, 0.0  ;;  %v469_v28 = vmul.f32 %v5992_v38, %v5992_v38  ;;  %v6019_v24 = vpop.f32.mrf.mxu1  ;;  %v6022_v25 = vsub.f32 %v5737_v16, %v412_v22  ;;  %v71_v16 = vld [vmem:[%s9842_s1 + $0x70] sm:$0xff] }
 0x17d   :  { %v341_v13 = vpop.xlane.xlu1 %340  ;;  %512 = vadd.xlane.f32.xlu2 %v511_v19  ;;  %554 = vadd.xlane.f32.xlu0 %v553_v30  ;;  %v6034_v19 = vsub.f32 %v5727_v10, %v411_v52  ;;  %v544_v30 = vsel %vm299_vm1, %v470_v60, 0.0  ;;  %v72_v52 = vld [vmem:[%s9842_s1 + $0x78] sm:$0xff] }
 0x17e   :  { %v5980_v20 = vsub.f32 %v5822_v15, %v418_v17  ;;  %v404_v21 = vmul.f32 %v5845_v32, %v341_v13  ;;  %v541_v50 = vsel %vm299_vm1, %v469_v28, 0.0  ;;  %v1181_v17 = vsel %vm299_vm1, %v6008_v18, 0.0  ;;  %4760 = vmatmul.msk.f32.gmra.mxu1 %vm113_vm0, %v69_v47  ;;  %4762 = vmatmul.msk.f32.vlgmr.msra.gmra.mxu3 %vm113_vm0, %v71_v16 }
 0x17f   :  { %v394_v13 = vmul.f32 %v5845_v32, %v5892_v5  ;;  %v452_v5 = vmul.f32 %v6031_v14, %v6031_v14  ;;  %v467_v12 = vmul.f32 %v6034_v19, %v6034_v19  ;;  %v393_v28 = vmul.f32 %v5845_v32, %v5890_v3 }
 0x180   :  { %v5985_v6 = vsub.f32 %v5815_v11, %v404_v21  ;;  %v474_v36 = vmul.f32 %v5980_v20, %v5980_v20  ;;  %v468_v21 = vmul.f32 %v6022_v25, %v6022_v25 }
 0x181   :  { %v490_v45 = vsel %vm299_vm1, %v452_v5, 0.0  ;;  %v535_v22 = vsel %vm299_vm1, %v467_v12, 0.0  ;;  %v6091_v16 = vsub.f32 %v5691_v53, %v393_v28 }
 0x182   :  { %v556_v15 = vsel %vm299_vm1, %v474_v36, 0.0  ;;  %v460_v34 = vmul.f32 %v5985_v6, %v5985_v6  ;;  %v410_v36 = vmul.f32 %v5845_v32, %v5898_v8  ;;  %v6063_v8 = vsub.f32 %v5705_v61, %v395_v27 }
 0x183   :  { %557 = vadd.xlane.f32.xlu1 %v556_v15  ;;  %v6058_v15 = vsub.f32 %v5698_v57, %v394_v13  ;;  %v70_v57 = vld [vmem:[%s9842_s1 + $0x68] sm:$0xff]  ;;  %9917 = vst [vmem:[#allocation4_spill] sm:$0xff] %v6091_v16 }
 0x184   :  { %v514_v11 = vsel %vm299_vm1, %v460_v34, 0.0  ;;  %v305_v34 = vpop.xlane.xlu0 %304  ;;  %v1103_v7 = vpop.f32.mrf.mxu1  ;;  %9916 = vst [vmem:[#allocation3_spill] sm:$0xff] %v6063_v8 }
 0x185   :  { %515 = vadd.xlane.f32.xlu2 %v514_v11  ;;  %494 = vadd.xlane.f32.xlu0 %v493_v39  ;;  %v356_v1 = vpop.xlane.xlu1 %355  ;;  %9915 = vst [vmem:[#allocation2_spill] sm:$0xff] %v6058_v15  ;;  %v538_v11 = vsel %vm299_vm1, %v468_v21, 0.0  ;;  %v6066_v39 = vsub.f32 %v5717_v4, %v410_v36  ;;  %v450_v61 = vmul.f32 %v6058_v15, %v6058_v15 }
 0x186   :  { %4761 = vmatmul.msk.f32.gmra.mxu1 %vm113_vm0, %v70_v57  ;;  %v392_v60 = vmul.f32 %v5845_v32, %v305_v34  ;;  %4763 = vmatmul.msk.f32.gmra.mxu3 %vm113_vm0, %v72_v52  ;;  %v6104_v34 = vadd.f32 %v5676_v44, %v6019_v24  ;;  %v73_v57 = vld [vmem:[%s9842_s1 + $0x80] sm:$0xff] }
 0x187   :  { %v466_v3 = vmul.f32 %v6066_v39, %v6066_v39 }
 0x188   :  { %v6097_v21 = vsub.f32 %v5795_v59, %v392_v60 }
 0x189   :  { %v532_v5 = vsel %vm299_vm1, %v466_v3, 0.0 }
 0x18a   :  { %9918 = vst [vmem:[#allocation5_spill] sm:$0xff] %v6097_v21 }
 0x18b   :  { %542 = vadd.xlane.f32.xlu1 %v541_v50  ;;  %v451_v50 = vmul.f32 %v6063_v8, %v6063_v8 }
 0x18c   :  { %v1106_v53 = vpop.f32.mrf.mxu1 }
 0x18d   :  { %545 = vadd.xlane.f32.xlu2 %v544_v30  ;;  %1182 = vadd.xlane.f32.xlu0 %v1181_v17  ;;  %v353_v47 = vpop.xlane.xlu1 %352  ;;  %v487_v36 = vsel %vm299_vm1, %v451_v50, 0.0  ;;  %v6126_v50 = vadd.f32 %v5676_v44, %v1103_v7 }
 0x18e   :  { %v519_v0 = vpop.xlane.xlu2 %518  ;;  %4764 = vmatmul.msk.f32.gmra.mxu3 %vm113_vm0, %v73_v57 }
 0x18f   :  { %v573_v10 = vmul.f32 %v519_v0, %v5845_v32  ;;  %v484_v0 = vsel %vm299_vm1, %v450_v61, 0.0 }
 0x191   :  { %v6055_v62 = vadd.f32 1e-05, %v573_v10  ;;  %v302_v10 = vpop.xlane.xlu0 %301 }
 0x192   :  { %v391_v59 = vmul.f32 %v5845_v32, %v302_v10 }
 0x193   :  { %5005 = vrsqrt.f32 %v6055_v62  ;;  %539 = vadd.xlane.f32.xlu1 %v538_v11  ;;  %v449_v11 = vmul.f32 %v6091_v16, %v6091_v16  ;;  %vm761_vm4 = vweird.f32 %v6055_v62 }
 0x194   :  { %v6120_v52 = vsub.f32 %v5812_v9, %v391_v59 }
 0x195   :  { %491 = vadd.xlane.f32.xlu2 %v490_v45  ;;  %536 = vadd.xlane.f32.xlu0 %v535_v22  ;;  %v409_v45 = vmul.f32 %v5845_v32, %v356_v1  ;;  %v448_v22 = vmul.f32 %v6097_v21, %v6097_v21  ;;  %v481_v61 = vsel %vm299_vm1, %v449_v11, 0.0  ;;  %v350_v60 = vpop.xlane.xlu1 %349 }
 0x196   :  { %v522_v49 = vpop.xlane.xlu2 %521  ;;  %9919 = vst [vmem:[#allocation6_spill] sm:$0xff] %v6120_v52  ;;  %v407_v9 = vmul.f32 %v5845_v32, %v350_v60 }
 0x197   :  { %v574_v4 = vmul.f32 %v522_v49, %v5845_v32  ;;  %v6123_v1 = vsub.f32 %v5839_v26, %v409_v45  ;;  %v1187_v26 = vsel %vm299_vm1, %v6126_v50, 0.0 }
 0x198   :  { %v6145_v59 = vsub.f32 %v5871_v46, %v407_v9 }
 0x199   :  { %v6088_v17 = vpop.eup %5005  ;;  %v602_v30 = vadd.f32 1e-05, %v574_v4  ;;  %v1184_v4 = vsel %vm299_vm1, %v6104_v34, 0.0  ;;  %9920 = vst [vmem:[#allocation7_spill] sm:$0xff] %v6123_v1  ;;  %v465_v7 = vmul.f32 %v6123_v1, %v6123_v1 }
 0x19a   :  { %v756_v13 = vmul.f32 %v6088_v17, %v6055_v62  ;;  %vm762_vm3 = vweird.f32 %v6088_v17  ;;  %9923 = vst [vmem:[#allocation8_spill] sm:$0xff] %v6145_v59 }
 0x19b   :  { %5007 = vrsqrt.f32 %v602_v30  ;;  %485 = vadd.xlane.f32.xlu1 %v484_v0  ;;  %vm6140_vm6 = vmor %vm761_vm4, %vm762_vm3  ;;  %vm771_vm7 = vweird.f32 %v602_v30  ;;  %v529_v62 = vsel %vm299_vm1, %v465_v7, 0.0 }
 0x19c   :  { %v757_v27 = vmul.f32 %v6088_v17, %v756_v13  ;;  %v478_v13 = vsel %vm299_vm1, %v448_v22, 0.0 }
 0x19d   :  { %488 = vadd.xlane.f32.xlu2 %v487_v36  ;;  %533 = vadd.xlane.f32.xlu0 %v532_v5  ;;  %v1109_v36 = vpop.f32.mrf.mxu1  ;;  %v408_v5 = vmul.f32 %v5845_v32, %v353_v47 }
 0x19e   :  { %v758_v12 = vmul.f32 0.5, %v757_v27  ;;  %v447_v27 = vmul.f32 %v6120_v52, %v6120_v52 }
 0x19f   :  { %v6151_v47 = vsub.f32 %v5854_v35, %v408_v5  ;;  %v1257_v35 = vmul.f32 %v5957_v42, %v5845_v32 }
 0x1a0   :  { %v759_v49 = vsub.f32 1.5, %v758_v12  ;;  %v475_v57 = vsel %vm299_vm1, %v447_v27, 0.0 }
 0x1a1   :  { %v5008_v28 = vpop.eup %5007  ;;  %9924 = vst [vmem:[#allocation9_spill] sm:$0xff] %v6151_v47  ;;  %v464_v42 = vmul.f32 %v6151_v47, %v6151_v47  ;;  %v6182_v9 = vsub.f32 %v5791_v56, %v1257_v35 }
 0x1a2   :  { %v766_v24 = vmul.f32 %v5008_v28, %v602_v30  ;;  %v760_v0 = vmul.f32 %v6088_v17, %v759_v49  ;;  %vm772_vm5 = vweird.f32 %v5008_v28 }
 0x1a3   :  { %482 = vadd.xlane.f32.xlu1 %v481_v61  ;;  %vm773_vm8 = vmor %vm771_vm7, %vm772_vm5  ;;  %v1180_v61 = vpop.xlane.xlu1 %1179  ;;  %9925 = vst [vmem:[#allocation10_spill] sm:$0xff] %v6182_v9  ;;  %v526_v5 = vsel %vm299_vm1, %v464_v42, 0.0 }
 0x1a4   :  { %v767_v3 = vmul.f32 %v5008_v28, %v766_v24  ;;  %v764_v22 = vsel %vm6140_vm6, %v6088_v17, %v760_v0  ;;  %v1174_v24 = vpop.xlane.xlu0 %1173  ;;  %v6159_v17 = vld [vmem:[%s9843_s6] ss:$0 sm:$0xff] }
 0x1a5   :  { %1185 = vadd.xlane.f32.xlu2 %v1184_v4  ;;  %479 = vadd.xlane.f32.xlu0 %v478_v13  ;;  %v909_v30 = vmul.f32 %v764_v22, %v5857_v37  ;;  %v6165_v4 = vadd.f32 %v5676_v44, %v1106_v53  ;;  %v1258_v37 = vmul.f32 %v1180_v61, %v5845_v32  ;;  %v1112_v0 = vpop.f32.mrf.mxu1 }
 0x1a6   :  { %v768_v10 = vmul.f32 0.5, %v767_v3  ;;  %v1256_v3 = vmul.f32 %v1174_v24, %v5845_v32  ;;  %v6205_v22 = vadd.f32 %v5676_v44, %v1112_v0 }
 0x1a7   :  { %v941_v13 = vmul.f32 %v6159_v17, %v909_v30  ;;  %v6192_v27 = vsub.f32 %v5885_v54, %v1258_v37 }
 0x1a8   :  { %v769_v12 = vsub.f32 1.5, %v768_v10  ;;  %v6189_v7 = vsub.f32 %v5831_v23, %v1256_v3  ;;  %v1196_v61 = vsel %vm299_vm1, %v6205_v22, 0.0 }
 0x1a9   :  { %9927 = vst [vmem:[#allocation12_spill] sm:$0xff] %v6192_v27  ;;  %v1314_v11 = vmul.f32 %v6192_v27, %v6192_v27 }
 0x1aa   :  { %v770_v45 = vmul.f32 %v5008_v28, %v769_v12  ;;  %9926 = vst [vmem:[#allocation11_spill] sm:$0xff] %v6189_v7  ;;  %v1313_v12 = vmul.f32 %v6182_v9, %v6182_v9  ;;  %v1312_v23 = vmul.f32 %v6189_v7, %v6189_v7 }
 0x1ab   :  { %1188 = vadd.xlane.f32.xlu1 %v1187_v26  ;;  %v1190_v26 = vsel %vm299_vm1, %v6165_v4, 0.0 }
 0x1ac   :  { %v774_v49 = vsel %vm773_vm8, %v5008_v28, %v770_v45  ;;  %v463_v28 = vmul.f32 %v6145_v59, %v6145_v59  ;;  %v1343_v54 = vsel %vm299_vm1, %v1313_v12, 0.0 }
 0x1ad   :  { %530 = vadd.xlane.f32.xlu2 %v529_v62  ;;  %476 = vadd.xlane.f32.xlu0 %v475_v57  ;;  %v910_v46 = vmul.f32 %v774_v49, %v5874_v51  ;;  %v6173_v51 = vld [vmem:[%s9844_s7] ss:$0 sm:$0xff]  ;;  %v1115_v45 = vpop.f32.mrf.mxu1  ;;  %v1346_v62 = vsel %vm299_vm1, %v1314_v11, 0.0  ;;  %v1340_v57 = vsel %vm299_vm1, %v1312_v23, 0.0  ;;  %v6210_v49 = vadd.f32 %v5676_v44, %v1109_v36 }
 0x1ae   :  { %v523_v10 = vsel %vm299_vm1, %v463_v28, 0.0  ;;  %v973_v56 = vadd.f32 %v6173_v51, %v941_v13  ;;  %v6213_v24 = vadd.f32 %v5676_v44, %v1115_v45 }
 0x1af   :  { %v942_v60 = vmul.f32 %v6159_v17, %v910_v46  ;;  %9928 = vst [vmem:[#allocation13_spill] sm:$0xff] %v6210_v49  ;;  %v1193_v30 = vsel %vm299_vm1, %v6210_v49, 0.0 }
 0x1b0   :  { %9929 = vst [vmem:[#allocation14_spill] sm:$0xff] %v6213_v24  ;;  %v1199_v46 = vsel %vm299_vm1, %v6213_v24, 0.0 }
 0x1b1   :  { %v974_v53 = vadd.f32 %v6173_v51, %v942_v60 }
 0x1b3   :  { %4832 = vmatpush.xpose.msk.msrb.mxu0 %vm299_vm1, %v974_v53  ;;  %524 = vadd.xlane.f32.xlu1 %v523_v10 }
 0x1b5   :  { %527 = vadd.xlane.f32.xlu2 %v526_v5  ;;  %1191 = vadd.xlane.f32.xlu0 %v1190_v26 }
 0x1b7   :  { %4833 = vmatpush.xpose.msk.msrb.mxu0 %vm299_vm1, %v973_v56 }
 0x1bb   :  { %1344 = vadd.xlane.f32.xlu1 %v1343_v54 }
 0x1bd   :  { %1347 = vadd.xlane.f32.xlu0 %v1346_v62  ;;  %1341 = vadd.xlane.f32.xlu2 %v1340_v57 }
 0x1c0   :  { %v498_v28 = vpop.xlane.xlu0 %497 }
 0x1c1   :  { %v566_v36 = vmul.f32 %v498_v28, %v5845_v32 }
 0x1c3   :  { %1197 = vadd.xlane.f32.xlu1 %v1196_v61  ;;  %v594_v3 = vadd.f32 1e-05, %v566_v36 }
 0x1c5   :  { %1200 = vadd.xlane.f32.xlu0 %v1199_v46  ;;  %1194 = vadd.xlane.f32.xlu2 %v1193_v30  ;;  %5009 = vrsqrt.f32 %v594_v3  ;;  %vm691_vm10 = vweird.f32 %v594_v3 }
 0x1c8   :  { %v501_v35 = vpop.xlane.xlu1 %500 }
 0x1c9   :  { %v567_v60 = vmul.f32 %v501_v35, %v5845_v32 }
 0x1cb   :  { %v595_v42 = vadd.f32 1e-05, %v567_v60  ;;  %v5010_v10 = vpop.eup %5009 }
 0x1cc   :  { %v686_v56 = vmul.f32 %v5010_v10, %v594_v3  ;;  %vm692_vm9 = vweird.f32 %v5010_v10  ;;  %v74_v3 = vld [vmem:[%s9842_s1 + $0x88] sm:$0xff] }
 0x1cd   :  { %5011 = vrsqrt.f32 %v595_v42  ;;  %vm6259_vm12 = vmor %vm691_vm10, %vm692_vm9  ;;  %4765 = vmatmul.msk.f32.gmra.mxu3 %vm113_vm0, %v74_v3  ;;  %vm701_vm13 = vweird.f32 %v595_v42 }
 0x1ce   :  { %v687_v45 = vmul.f32 %v5010_v10, %v686_v56 }
 0x1d0   :  { %v504_v44 = vpop.xlane.xlu1 %503  ;;  %v688_v30 = vmul.f32 0.5, %v687_v45 }
 0x1d1   :  { %v568_v37 = vmul.f32 %v504_v44, %v5845_v32 }
 0x1d3   :  { %v6224_v53 = vadd.f32 1e-05, %v568_v37  ;;  %v6231_v5 = vpop.eup %5011 }
 0x1d4   :  { %v696_v23 = vmul.f32 %v6231_v5, %v595_v42  ;;  %vm702_vm11 = vweird.f32 %v6231_v5 }
 0x1d5   :  { %5013 = vrsqrt.f32 %v6224_v53  ;;  %vm6283_vm15 = vmor %vm701_vm13, %vm702_vm11  ;;  %vm711_vm2 = vweird.f32 %v6224_v53 }
 0x1d6   :  { %v697_v46 = vmul.f32 %v6231_v5, %v696_v23 }
 0x1d8   :  { %v507_v13 = vpop.xlane.xlu2 %506  ;;  %v698_v37 = vmul.f32 0.5, %v697_v46 }
 0x1d9   :  { %v569_v0 = vmul.f32 %v507_v13, %v5845_v32 }
 0x1db   :  { %v6228_v26 = vadd.f32 1e-05, %v569_v0  ;;  %v6233_v12 = vpop.eup %5013  ;;  %v689_v0 = vsub.f32 1.5, %v688_v30 }
 0x1dc   :  { %v706_v57 = vmul.f32 %v6233_v12, %v6224_v53  ;;  %vm712_vm14 = vweird.f32 %v6233_v12 }
 0x1dd   :  { %5015 = vrsqrt.f32 %v6228_v26  ;;  %vm6295_vm3 = vmor %vm711_vm2, %vm712_vm14  ;;  %vm721_vm5 = vweird.f32 %v6228_v26 }
 0x1de   :  { %v707_v36 = vmul.f32 %v6233_v12, %v706_v57  ;;  %v690_v57 = vmul.f32 %v5010_v10, %v689_v0 }
 0x1e0   :  { %v549_v11 = vpop.xlane.xlu2 %548  ;;  %v708_v23 = vmul.f32 0.5, %v707_v36 }
 0x1e1   :  { %v583_v54 = vmul.f32 %v549_v11, %v5845_v32 }
 0x1e2   :  { %v709_v9 = vsub.f32 1.5, %v708_v23 }
 0x1e3   :  { %v6237_v62 = vpop.eup %5015  ;;  %v6241_v61 = vadd.f32 1e-05, %v583_v54  ;;  %v699_v54 = vsub.f32 1.5, %v698_v37 }
 0x1e4   :  { %v716_v35 = vmul.f32 %v6237_v62, %v6228_v26  ;;  %v710_v23 = vmul.f32 %v6233_v12, %v709_v9  ;;  %vm722_vm4 = vweird.f32 %v6237_v62  ;;  %v1118_v59 = vpop.f32.mrf.mxu1 }
 0x1e5   :  { %5017 = vrsqrt.f32 %v6241_v61  ;;  %v700_v36 = vmul.f32 %v6231_v5, %v699_v54  ;;  %vm6312_vm6 = vmor %vm721_vm5, %vm722_vm4  ;;  %vm861_vm7 = vweird.f32 %v6241_v61 }
 0x1e6   :  { %v552_v28 = vpop.xlane.xlu0 %551  ;;  %v717_v56 = vmul.f32 %v6237_v62, %v716_v35 }
 0x1e7   :  { %v584_v60 = vmul.f32 %v552_v28, %v5845_v32  ;;  %v704_v9 = vsel %vm6283_vm15, %v6231_v5, %v700_v36 }
 0x1e8   :  { %v510_v44 = vpop.xlane.xlu2 %509  ;;  %v718_v28 = vmul.f32 0.5, %v717_v56  ;;  %v694_v56 = vsel %vm6259_vm12, %v5010_v10, %v690_v57 }
 0x1e9   :  { %v6249_v13 = vadd.f32 1e-05, %v584_v60  ;;  %v570_v11 = vmul.f32 %v510_v44, %v5845_v32  ;;  %v902_v42 = vmul.f32 %v694_v56, %v5904_v43  ;;  %v714_v43 = vsel %vm6295_vm3, %v6233_v12, %v710_v23 }
 0x1ea   :  { %v719_v0 = vsub.f32 1.5, %v718_v28  ;;  %v904_v23 = vmul.f32 %v714_v43, %v5920_v40 }
 0x1eb   :  { %5019 = vrsqrt.f32 %v6249_v13  ;;  %v6254_v45 = vpop.eup %5017  ;;  %v6256_v27 = vadd.f32 1e-05, %v570_v11  ;;  %vm871_vm9 = vweird.f32 %v6249_v13 }
 0x1ec   :  { %v856_v60 = vmul.f32 %v6254_v45, %v6241_v61  ;;  %vm862_vm8 = vweird.f32 %v6254_v45 }
 0x1ed   :  { %5021 = vrsqrt.f32 %v6256_v27  ;;  %vm6378_vm10 = vmor %vm861_vm7, %vm862_vm8  ;;  %vm731_vm13 = vweird.f32 %v6256_v27 }
 0x1f0   :  { %v513_v46 = vpop.xlane.xlu2 %512  ;;  %v555_v30 = vpop.xlane.xlu0 %554 }
 0x1f1   :  { %v571_v44 = vmul.f32 %v513_v46, %v5845_v32  ;;  %v585_v37 = vmul.f32 %v555_v30, %v5845_v32  ;;  %v6275_v11 = vpop.eup %5019  ;;  %v857_v46 = vmul.f32 %v6254_v45, %v856_v60  ;;  %v720_v30 = vmul.f32 %v6237_v62, %v719_v0 }
 0x1f2   :  { %v866_v53 = vmul.f32 %v6275_v11, %v6249_v13  ;;  %vm872_vm11 = vweird.f32 %v6275_v11 }
 0x1f3   :  { %v6279_v54 = vadd.f32 1e-05, %v585_v37  ;;  %v6289_v10 = vadd.f32 1e-05, %v571_v44  ;;  %v6308_v5 = vpop.eup %5021  ;;  %v903_v37 = vmul.f32 %v704_v9, %v5913_v31  ;;  %v858_v0 = vmul.f32 0.5, %v857_v46  ;;  %vm6430_vm15 = vmor %vm871_vm9, %vm872_vm11 }
 0x1f4   :  { %v867_v12 = vmul.f32 %v6275_v11, %v866_v53  ;;  %v724_v26 = vsel %vm6312_vm6, %v6237_v62, %v720_v30  ;;  %v934_v31 = vmul.f32 %v6159_v17, %v902_v42  ;;  %v726_v9 = vmul.f32 %v6308_v5, %v6256_v27 }
 0x1f5   :  { %5023 = vrsqrt.f32 %v6279_v54  ;;  %v935_v53 = vmul.f32 %v6159_v17, %v903_v37  ;;  %v905_v40 = vmul.f32 %v724_v26, %v5927_v58  ;;  %v936_v30 = vmul.f32 %v6159_v17, %v904_v23 }
 0x1f6   :  { %v558_v35 = vpop.xlane.xlu1 %557  ;;  %5025 = vrsqrt.f32 %v6289_v10  ;;  %v6341_v43 = vadd.f32 %v6173_v51, %v934_v31  ;;  %v727_v3 = vmul.f32 %v6308_v5, %v726_v9  ;;  %vm881_vm2 = vweird.f32 %v6279_v54 }
 0x1f7   :  { %v586_v60 = vmul.f32 %v558_v35, %v5845_v32  ;;  %v6353_v23 = vadd.f32 %v6173_v51, %v935_v53  ;;  %v6367_v7 = vadd.f32 %v6173_v51, %v936_v30  ;;  %vm732_vm3 = vweird.f32 %v6308_v5 }
 0x1f8   :  { %v516_v36 = vpop.xlane.xlu2 %515  ;;  %v495_v44 = vpop.xlane.xlu0 %494  ;;  %vm741_vm6 = vweird.f32 %v6289_v10 }
 0x1f9   :  { %v6317_v56 = vadd.f32 1e-05, %v586_v60  ;;  %v572_v28 = vmul.f32 %v516_v36, %v5845_v32  ;;  %v565_v57 = vmul.f32 %v495_v44, %v5845_v32  ;;  %v859_v60 = vsub.f32 1.5, %v858_v0 }
 0x1fa   :  { %v868_v44 = vmul.f32 0.5, %v867_v12 }
 0x1fb   :  { %5027 = vrsqrt.f32 %v6317_v56  ;;  %v6329_v46 = vadd.f32 1e-05, %v572_v28  ;;  %v6332_v35 = vpop.eup %5023  ;;  %v6347_v0 = vadd.f32 1e-05, %v565_v57  ;;  %v860_v12 = vmul.f32 %v6254_v45, %v859_v60 }
 0x1fc   :  { %v876_v62 = vmul.f32 %v6332_v35, %v6279_v54  ;;  %v6343_v36 = vpop.eup %5025  ;;  %v937_v57 = vmul.f32 %v6159_v17, %v905_v40  ;;  %vm882_vm12 = vweird.f32 %v6332_v35  ;;  %vm891_vm5 = vweird.f32 %v6317_v56 }
 0x1fd   :  { %5029 = vrsqrt.f32 %v6329_v46  ;;  %v736_v52 = vmul.f32 %v6343_v36, %v6289_v10  ;;  %v864_v21 = vsel %vm6378_vm10, %v6254_v45, %v860_v12  ;;  %vm6441_vm4 = vmor %vm881_vm2, %vm882_vm12  ;;  %vm751_vm9 = vweird.f32 %v6329_v46 }
 0x1fe   :  { %v543_v42 = vpop.xlane.xlu1 %542  ;;  %v877_v37 = vmul.f32 %v6332_v35, %v876_v62  ;;  %5031 = vrsqrt.f32 %v6347_v0  ;;  %v919_v54 = vmul.f32 %v864_v21, %v5934_v2  ;;  %vm742_vm10 = vweird.f32 %v6343_v36  ;;  %vm6516_vm12 = vmor %vm731_vm13, %vm732_vm3 }
 0x1ff   :  { %v581_v58 = vmul.f32 %v543_v42, %v5845_v32  ;;  %v737_v16 = vmul.f32 %v6343_v36, %v736_v52  ;;  %vm6545_vm13 = vmor %vm741_vm6, %vm742_vm10 }
 0x200   :  { %v546_v28 = vpop.xlane.xlu2 %545  ;;  %v1183_v26 = vpop.xlane.xlu0 %1182  ;;  %v878_v9 = vmul.f32 0.5, %v877_v37  ;;  %v869_v37 = vsub.f32 1.5, %v868_v44 }
 0x201   :  { %v6355_v31 = vpop.eup %5027  ;;  %v582_v62 = vmul.f32 %v546_v28, %v5845_v32  ;;  %v1259_v53 = vmul.f32 %v1183_v26, %v5845_v32  ;;  %v728_v28 = vmul.f32 0.5, %v727_v3  ;;  %v6386_v3 = vadd.f32 1e-05, %v581_v58 }
 0x202   :  { %v886_v42 = vmul.f32 %v6355_v31, %v6317_v56  ;;  %v879_v26 = vsub.f32 1.5, %v878_v9  ;;  %v6408_v8 = vmul.f32 %v6275_v11, %v869_v37  ;;  %vm892_vm14 = vweird.f32 %v6355_v31 }
 0x203   :  { %v6369_v60 = vpop.eup %5029  ;;  %v6372_v40 = vadd.f32 1e-05, %v582_v62  ;;  %v6391_v62 = vld [vmem:[%s9840_s3] ss:$0 sm:$0xff]  ;;  %v6405_v1 = vsub.f32 %v6008_v18, %v1259_v53  ;;  %vm893_vm7 = vmor %vm891_vm5, %vm892_vm14  ;;  %vm841_vm14 = vweird.f32 %v6386_v3 }
 0x204   :  { %v887_v30 = vmul.f32 %v6355_v31, %v886_v42  ;;  %v746_v44 = vmul.f32 %v6369_v60, %v6329_v46  ;;  %v6394_v61 = vadd.f32 %v6391_v62, %v1118_v59  ;;  %v6400_v42 = vadd.f32 %v6173_v51, %v937_v57 }
 0x205   :  { %9941 = vst [vmem:[#allocation16_spill] sm:$0xff] %v6405_v1  ;;  %v729_v59 = vsub.f32 1.5, %v728_v28  ;;  %5033 = vrsqrt.f32 %v6372_v40  ;;  %v880_v18 = vmul.f32 %v6332_v35, %v879_v26  ;;  %v1315_v28 = vmul.f32 %v6405_v1, %v6405_v1 }
 0x206   :  { %9940 = vst [vmem:[#allocation15_spill] sm:$0xff] %v6394_v61  ;;  %v888_v58 = vmul.f32 0.5, %v887_v30  ;;  %v747_v9 = vmul.f32 %v6369_v60, %v746_v44  ;;  %v540_v15 = vpop.xlane.xlu1 %539  ;;  %5035 = vrsqrt.f32 %v6386_v3  ;;  %v6414_v30 = vpop.eup %5031  ;;  %v874_v1 = vsel %vm6430_vm15, %v6275_v11, %v6408_v8  ;;  %v107_v8 = vld [vmem:[%s9845_s4 + $0x50] sm:$0xff] }
 0x207   :  { %v580_v47 = vmul.f32 %v540_v15, %v5845_v32  ;;  %v738_v15 = vmul.f32 0.5, %v737_v16  ;;  %v676_v13 = vmul.f32 %v6414_v30, %v6347_v0  ;;  %v884_v56 = vsel %vm6441_vm4, %v6332_v35, %v880_v18 }
 0x208   :  { %v889_v45 = vsub.f32 1.5, %v888_v58  ;;  %v748_v12 = vmul.f32 0.5, %v747_v9  ;;  %v492_v52 = vpop.xlane.xlu2 %491  ;;  %v537_v57 = vpop.xlane.xlu0 %536  ;;  %vm752_vm8 = vweird.f32 %v6369_v60  ;;  %v921_v26 = vmul.f32 %v884_v56, %v5966_v55 }
 0x209   :  { %v6417_v53 = vadd.f32 1e-05, %v580_v47  ;;  %v564_v37 = vmul.f32 %v492_v52, %v5845_v32  ;;  %v579_v58 = vmul.f32 %v537_v57, %v5845_v32  ;;  %v1349_v52 = vsel %vm299_vm1, %v1315_v28, 0.0  ;;  %vm6502_vm11 = vmor %vm751_vm9, %vm752_vm8 }
 0x20a   :  { %v890_v44 = vmul.f32 %v6355_v31, %v889_v45  ;;  %v749_v9 = vsub.f32 1.5, %v748_v12  ;;  %v6452_v12 = vmul.f32 %v6308_v5, %v729_v59  ;;  %v739_v2 = vsub.f32 1.5, %v738_v15  ;;  %1350 = vadd.xlane.f32.xlu2 %v1349_v52  ;;  %v75_v15 = vld [vmem:[%s9842_s1 + $0x90] sm:$0xff] }
 0x20b   :  { %5037 = vrsqrt.f32 %v6417_v53  ;;  %v6436_v16 = vadd.f32 1e-05, %v564_v37  ;;  %v6449_v45 = vpop.eup %5033  ;;  %v6464_v21 = vadd.f32 1e-05, %v579_v58  ;;  %v677_v11 = vmul.f32 %v6414_v30, %v676_v13  ;;  %4766 = vmatmul.msk.f32.gmra.mxu3 %vm113_vm0, %v75_v15 }
 0x20c   :  { %v6462_v57 = vpop.eup %5035  ;;  %v894_v37 = vsel %vm893_vm7, %v6355_v31, %v890_v44  ;;  %v750_v28 = vmul.f32 %v6369_v60, %v749_v9  ;;  %v108_v31 = vld [vmem:[%s9845_s4 + $0x58] sm:$0xff]  ;;  %v846_v44 = vmul.f32 %v6449_v45, %v6372_v40  ;;  %v1202_v56 = vsel %vm299_vm1, %v6394_v61, 0.0 }
 0x20d   :  { %5039 = vrsqrt.f32 %v6436_v16  ;;  %v922_v18 = vmul.f32 %v894_v37, %v5980_v20  ;;  %1852 = vmatpush.msrb.mxu2 %v108_v31  ;;  %v836_v47 = vmul.f32 %v6462_v57, %v6386_v3  ;;  %1953 = vmatpush.msrb.mxu3 %v108_v31  ;;  %v951_v37 = vmul.f32 %v6159_v17, %v919_v54 }
 0x20e   :  { %v486_v59 = vpop.xlane.xlu1 %485  ;;  %5041 = vrsqrt.f32 %v6464_v21  ;;  %v740_v15 = vmul.f32 %v6343_v36, %v739_v2  ;;  %v847_v54 = vmul.f32 %v6449_v45, %v846_v44  ;;  %v734_v2 = vsel %vm6516_vm12, %v6308_v5, %v6452_v12 }
 0x20f   :  { %v562_v35 = vmul.f32 %v486_v59, %v5845_v32  ;;  %v954_v13 = vmul.f32 %v6159_v17, %v922_v18  ;;  %v920_v59 = vmul.f32 %v874_v1, %v5945_v33  ;;  %1853 = vmatpush.msrb.mxu2 %v107_v8  ;;  %v754_v33 = vsel %vm6502_vm11, %v6369_v60, %v750_v28 }
 0x210   :  { %v489_v20 = vpop.xlane.xlu2 %488  ;;  %v534_v58 = vpop.xlane.xlu0 %533  ;;  %1954 = vmatpush.msrb.mxu3 %v107_v8  ;;  %v6527_v1 = vmul.f32 0.5, %v677_v11  ;;  %v953_v60 = vmul.f32 %v6159_v17, %v921_v26  ;;  %v908_v5 = vmul.f32 %v754_v33, %v5985_v6  ;;  %v6554_v44 = vadd.f32 %v6173_v51, %v951_v37 }
 0x211   :  { %v6490_v9 = vpop.eup %5037  ;;  %v563_v52 = vmul.f32 %v489_v20, %v5845_v32  ;;  %v6521_v31 = vadd.f32 1e-05, %v562_v35  ;;  %v578_v20 = vmul.f32 %v534_v58, %v5845_v32  ;;  %v837_v35 = vmul.f32 %v6462_v57, %v836_v47 }
 0x212   :  { %v826_v27 = vmul.f32 %v6490_v9, %v6417_v53  ;;  %v986_v55 = vadd.f32 %v6173_v51, %v954_v13  ;;  %1203 = vadd.xlane.f32.xlu2 %v1202_v56  ;;  %v952_v11 = vmul.f32 %v6159_v17, %v920_v59  ;;  %v744_v6 = vsel %vm6545_vm13, %v6343_v36, %v740_v15  ;;  %v76_v13 = vld [vmem:[%s9842_s1 + $0x98] sm:$0xff]  ;;  %v105_v56 = vld [vmem:[%s9845_s4 + $0x40] sm:$0xff] }
 0x213   :  { %v6510_v18 = vpop.eup %5039  ;;  %v6537_v58 = vadd.f32 1e-05, %v563_v52  ;;  %5043 = vrsqrt.f32 %v6521_v31  ;;  %v6559_v10 = vadd.f32 1e-05, %v578_v20  ;;  %v106_v52 = vld [vmem:[%s9845_s4 + $0x48] sm:$0xff]  ;;  %v848_v59 = vmul.f32 0.5, %v847_v54  ;;  %4767 = vmatmul.msk.f32.gmra.mxu3 %vm113_vm0, %v76_v13 }
 0x214   :  { %v666_v8 = vmul.f32 %v6510_v18, %v6436_v16  ;;  %v6556_v26 = vpop.eup %5041  ;;  %4876 = vmatpush.xpose.msk.msrb.mxu1 %vm299_vm1, %v986_v55  ;;  %v827_v37 = vmul.f32 %v6490_v9, %v826_v27  ;;  %v940_v46 = vmul.f32 %v6159_v17, %v908_v5  ;;  %v906_v36 = vmul.f32 %v734_v2, %v5942_v29  ;;  %v104_v54 = vld [vmem:[%s9845_s4 + $0x38] sm:$0xff]  ;;  %v77_v13 = vld [vmem:[%s9842_s1 + $0xa0] sm:$0xff] }
 0x215   :  { %1854 = vmatpush.msrb.mxu2 %v106_v52  ;;  %v679_v15 = vsub.f32 1.5, %v6527_v1  ;;  %v838_v55 = vmul.f32 0.5, %v837_v35  ;;  %5045 = vrsqrt.f32 %v6537_v58  ;;  %v985_v28 = vadd.f32 %v6173_v51, %v953_v60  ;;  %1955 = vmatpush.msrb.mxu3 %v106_v52 }
 0x216   :  { %v483_v12 = vpop.xlane.xlu1 %482  ;;  %v667_v27 = vmul.f32 %v6510_v18, %v666_v8  ;;  %v816_v29 = vmul.f32 %v6556_v26, %v6464_v21  ;;  %v907_v5 = vmul.f32 %v744_v6, %v5960_v41  ;;  %5047 = vrsqrt.f32 %v6559_v10  ;;  %v103_v41 = vld [vmem:[%s9845_s4 + $0x30] sm:$0xff] }
 0x217   :  { %v561_v47 = vmul.f32 %v483_v12, %v5845_v32  ;;  %1855 = vmatpush.msrb.mxu2 %v105_v56  ;;  %v972_v1 = vadd.f32 %v6173_v51, %v940_v46  ;;  %1956 = vmatpush.msrb.mxu3 %v105_v56  ;;  %v849_v8 = vsub.f32 1.5, %v848_v59  ;;  %v828_v12 = vmul.f32 0.5, %v827_v37 }
 0x218   :  { %v1186_v20 = vpop.xlane.xlu2 %1185  ;;  %v480_v33 = vpop.xlane.xlu0 %479  ;;  %4877 = vmatpush.xpose.msk.msrb.mxu1 %vm299_vm1, %v985_v28  ;;  %v984_v52 = vadd.f32 %v6173_v51, %v952_v11  ;;  %vm842_vm15 = vweird.f32 %v6462_v57  ;;  %vm851_vm2 = vweird.f32 %v6372_v40  ;;  %vm852_vm3 = vweird.f32 %v6449_v45  ;;  %v102_v11 = vld [vmem:[%s9845_s4 + $0x28] sm:$0xff] }
 0x219   :  { %v560_v2 = vmul.f32 %v480_v33, %v5845_v32  ;;  %v6592_v35 = vadd.f32 1e-05, %v561_v47  ;;  %v1260_v60 = vmul.f32 %v1186_v20, %v5845_v32  ;;  %1856 = vmatpush.msrb.mxu2 %v104_v54  ;;  %v6601_v6 = vpop.eup %5043  ;;  %v839_v47 = vsub.f32 1.5, %v838_v55  ;;  %4834 = vmatpush.xpose.msk.msrb.mxu0 %vm299_vm1, %v972_v1  ;;  %vm6655_vm6 = vmor %vm851_vm2, %vm852_vm3 }
 0x21a   :  { %1957 = vmatpush.msrb.mxu3 %v104_v54  ;;  %v6614_v56 = vmul.f32 %v6414_v30, %v679_v15  ;;  %v817_v59 = vmul.f32 %v6556_v26, %v816_v29  ;;  %v939_v46 = vmul.f32 %v6159_v17, %v907_v5  ;;  %v668_v55 = vmul.f32 0.5, %v667_v27  ;;  %v1121_v54 = vpop.f32.mrf.mxu1  ;;  %v101_v29 = vld [vmem:[%s9845_s4 + $0x20] sm:$0xff]  ;;  %vm6688_vm9 = vmor %vm841_vm14, %vm842_vm15 }
 0x21b   :  { %v6617_v37 = vadd.f32 1e-05, %v560_v2  ;;  %1857 = vmatpush.msrb.mxu2 %v103_v41  ;;  %v6620_v33 = vpop.eup %5045  ;;  %5049 = vrsqrt.f32 %v6592_v35  ;;  %v6624_v28 = vsub.f32 %v6104_v34, %v1260_v60  ;;  %v850_v2 = vmul.f32 %v6449_v45, %v849_v8  ;;  %4768 = vmatmul.msk.f32.gmra.mxu3 %vm113_vm0, %v77_v13 }
 0x21c   :  { %4878 = vmatpush.xpose.msk.msrb.mxu1 %vm299_vm1, %v984_v52  ;;  %v829_v5 = vsub.f32 1.5, %v828_v12  ;;  %v646_v27 = vmul.f32 %v6601_v6, %v6521_v31  ;;  %v6636_v60 = vpop.eup %5047  ;;  %v840_v52 = vmul.f32 %v6462_v57, %v839_v47  ;;  %vm832_vm4 = vweird.f32 %v6490_v9  ;;  %v100_v12 = vld [vmem:[%s9845_s4 + $0x18] sm:$0xff]  ;;  %1958 = vmatpush.msrb.mxu3 %v103_v41 }
 0x21d   :  { %9952 = vst [vmem:[#allocation17_spill] sm:$0xff] %v6624_v28  ;;  %5051 = vrsqrt.f32 %v6617_v37  ;;  %1858 = vmatpush.msrb.mxu2 %v102_v11  ;;  %v938_v8 = vmul.f32 %v6159_v17, %v906_v36  ;;  %v818_v61 = vmul.f32 0.5, %v817_v59  ;;  %vm822_vm5 = vweird.f32 %v6556_v26 }
 0x21e   :  { %v1189_v20 = vpop.xlane.xlu1 %1188  ;;  %v656_v13 = vmul.f32 %v6620_v33, %v6537_v58  ;;  %vm831_vm7 = vweird.f32 %v6417_v53  ;;  %v669_v41 = vsub.f32 1.5, %v668_v55  ;;  %v6668_v40 = vmul.f32 %v6490_v9, %v829_v5  ;;  %1959 = vmatpush.msrb.mxu3 %v102_v11  ;;  %v97_v5 = vld [vmem:[%s9845_s4] sm:$0xff] }
 0x21f   :  { %v1261_v15 = vmul.f32 %v1189_v20, %v5845_v32  ;;  %v971_v20 = vadd.f32 %v6173_v51, %v939_v46  ;;  %1859 = vmatpush.msrb.mxu2 %v101_v29  ;;  %vm821_vm8 = vweird.f32 %v6464_v21  ;;  %v647_v46 = vmul.f32 %v6601_v6, %v646_v27  ;;  %vm6754_vm11 = vmor %vm831_vm7, %vm832_vm4 }
 0x220   :  { %v531_v1 = vpop.xlane.xlu2 %530  ;;  %v477_v34 = vpop.xlane.xlu0 %476  ;;  %4879 = vmatpush.xpose.msk.msrb.mxu1 %vm299_vm1, %v6554_v44  ;;  %v806_v55 = vmul.f32 %v6636_v60, %v6559_v10  ;;  %v854_v44 = vsel %vm6655_vm6, %v6449_v45, %v850_v2  ;;  %v970_v27 = vadd.f32 %v6173_v51, %v938_v8  ;;  %v819_v36 = vsub.f32 1.5, %v818_v61  ;;  %1960 = vmatpush.msrb.mxu3 %v101_v29  ;;  %vm6772_vm14 = vmor %vm821_vm8, %vm822_vm5 }
 0x221   :  { %v6649_v24 = vsub.f32 %v6126_v50, %v1261_v15  ;;  %4835 = vmatpush.xpose.msk.msrb.mxu0 %vm299_vm1, %v971_v20  ;;  %v1316_v50 = vmul.f32 %v6624_v28, %v6624_v28  ;;  %v577_v47 = vmul.f32 %v531_v1, %v5845_v32  ;;  %v559_v59 = vmul.f32 %v477_v34, %v5845_v32  ;;  %v6680_v15 = vld [vmem:[%s9845_s4 + $0x10] sm:$0xff]  ;;  %v6682_v1 = vpop.eup %5049 }
 0x222   :  { %1860 = vmatpush.msrb.mxu2 %v100_v12  ;;  %v918_v28 = vmul.f32 %v854_v44, %v5998_v63  ;;  %v844_v8 = vsel %vm6688_vm9, %v6462_v57, %v840_v52  ;;  %v657_v11 = vmul.f32 %v6620_v33, %v656_v13  ;;  %v6714_v63 = vadd.f32 %v6391_v62, %v1121_v54  ;;  %v1124_v44 = vpop.f32.mrf.mxu1 }
 0x223   :  { %v1352_v45 = vsel %vm299_vm1, %v1316_v50, 0.0  ;;  %v6694_v2 = vadd.f32 1e-05, %v577_v47  ;;  %v6696_v34 = vadd.f32 1e-05, %v559_v59  ;;  %v6698_v20 = vpop.eup %5051  ;;  %v1317_v49 = vmul.f32 %v6649_v24, %v6649_v24  ;;  %1961 = vmatpush.msrb.mxu3 %v100_v12 }
 0x224   :  { %1353 = vadd.xlane.f32.xlu1 %v1352_v45  ;;  %1861 = vmatpush.msrb.mxu2 %v6680_v15  ;;  %v6708_v50 = vmul.f32 %v6510_v18, %v669_v41  ;;  %v807_v61 = vmul.f32 %v6636_v60, %v806_v55  ;;  %v636_v57 = vmul.f32 %v6682_v1, %v6592_v35  ;;  %v98_v55 = vld [vmem:[%s9845_s4 + $0x8] sm:$0xff]  ;;  %v6736_v45 = vmul.f32 0.5, %v647_v46 }
 0x225   :  { %4836 = vmatpush.xpose.msk.msrb.mxu0 %vm299_vm1, %v970_v27  ;;  %5053 = vrsqrt.f32 %v6694_v2  ;;  %v950_v52 = vmul.f32 %v6159_v17, %v918_v28  ;;  %v626_v13 = vmul.f32 %v6698_v20, %v6617_v37  ;;  %v1355_v54 = vsel %vm299_vm1, %v1317_v49, 0.0  ;;  %v78_v28 = vld [vmem:[%s9842_s1 + $0xa8] sm:$0xff]  ;;  %1962 = vmatpush.msrb.mxu3 %v6680_v15 }
 0x226   :  { %v525_v3 = vpop.xlane.xlu1 %524  ;;  %5055 = vrsqrt.f32 %v6696_v34  ;;  %v917_v29 = vmul.f32 %v844_v8, %v5992_v38  ;;  %v820_v27 = vmul.f32 %v6556_v26, %v819_v36  ;;  %1356 = vadd.xlane.f32.xlu0 %v1355_v54  ;;  %1862 = vmatpush.msrb.mxu2 %v98_v55  ;;  %vm682_vm10 = vweird.f32 %v6414_v30 }
 0x227   :  { %v575_v59 = vmul.f32 %v525_v3, %v5845_v32  ;;  %v982_v38 = vadd.f32 %v6173_v51, %v950_v52  ;;  %v1205_v12 = vsel %vm299_vm1, %v6714_v63, 0.0  ;;  %4769 = vmatmul.msk.f32.gmra.mxu3 %vm113_vm0, %v78_v28  ;;  %vm812_vm12 = vweird.f32 %v6636_v60 }
 0x228   :  { %v528_v41 = vpop.xlane.xlu2 %527  ;;  %v1192_v47 = vpop.xlane.xlu0 %1191  ;;  %v949_v8 = vmul.f32 %v6159_v17, %v917_v29  ;;  %1863 = vmatpush.msrb.mxu2 %v97_v5  ;;  %vm681_vm13 = vweird.f32 %v6347_v0  ;;  %v834_v54 = vsel %vm6754_vm11, %v6490_v9, %v6668_v40  ;;  %v5398_v29 = vld [vmem:[%s9841_s0] sm:$0xff]  ;;  %vm811_vm15 = vweird.f32 %v6559_v10  ;;  %1963 = vmatpush.msrb.mxu3 %v98_v55 }
 0x229   :  { %v576_v49 = vmul.f32 %v528_v41, %v5845_v32  ;;  %4837 = vmatpush.xpose.msk.msrb.mxu0 %vm299_vm1, %v6400_v42  ;;  %v6743_v3 = vadd.f32 1e-05, %v575_v59  ;;  %v1262_v46 = vmul.f32 %v1192_v47, %v5845_v32  ;;  %v808_v42 = vmul.f32 0.5, %v807_v61  ;;  %4880 = vmatpush.xpose.msk.msrb.mxu1 %vm299_vm1, %v982_v38  ;;  %vm6854_vm4 = vmor %vm681_vm13, %vm682_vm10 }
 0x22a   :  { %v6763_v41 = vadd.f32 %v6391_v62, %v1124_v44  ;;  %v637_v61 = vmul.f32 %v6682_v1, %v636_v57  ;;  %v627_v59 = vmul.f32 %v6698_v20, %v626_v13  ;;  %4776 = vmatmul.msk.f32.vlgmr.msrb.gmra.mxu2 %vm113_vm0, %v5398_v29  ;;  %v981_v13 = vadd.f32 %v6173_v51, %v949_v8  ;;  %v79_v8 = vld [vmem:[%s9842_s1 + $0xb0] sm:$0xff]  ;;  %vm6872_vm8 = vmor %vm811_vm15, %vm812_vm12 }
 0x22b   :  { %v6760_v52 = vadd.f32 1e-05, %v576_v49  ;;  %v6765_v47 = vpop.eup %5053  ;;  %5057 = vrsqrt.f32 %v6743_v3  ;;  %v824_v40 = vsel %vm6772_vm14, %v6556_v26, %v820_v27  ;;  %vm672_vm2 = vweird.f32 %v6510_v18  ;;  %1964 = vmatpush.msrb.mxu3 %v97_v5 }
 0x22c   :  { %v6788_v21 = vpop.eup %5055  ;;  %v796_v57 = vmul.f32 %v6765_v47, %v6694_v2  ;;  %1206 = vadd.xlane.f32.xlu1 %v1205_v12  ;;  %v649_v15 = vsub.f32 1.5, %v6736_v45  ;;  %v658_v44 = vmul.f32 0.5, %v657_v11  ;;  %v6805_v38 = vsub.f32 %v6165_v4, %v1262_v46 }
 0x22d   :  { %5059 = vrsqrt.f32 %v6760_v52  ;;  %v616_v28 = vmul.f32 %v6788_v21, %v6696_v34  ;;  %4838 = vmatpush.xpose.msk.msrb.mxu0 %vm299_vm1, %v6367_v7  ;;  %v809_v49 = vsub.f32 1.5, %v808_v42  ;;  %4881 = vmatpush.xpose.msk.msrb.mxu1 %vm299_vm1, %v981_v13  ;;  %v916_v26 = vmul.f32 %v834_v54, %v6022_v25 }
 0x22e   :  { %v1345_v9 = vpop.xlane.xlu1 %1344  ;;  %v1208_v11 = vsel %vm299_vm1, %v6763_v41, 0.0  ;;  %vm671_vm3 = vweird.f32 %v6436_v16  ;;  %v638_v4 = vmul.f32 0.5, %v637_v61  ;;  %v915_v7 = vmul.f32 %v824_v40, %v6034_v19 }
 0x22f   :  { %v1425_v27 = vmul.f32 %v1345_v9, %v5845_v32  ;;  %v1318_v25 = vmul.f32 %v6805_v38, %v6805_v38  ;;  %v628_v46 = vmul.f32 0.5, %v627_v59  ;;  %v797_v36 = vmul.f32 %v6765_v47, %v796_v57  ;;  %1209 = vadd.xlane.f32.xlu0 %v1208_v11  ;;  %v6832_v59 = vpop.f32.mrf.mxu3  ;;  %4770 = vmatmul.msk.f32.gmra.mxu3 %vm113_vm0, %v79_v8  ;;  %vm6912_vm11 = vmor %vm671_vm3, %vm672_vm2 }
 0x230   :  { %v1342_v45 = vpop.xlane.xlu2 %1341  ;;  %v1348_v12 = vpop.xlane.xlu0 %1347  ;;  %v948_v42 = vmul.f32 %v6159_v17, %v916_v26  ;;  %v659_v61 = vsub.f32 1.5, %v658_v44  ;;  %v617_v19 = vmul.f32 %v6788_v21, %v616_v28  ;;  %v810_v13 = vmul.f32 %v6636_v60, %v809_v49  ;;  %v5399_v49 = vld [vmem:[%s9841_s0 + $0x8] sm:$0xff] }
 0x231   :  { %v1424_v55 = vmul.f32 %v1342_v45, %v5845_v32  ;;  %v6822_v53 = vadd.f32 1e-05, %v1425_v27  ;;  %v6824_v54 = vpop.eup %5057  ;;  %4839 = vmatpush.xpose.msk.msrb.mxu0 %vm299_vm1, %v6353_v23  ;;  %v1358_v5 = vsel %vm299_vm1, %v1318_v25, 0.0  ;;  %v947_v40 = vmul.f32 %v6159_v17, %v915_v7  ;;  %v1127_v25 = vpop.f32.mrf.mxu1 }
 0x232   :  { %v980_v9 = vadd.f32 %v6173_v51, %v948_v42  ;;  %1359 = vadd.xlane.f32.xlu2 %v1358_v5  ;;  %v1426_v44 = vmul.f32 %v1348_v12, %v5845_v32  ;;  %v639_v23 = vsub.f32 1.5, %v638_v4  ;;  %v776_v28 = vmul.f32 %v6824_v54, %v6743_v3  ;;  %4777 = vmatmul.msk.f32.gmra.mxu2 %vm113_vm0, %v5399_v49  ;;  %v6886_v4 = vld [vmem:[%s9844_s7] ss:$0 sm:$0xff]  ;;  %v80_v12 = vld [vmem:[%s9842_s1 + $0xb8] sm:$0xff] }
 0x233   :  { %v6829_v29 = vadd.f32 1e-05, %v1424_v55  ;;  %v6835_v57 = vpop.eup %5059  ;;  %5061 = vrsqrt.f32 %v6822_v53  ;;  %v6859_v51 = vmul.f32 %v6601_v6, %v649_v15  ;;  %vm652_vm5 = vweird.f32 %v6601_v6 }
 0x234   :  { %v786_v26 = vmul.f32 %v6835_v57, %v6760_v52  ;;  %vm661_vm6 = vweird.f32 %v6537_v58  ;;  %vm662_vm7 = vweird.f32 %v6620_v33  ;;  %v629_v27 = vsub.f32 1.5, %v628_v46  ;;  %4882 = vmatpush.xpose.msk.msrb.mxu1 %vm299_vm1, %v980_v9 }
 0x235   :  { %v798_v11 = vmul.f32 0.5, %v797_v36  ;;  %v6866_v45 = vmul.f32 %v6620_v33, %v659_v61  ;;  %v6876_v15 = vmul.f32 0.5, %v617_v19  ;;  %4840 = vmatpush.xpose.msk.msrb.mxu0 %vm299_vm1, %v6341_v43  ;;  %5063 = vrsqrt.f32 %v6829_v29 }
 0x236   :  { %v787_v8 = vmul.f32 %v6835_v57, %v786_v26  ;;  %vm651_vm9 = vweird.f32 %v6521_v31  ;;  %v979_v10 = vadd.f32 %v6886_v4, %v947_v40  ;;  %v6889_v7 = vadd.f32 1e-05, %v1426_v44 }
 0x237   :  { %v684_v55 = vsel %vm6854_vm4, %v6414_v30, %v6614_v56  ;;  %v814_v43 = vsel %vm6872_vm8, %v6636_v60, %v810_v13  ;;  %v6902_v46 = vmul.f32 %v6682_v1, %v639_v23  ;;  %vm801_vm10 = vweird.f32 %v6694_v2  ;;  %4771 = vmatmul.msk.f32.gmra.mxu3 %vm113_vm0, %v80_v12  ;;  %v1133_v0 = vpop.f32.mrf.mxu3  ;;  %vm6967_vm4 = vmor %vm661_vm6, %vm662_vm7 }
 0x238   :  { %v777_v36 = vmul.f32 %v6824_v54, %v776_v28  ;;  %v901_v42 = vmul.f32 %v684_v55, %v5973_v48  ;;  %v914_v30 = vmul.f32 %v814_v43, %v6066_v39  ;;  %v6917_v60 = vmul.f32 %v6698_v20, %v629_v27  ;;  %4883 = vmatpush.xpose.msk.msrb.mxu1 %vm299_vm1, %v979_v10  ;;  %v1198_v48 = vpop.xlane.xlu1 %1197  ;;  %v6927_v39 = vld [vmem:[%s9843_s6] ss:$0 sm:$0xff]  ;;  %v1195_v26 = vpop.xlane.xlu2 %1194 }
 0x239   :  { %v799_v61 = vsub.f32 1.5, %v798_v11  ;;  %vm802_vm12 = vweird.f32 %v6765_v47  ;;  %v788_v19 = vmul.f32 0.5, %v787_v8  ;;  %v6921_v5 = vpop.eup %5061  ;;  %vm642_vm13 = vweird.f32 %v6682_v1  ;;  %v1201_v49 = vpop.xlane.xlu0 %1200 }
 0x23a   :  { %v933_v16 = vmul.f32 %v6927_v39, %v901_v42  ;;  %v946_v13 = vmul.f32 %v6927_v39, %v914_v30  ;;  %v6932_v9 = vadd.f32 %v6391_v62, %v1127_v25  ;;  %v674_v40 = vsel %vm6912_vm11, %v6510_v18, %v6708_v50  ;;  %vm6996_vm11 = vmor %vm651_vm9, %vm652_vm5 }
 0x23b   :  { %vm632_vm14 = vweird.f32 %v6698_v20  ;;  %v619_v44 = vsub.f32 1.5, %v6876_v15  ;;  %v1491_v23 = vmul.f32 %v6921_v5, %v6822_v53  ;;  %5065 = vrsqrt.f32 %v6889_v7  ;;  %v6945_v17 = vpop.eup %5063  ;;  %v5402_v15 = vld [vmem:[%s9841_s0 + $0x10] sm:$0xff]  ;;  %vm7013_vm5 = vmor %vm801_vm10, %vm802_vm12 }
 0x23c   :  { %v900_v28 = vmul.f32 %v674_v40, %v6031_v14  ;;  %vm641_vm15 = vweird.f32 %v6592_v35  ;;  %v6948_v18 = vmul.f32 0.5, %v777_v36  ;;  %v965_v50 = vadd.f32 %v6886_v4, %v933_v16  ;;  %4778 = vmatmul.msk.f32.gmra.mxu2 %vm113_vm0, %v5402_v15  ;;  %v9971_v16 = vld [vmem:[#allocation13_spill] sm:$0xff]  ;;  %v9976_v15 = vld [vmem:[#allocation2_spill] sm:$0xff] }
 0x23d   :  { %v978_v27 = vadd.f32 %v6886_v4, %v946_v13  ;;  %v1264_v11 = vmul.f32 %v1198_v48, %v5845_v32  ;;  %vm631_vm2 = vweird.f32 %v6617_v37  ;;  %v800_v14 = vmul.f32 %v6765_v47, %v799_v61  ;;  %vm7050_vm10 = vmor %vm641_vm15, %vm642_vm13 }
 0x23e   :  { %v789_v8 = vsub.f32 1.5, %v788_v19  ;;  %vm792_vm3 = vweird.f32 %v6835_v57  ;;  %v1481_v10 = vmul.f32 %v6945_v17, %v6829_v29  ;;  %v932_v55 = vmul.f32 %v6927_v39, %v900_v28  ;;  %4841 = vmatpush.xpose.msk.msrb.mxu0 %vm299_vm1, %v965_v50  ;;  %v9975_v28 = vld [vmem:[#allocation3_spill] sm:$0xff]  ;;  %vm7063_vm12 = vmor %vm631_vm2, %vm632_vm14 }
 0x23f   :  { %4884 = vmatpush.xpose.msk.msrb.mxu1 %vm299_vm1, %v978_v27  ;;  %v6975_v25 = vsub.f32 %v6205_v22, %v1264_v11  ;;  %v1263_v12 = vmul.f32 %v1195_v26, %v5845_v32  ;;  %v1211_v36 = vsel %vm299_vm1, %v6932_v9, 0.0  ;;  %v1265_v58 = vmul.f32 %v1201_v49, %v5845_v32 }
 0x240   :  { %v6982_v42 = vmul.f32 %v6788_v21, %v619_v44  ;;  %vm791_vm7 = vweird.f32 %v6760_v52  ;;  %v1492_v30 = vmul.f32 %v6921_v5, %v1491_v23  ;;  %v1482_v56 = vmul.f32 %v6945_v17, %v1481_v10  ;;  %1212 = vadd.xlane.f32.xlu2 %v1211_v36  ;;  %v9974_v44 = vld [vmem:[#allocation14_spill] sm:$0xff] }
 0x241   :  { %v664_v22 = vsel %vm6967_vm4, %v6620_v33, %v6866_v45  ;;  %vm621_vm6 = vweird.f32 %v6696_v34  ;;  %v779_v19 = vsub.f32 1.5, %v6948_v18  ;;  %vm1486_vm8 = vweird.f32 %v6829_v29  ;;  %v7007_v33 = vpop.eup %5065  ;;  %vm793_vm14 = vmor %vm791_vm7, %vm792_vm3 }
 0x242   :  { %v964_v48 = vadd.f32 %v6886_v4, %v932_v55  ;;  %v7005_v13 = vsub.f32 %v9971_v16, %v1263_v12  ;;  %vm781_vm9 = vweird.f32 %v6743_v3  ;;  %v790_v45 = vmul.f32 %v6835_v57, %v789_v8  ;;  %v9977_v55 = vld [vmem:[#allocation7_spill] sm:$0xff]  ;;  %v1136_v16 = vpop.f32.mrf.mxu3 }
 0x243   :  { %v1483_v40 = vmul.f32 0.5, %v1482_v56  ;;  %v7020_v23 = vsub.f32 %v9974_v44, %v1265_v58  ;;  %v899_v26 = vmul.f32 %v664_v22, %v9975_v28  ;;  %vm1487_vm4 = vweird.f32 %v6945_v17  ;;  %v5409_v28 = vld [vmem:[%s9841_s0 + $0x48] sm:$0xff] }
 0x244   :  { %4842 = vmatpush.xpose.msk.msrb.mxu0 %vm299_vm1, %v964_v48  ;;  %v654_v2 = vsel %vm6996_vm11, %v6601_v6, %v6859_v51  ;;  %v804_v49 = vsel %vm7013_vm5, %v6765_v47, %v800_v14  ;;  %v1320_v18 = vmul.f32 %v6975_v25, %v6975_v25  ;;  %v1493_v50 = vmul.f32 0.5, %v1492_v30  ;;  %v5403_v47 = vld [vmem:[%s9841_s0 + $0x18] sm:$0xff]  ;;  %vm7081_vm13 = vmor %vm1486_vm8, %vm1487_vm4 }
 0x245   :  { %v1484_v27 = vsub.f32 1.5, %v1483_v40  ;;  %v931_v11 = vmul.f32 %v6927_v39, %v899_v26  ;;  %v898_v8 = vmul.f32 %v654_v2, %v9976_v15  ;;  %v1501_v10 = vmul.f32 %v7007_v33, %v6889_v7  ;;  %4779 = vmatmul.msk.f32.gmra.mxu2 %vm113_vm0, %v5403_v47  ;;  %v9992_v15 = vld [vmem:[#allocation8_spill] sm:$0xff] }
 0x246   :  { %v913_v43 = vmul.f32 %v804_v49, %v9977_v55  ;;  %v1364_v6 = vsel %vm299_vm1, %v1320_v18, 0.0  ;;  %v1319_v51 = vmul.f32 %v7005_v13, %v7005_v13  ;;  %v1321_v30 = vmul.f32 %v7020_v23, %v7020_v23  ;;  %v9989_v49 = vld [vmem:[#allocation5_spill] sm:$0xff] }
 0x247   :  { %v1485_v12 = vmul.f32 %v6945_v17, %v1484_v27  ;;  %v963_v36 = vadd.f32 %v6886_v4, %v931_v11  ;;  %v930_v58 = vmul.f32 %v6927_v39, %v898_v8  ;;  %1365 = vadd.xlane.f32.xlu0 %v1364_v6  ;;  %v7068_v56 = vadd.f32 %v6391_v62, %v1133_v0  ;;  %v9991_v11 = vld [vmem:[#allocation11_spill] sm:$0xff] }
 0x248   :  { %v945_v22 = vmul.f32 %v6927_v39, %v913_v43  ;;  %v1361_v61 = vsel %vm299_vm1, %v1319_v51, 0.0  ;;  %v644_v48 = vsel %vm7050_vm10, %v6682_v1, %v6902_v46  ;;  %v780_v31 = vmul.f32 %v6824_v54, %v779_v19  ;;  %v9984_v46 = vld [vmem:[#allocation4_spill] sm:$0xff] }
 0x249   :  { %v7087_v0 = vadd.f32 %v6391_v62, %v6832_v59  ;;  %4843 = vmatpush.xpose.msk.msrb.mxu0 %vm299_vm1, %v963_v36  ;;  %1362 = vadd.xlane.f32.xlu1 %v1361_v61  ;;  %v1367_v1 = vsel %vm299_vm1, %v1321_v30, 0.0  ;;  %v897_v40 = vmul.f32 %v644_v48, %v9984_v46  ;;  %v1494_v29 = vsub.f32 1.5, %v1493_v50  ;;  %v5406_v46 = vld [vmem:[%s9841_s0 + $0x30] sm:$0xff] }
 0x24a   :  { %v1489_v19 = vsel %vm7081_vm13, %v6945_v17, %v1485_v12  ;;  %v962_v59 = vadd.f32 %v6886_v4, %v930_v58  ;;  %v977_v44 = vadd.f32 %v6886_v4, %v945_v22  ;;  %1368 = vadd.xlane.f32.xlu2 %v1367_v1  ;;  %vm9985_vm15 = vweird.f32 %v6788_v21 }
 0x24b   :  { %vm7105_vm2 = vmor %vm621_vm6, %vm9985_vm15  ;;  %v929_v52 = vmul.f32 %v6927_v39, %v897_v40  ;;  %v7111_v26 = vadd.f32 %v6391_v62, %v1136_v16  ;;  %v634_v17 = vsel %vm7063_vm12, %v6698_v20, %v6917_v60  ;;  %v794_v2 = vsel %vm793_vm14, %v6835_v57, %v790_v45  ;;  %v9990_v62 = vld [vmem:[#allocation9_spill] sm:$0xff]  ;;  %v9994_v16 = vld [vmem:[#allocation10_spill] sm:$0xff] }
 0x24c   :  { %vm9988_vm3 = vweird.f32 %v6824_v54  ;;  %v1502_v34 = vmul.f32 %v7007_v33, %v1501_v10  ;;  %4885 = vmatpush.xpose.msk.msrb.mxu1 %vm299_vm1, %v977_v44  ;;  %v896_v18 = vmul.f32 %v634_v17, %v9989_v49  ;;  %v912_v50 = vmul.f32 %v794_v2, %v9990_v62  ;;  %v5404_v10 = vld [vmem:[%s9841_s0 + $0x20] sm:$0xff]  ;;  %v5410_v17 = vld [vmem:[%s9841_s0 + $0x50] sm:$0xff] }
 0x24d   :  { %vm783_vm8 = vmor %vm781_vm9, %vm9988_vm3  ;;  %v1217_v27 = vsel %vm299_vm1, %v7068_v56, 0.0  ;;  %v1760_v20 = vmul.f32 %v1489_v19, %v9991_v11  ;;  %4844 = vmatpush.xpose.msk.msrb.mxu0 %vm299_vm1, %v962_v59  ;;  %v624_v3 = vsel %vm7105_vm2, %v6788_v21, %v6982_v42  ;;  %vm1497_vm6 = vweird.f32 %v6921_v5  ;;  %4780 = vmatmul.msk.f32.gmra.mxu2 %vm113_vm0, %v5404_v10  ;;  %v9993_v42 = vld [vmem:[#allocation6_spill] sm:$0xff]  ;;  %v9996_v11 = vld [vmem:[#allocation15_spill] sm:$0xff] }
 0x24e   :  { %v784_v57 = vsel %vm783_vm8, %v6824_v54, %v780_v31  ;;  %v944_v60 = vmul.f32 %v6927_v39, %v912_v50  ;;  %v1214_v45 = vsel %vm299_vm1, %v7087_v0, 0.0  ;;  %v961_v55 = vadd.f32 %v6886_v4, %v929_v52  ;;  %v5408_v44 = vld [vmem:[%s9841_s0 + $0x40] sm:$0xff] }
 0x24f   :  { %v911_v8 = vmul.f32 %v784_v57, %v9992_v15  ;;  %v928_v21 = vmul.f32 %v6927_v39, %v896_v18  ;;  %1218 = vadd.xlane.f32.xlu0 %v1217_v27  ;;  %v1220_v54 = vsel %vm299_vm1, %v7111_v26, 0.0  ;;  %v895_v43 = vmul.f32 %v624_v3, %v9993_v42  ;;  %v81_v52 = vld [vmem:[%s9842_s1 + $0xc0] sm:$0xff]  ;;  %v5411_v18 = vld [vmem:[%s9841_s0 + $0x58] sm:$0xff] }
 0x250   :  { %v1495_v6 = vmul.f32 %v6921_v5, %v1494_v29  ;;  %v1503_v51 = vmul.f32 0.5, %v1502_v34  ;;  %v976_v47 = vadd.f32 %v6886_v4, %v944_v60  ;;  %v1788_v12 = vmul.f32 %v6927_v39, %v1760_v20  ;;  %v9995_v29 = vld [vmem:[#allocation12_spill] sm:$0xff]  ;;  %4772 = vmatmul.msk.f32.gmra.mxu3 %vm113_vm0, %v81_v52  ;;  %v5412_v57 = vld [vmem:[%s9841_s0 + $0x60] sm:$0xff]  ;;  %v1139_v15 = vpop.f32.mrf.mxu3 }
 0x251   :  { %v943_v14 = vmul.f32 %v6927_v39, %v911_v8  ;;  %4845 = vmatpush.xpose.msk.msrb.mxu0 %vm299_vm1, %v961_v55  ;;  %1215 = vadd.xlane.f32.xlu1 %v1214_v45  ;;  %vm1496_vm7 = vweird.f32 %v6822_v53  ;;  %v960_v36 = vadd.f32 %v6886_v4, %v928_v21  ;;  %v927_v58 = vmul.f32 %v6927_v39, %v895_v43  ;;  %v5405_v53 = vld [vmem:[%s9841_s0 + $0x28] sm:$0xff]  ;;  %v7230_v55 = vld [vmem:[%s9840_s3] ss:$0 sm:$0xff] }
 0x252   :  { %4886 = vmatpush.xpose.msk.msrb.mxu1 %vm299_vm1, %v976_v47  ;;  %1221 = vadd.xlane.f32.xlu2 %v1220_v54  ;;  %vm1498_vm11 = vmor %vm1496_vm7, %vm1497_vm6  ;;  %v1504_v30 = vsub.f32 1.5, %v1503_v51  ;;  %v1816_v61 = vadd.f32 %v6886_v4, %v1788_v12  ;;  %vm1507_vm5 = vweird.f32 %v7007_v33  ;;  %vm1506_vm9 = vweird.f32 %v6889_v7  ;;  %v5414_v43 = vld [vmem:[%s9841_s0 + $0x68] sm:$0xff]  ;;  %v9997_v47 = vld [vmem:[#allocation16_spill] sm:$0xff] }
 0x253   :  { %v975_v35 = vadd.f32 %v6886_v4, %v943_v14  ;;  %v1499_v22 = vsel %vm1498_vm11, %v6921_v5, %v1495_v6  ;;  %v959_v48 = vadd.f32 %v6886_v4, %v927_v58  ;;  %vm1508_vm4 = vmor %vm1506_vm9, %vm1507_vm5  ;;  %v7233_v21 = vadd.f32 %v7230_v55, %v1139_v15  ;;  %v5417_v15 = vld [vmem:[%s9841_s0 + $0x80] sm:$0xff] }
 0x254   :  { %v1761_v31 = vmul.f32 %v1499_v22, %v9994_v16  ;;  %v1505_v37 = vmul.f32 %v7007_v33, %v1504_v30 }
 0x255   :  { %4846 = vmatpush.xpose.msk.msrb.mxu0 %vm299_vm1, %v960_v36  ;;  %4781 = vmatmul.msk.f32.gmra.mxu2 %vm113_vm0, %v5405_v53  ;;  %v1223_v6 = vsel %vm299_vm1, %v7233_v21, 0.0 }
 0x256   :  { %4887 = vmatpush.xpose.msk.msrb.mxu1 %vm299_vm1, %v975_v35  ;;  %v1789_v5 = vmul.f32 %v6927_v39, %v1761_v31  ;;  %v1509_v1 = vsel %vm1508_vm4, %v7007_v33, %v1505_v37  ;;  %v5407_v33 = vld [vmem:[%s9841_s0 + $0x38] sm:$0xff]  ;;  %v82_v35 = vld [vmem:[%s9842_s1 + $0xc8] sm:$0xff] }
 0x257   :  { %v1762_v19 = vmul.f32 %v1509_v1, %v9995_v29 }
 0x258   :  { %v1817_v40 = vadd.f32 %v6886_v4, %v1789_v5  ;;  %4773 = vmatmul.msk.f32.gmra.mxu3 %vm113_vm0, %v82_v35  ;;  %v83_v5 = vld [vmem:[%s9842_s1 + $0xd0] sm:$0xff] }
 0x259   :  { %4847 = vmatpush.xpose.msk.msrb.mxu0 %vm299_vm1, %v959_v48  ;;  %4888 = vmatmul.msk.f32.vlgmr.msrb.gmra.mxu1 %vm299_vm1, %v1816_v61  ;;  %v1790_v7 = vmul.f32 %v6927_v39, %v1762_v19  ;;  %v5415_v48 = vld [vmem:[%s9841_s0 + $0x70] sm:$0xff] }
 0x25b   :  { %v1818_v59 = vadd.f32 %v6886_v4, %v1790_v7 }
 0x25c   :  { %4848 = vmatmul.msk.f32.vlgmr.msrb.gmra.mxu0 %vm299_vm1, %v1816_v61 }
 0x25d   :  { %4782 = vmatmul.msk.f32.gmra.mxu2 %vm113_vm0, %v5406_v46 }
 0x260   :  { %4774 = vmatmul.msk.f32.gmra.mxu3 %vm113_vm0, %v83_v5 }
 0x261   :  { %4889 = vmatmul.msk.f32.gmra.mxu1 %vm299_vm1, %v1817_v40 }
 0x264   :  { %4849 = vmatmul.msk.f32.gmra.mxu0 %vm299_vm1, %v1817_v40 }
 0x265   :  { %4783 = vmatmul.msk.f32.gmra.mxu2 %vm113_vm0, %v5407_v33  ;;  %v5416_v33 = vld [vmem:[%s9841_s0 + $0x78] sm:$0xff] }
 0x269   :  { %4890 = vmatmul.msk.f32.gmra.mxu1 %vm299_vm1, %v1818_v59 }
 0x26c   :  { %4850 = vmatmul.msk.f32.gmra.mxu0 %vm299_vm1, %v1818_v59 }
 0x26d   :  { %4784 = vmatmul.msk.f32.gmra.mxu2 %vm113_vm0, %v5408_v44 }
 0x275   :  { %4785 = vmatmul.msk.f32.gmra.mxu2 %vm113_vm0, %v5409_v28 }
 0x27d   :  { %4786 = vmatmul.msk.f32.gmra.mxu2 %vm113_vm0, %v5410_v17  ;;  %v1351_v2 = vpop.xlane.xlu2 %1350 }
 0x27e   :  { %v1427_v34 = vmul.f32 %v1351_v2, %v5845_v32 }
 0x280   :  { %v1455_v49 = vadd.f32 1e-05, %v1427_v34 }
 0x282   :  { %5067 = vrsqrt.f32 %v1455_v49  ;;  %vm1516_vm12 = vweird.f32 %v1455_v49 }
 0x285   :  { %4787 = vmatmul.msk.f32.gmra.mxu2 %vm113_vm0, %v5411_v18  ;;  %v1204_v62 = vpop.xlane.xlu2 %1203 }
 0x286   :  { %v1266_v50 = vmul.f32 %v1204_v62, %v5845_v32 }
 0x288   :  { %v5068_v27 = vpop.eup %5067  ;;  %v7218_v20 = vsub.f32 %v9996_v11, %v1266_v50 }
 0x289   :  { %v1511_v3 = vmul.f32 %v5068_v27, %v1455_v49  ;;  %vm1517_vm10 = vweird.f32 %v5068_v27 }
 0x28a   :  { %v1322_v60 = vmul.f32 %v7218_v20, %v7218_v20  ;;  %vm1518_vm13 = vmor %vm1516_vm12, %vm1517_vm10 }
 0x28b   :  { %v1512_v45 = vmul.f32 %v5068_v27, %v1511_v3 }
 0x28c   :  { %v1370_v8 = vsel %vm299_vm1, %v1322_v60, 0.0 }
 0x28d   :  { %4788 = vmatmul.msk.f32.gmra.mxu2 %vm113_vm0, %v5412_v57  ;;  %v1513_v10 = vmul.f32 0.5, %v1512_v45  ;;  %1371 = vadd.xlane.f32.xlu1 %v1370_v8 }
 0x28e   :  { %v1142_v12 = vpop.f32.mrf.mxu3 }
 0x28f   :  { %v1514_v54 = vsub.f32 1.5, %v1513_v10  ;;  %v7277_v62 = vadd.f32 %v7230_v55, %v1142_v12 }
 0x291   :  { %v1515_v42 = vmul.f32 %v5068_v27, %v1514_v54  ;;  %v1226_v10 = vsel %vm299_vm1, %v7277_v62, 0.0 }
 0x293   :  { %v1519_v51 = vsel %vm1518_vm13, %v5068_v27, %v1515_v42 }
 0x294   :  { %v1763_v14 = vmul.f32 %v1519_v51, %v9997_v47  ;;  %v84_v51 = vld [vmem:[%s9842_s1 + $0xd8] sm:$0xff] }
 0x295   :  { %4789 = vmatmul.msk.f32.gmra.mxu2 %vm113_vm0, %v5414_v43  ;;  %1224 = vadd.xlane.f32.xlu1 %v1223_v6  ;;  %v9998_v43 = vld [vmem:[#allocation17_spill] sm:$0xff] }
 0x296   :  { %v1791_v30 = vmul.f32 %v6927_v39, %v1763_v14  ;;  %v1145_v46 = vpop.f32.mrf.mxu3  ;;  %4775 = vmatmul.msk.f32.gmra.mxu3 %vm113_vm0, %v84_v51 }
 0x297   :  { %v1354_v36 = vpop.xlane.xlu1 %1353  ;;  %v7287_v8 = vadd.f32 %v7230_v55, %v1145_v46 }
 0x298   :  { %v1428_v58 = vmul.f32 %v1354_v36, %v5845_v32  ;;  %v1819_v61 = vadd.f32 %v6886_v4, %v1791_v30 }
 0x299   :  { %v1357_v53 = vpop.xlane.xlu0 %1356 }
 0x29a   :  { %v1456_v22 = vadd.f32 1e-05, %v1428_v58  ;;  %4851 = vmatmul.msk.f32.gmra.mxu0 %vm299_vm1, %v1819_v61  ;;  %4891 = vmatmul.msk.f32.gmra.mxu1 %vm299_vm1, %v1819_v61  ;;  %v1429_v16 = vmul.f32 %v1357_v53, %v5845_v32  ;;  %v1229_v58 = vsel %vm299_vm1, %v7287_v8, 0.0 }
 0x29c   :  { %5069 = vrsqrt.f32 %v1456_v22  ;;  %v1457_v31 = vadd.f32 1e-05, %v1429_v16  ;;  %vm1526_vm15 = vweird.f32 %v1456_v22 }
 0x29d   :  { %4790 = vmatmul.msk.f32.gmra.mxu2 %vm113_vm0, %v5415_v48 }
 0x29e   :  { %5071 = vrsqrt.f32 %v1457_v31  ;;  %v1148_v57 = vpop.f32.mrf.mxu3  ;;  %vm1536_vm8 = vweird.f32 %v1457_v31 }
 0x29f   :  { %v1207_v37 = vpop.xlane.xlu1 %1206 }
 0x2a0   :  { %v1267_v1 = vmul.f32 %v1207_v37, %v5845_v32 }
 0x2a2   :  { %v5070_v40 = vpop.eup %5069  ;;  %v7261_v29 = vsub.f32 %v6714_v63, %v1267_v1  ;;  %v1210_v7 = vpop.xlane.xlu0 %1209 }
 0x2a3   :  { %v1521_v19 = vmul.f32 %v5070_v40, %v1456_v22  ;;  %v1268_v59 = vmul.f32 %v1210_v7, %v5845_v32  ;;  %vm1527_vm14 = vweird.f32 %v5070_v40 }
 0x2a4   :  { %v1323_v44 = vmul.f32 %v7261_v29, %v7261_v29  ;;  %v5072_v17 = vpop.eup %5071  ;;  %vm1528_vm2 = vmor %vm1526_vm15, %vm1527_vm14 }
 0x2a5   :  { %4791 = vmatmul.msk.f32.gmra.mxu2 %vm113_vm0, %v5416_v33  ;;  %v1522_v28 = vmul.f32 %v5070_v40, %v1521_v19  ;;  %v1360_v52 = vpop.xlane.xlu2 %1359  ;;  %v7272_v63 = vsub.f32 %v6763_v41, %v1268_v59  ;;  %v1531_v18 = vmul.f32 %v5072_v17, %v1457_v31  ;;  %vm1537_vm3 = vweird.f32 %v5072_v17  ;;  %v5418_v31 = vld [vmem:[%s9841_s0 + $0x88] sm:$0xff] }
 0x2a6   :  { %v1373_v2 = vsel %vm299_vm1, %v1323_v44, 0.0  ;;  %v1430_v34 = vmul.f32 %v1360_v52, %v5845_v32  ;;  %vm1538_vm6 = vmor %vm1536_vm8, %vm1537_vm3  ;;  %v7327_v52 = vadd.f32 %v7230_v55, %v1148_v57 }
 0x2a7   :  { %v1523_v49 = vmul.f32 0.5, %v1522_v28  ;;  %1374 = vadd.xlane.f32.xlu0 %v1373_v2  ;;  %v1324_v27 = vmul.f32 %v7272_v63, %v7272_v63  ;;  %v1532_v3 = vmul.f32 %v5072_v17, %v1531_v18 }
 0x2a8   :  { %v1458_v50 = vadd.f32 1e-05, %v1430_v34  ;;  %v1232_v57 = vsel %vm299_vm1, %v7327_v52, 0.0 }
 0x2a9   :  { %v1524_v11 = vsub.f32 1.5, %v1523_v49  ;;  %v1376_v41 = vsel %vm299_vm1, %v1324_v27, 0.0  ;;  %v1533_v45 = vmul.f32 0.5, %v1532_v3 }
 0x2aa   :  { %5073 = vrsqrt.f32 %v1458_v50  ;;  %1377 = vadd.xlane.f32.xlu2 %v1376_v41  ;;  %v7313_v5 = vpop.f32.mrf.mxu3  ;;  %vm1546_vm11 = vweird.f32 %v1458_v50 }
 0x2ab   :  { %v1525_v60 = vmul.f32 %v5070_v40, %v1524_v11  ;;  %v1534_v54 = vsub.f32 1.5, %v1533_v45 }
 0x2ad   :  { %4792 = vmatmul.msk.f32.gmra.mxu2 %vm113_vm0, %v5417_v15  ;;  %v1529_v42 = vsel %vm1528_vm2, %v5070_v40, %v1525_v60  ;;  %v7295_v47 = vpop.f32.mrf.mxu2  ;;  %v1535_v14 = vmul.f32 %v5072_v17, %v1534_v54  ;;  %v5421_v54 = vld [vmem:[%s9842_s1 + $0x8] sm:$0xff] }
 0x2ae   :  { %v1764_v6 = vmul.f32 %v1529_v42, %v9998_v43 }
 0x2af   :  { %1227 = vadd.xlane.f32.xlu0 %v1226_v10  ;;  %v1539_v22 = vsel %vm1538_vm6, %v5072_v17, %v1535_v14 }
 0x2b0   :  { %v5074_v12 = vpop.eup %5073  ;;  %v1792_v36 = vmul.f32 %v6927_v39, %v1764_v6  ;;  %v1765_v48 = vmul.f32 %v1539_v22, %v6649_v24 }
 0x2b1   :  { %v1541_v30 = vmul.f32 %v5074_v12, %v1458_v50  ;;  %vm1547_vm7 = vweird.f32 %v5074_v12  ;;  %v5420_v50 = vld [vmem:[%s9841_s0 + $0x90] sm:$0xff] }
 0x2b2   :  { %v1820_v53 = vadd.f32 %v6886_v4, %v1792_v36  ;;  %1230 = vadd.xlane.f32.xlu2 %v1229_v58  ;;  %v1793_v46 = vmul.f32 %v6927_v39, %v1765_v48  ;;  %vm1548_vm5 = vmor %vm1546_vm11, %vm1547_vm7  ;;  %v1154_v60 = vpop.f32.mrf.mxu3 }
 0x2b3   :  { %v1213_v35 = vpop.xlane.xlu2 %1212  ;;  %v1542_v16 = vmul.f32 %v5074_v12, %v1541_v30  ;;  %v5422_v30 = vld [vmem:[%s9841_s0 + $0x98] sm:$0xff] }
 0x2b4   :  { %v1269_v61 = vmul.f32 %v1213_v35, %v5845_v32  ;;  %4852 = vmatmul.msk.f32.gmra.mxu0 %vm299_vm1, %v1820_v53  ;;  %4892 = vmatmul.msk.f32.gmra.mxu1 %vm299_vm1, %v1820_v53  ;;  %v1821_v49 = vadd.f32 %v6886_v4, %v1793_v46 }
 0x2b5   :  { %4793 = vmatmul.msk.f32.gmra.mxu2 %vm113_vm0, %v5418_v31  ;;  %v1543_v1 = vmul.f32 0.5, %v1542_v16  ;;  %v7318_v40 = vpop.f32.mrf.mxu2 }
 0x2b6   :  { %v7309_v37 = vsub.f32 %v6932_v9, %v1269_v61  ;;  %v5419_v9 = vld [vmem:[%s9842_s1] sm:$0xff] }
 0x2b7   :  { %v1544_v19 = vsub.f32 1.5, %v1543_v1  ;;  %4804 = vmatmul.msk.f32.vlgmr.msrb.gmra.mxu3 %vm113_vm0, %v5419_v9  ;;  %v7400_v9 = vadd.f32 %v7230_v55, %v1154_v60 }
 0x2b8   :  { %v1325_v24 = vmul.f32 %v7309_v37, %v7309_v37 }
 0x2b9   :  { %v1545_v44 = vmul.f32 %v5074_v12, %v1544_v19 }
 0x2ba   :  { %v1366_v7 = vpop.xlane.xlu0 %1365  ;;  %v1379_v59 = vsel %vm299_vm1, %v1325_v24, 0.0 }
 0x2bb   :  { %v1432_v33 = vmul.f32 %v1366_v7, %v5845_v32  ;;  %1380 = vadd.xlane.f32.xlu1 %v1379_v59  ;;  %v1549_v27 = vsel %vm1548_vm5, %v5074_v12, %v1545_v44  ;;  %v1157_v59 = vpop.f32.mrf.mxu3 }
 0x2bc   :  { %v1363_v28 = vpop.xlane.xlu1 %1362  ;;  %4853 = vmatmul.msk.f32.gmra.mxu0 %vm299_vm1, %v1821_v49  ;;  %4893 = vmatmul.msk.f32.gmra.mxu1 %vm299_vm1, %v1821_v49  ;;  %v1766_v3 = vmul.f32 %v1549_v27, %v6805_v38  ;;  %v7407_v49 = vadd.f32 %v7230_v55, %v7313_v5  ;;  %v7410_v27 = vadd.f32 %v7230_v55, %v1157_v59  ;;  %v5435_v59 = vld [vmem:[%s9842_s1 + $0x40] sm:$0xff] }
 0x2bd   :  { %v7329_v17 = vadd.f32 1e-05, %v1432_v33  ;;  %v1431_v2 = vmul.f32 %v1363_v28, %v5845_v32  ;;  %v1369_v34 = vpop.xlane.xlu2 %1368  ;;  %4794 = vmatmul.msk.f32.gmra.mxu2 %vm113_vm0, %v5420_v50  ;;  %v5424_v50 = vld [vmem:[%s9841_s0 + $0xa0] sm:$0xff] }
 0x2be   :  { %v1433_v18 = vmul.f32 %v1369_v34, %v5845_v32  ;;  %v1794_v45 = vmul.f32 %v6927_v39, %v1766_v3  ;;  %v1238_v3 = vsel %vm299_vm1, %v7400_v9, 0.0 }
 0x2bf   :  { %5075 = vrsqrt.f32 %v7329_v17  ;;  %v7339_v11 = vadd.f32 1e-05, %v1431_v2  ;;  %v7350_v15 = vpop.f32.mrf.mxu2  ;;  %4805 = vmatmul.msk.f32.gmra.mxu3 %vm113_vm0, %v5421_v54  ;;  %vm1566_vm13 = vweird.f32 %v7329_v17 }
 0x2c0   :  { %v7344_v41 = vadd.f32 1e-05, %v1433_v18  ;;  %v1822_v42 = vadd.f32 %v6886_v4, %v1794_v45  ;;  %v1235_v45 = vsel %vm299_vm1, %v7407_v49, 0.0 }
 0x2c1   :  { %5077 = vrsqrt.f32 %v7339_v11  ;;  %vm1556_vm4 = vweird.f32 %v7339_v11 }
 0x2c2   :  { %5079 = vrsqrt.f32 %v7344_v41  ;;  %v1219_v10 = vpop.xlane.xlu0 %1218  ;;  %vm1576_vm2 = vweird.f32 %v7344_v41 }
 0x2c3   :  { %v1271_v38 = vmul.f32 %v1219_v10, %v5845_v32  ;;  %1233 = vadd.xlane.f32.xlu1 %v1232_v57 }
 0x2c4   :  { %v1216_v43 = vpop.xlane.xlu1 %1215  ;;  %4854 = vmatmul.msk.f32.gmra.mxu0 %vm299_vm1, %v1822_v42  ;;  %4894 = vmatmul.msk.f32.gmra.mxu1 %vm299_vm1, %v1822_v42 }
 0x2c5   :  { %v7359_v6 = vpop.eup %5075  ;;  %v7362_v51 = vsub.f32 %v7068_v56, %v1271_v38  ;;  %v1270_v14 = vmul.f32 %v1216_v43, %v5845_v32  ;;  %v1222_v12 = vpop.xlane.xlu2 %1221  ;;  %4795 = vmatmul.msk.f32.gmra.mxu2 %vm113_vm0, %v5422_v30  ;;  %v5425_v38 = vld [vmem:[%s9842_s1 + $0x18] sm:$0xff] }
 0x2c6   :  { %v1561_v36 = vmul.f32 %v7359_v6, %v7329_v17  ;;  %v1272_v58 = vmul.f32 %v1222_v12, %v5845_v32  ;;  %vm1567_vm10 = vweird.f32 %v7359_v6  ;;  %v5426_v12 = vld [vmem:[%s9841_s0 + $0xa8] sm:$0xff] }
 0x2c7   :  { %v5078_v35 = vpop.eup %5077  ;;  %v7373_v22 = vsub.f32 %v7087_v0, %v1270_v14  ;;  %v1327_v56 = vmul.f32 %v7362_v51, %v7362_v51  ;;  %vm1568_vm14 = vmor %vm1566_vm13, %vm1567_vm10 }
 0x2c8   :  { %v7379_v61 = vpop.eup %5079  ;;  %v1562_v53 = vmul.f32 %v7359_v6, %v1561_v36  ;;  %v1551_v48 = vmul.f32 %v5078_v35, %v7339_v11  ;;  %v7384_v16 = vsub.f32 %v7111_v26, %v1272_v58  ;;  %v7391_v24 = vpop.f32.mrf.mxu2  ;;  %v5423_v26 = vld [vmem:[%s9842_s1 + $0x10] sm:$0xff]  ;;  %vm1557_vm9 = vweird.f32 %v5078_v35 }
 0x2c9   :  { %v1571_v0 = vmul.f32 %v7379_v61, %v7344_v41  ;;  %v1385_v31 = vsel %vm299_vm1, %v1327_v56, 0.0  ;;  %v1326_v1 = vmul.f32 %v7373_v22, %v7373_v22  ;;  %4806 = vmatmul.msk.f32.gmra.mxu3 %vm113_vm0, %v5423_v26  ;;  %vm1558_vm12 = vmor %vm1556_vm4, %vm1557_vm9  ;;  %v1241_v11 = vsel %vm299_vm1, %v7410_v27, 0.0  ;;  %v5428_v56 = vld [vmem:[%s9841_s0 + $0xb0] sm:$0xff]  ;;  %v5433_v26 = vld [vmem:[%s9842_s1 + $0x38] sm:$0xff] }
 0x2ca   :  { %v1563_v46 = vmul.f32 0.5, %v1562_v53  ;;  %v1552_v19 = vmul.f32 %v5078_v35, %v1551_v48  ;;  %1386 = vadd.xlane.f32.xlu2 %v1385_v31  ;;  %v1328_v7 = vmul.f32 %v7384_v16, %v7384_v16  ;;  %vm1577_vm15 = vweird.f32 %v7379_v61  ;;  %v5430_v31 = vld [vmem:[%s9841_s0 + $0xb8] sm:$0xff] }
 0x2cb   :  { %v1382_v33 = vsel %vm299_vm1, %v1326_v1, 0.0  ;;  %v1572_v2 = vmul.f32 %v7379_v61, %v1571_v0  ;;  %vm1578_vm3 = vmor %vm1576_vm2, %vm1577_vm15 }
 0x2cc   :  { %v1564_v44 = vsub.f32 1.5, %v1563_v46  ;;  %v1553_v28 = vmul.f32 0.5, %v1552_v19  ;;  %1383 = vadd.xlane.f32.xlu0 %v1382_v33  ;;  %v1388_v34 = vsel %vm299_vm1, %v1328_v7, 0.0  ;;  %v5431_v46 = vld [vmem:[%s9842_s1 + $0x30] sm:$0xff]  ;;  %v5432_v19 = vld [vmem:[%s9841_s0 + $0xc0] sm:$0xff]  ;;  %v5434_v33 = vld [vmem:[%s9841_s0 + $0xc8] sm:$0xff] }
 0x2cd   :  { %1389 = vadd.xlane.f32.xlu1 %v1388_v34  ;;  %4796 = vmatmul.msk.f32.gmra.mxu2 %vm113_vm0, %v5424_v50  ;;  %v1573_v60 = vmul.f32 0.5, %v1572_v2  ;;  %v5437_v2 = vld [vmem:[%s9842_s1 + $0x48] sm:$0xff] }
 0x2ce   :  { %v1554_v18 = vsub.f32 1.5, %v1553_v28  ;;  %v1565_v5 = vmul.f32 %v7359_v6, %v1564_v44  ;;  %v5436_v28 = vld [vmem:[%s9841_s0 + $0xd0] sm:$0xff] }
 0x2cf   :  { %v1574_v43 = vsub.f32 1.5, %v1573_v60 }
 0x2d0   :  { %v1555_v57 = vmul.f32 %v5078_v35, %v1554_v18  ;;  %v7423_v10 = vpop.f32.mrf.mxu2  ;;  %v1569_v14 = vsel %vm1568_vm14, %v7359_v6, %v1565_v5  ;;  %v5427_v6 = vld [vmem:[%s9842_s1 + $0x20] sm:$0xff] }
 0x2d1   :  { %4807 = vmatmul.msk.f32.gmra.mxu3 %vm113_vm0, %v5425_v38  ;;  %v1768_v58 = vmul.f32 %v1569_v14, %v6975_v25  ;;  %v1575_v30 = vmul.f32 %v7379_v61, %v1574_v43  ;;  %v5440_v14 = vld [vmem:[%s9842_s1 + $0x58] sm:$0xff] }
 0x2d2   :  { %1239 = vadd.xlane.f32.xlu2 %v1238_v3  ;;  %v1559_v54 = vsel %vm1558_vm12, %v5078_v35, %v1555_v57  ;;  %v5438_v3 = vld [vmem:[%s9841_s0 + $0xd8] sm:$0xff]  ;;  %v5439_v57 = vld [vmem:[%s9842_s1 + $0x50] sm:$0xff] }
 0x2d3   :  { %v1767_v42 = vmul.f32 %v1559_v54, %v7005_v13  ;;  %v1796_v25 = vmul.f32 %v6927_v39, %v1768_v58  ;;  %v1579_v35 = vsel %vm1578_vm3, %v7379_v61, %v1575_v30  ;;  %v5429_v61 = vld [vmem:[%s9842_s1 + $0x28] sm:$0xff] }
 0x2d4   :  { %1236 = vadd.xlane.f32.xlu0 %v1235_v45  ;;  %v1769_v41 = vmul.f32 %v1579_v35, %v7020_v23 }
 0x2d5   :  { %1242 = vadd.xlane.f32.xlu1 %v1241_v11  ;;  %v1795_v17 = vmul.f32 %v6927_v39, %v1767_v42  ;;  %4797 = vmatmul.msk.f32.gmra.mxu2 %vm113_vm0, %v5426_v12  ;;  %v1824_v53 = vadd.f32 %v6886_v4, %v1796_v25  ;;  %v1160_v12 = vpop.f32.mrf.mxu3 }
 0x2d6   :  { %v1797_v0 = vmul.f32 %v6927_v39, %v1769_v41 }
 0x2d7   :  { %v1823_v36 = vadd.f32 %v6886_v4, %v1795_v17 }
 0x2d8   :  { %v7445_v13 = vpop.f32.mrf.mxu2  ;;  %v1825_v23 = vadd.f32 %v6886_v4, %v1797_v0 }
 0x2d9   :  { %4855 = vmatmul.msk.f32.gmra.mxu0 %vm299_vm1, %v1823_v36  ;;  %4895 = vmatmul.msk.f32.gmra.mxu1 %vm299_vm1, %v1823_v36 }
 0x2da   :  { %4808 = vmatmul.msk.f32.gmra.mxu3 %vm113_vm0, %v5427_v6 }
 0x2dd   :  { %4798 = vmatmul.msk.f32.gmra.mxu2 %vm113_vm0, %v5428_v56  ;;  %v5441_v56 = vld [vmem:[%s9842_s1 + $0x60] sm:$0xff] }
 0x2e0   :  { %v7462_v48 = vpop.f32.mrf.mxu2 }
 0x2e1   :  { %4856 = vmatmul.msk.f32.gmra.mxu0 %vm299_vm1, %v1824_v53  ;;  %4896 = vmatmul.msk.f32.gmra.mxu1 %vm299_vm1, %v1824_v53 }
 0x2e2   :  { %4809 = vmatmul.msk.f32.gmra.mxu3 %vm113_vm0, %v5429_v61 }
 0x2e5   :  { %4799 = vmatmul.msk.f32.gmra.mxu2 %vm113_vm0, %v5430_v31 }
 0x2e8   :  { %v7476_v1 = vpop.f32.mrf.mxu2 }
 0x2e9   :  { %4857 = vmatmul.msk.f32.gmra.mxu0 %vm299_vm1, %v1825_v23  ;;  %4897 = vmatmul.msk.f32.gmra.mxu1 %vm299_vm1, %v1825_v23 }
 0x2ea   :  { %4810 = vmatmul.msk.f32.gmra.mxu3 %vm113_vm0, %v5431_v46 }
 0x2ed   :  { %4800 = vmatmul.msk.f32.gmra.mxu2 %vm113_vm0, %v5432_v19 }
 0x2f0   :  { %v7486_v7 = vpop.f32.mrf.mxu2 }
 0x2f2   :  { %4811 = vmatmul.msk.f32.gmra.mxu3 %vm113_vm0, %v5433_v26 }
 0x2f5   :  { %4801 = vmatmul.msk.f32.gmra.mxu2 %vm113_vm0, %v5434_v33 }
 0x2f8   :  { %v7500_v44 = vpop.f32.mrf.mxu2 }
 0x2fa   :  { %4812 = vmatmul.msk.f32.gmra.mxu3 %vm113_vm0, %v5435_v59 }
 0x2fd   :  { %4802 = vmatmul.msk.f32.gmra.mxu2 %vm113_vm0, %v5436_v28 }
 0x300   :  { %v7510_v34 = vpop.f32.mrf.mxu2  ;;  %v1372_v18 = vpop.xlane.xlu1 %1371 }
 0x301   :  { %v1434_v50 = vmul.f32 %v1372_v18, %v5845_v32 }
 0x302   :  { %4813 = vmatmul.msk.f32.gmra.mxu3 %vm113_vm0, %v5437_v2 }
 0x303   :  { %v1462_v5 = vadd.f32 1e-05, %v1434_v50 }
 0x305   :  { %4803 = vmatmul.msk.f32.gmra.mxu2 %vm113_vm0, %v5438_v3  ;;  %5081 = vrsqrt.f32 %v1462_v5  ;;  %vm1586_vm6 = vweird.f32 %v1462_v5 }
 0x308   :  { %v7521_v60 = vpop.f32.mrf.mxu2  ;;  %v1225_v45 = vpop.xlane.xlu1 %1224 }
 0x309   :  { %v1273_v11 = vmul.f32 %v1225_v45, %v5845_v32 }
 0x30a   :  { %4814 = vmatmul.msk.f32.gmra.mxu3 %vm113_vm0, %v5439_v57 }
 0x30b   :  { %v5082_v54 = vpop.eup %5081  ;;  %v7525_v38 = vsub.f32 %v7233_v21, %v1273_v11  ;;  %v7537_v21 = vadd.f32 %v7230_v55, %v1160_v12  ;;  %v7566_v11 = vld [vmem:[%s9846_s5] ss:$0 sm:$0xff] }
 0x30c   :  { %v1581_v42 = vmul.f32 %v5082_v54, %v1462_v5  ;;  %vm1587_vm8 = vweird.f32 %v5082_v54 }
 0x30d   :  { %v1329_v43 = vmul.f32 %v7525_v38, %v7525_v38  ;;  %vm1588_vm7 = vmor %vm1586_vm6, %vm1587_vm8  ;;  %v1244_v35 = vsel %vm299_vm1, %v7537_v21, 0.0 }
 0x30e   :  { %v1582_v17 = vmul.f32 %v5082_v54, %v1581_v42  ;;  %v5443_v42 = vld [vmem:[%s9842_s1 + $0x70] sm:$0xff] }
 0x30f   :  { %v1391_v36 = vsel %vm299_vm1, %v1329_v43, 0.0 }
 0x310   :  { %v7534_v58 = vpop.f32.mrf.mxu2  ;;  %v1583_v30 = vmul.f32 0.5, %v1582_v17  ;;  %1392 = vadd.xlane.f32.xlu0 %v1391_v36 }
 0x312   :  { %4815 = vmatmul.msk.f32.gmra.mxu3 %vm113_vm0, %v5440_v14  ;;  %v1584_v6 = vsub.f32 1.5, %v1583_v30 }
 0x314   :  { %v1585_v25 = vmul.f32 %v5082_v54, %v1584_v6 }
 0x316   :  { %v1589_v53 = vsel %vm1588_vm7, %v5082_v54, %v1585_v25 }
 0x317   :  { %v1770_v41 = vmul.f32 %v1589_v53, %v7218_v20  ;;  %v5442_v20 = vld [vmem:[%s9842_s1 + $0x68] sm:$0xff] }
 0x318   :  { %1245 = vadd.xlane.f32.xlu0 %v1244_v35  ;;  %v1904_v0 = vpop.f32.mrf.mxu2 }
 0x319   :  { %v1798_v23 = vmul.f32 %v6927_v39, %v1770_v41 }
 0x31a   :  { %4816 = vmatmul.msk.f32.gmra.mxu3 %vm113_vm0, %v5441_v56  ;;  %v1375_v61 = vpop.xlane.xlu0 %1374 }
 0x31b   :  { %v1435_v31 = vmul.f32 %v1375_v61, %v5845_v32  ;;  %v1826_v19 = vadd.f32 %v6886_v4, %v1798_v23  ;;  %v1163_v4 = vpop.f32.mrf.mxu3 }
 0x31c   :  { %v7577_v36 = vadd.f32 %v7230_v55, %v1163_v4  ;;  %v1902_v4 = vadd.f32 %v7566_v11, %v7534_v58  ;;  %v7606_v58 = vld [vmem:[%s9843_s6] ss:$0 sm:$0xff] }
 0x31d   :  { %v1463_v46 = vadd.f32 1e-05, %v1435_v31  ;;  %v1378_v26 = vpop.xlane.xlu2 %1377  ;;  %4858 = vmatmul.msk.f32.gmra.mxu0 %vm299_vm1, %v1826_v19  ;;  %4898 = vmatmul.msk.f32.gmra.mxu1 %vm299_vm1, %v1826_v19 }
 0x31e   :  { %v1436_v33 = vmul.f32 %v1378_v26, %v5845_v32  ;;  %v1905_v26 = vadd.f32 %v7566_v11, %v1904_v0  ;;  %v5444_v0 = vld [vmem:[%s9842_s1 + $0x78] sm:$0xff] }
 0x31f   :  { %5083 = vrsqrt.f32 %v1463_v46  ;;  %vm1596_vm5 = vweird.f32 %v1463_v46 }
 0x320   :  { %v1464_v59 = vadd.f32 1e-05, %v1436_v33  ;;  %v1907_v2 = vpop.f32.mrf.mxu2 }
 0x321   :  { %v1908_v30 = vadd.f32 %v7566_v11, %v1907_v2 }
 0x322   :  { %4817 = vmatmul.msk.f32.gmra.mxu3 %vm113_vm0, %v5442_v20  ;;  %v1228_v28 = vpop.xlane.xlu0 %1227  ;;  %5085 = vrsqrt.f32 %v1464_v59  ;;  %v1247_v20 = vsel %vm299_vm1, %v7577_v36, 0.0  ;;  %vm1606_vm10 = vweird.f32 %v1464_v59 }
 0x323   :  { %v1274_v39 = vmul.f32 %v1228_v28, %v5845_v32 }
 0x325   :  { %v5084_v18 = vpop.eup %5083  ;;  %v7558_v50 = vsub.f32 %v7277_v62, %v1274_v39  ;;  %v1231_v5 = vpop.xlane.xlu2 %1230 }
 0x326   :  { %v1591_v3 = vmul.f32 %v5084_v18, %v1463_v46  ;;  %v1275_v57 = vmul.f32 %v1231_v5, %v5845_v32  ;;  %vm1597_vm11 = vweird.f32 %v5084_v18 }
 0x327   :  { %v1330_v45 = vmul.f32 %v7558_v50, %v7558_v50  ;;  %vm1598_vm9 = vmor %vm1596_vm5, %vm1597_vm11 }
 0x328   :  { %v1592_v54 = vmul.f32 %v5084_v18, %v1591_v3  ;;  %v5086_v62 = vpop.eup %5085  ;;  %v7573_v43 = vsub.f32 %v7287_v8, %v1275_v57  ;;  %v1910_v25 = vpop.f32.mrf.mxu2  ;;  %v1896_v57 = vadd.f32 %v7566_v11, %v7510_v34  ;;  %v1893_v34 = vadd.f32 %v7566_v11, %v7500_v44 }
 0x329   :  { %v1394_v14 = vsel %vm299_vm1, %v1330_v45, 0.0  ;;  %v1601_v12 = vmul.f32 %v5086_v62, %v1464_v59  ;;  %v1166_v8 = vpop.f32.mrf.mxu3  ;;  %v1911_v41 = vadd.f32 %v7566_v11, %v1910_v25  ;;  %vm1607_vm4 = vweird.f32 %v5086_v62 }
 0x32a   :  { %4818 = vmatmul.msk.f32.gmra.mxu3 %vm113_vm0, %v5443_v42  ;;  %v1593_v17 = vmul.f32 0.5, %v1592_v54  ;;  %1395 = vadd.xlane.f32.xlu2 %v1394_v14  ;;  %v1331_v6 = vmul.f32 %v7573_v43, %v7573_v43  ;;  %v7591_v28 = vadd.f32 %v7230_v55, %v1166_v8  ;;  %vm1608_vm12 = vmor %vm1606_vm10, %vm1607_vm4  ;;  %v7618_v42 = vld [vmem:[%s9844_s7] ss:$0 sm:$0xff] }
 0x32b   :  { %v1602_v56 = vmul.f32 %v5086_v62, %v1601_v12  ;;  %3158 = vmatpush.msra.mxu2 %v1911_v41  ;;  %4284 = vmatpush.msra.mxu0 %v1911_v41  ;;  %v1887_v41 = vadd.f32 %v7566_v11, %v7476_v1 }
 0x32c   :  { %v1594_v35 = vsub.f32 1.5, %v1593_v17  ;;  %v1397_v31 = vsel %vm299_vm1, %v1331_v6, 0.0  ;;  %v7621_v17 = vpop.f32.mrf.mxu0 }
 0x32d   :  { %v1603_v19 = vmul.f32 0.5, %v1602_v56  ;;  %1398 = vadd.xlane.f32.xlu1 %v1397_v31  ;;  %3159 = vmatpush.msra.mxu2 %v1908_v30 }
 0x32e   :  { %v1381_v53 = vpop.xlane.xlu1 %1380  ;;  %v1595_v23 = vmul.f32 %v5084_v18, %v1594_v35  ;;  %4285 = vmatpush.msra.mxu0 %v1908_v30  ;;  %v1890_v30 = vadd.f32 %v7566_v11, %v7486_v7 }
 0x32f   :  { %v1437_v61 = vmul.f32 %v1381_v53, %v5845_v32  ;;  %v1604_v46 = vsub.f32 1.5, %v1603_v19  ;;  %3160 = vmatpush.msra.mxu2 %v1905_v26  ;;  %v7640_v53 = vpop.f32.mrf.mxu1 }
 0x330   :  { %v1599_v39 = vsel %vm1598_vm9, %v5084_v18, %v1595_v23  ;;  %v1899_v18 = vadd.f32 %v7566_v11, %v7521_v60  ;;  %4286 = vmatpush.msra.mxu0 %v1905_v26 }
 0x331   :  { %v7586_v33 = vadd.f32 1e-05, %v1437_v61  ;;  %v1771_v2 = vmul.f32 %v1599_v39, %v7261_v29  ;;  %v1605_v3 = vmul.f32 %v5086_v62, %v1604_v46  ;;  %v1250_v29 = vsel %vm299_vm1, %v7591_v28, 0.0  ;;  %3161 = vmatpush.msra.mxu2 %v1902_v4  ;;  %v1169_v56 = vpop.f32.mrf.mxu3 }
 0x332   :  { %4819 = vmatmul.msk.f32.gmra.mxu3 %vm113_vm0, %v5444_v0  ;;  %1248 = vadd.xlane.f32.xlu2 %v1247_v20  ;;  %v7650_v20 = vadd.f32 %v7230_v55, %v1169_v56 }
 0x333   :  { %5087 = vrsqrt.f32 %v7586_v33  ;;  %v1799_v5 = vmul.f32 %v7606_v58, %v1771_v2  ;;  %v1609_v60 = vsel %vm1608_vm12, %v5086_v62, %v1605_v3  ;;  %4287 = vmatpush.msra.mxu0 %v1902_v4  ;;  %3162 = vmatpush.msra.mxu2 %v1899_v18  ;;  %v1884_v4 = vadd.f32 %v7566_v11, %v7462_v48 }
 0x334   :  { %v1772_v59 = vmul.f32 %v1609_v60, %v7272_v63  ;;  %v7661_v55 = vpop.f32.mrf.mxu0  ;;  %v1881_v2 = vadd.f32 %v7566_v11, %v7445_v13  ;;  %vm1616_vm14 = vweird.f32 %v7586_v33  ;;  %v1253_v3 = vsel %vm299_vm1, %v7650_v20, 0.0 }
 0x335   :  { %v1827_v14 = vadd.f32 %v7618_v42, %v1799_v5  ;;  %1251 = vadd.xlane.f32.xlu1 %v1250_v29  ;;  %4288 = vmatpush.msra.mxu0 %v1899_v18  ;;  %v5448_v5 = vld [vmem:[%s9842_s1 + $0x88] sm:$0xff]  ;;  %v1878_v13 = vadd.f32 %v7566_v11, %v7423_v10 }
 0x336   :  { %v1234_v45 = vpop.xlane.xlu1 %1233  ;;  %3163 = vmatpush.msra.mxu2 %v1896_v57  ;;  %v1800_v6 = vmul.f32 %v7606_v58, %v1772_v59  ;;  %v1875_v59 = vadd.f32 %v7566_v11, %v7391_v24  ;;  %v1872_v24 = vadd.f32 %v7566_v11, %v7350_v15  ;;  %v7709_v15 = vmul.f32 0.17677669, %v7621_v17 }
 0x337   :  { %v1276_v54 = vmul.f32 %v1234_v45, %v5845_v32  ;;  %4859 = vmatmul.msk.f32.gmra.mxu0 %vm299_vm1, %v1827_v14  ;;  %4899 = vmatmul.msk.f32.gmra.mxu1 %vm299_vm1, %v1827_v14  ;;  %v7684_v10 = vpop.f32.mrf.mxu1 }
 0x338   :  { %4289 = vmatpush.msra.mxu0 %v1896_v57  ;;  %3164 = vmatpush.msra.mxu2 %v1893_v34  ;;  %v1828_v39 = vadd.f32 %v7618_v42, %v1800_v6  ;;  %v2476_v57 = vlaneseq }
 0x339   :  { %v5088_v62 = vpop.eup %5087  ;;  %v7626_v63 = vsub.f32 %v7327_v52, %v1276_v54  ;;  %v5447_v52 = vld [vmem:[%s9842_s1 + $0x80] sm:$0xff] }
 0x33a   :  { %v1611_v12 = vmul.f32 %v5088_v62, %v7586_v33  ;;  %4820 = vmatmul.msk.f32.gmra.mxu3 %vm113_vm0, %v5447_v52  ;;  %4290 = vmatpush.msra.mxu0 %v1893_v34  ;;  %vm1617_vm13 = vweird.f32 %v5088_v62  ;;  %v7697_v6 = vand.u32 127, %v2476_v57 }
 0x33b   :  { %v1332_v44 = vmul.f32 %v7626_v63, %v7626_v63  ;;  %3165 = vmatpush.msra.mxu2 %v1890_v30  ;;  %vm1618_vm15 = vmor %vm1616_vm14, %vm1617_vm13 }
 0x33c   :  { %v1612_v25 = vmul.f32 %v5088_v62, %v1611_v12  ;;  %4291 = vmatpush.msra.mxu0 %v1890_v30  ;;  %v1869_v30 = vadd.f32 %v7566_v11, %v7318_v40  ;;  %vm2482_vm2 = vcmp.lt.s32.totalorder %v7697_v6, 112  ;;  %v2241_v17 = vpop.f32.mrf.mxu0  ;;  %vm3606_vm13 = vcmp.ge.s32.totalorder %v7697_v6, 112 }
 0x33d   :  { %v1387_v35 = vpop.xlane.xlu2 %1386  ;;  %v1400_v8 = vsel %vm299_vm1, %v1332_v44, 0.0  ;;  %3166 = vmatpush.msra.mxu2 %v1887_v41 }
 0x33e   :  { %v1439_v7 = vmul.f32 %v1387_v35, %v5845_v32  ;;  %v1613_v61 = vmul.f32 0.5, %v1612_v25  ;;  %1401 = vadd.xlane.f32.xlu0 %v1400_v8  ;;  %4292 = vmatpush.msra.mxu0 %v1887_v41 }
 0x33f   :  { %v1384_v31 = vpop.xlane.xlu0 %1383  ;;  %4860 = vmatmul.msk.f32.gmra.mxu0 %vm299_vm1, %v1828_v39  ;;  %4900 = vmatmul.msk.f32.gmra.mxu1 %vm299_vm1, %v1828_v39  ;;  %v1866_v39 = vadd.f32 %v7566_v11, %v7295_v47 }
 0x340   :  { %v7646_v23 = vadd.f32 1e-05, %v1439_v7  ;;  %v1390_v19 = vpop.xlane.xlu1 %1389  ;;  %v1438_v26 = vmul.f32 %v1384_v31, %v5845_v32  ;;  %v1614_v46 = vsub.f32 1.5, %v1613_v61  ;;  %3167 = vmatpush.msra.mxu2 %v1884_v4  ;;  %4293 = vmatpush.msra.mxu0 %v1884_v4 }
 0x341   :  { %v1440_v1 = vmul.f32 %v1390_v19, %v5845_v32 }
 0x342   :  { %5089 = vrsqrt.f32 %v7646_v23  ;;  %v7657_v0 = vadd.f32 1e-05, %v1438_v26  ;;  %v1615_v18 = vmul.f32 %v5088_v62, %v1614_v46  ;;  %4821 = vmatmul.msk.f32.gmra.mxu3 %vm113_vm0, %v5448_v5  ;;  %3168 = vmatpush.msra.mxu2 %v1881_v2  ;;  %v7721_v26 = vpop.f32.mrf.mxu2  ;;  %vm1636_vm11 = vweird.f32 %v7646_v23 }
 0x343   :  { %v7666_v48 = vadd.f32 1e-05, %v1440_v1  ;;  %4294 = vmatpush.msra.mxu0 %v1881_v2  ;;  %v5464_v1 = vmov -inf  }
 0x344   :  { %5091 = vrsqrt.f32 %v7657_v0  ;;  %v1619_v33 = vsel %vm1618_vm15, %v5088_v62, %v1615_v18  ;;  %3169 = vmatpush.msra.mxu2 %v1878_v13  ;;  %v7730_v2 = vsel %vm113_vm0, -1e+30, %v5464_v1  ;;  %v5449_v18 = vld [vmem:[%s9842_s1 + $0x90] sm:$0xff]  ;;  %vm1626_vm8 = vweird.f32 %v7657_v0  ;;  %v5452_v1 = vld [vmem:[%s9842_s1 + $0xa8] sm:$0xff] }
 0x345   :  { %5093 = vrsqrt.f32 %v7666_v48  ;;  %v1240_v29 = vpop.xlane.xlu2 %1239  ;;  %v1773_v60 = vmul.f32 %v1619_v33, %v7309_v37  ;;  %4295 = vmatpush.msra.mxu0 %v1878_v13  ;;  %v7742_v33 = vpop.f32.mrf.mxu1  ;;  %vm1646_vm4 = vweird.f32 %v7666_v48 }
 0x346   :  { %v1278_v45 = vmul.f32 %v1240_v29, %v5845_v32  ;;  %1254 = vadd.xlane.f32.xlu0 %v1253_v3  ;;  %3170 = vmatpush.msra.mxu2 %v1875_v59 }
 0x347   :  { %v1237_v54 = vpop.xlane.xlu0 %1236  ;;  %v1801_v37 = vmul.f32 %v7606_v58, %v1773_v60  ;;  %4296 = vmatpush.msra.mxu0 %v1875_v59 }
 0x348   :  { %v7682_v14 = vpop.eup %5089  ;;  %v7687_v34 = vsub.f32 %v7400_v9, %v1278_v45  ;;  %v1243_v62 = vpop.xlane.xlu1 %1242  ;;  %v1277_v12 = vmul.f32 %v1237_v54, %v5845_v32  ;;  %3171 = vmatpush.msra.mxu2 %v1872_v24  ;;  %v7752_v54 = vmul.f32 0.17677669, %v7661_v55 }
 0x349   :  { %v1631_v44 = vmul.f32 %v7682_v14, %v7646_v23  ;;  %v1279_v52 = vmul.f32 %v1243_v62, %v5845_v32  ;;  %v1829_v35 = vadd.f32 %v7618_v42, %v1801_v37  ;;  %4297 = vmatpush.msra.mxu0 %v1872_v24  ;;  %vm1637_vm6 = vweird.f32 %v7682_v14  ;;  %v2244_v62 = vpop.f32.mrf.mxu0 }
 0x34a   :  { %v5092_v9 = vpop.eup %5091  ;;  %v7701_v25 = vsub.f32 %v7407_v49, %v1277_v12  ;;  %v1334_v40 = vmul.f32 %v7687_v34, %v7687_v34  ;;  %4822 = vmatmul.msk.f32.gmra.mxu3 %vm113_vm0, %v5449_v18  ;;  %3172 = vmatpush.msra.mxu2 %v1869_v30  ;;  %vm1638_vm5 = vmor %vm1636_vm11, %vm1637_vm6 }
 0x34b   :  { %v7706_v56 = vpop.eup %5093  ;;  %v1632_v7 = vmul.f32 %v7682_v14, %v1631_v44  ;;  %v1621_v8 = vmul.f32 %v5092_v9, %v7657_v0  ;;  %4861 = vmatmul.msk.f32.gmra.mxu0 %vm299_vm1, %v1829_v35  ;;  %4901 = vmatmul.msk.f32.gmra.mxu1 %vm299_vm1, %v1829_v35  ;;  %v7726_v4 = vsub.f32 %v7410_v27, %v1279_v52  ;;  %v7740_v27 = vsel %vm2482_vm2, %v7709_v15, -1e+30  ;;  %v7762_v44 = vpop.f32.mrf.mxu2 }
 0x34c   :  { %v1641_v49 = vmul.f32 %v7706_v56, %v7666_v48  ;;  %v1406_v41 = vsel %vm299_vm1, %v1334_v40, 0.0  ;;  %v1333_v61 = vmul.f32 %v7701_v25, %v7701_v25  ;;  %vm1627_vm3 = vweird.f32 %v5092_v9  ;;  %4298 = vmatpush.msra.mxu0 %v1869_v30  ;;  %3173 = vmatpush.msra.mxu2 %v1866_v39  ;;  %v5450_v30 = vld [vmem:[%s9842_s1 + $0x98] sm:$0xff] }
 0x34d   :  { %v1633_v31 = vmul.f32 0.5, %v1632_v7  ;;  %v1622_v19 = vmul.f32 %v5092_v9, %v1621_v8  ;;  %1407 = vadd.xlane.f32.xlu1 %v1406_v41  ;;  %v2543_v29 = vmax.f32 %v7740_v27, %v7730_v2  ;;  %v1335_v57 = vmul.f32 %v7726_v4, %v7726_v4  ;;  %vm1628_vm7 = vmor %vm1626_vm8, %vm1627_vm3 }
 0x34e   :  { %v1403_v46 = vsel %vm299_vm1, %v1333_v61, 0.0  ;;  %v1642_v5 = vmul.f32 %v7706_v56, %v1641_v49  ;;  %4299 = vmatpush.msra.mxu0 %v1866_v39  ;;  %vm1647_vm9 = vweird.f32 %v7706_v56  ;;  %v7778_v7 = vmul.f32 0.17677669, %v2241_v17  ;;  %v5451_v49 = vld [vmem:[%s9842_s1 + $0xa0] sm:$0xff] }
 0x34f   :  { %v1634_v3 = vsub.f32 1.5, %v1633_v31  ;;  %v1623_v47 = vmul.f32 0.5, %v1622_v19  ;;  %1404 = vadd.xlane.f32.xlu2 %v1403_v46  ;;  %v1409_v37 = vsel %vm299_vm1, %v1335_v57, 0.0  ;;  %vm1648_vm10 = vmor %vm1646_vm4, %vm1647_vm9  ;;  %v7800_v46 = vmul.f32 0.17677669, %v2244_v62 }
 0x350   :  { %v1643_v45 = vmul.f32 0.5, %v1642_v5  ;;  %v7792_v61 = vsel %vm2482_vm2, %v7778_v7, -1e+30 }
 0x351   :  { %v1624_v13 = vsub.f32 1.5, %v1623_v47  ;;  %v1635_v60 = vmul.f32 %v7682_v14, %v1634_v3  ;;  %v2247_v8 = vpop.f32.mrf.mxu0  ;;  %v2551_v39 = vmax.f32 %v7792_v61, %v7730_v2  ;;  %v7814_v18 = vsel %vm2482_vm2, %v7800_v46, -1e+30 }
 0x352   :  { %4823 = vmatmul.msk.f32.gmra.mxu3 %vm113_vm0, %v5450_v30  ;;  %v1644_v24 = vsub.f32 1.5, %v1643_v45  ;;  %9999 = vst [vmem:[#allocation13_spill] sm:$0xff] %v7814_v18  ;;  %v7817_v3 = vadd.s32 128, %v7697_v6  ;;  %v7824_v57 = vmul.f32 0.17677669, %v2247_v8 }
 0x353   :  { %v1625_v59 = vmul.f32 %v5092_v9, %v1624_v13  ;;  %v1639_v55 = vsel %vm1638_vm5, %v7682_v14, %v1635_v60  ;;  %v7794_v17 = vpop.f32.mrf.mxu2  ;;  %v2555_v13 = vmax.f32 %v7814_v18, %v7730_v2 }
 0x354   :  { %v1775_v52 = vmul.f32 %v1639_v55, %v7362_v51  ;;  %v1645_v40 = vmul.f32 %v7706_v56, %v1644_v24  ;;  %vm3609_vm12 = vcmp.lt.s32.totalorder %v7817_v3, 224  ;;  %v7843_v62 = vsel %vm3606_vm13, %v7824_v57, -1e+30 }
 0x355   :  { %v1629_v0 = vsel %vm1628_vm7, %v5092_v9, %v1625_v59  ;;  %2544 = vmax.xlane.f32.xlu1 %v2543_v29  ;;  %v7770_v9 = vpop.f32.mrf.mxu1  ;;  %v5453_v59 = vld [vmem:[%s9842_s1 + $0xb0] sm:$0xff]  ;;  %10001 = vst [vmem:[#allocation3_spill] sm:$0xff] %v7843_v62 }
 0x356   :  { %v1774_v12 = vmul.f32 %v1629_v0, %v7373_v22  ;;  %v7768_v22 = vsel %vm2482_vm2, %v7752_v54, -1e+30  ;;  %v1803_v51 = vmul.f32 %v7606_v58, %v1775_v52  ;;  %v1649_v41 = vsel %vm1648_vm10, %v7706_v56, %v1645_v40 }
 0x357   :  { %1410 = vadd.xlane.f32.xlu2 %v1409_v37  ;;  %v2547_v14 = vmax.f32 %v7768_v22, %v7730_v2  ;;  %v1776_v31 = vmul.f32 %v1649_v41, %v7384_v16 }
 0x358   :  { %v1802_v23 = vmul.f32 %v7606_v58, %v1774_v12  ;;  %v1831_v19 = vadd.f32 %v7618_v42, %v1803_v51 }
 0x359   :  { %v1804_v56 = vmul.f32 %v7606_v58, %v1776_v31  ;;  %v7809_v16 = vpop.f32.mrf.mxu0 }
 0x35a   :  { %v1830_v35 = vadd.f32 %v7618_v42, %v1802_v23  ;;  %4824 = vmatmul.msk.f32.gmra.mxu3 %vm113_vm0, %v5451_v49  ;;  %v5454_v23 = vld [vmem:[%s9842_s1 + $0xb8] sm:$0xff] }
 0x35b   :  { %v1832_v47 = vadd.f32 %v7618_v42, %v1804_v56  ;;  %v7822_v29 = vpop.f32.mrf.mxu2 }
 0x35c   :  { %4862 = vmatmul.msk.f32.gmra.mxu0 %vm299_vm1, %v1830_v35  ;;  %4902 = vmatmul.msk.f32.gmra.mxu1 %vm299_vm1, %v1830_v35 }
 0x35d   :  { %2548 = vmax.xlane.f32.xlu1 %v2547_v14  ;;  %v2348_v48 = vpop.f32.mrf.mxu1 }
 0x35e   :  { %v2429_v5 = vmul.f32 0.17677669, %v2348_v48 }
 0x360   :  { %v7833_v45 = vsel %vm3609_vm12, %v2429_v5, -1e+30 }
 0x361   :  { %10000 = vst [vmem:[#allocation14_spill] sm:$0xff] %v7833_v45  ;;  %v3684_v0 = vsel %vm113_vm0, %v7833_v45, -inf  ;;  %v2253_v12 = vpop.f32.mrf.mxu0 }
 0x362   :  { %4825 = vmatmul.msk.f32.gmra.mxu3 %vm113_vm0, %v5452_v1  ;;  %v3685_v37 = vmax.f32 %v7843_v62, %v3684_v0  ;;  %v7848_v30 = vmul.f32 0.17677669, %v2253_v12 }
 0x363   :  { %v7850_v55 = vpop.f32.mrf.mxu2 }
 0x364   :  { %4863 = vmatmul.msk.f32.gmra.mxu0 %vm299_vm1, %v1831_v19  ;;  %4903 = vmatmul.msk.f32.gmra.mxu1 %vm299_vm1, %v1831_v19  ;;  %v7861_v52 = vsel %vm2482_vm2, %v7848_v30, -1e+30 }
 0x365   :  { %2552 = vmax.xlane.f32.xlu1 %v2551_v39  ;;  %v7826_v60 = vpop.f32.mrf.mxu1  ;;  %10002 = vst [vmem:[#allocation2_spill] sm:$0xff] %v7861_v52  ;;  %v2567_v40 = vmax.f32 %v7861_v52, %v7730_v2 }
 0x369   :  { %v2256_v35 = vpop.f32.mrf.mxu0 }
 0x36a   :  { %4826 = vmatmul.msk.f32.gmra.mxu3 %vm113_vm0, %v5453_v59  ;;  %v2434_v14 = vmul.f32 0.17677669, %v2256_v35 }
 0x36b   :  { %v7865_v51 = vpop.f32.mrf.mxu2 }
 0x36c   :  { %4864 = vmatmul.msk.f32.gmra.mxu0 %vm299_vm1, %v1832_v47  ;;  %4904 = vmatmul.msk.f32.gmra.mxu1 %vm299_vm1, %v1832_v47  ;;  %v7869_v49 = vsel %vm2482_vm2, %v2434_v14, -1e+30  ;;  %v7881_v56 = vsel %vm3606_vm13, %v2434_v14, -1e+30  ;;  %v2421_v14 = vmul.f32 0.17677669, %v7640_v53 }
 0x36d   :  { %2556 = vmax.xlane.f32.xlu1 %v2555_v13  ;;  %v7852_v24 = vpop.f32.mrf.mxu1  ;;  %10003 = vst [vmem:[#allocation7_spill] sm:$0xff] %v7869_v49  ;;  %v2571_v48 = vmax.f32 %v7869_v49, %v7730_v2  ;;  %v2423_v53 = vmul.f32 0.17677669, %v7684_v10 }
 0x36e   :  { %10005 = vst [vmem:[#allocation5_spill] sm:$0xff] %v7881_v56 }
 0x371   :  { %v7887_v59 = vpop.f32.mrf.mxu0 }
 0x372   :  { %4827 = vmatmul.msk.f32.gmra.mxu3 %vm113_vm0, %v5454_v23 }
 0x373   :  { %v7877_v19 = vpop.f32.mrf.mxu2 }
 0x375   :  { %3686 = vmax.xlane.f32.xlu1 %v3685_v37  ;;  %v2357_v8 = vpop.f32.mrf.mxu1 }
 0x376   :  { %v2435_v41 = vmul.f32 0.17677669, %v2357_v8 }
 0x378   :  { %v7875_v31 = vsel %vm3609_vm12, %v2435_v41, -1e+30 }
 0x379   :  { %10004 = vst [vmem:[#allocation4_spill] sm:$0xff] %v7875_v31  ;;  %v3696_v1 = vsel %vm113_vm0, %v7875_v31, -inf  ;;  %v7923_v31 = vsel %vm3609_vm12, %v2423_v53, -1e+30 }
 0x37a   :  { %v3697_v13 = vmax.f32 %v7881_v56, %v3696_v1 }
 0x37b   :  { %v7892_v23 = vpop.f32.mrf.mxu2 }
 0x37d   :  { %2568 = vmax.xlane.f32.xlu1 %v2567_v40  ;;  %v7889_v0 = vpop.f32.mrf.mxu1 }
 0x383   :  { %v1393_v39 = vpop.xlane.xlu0 %1392  ;;  %v7917_v56 = vpop.f32.mrf.mxu2 }
 0x384   :  { %v1441_v5 = vmul.f32 %v1393_v39, %v5845_v32  ;;  %v7900_v39 = vpop.f32.mrf.mxu0 }
 0x385   :  { %2572 = vmax.xlane.f32.xlu1 %v2571_v48  ;;  %v7902_v1 = vpop.f32.mrf.mxu1 }
 0x386   :  { %v1469_v47 = vadd.f32 1e-05, %v1441_v5 }
 0x388   :  { %5095 = vrsqrt.f32 %v1469_v47  ;;  %vm1656_vm15 = vweird.f32 %v1469_v47 }
 0x38b   :  { %v1246_v12 = vpop.xlane.xlu0 %1245 }
 0x38c   :  { %v1280_v37 = vmul.f32 %v1246_v12, %v5845_v32  ;;  %v7907_v12 = vsel %vm3609_vm12, %v2421_v14, -1e+30 }
 0x38d   :  { %3698 = vmax.xlane.f32.xlu1 %v3697_v13 }
 0x38e   :  { %v5096_v35 = vpop.eup %5095  ;;  %v7895_v40 = vsub.f32 %v7537_v21, %v1280_v37  ;;  %v7913_v37 = vsel %vm3606_vm13, %v7709_v15, -1e+30 }
 0x38f   :  { %v1651_v8 = vmul.f32 %v5096_v35, %v1469_v47  ;;  %vm1657_vm14 = vweird.f32 %v5096_v35 }
 0x390   :  { %v1336_v41 = vmul.f32 %v7895_v40, %v7895_v40  ;;  %vm1658_vm3 = vmor %vm1656_vm15, %vm1657_vm14 }
 0x391   :  { %v1652_v48 = vmul.f32 %v5096_v35, %v1651_v8  ;;  %v3668_v8 = vsel %vm113_vm0, %v7907_v12, -inf }
 0x392   :  { %v1412_v5 = vsel %vm299_vm1, %v1336_v41, 0.0  ;;  %v3669_v14 = vmax.f32 %v7913_v37, %v3668_v8 }
 0x393   :  { %v1653_v13 = vmul.f32 0.5, %v1652_v48  ;;  %1413 = vadd.xlane.f32.xlu0 %v1412_v5 }
 0x395   :  { %v1654_v21 = vsub.f32 1.5, %v1653_v13 }
 0x397   :  { %v1655_v41 = vmul.f32 %v5096_v35, %v1654_v21 }
 0x399   :  { %v1659_v48 = vsel %vm1658_vm3, %v5096_v35, %v1655_v41  ;;  %v7939_v41 = vsel %vm3606_vm13, %v7752_v54, -1e+30 }
 0x39a   :  { %v1777_v5 = vmul.f32 %v1659_v48, %v7525_v38  ;;  %v2265_v13 = vpop.f32.mrf.mxu0  ;;  %v2366_v10 = vpop.f32.mrf.mxu1  ;;  %v3672_v38 = vsel %vm113_vm0, %v7923_v31, -inf }
 0x39b   :  { %v2440_v15 = vmul.f32 0.17677669, %v2265_v13  ;;  %3670 = vmax.xlane.f32.xlu0 %v3669_v14  ;;  %v2441_v52 = vmul.f32 0.17677669, %v2366_v10  ;;  %v7942_v14 = vpop.f32.mrf.mxu2  ;;  %v3673_v54 = vmax.f32 %v7939_v41, %v3672_v38 }
 0x39c   :  { %v1805_v47 = vmul.f32 %v7606_v58, %v1777_v5 }
 0x39d   :  { %v1396_v49 = vpop.xlane.xlu2 %1395  ;;  %v7929_v35 = vsel %vm2482_vm2, %v2440_v15, -1e+30  ;;  %v7948_v5 = vsel %vm3609_vm12, %v2441_v52, -1e+30 }
 0x39e   :  { %v1442_v62 = vmul.f32 %v1396_v49, %v5845_v32  ;;  %10006 = vst [vmem:[#allocation9_spill] sm:$0xff] %v7929_v35  ;;  %v2583_v53 = vmax.f32 %v7929_v35, %v7730_v2  ;;  %v1833_v8 = vadd.f32 %v7618_v42, %v1805_v47  ;;  %v2425_v49 = vmul.f32 0.17677669, %v7742_v33 }
 0x39f   :  { %10007 = vst [vmem:[#allocation11_spill] sm:$0xff] %v7948_v5  ;;  %v7954_v33 = vsel %vm3606_vm13, %v2440_v15, -1e+30  ;;  %v3708_v47 = vsel %vm113_vm0, %v7948_v5, -inf  ;;  %v7970_v15 = vsel %vm3606_vm13, %v7778_v7, -1e+30 }
 0x3a0   :  { %v1470_v21 = vadd.f32 1e-05, %v1442_v62  ;;  %v1399_v48 = vpop.xlane.xlu1 %1398  ;;  %2584 = vmax.xlane.f32.xlu1 %v2583_v53  ;;  %4865 = vmatmul.msk.f32.gmra.mxu0 %vm299_vm1, %v1833_v8  ;;  %10008 = vst [vmem:[#allocation8_spill] sm:$0xff] %v7954_v33  ;;  %v7960_v53 = vsel %vm3609_vm12, %v2425_v49, -1e+30 }
 0x3a1   :  { %v1443_v62 = vmul.f32 %v1399_v48, %v5845_v32  ;;  %4905 = vmatmul.msk.f32.gmra.mxu1 %vm299_vm1, %v1833_v8  ;;  %10009 = vst [vmem:[#allocation6_spill] sm:$0xff] %v7960_v53  ;;  %v3709_v48 = vmax.f32 %v7954_v33, %v3708_v47 }
 0x3a2   :  { %5097 = vrsqrt.f32 %v1470_v21  ;;  %vm1666_vm6 = vweird.f32 %v1470_v21 }
 0x3a3   :  { %v1471_v13 = vadd.f32 1e-05, %v1443_v62  ;;  %3674 = vmax.xlane.f32.xlu0 %v3673_v54  ;;  %v3676_v62 = vsel %vm113_vm0, %v7960_v53, -inf  ;;  %v1943_v47 = vpop.f32.mrf.mxu2 }
 0x3a5   :  { %v1249_v10 = vpop.xlane.xlu2 %1248  ;;  %5099 = vrsqrt.f32 %v1471_v13  ;;  %vm1676_vm5 = vweird.f32 %v1471_v13 }
 0x3a6   :  { %v1281_v52 = vmul.f32 %v1249_v10, %v5845_v32 }
 0x3a8   :  { %v5098_v8 = vpop.eup %5097  ;;  %v7964_v38 = vsub.f32 %v7577_v36, %v1281_v52  ;;  %v1252_v49 = vpop.xlane.xlu1 %1251  ;;  %3710 = vmax.xlane.f32.xlu1 %v3709_v48  ;;  %v3677_v52 = vmax.f32 %v7970_v15, %v3676_v62 }
 0x3a9   :  { %v1661_v54 = vmul.f32 %v5098_v8, %v1470_v21  ;;  %v1282_v5 = vmul.f32 %v1252_v49, %v5845_v32  ;;  %vm1667_vm8 = vweird.f32 %v5098_v8 }
 0x3aa   :  { %10010 = vst [vmem:[#allocation10_spill] sm:$0xff] %v7964_v38  ;;  %v1337_v10 = vmul.f32 %v7964_v38, %v7964_v38  ;;  %vm1668_vm7 = vmor %vm1666_vm6, %vm1667_vm8 }
 0x3ab   :  { %v1662_v36 = vmul.f32 %v5098_v8, %v1661_v54  ;;  %v5100_v33 = vpop.eup %5099  ;;  %v7979_v35 = vsub.f32 %v7591_v28, %v1282_v5  ;;  %3678 = vmax.xlane.f32.xlu0 %v3677_v52  ;;  %v7988_v28 = vsel %vm2482_vm2, %v7824_v57, -1e+30  ;;  %v2431_v5 = vmul.f32 0.17677669, %v7826_v60 }
 0x3ac   :  { %v1415_v7 = vsel %vm299_vm1, %v1337_v10, 0.0  ;;  %v1671_v53 = vmul.f32 %v5100_v33, %v1471_v13  ;;  %vm1677_vm11 = vweird.f32 %v5100_v33  ;;  %v2559_v52 = vmax.f32 %v7988_v28, %v7730_v2 }
 0x3ad   :  { %v1663_v45 = vmul.f32 0.5, %v1662_v36  ;;  %1416 = vadd.xlane.f32.xlu2 %v1415_v7  ;;  %v1338_v62 = vmul.f32 %v7979_v35, %v7979_v35  ;;  %vm1678_vm9 = vmor %vm1676_vm5, %vm1677_vm11 }
 0x3ae   :  { %v1672_v49 = vmul.f32 %v5100_v33, %v1671_v53 }
 0x3af   :  { %v1664_v48 = vsub.f32 1.5, %v1663_v45  ;;  %v7992_v45 = vmul.f32 0.17677669, %v7809_v16  ;;  %v1418_v16 = vsel %vm299_vm1, %v1338_v62, 0.0 }
 0x3b0   :  { %v1673_v10 = vmul.f32 0.5, %v1672_v49 }
 0x3b1   :  { %v1402_v18 = vpop.xlane.xlu0 %1401  ;;  %v1665_v54 = vmul.f32 %v5098_v8, %v1664_v48  ;;  %v8015_v13 = vsel %vm3606_vm13, %v7992_v45, -1e+30 }
 0x3b2   :  { %v1444_v38 = vmul.f32 %v1402_v18, %v5845_v32  ;;  %v1674_v36 = vsub.f32 1.5, %v1673_v10 }
 0x3b3   :  { %v1669_v18 = vsel %vm1668_vm7, %v5098_v8, %v1665_v54  ;;  %2560 = vmax.xlane.f32.xlu0 %v2559_v52  ;;  %v1946_v8 = vpop.f32.mrf.mxu2  ;;  %v1944_v54 = vadd.f32 %v7566_v11, %v1943_v47  ;;  %v1941_v47 = vadd.f32 %v7566_v11, %v7942_v14 }
 0x3b4   :  { %v7994_v53 = vadd.f32 1e-05, %v1444_v38  ;;  %v1778_v57 = vmul.f32 %v1669_v18, %v7558_v50  ;;  %v8000_v60 = vpop.f32.mrf.mxu0  ;;  %v8002_v21 = vpop.f32.mrf.mxu1  ;;  %v1675_v7 = vmul.f32 %v5100_v33, %v1674_v36  ;;  %v8007_v38 = vsel %vm3609_vm12, %v2431_v5, -1e+30 }
 0x3b5   :  { %1419 = vadd.xlane.f32.xlu2 %v1418_v16  ;;  %v1947_v48 = vadd.f32 %v7566_v11, %v1946_v8  ;;  %v3688_v36 = vsel %vm113_vm0, %v8007_v38, -inf  ;;  %v1938_v16 = vadd.f32 %v7566_v11, %v7917_v56 }
 0x3b6   :  { %5101 = vrsqrt.f32 %v7994_v53  ;;  %v1806_v50 = vmul.f32 %v7606_v58, %v1778_v57  ;;  %v1679_v49 = vsel %vm1678_vm9, %v5100_v33, %v1675_v7  ;;  %v2433_v33 = vmul.f32 0.17677669, %v7852_v24 }
 0x3b7   :  { %v1779_v62 = vmul.f32 %v1679_v49, %v7573_v43  ;;  %3263 = vmatpush.msra.mxu3 %v1947_v48  ;;  %4389 = vmatpush.msra.mxu1 %v1947_v48  ;;  %v2427_v43 = vmul.f32 0.17677669, %v7770_v9  ;;  %v3689_v24 = vmax.f32 %v8015_v13, %v3688_v36  ;;  %v1935_v9 = vadd.f32 %v7566_v11, %v7892_v23 }
 0x3b8   :  { %v1834_v5 = vadd.f32 %v7618_v42, %v1806_v50  ;;  %v8046_v49 = vsel %vm3609_vm12, %v2433_v33, -1e+30  ;;  %v8055_v23 = vsel %vm3606_vm13, %v7848_v30, -1e+30  ;;  %v8070_v30 = vsel %vm3606_vm13, %v7800_v46, -1e+30 }
 0x3b9   :  { %v1255_v10 = vpop.xlane.xlu0 %1254  ;;  %3264 = vmatpush.msra.mxu3 %v1944_v54  ;;  %4390 = vmatpush.msra.mxu1 %v1944_v54  ;;  %v1807_v50 = vmul.f32 %v7606_v58, %v1779_v62  ;;  %v8059_v36 = vsel %vm3609_vm12, %v2427_v43, -1e+30  ;;  %v1929_v43 = vadd.f32 %v7566_v11, %v7865_v51  ;;  %vm1686_vm10 = vweird.f32 %v7994_v53 }
 0x3ba   :  { %v1283_v18 = vmul.f32 %v1255_v10, %v5845_v32  ;;  %4866 = vmatmul.msk.f32.gmra.mxu0 %vm299_vm1, %v1834_v5  ;;  %4906 = vmatmul.msk.f32.gmra.mxu1 %vm299_vm1, %v1834_v5  ;;  %v2438_v51 = vmul.f32 0.17677669, %v7900_v39  ;;  %v2439_v39 = vmul.f32 0.17677669, %v7902_v1 }
 0x3bb   :  { %3690 = vmax.xlane.f32.xlu0 %v3689_v24  ;;  %3265 = vmatpush.msra.mxu3 %v1941_v47 }
 0x3bc   :  { %v5102_v52 = vpop.eup %5101  ;;  %v8026_v57 = vsub.f32 %v7650_v20, %v1283_v18  ;;  %v8035_v14 = vpop.f32.mrf.mxu0  ;;  %4391 = vmatpush.msra.mxu1 %v1941_v47  ;;  %v1932_v18 = vadd.f32 %v7566_v11, %v7877_v19  ;;  %v3692_v19 = vsel %vm113_vm0, %v8046_v49, -inf }
 0x3bd   :  { %v1681_v7 = vmul.f32 %v5102_v52, %v7994_v53  ;;  %v8037_v8 = vpop.f32.mrf.mxu1  ;;  %3266 = vmatpush.msra.mxu3 %v1938_v16  ;;  %vm1687_vm4 = vweird.f32 %v5102_v52  ;;  %v3693_v46 = vmax.f32 %v8055_v23, %v3692_v19  ;;  %v1923_v53 = vadd.f32 %v7566_v11, %v7822_v29 }
 0x3be   :  { %v1339_v20 = vmul.f32 %v8026_v57, %v8026_v57  ;;  %4392 = vmatpush.msra.mxu1 %v1938_v16  ;;  %v3680_v16 = vsel %vm113_vm0, %v8059_v36, -inf  ;;  %vm1688_vm14 = vmor %vm1686_vm10, %vm1687_vm4  ;;  %v8110_v19 = vsel %vm2482_vm2, %v7992_v45, -1e+30 }
 0x3bf   :  { %v1682_v48 = vmul.f32 %v5102_v52, %v1681_v7  ;;  %v1835_v7 = vadd.f32 %v7618_v42, %v1807_v50  ;;  %3267 = vmatpush.msra.mxu3 %v1935_v9 }
 0x3c0   :  { %v1408_v56 = vpop.xlane.xlu1 %1407  ;;  %v1421_v10 = vsel %vm299_vm1, %v1339_v20, 0.0  ;;  %4393 = vmatpush.msra.mxu1 %v1935_v9 }
 0x3c1   :  { %v1446_v54 = vmul.f32 %v1408_v56, %v5845_v32  ;;  %v1683_v62 = vmul.f32 0.5, %v1682_v48  ;;  %1422 = vadd.xlane.f32.xlu2 %v1421_v10  ;;  %3268 = vmatpush.msra.mxu3 %v1932_v18  ;;  %v1926_v48 = vadd.f32 %v7566_v11, %v7850_v55 }
 0x3c2   :  { %v1405_v5 = vpop.xlane.xlu2 %1404  ;;  %4867 = vmatmul.msk.f32.gmra.mxu0 %vm299_vm1, %v1835_v7  ;;  %4907 = vmatmul.msk.f32.gmra.mxu1 %vm299_vm1, %v1835_v7 }
 0x3c3   :  { %v8061_v33 = vadd.f32 1e-05, %v1446_v54  ;;  %v1445_v47 = vmul.f32 %v1405_v5, %v5845_v32  ;;  %v1684_v24 = vsub.f32 1.5, %v1683_v62  ;;  %3694 = vmax.xlane.f32.xlu0 %v3693_v46  ;;  %v3681_v54 = vmax.f32 %v8070_v30, %v3680_v16  ;;  %4394 = vmatpush.msra.mxu1 %v1932_v18 }
 0x3c4   :  { %3269 = vmatpush.msra.mxu3 %v1929_v43 }
 0x3c5   :  { %5103 = vrsqrt.f32 %v8061_v33  ;;  %v8075_v20 = vadd.f32 1e-05, %v1445_v47  ;;  %v1685_v50 = vmul.f32 %v5102_v52, %v1684_v24  ;;  %4395 = vmatpush.msra.mxu1 %v1929_v43  ;;  %v1920_v43 = vadd.f32 %v7566_v11, %v7794_v17 }
 0x3c6   :  { %3270 = vmatpush.msra.mxu3 %v1926_v48  ;;  %v1917_v17 = vadd.f32 %v7566_v11, %v7762_v44  ;;  %v1914_v44 = vadd.f32 %v7566_v11, %v7721_v26  ;;  %v2437_v11 = vmul.f32 0.17677669, %v7889_v0  ;;  %vm1706_vm7 = vweird.f32 %v8061_v33 }
 0x3c7   :  { %5105 = vrsqrt.f32 %v8075_v20  ;;  %v1689_v56 = vsel %vm1688_vm14, %v5102_v52, %v1685_v50  ;;  %4396 = vmatpush.msra.mxu1 %v1926_v48  ;;  %vm1696_vm3 = vweird.f32 %v8075_v20 }
 0x3c8   :  { %v1780_v9 = vmul.f32 %v1689_v56, %v7626_v63  ;;  %v2274_v10 = vpop.f32.mrf.mxu0  ;;  %v2375_v62 = vpop.f32.mrf.mxu1  ;;  %v8099_v63 = vsel %vm2482_vm2, %v2438_v51, -1e+30  ;;  %3271 = vmatpush.msra.mxu3 %v1923_v53 }
 0x3c9   :  { %v2446_v55 = vmul.f32 0.17677669, %v2274_v10  ;;  %3682 = vmax.xlane.f32.xlu2 %v3681_v54  ;;  %v2447_v52 = vmul.f32 0.17677669, %v2375_v62  ;;  %v2579_v45 = vmax.f32 %v8099_v63, %v7730_v2  ;;  %4397 = vmatpush.msra.mxu1 %v1923_v53  ;;  %v8125_v54 = vsel %vm3609_vm12, %v2439_v39, -1e+30 }
 0x3ca   :  { %v1411_v5 = vpop.xlane.xlu2 %1410  ;;  %v1808_v18 = vmul.f32 %v7606_v58, %v1780_v9  ;;  %v2563_v53 = vmax.f32 %v8110_v19, %v7730_v2  ;;  %v2436_v39 = vmul.f32 0.17677669, %v7887_v59  ;;  %3272 = vmatpush.msra.mxu3 %v1920_v43 }
 0x3cb   :  { %v8093_v47 = vpop.eup %5103  ;;  %v1447_v7 = vmul.f32 %v1411_v5, %v5845_v32  ;;  %v8105_v1 = vsel %vm2482_vm2, %v2446_v55, -1e+30  ;;  %v8133_v9 = vsel %vm3609_vm12, %v2447_v52, -1e+30  ;;  %2580 = vmax.xlane.f32.xlu0 %v2579_v45  ;;  %4398 = vmatpush.msra.mxu1 %v1920_v43  ;;  %v8143_v5 = vsel %vm3606_vm13, %v2438_v51, -1e+30 }
 0x3cc   :  { %v1701_v29 = vmul.f32 %v8093_v47, %v8061_v33  ;;  %v2595_v50 = vmax.f32 %v8105_v1, %v7730_v2  ;;  %v1836_v46 = vadd.f32 %v7618_v42, %v1808_v18  ;;  %v3704_v52 = vsel %vm113_vm0, %v8125_v54, -inf  ;;  %3273 = vmatpush.msra.mxu3 %v1917_v17 }
 0x3cd   :  { %v5106_v24 = vpop.eup %5105  ;;  %v8114_v16 = vadd.f32 1e-05, %v1447_v7  ;;  %v3720_v59 = vsel %vm113_vm0, %v8133_v9, -inf  ;;  %4399 = vmatpush.msra.mxu1 %v1917_v17  ;;  %vm1707_vm8 = vweird.f32 %v8093_v47  ;;  %v8178_v33 = vsel %vm3609_vm12, %v2437_v11, -1e+30 }
 0x3ce   :  { %v1702_v56 = vmul.f32 %v8093_v47, %v1701_v29  ;;  %v1691_v48 = vmul.f32 %v5106_v24, %v8075_v20  ;;  %2596 = vmax.xlane.f32.xlu1 %v2595_v50  ;;  %4868 = vmatmul.msk.f32.gmra.mxu0 %vm299_vm1, %v1836_v46  ;;  %v8149_v29 = vsel %vm3606_vm13, %v2446_v55, -1e+30  ;;  %vm1697_vm15 = vweird.f32 %v5106_v24  ;;  %vm1708_vm11 = vmor %vm1706_vm7, %vm1707_vm8 }
 0x3cf   :  { %5107 = vrsqrt.f32 %v8114_v16  ;;  %4908 = vmatmul.msk.f32.gmra.mxu1 %vm299_vm1, %v1836_v46  ;;  %v3721_v43 = vmax.f32 %v8149_v29, %v3720_v59  ;;  %3274 = vmatpush.msra.mxu3 %v1914_v44  ;;  %v3705_v50 = vmax.f32 %v8143_v5, %v3704_v52  ;;  %v8159_v55 = vsel %vm2482_vm2, %v2436_v39, -1e+30  ;;  %vm1698_vm6 = vmor %vm1696_vm3, %vm1697_vm15 }
 0x3d0   :  { %v1703_v10 = vmul.f32 0.5, %v1702_v56  ;;  %v1692_v62 = vmul.f32 %v5106_v24, %v1691_v48  ;;  %4400 = vmatpush.msra.mxu1 %v1914_v44  ;;  %v8163_v56 = vpop.xlane.xlu1 %2544  ;;  %v2444_v20 = vmul.f32 0.17677669, %v8035_v14  ;;  %v3700_v11 = vsel %vm113_vm0, %v8178_v33, -inf }
 0x3d1   :  { %2564 = vmax.xlane.f32.xlu2 %v2563_v53  ;;  %vm1716_vm9 = vweird.f32 %v8114_v16 }
 0x3d2   :  { %v1704_v7 = vsub.f32 1.5, %v1703_v10  ;;  %v1693_v18 = vmul.f32 0.5, %v1692_v62  ;;  %v2575_v10 = vmax.f32 %v8159_v55, %v7730_v2 }
 0x3d3   :  { %3706 = vmax.xlane.f32.xlu0 %v3705_v50 }
 0x3d4   :  { %v1694_v26 = vsub.f32 1.5, %v1693_v18  ;;  %v1705_v46 = vmul.f32 %v8093_v47, %v1704_v7  ;;  %v8183_v7 = vsel %vm2482_vm2, %v2444_v20, -1e+30 }
 0x3d5   :  { %v5108_v51 = vpop.eup %5107 }
 0x3d6   :  { %v1695_v0 = vmul.f32 %v5106_v24, %v1694_v26  ;;  %v1711_v48 = vmul.f32 %v5108_v51, %v8114_v16  ;;  %3722 = vmax.xlane.f32.xlu1 %v3721_v43  ;;  %v1709_v52 = vsel %vm1708_vm11, %v8093_v47, %v1705_v46  ;;  %v8190_v47 = vsel %vm3606_vm13, %v2436_v39, -1e+30 }
 0x3d7   :  { %v1782_v59 = vmul.f32 %v1709_v52, %v7687_v34  ;;  %vm1717_vm5 = vweird.f32 %v5108_v51  ;;  %v2442_v39 = vmul.f32 0.17677669, %v8000_v60  ;;  %v2443_v52 = vmul.f32 0.17677669, %v8002_v21 }
 0x3d8   :  { %v1699_v45 = vsel %vm1698_vm6, %v5106_v24, %v1695_v0  ;;  %v1712_v17 = vmul.f32 %v5108_v51, %v1711_v48  ;;  %v2549_v34 = vpop.xlane.xlu1 %2548  ;;  %vm1718_vm4 = vmor %vm1716_vm9, %vm1717_vm5  ;;  %v8208_v0 = vld [vmem:[%s9843_s6] ss:$0 sm:$0xff] }
 0x3d9   :  { %v1781_v62 = vmul.f32 %v1699_v45, %v7701_v25  ;;  %v8171_v53 = vpop.f32.mrf.mxu0  ;;  %v8173_v44 = vpop.f32.mrf.mxu1  ;;  %2576 = vmax.xlane.f32.xlu2 %v2575_v10  ;;  %v2445_v25 = vmul.f32 0.17677669, %v8037_v8  ;;  %v1810_v16 = vmul.f32 %v8208_v0, %v1782_v59  ;;  %v8213_v45 = vsel %vm3606_vm13, %v2444_v20, -1e+30  ;;  %v8221_v10 = vld [vmem:[%s9844_s7] ss:$0 sm:$0xff] }
 0x3da   :  { %v1713_v14 = vmul.f32 0.5, %v1712_v17  ;;  %v8237_v21 = vsel %vm3609_vm12, %v2443_v52, -1e+30 }
 0x3db   :  { %v1809_v24 = vmul.f32 %v7606_v58, %v1781_v62  ;;  %v2591_v58 = vmax.f32 %v8183_v7, %v7730_v2  ;;  %v8202_v8 = vsel %vm3609_vm12, %v2445_v25, -1e+30  ;;  %v1838_v62 = vadd.f32 %v8221_v10, %v1810_v16 }
 0x3dc   :  { %v1714_v18 = vsub.f32 1.5, %v1713_v14  ;;  %v3716_v17 = vsel %vm113_vm0, %v8202_v8, -inf }
 0x3dd   :  { %v1837_v26 = vadd.f32 %v7618_v42, %v1809_v24  ;;  %2592 = vmax.xlane.f32.xlu0 %v2591_v58  ;;  %v3701_v42 = vmax.f32 %v8190_v47, %v3700_v11  ;;  %v3717_v20 = vmax.f32 %v8213_v45, %v3716_v17 }
 0x3de   :  { %v1715_v43 = vmul.f32 %v5108_v51, %v1714_v18 }
 0x3df   :  { %4869 = vmatmul.msk.f32.gmra.mxu0 %vm299_vm1, %v1837_v26  ;;  %4909 = vmatmul.msk.f32.gmra.mxu1 %vm299_vm1, %v1837_v26 }
 0x3e0   :  { %v1719_v48 = vsel %vm1718_vm4, %v5108_v51, %v1715_v43  ;;  %v8226_v51 = vsel %vm2482_vm2, %v2442_v39, -1e+30  ;;  %v2553_v59 = vpop.xlane.xlu1 %2552 }
 0x3e1   :  { %v2280_v50 = vpop.f32.mrf.mxu0  ;;  %v2381_v46 = vpop.f32.mrf.mxu1  ;;  %3702 = vmax.xlane.f32.xlu2 %v3701_v42  ;;  %v1783_v60 = vmul.f32 %v1719_v48, %v7726_v4  ;;  %v2587_v4 = vmax.f32 %v8226_v51, %v7730_v2  ;;  %v2658_v16 = vsub.f32 %v7792_v61, %v2553_v59 }
 0x3e2   :  { %v2450_v14 = vmul.f32 0.17677669, %v2280_v50  ;;  %v2451_v58 = vmul.f32 0.17677669, %v2381_v46  ;;  %v8249_v50 = vsel %vm3606_vm13, %v2442_v39, -1e+30  ;;  %v2656_v46 = vsub.f32 %v7768_v22, %v2549_v34 }
 0x3e3   :  { %v1811_v18 = vmul.f32 %v8208_v0, %v1783_v60  ;;  %v3712_v60 = vsel %vm113_vm0, %v8237_v21, -inf  ;;  %v2718_v22 = vmul.f32 1.442695, %v2658_v16  ;;  %v2448_v34 = vmul.f32 0.17677669, %v8171_v53 }
 0x3e4   :  { %v8241_v43 = vsel %vm2482_vm2, %v2450_v14, -1e+30  ;;  %v3713_v61 = vmax.f32 %v8249_v50, %v3712_v60  ;;  %v8269_v39 = vsel %vm3609_vm12, %v2451_v58, -1e+30 }
 0x3e5   :  { %3718 = vmax.xlane.f32.xlu0 %v3717_v20  ;;  %v1839_v17 = vadd.f32 %v8221_v10, %v1811_v18  ;;  %v2714_v20 = vmul.f32 1.442695, %v2656_v46  ;;  %v3728_v18 = vsel %vm113_vm0, %v8269_v39, -inf  ;;  %5109 = vpow2.f32 %v2718_v22 }
 0x3e6   :  { %v8287_v53 = vsel %vm2482_vm2, %v2448_v34, -1e+30 }
 0x3e7   :  { %4870 = vmatmul.msk.f32.gmra.mxu0 %vm299_vm1, %v1838_v62  ;;  %4910 = vmatmul.msk.f32.gmra.mxu1 %vm299_vm1, %v1838_v62  ;;  %v2603_v62 = vmax.f32 %v8241_v43, %v7730_v2  ;;  %5111 = vpow2.f32 %v2714_v20  ;;  %v2599_v58 = vmax.f32 %v8287_v53, %v7730_v2 }
 0x3e9   :  { %v2283_v24 = vpop.f32.mrf.mxu0  ;;  %v2384_v25 = vpop.f32.mrf.mxu1  ;;  %2588 = vmax.xlane.f32.xlu2 %v2587_v4 }
 0x3ea   :  { %v2452_v26 = vmul.f32 0.17677669, %v2283_v24  ;;  %v2453_v11 = vmul.f32 0.17677669, %v2384_v25  ;;  %v8280_v25 = vsel %vm3606_vm13, %v2450_v14, -1e+30  ;;  %v2654_v14 = vsub.f32 %v7740_v27, %v8163_v56 }
 0x3eb   :  { %10014 = vst [vmem:[#allocation17_spill] sm:$0xff] %v8280_v25 }
 0x3ec   :  { %v8245_v42 = vsel %vm2482_vm2, %v2452_v26, -1e+30  ;;  %v8262_v52 = vsel %vm3609_vm12, %v2453_v11, -1e+30  ;;  %v8274_v4 = vsel %vm3606_vm13, %v2452_v26, -1e+30  ;;  %v3729_v11 = vmax.f32 %v8280_v25, %v3728_v18 }
 0x3ed   :  { %10011 = vst [vmem:[#allocation12_spill] sm:$0xff] %v8245_v42  ;;  %v2607_v48 = vmax.f32 %v8245_v42, %v7730_v2  ;;  %2604 = vmax.xlane.f32.xlu0 %v2603_v62  ;;  %v3732_v24 = vsel %vm113_vm0, %v8262_v52, -inf  ;;  %v2449_v26 = vmul.f32 0.17677669, %v8173_v44  ;;  %v2710_v60 = vmul.f32 1.442695, %v2654_v14 }
 0x3ee   :  { %10012 = vst [vmem:[#allocation15_spill] sm:$0xff] %v8262_v52  ;;  %v3733_v59 = vmax.f32 %v8274_v4, %v3732_v24  ;;  %v8301_v44 = vsel %vm3606_vm13, %v2448_v34, -1e+30  ;;  %v10029_v52 = vld [vmem:[#allocation14_spill] sm:$0xff] }
 0x3ef   :  { %2608 = vmax.xlane.f32.xlu1 %v2607_v48  ;;  %4871 = vmatmul.msk.f32.gmra.mxu0 %vm299_vm1, %v1839_v17  ;;  %10013 = vst [vmem:[#allocation16_spill] sm:$0xff] %v8274_v4  ;;  %v8297_v16 = vsel %vm3609_vm12, %v2449_v26, -1e+30  ;;  %v5110_v48 = vpop.eup %5109  ;;  %5113 = vpow2.f32 %v2710_v60  ;;  %v8324_v60 = vpop.f32.mrf.mxu3 }
 0x3f0   :  { %4911 = vmatmul.msk.f32.gmra.mxu1 %vm299_vm1, %v1839_v17  ;;  %v5112_v17 = vpop.eup %5111  ;;  %v3724_v46 = vsel %vm113_vm0, %v8297_v16, -inf  ;;  %v8307_v27 = vsel %vm2482_vm2, %v5110_v48, 0.0  ;;  %10015 = vst [vmem:[#allocation18_spill] sm:$0xff] %v8324_v60  ;;  %v10020_v60 = vld [vmem:[#allocation6_spill] sm:$0xff] }
 0x3f1   :  { %3714 = vmax.xlane.f32.xlu2 %v3713_v61  ;;  %v8312_v56 = vsel %vm2482_vm2, %v5112_v17, 0.0  ;;  %v3725_v62 = vmax.f32 %v8301_v44, %v3724_v46  ;;  %v5457_v46 = vld [vmem:[%s9842_s1 + $0xc0] sm:$0xff] }
 0x3f2   :  { %4828 = vmatmul.msk.f32.gmra.mxu3 %vm113_vm0, %v5457_v46 }
 0x3f5   :  { %3730 = vmax.xlane.f32.xlu0 %v3729_v11  ;;  %v5114_v61 = vpop.eup %5113 }
 0x3f6   :  { %v8318_v22 = vsel %vm2482_vm2, %v5114_v61, 0.0 }
 0x3f7   :  { %3734 = vmax.xlane.f32.xlu1 %v3733_v59 }
 0x3f9   :  { %2600 = vmax.xlane.f32.xlu2 %v2599_v58 }
 0x3fd   :  { %2884 = vadd.xlane.f32.xlu0 %v8312_v56 }
 0x3ff   :  { %2888 = vadd.xlane.f32.xlu1 %v8307_v27 }
 0x401   :  { %3726 = vmax.xlane.f32.xlu2 %v3725_v62 }
 0x406   :  { %v1414_v34 = vpop.xlane.xlu0 %1413 }
 0x407   :  { %v1448_v20 = vmul.f32 %v1414_v34, %v5845_v32 }
 0x409   :  { %2880 = vadd.xlane.f32.xlu2 %v8318_v22  ;;  %v1476_v24 = vadd.f32 1e-05, %v1448_v20 }
 0x40b   :  { %5115 = vrsqrt.f32 %v1476_v24  ;;  %vm1726_vm14 = vweird.f32 %v1476_v24 }
 0x40e   :  { %v3671_v18 = vpop.xlane.xlu0 %3670 }
 0x40f   :  { %v3780_v59 = vsub.f32 %v7913_v37, %v3671_v18  ;;  %v3781_v26 = vsub.f32 %v7907_v12, %v3671_v18 }
 0x411   :  { %v5116_v11 = vpop.eup %5115  ;;  %v3836_v14 = vmul.f32 1.442695, %v3780_v59  ;;  %v3838_v58 = vmul.f32 1.442695, %v3781_v26 }
 0x412   :  { %v1721_v48 = vmul.f32 %v5116_v11, %v1476_v24  ;;  %vm1727_vm10 = vweird.f32 %v5116_v11  ;;  %v5458_v24 = vld [vmem:[%s9842_s1 + $0xc8] sm:$0xff] }
 0x413   :  { %5117 = vpow2.f32 %v3836_v14  ;;  %v2557_v14 = vpop.xlane.xlu1 %2556  ;;  %vm1728_vm15 = vmor %vm1726_vm14, %vm1727_vm10  ;;  %vm3547_vm14 = vcmask 392512  }
 0x414   :  { %v1722_v17 = vmul.f32 %v5116_v11, %v1721_v48  ;;  %5119 = vpow2.f32 %v3838_v58 }
 0x416   :  { %v1723_v62 = vmul.f32 0.5, %v1722_v17  ;;  %v3675_v61 = vpop.xlane.xlu0 %3674 }
 0x417   :  { %v3782_v37 = vsub.f32 %v7939_v41, %v3675_v61  ;;  %v3783_v12 = vsub.f32 %v7923_v31, %v3675_v61  ;;  %v8343_v61 = vpop.f32.mrf.mxu3  ;;  %4829 = vmatmul.msk.f32.gmra.mxu3 %vm113_vm0, %v5458_v24 }
 0x418   :  { %v1724_v34 = vsub.f32 1.5, %v1723_v62  ;;  %10018 = vst [vmem:[#allocation21_spill] sm:$0xff] %v8343_v61 }
 0x419   :  { %v5118_v20 = vpop.eup %5117  ;;  %v3840_v18 = vmul.f32 1.442695, %v3782_v37  ;;  %v3842_v59 = vmul.f32 1.442695, %v3783_v12  ;;  %v10019_v37 = vld [vmem:[#allocation13_spill] sm:$0xff] }
 0x41a   :  { %v5120_v26 = vpop.eup %5119  ;;  %v1725_v58 = vmul.f32 %v5116_v11, %v1724_v34  ;;  %v8334_v48 = vsel %vm3606_vm13, %v5118_v20, 0.0  ;;  %v2660_v12 = vsub.f32 %v10019_v37, %v2557_v14 }
 0x41b   :  { %5121 = vpow2.f32 %v3840_v18  ;;  %10016 = vst [vmem:[#allocation19_spill] sm:$0xff] %v8334_v48  ;;  %v8338_v41 = vsel %vm3609_vm12, %v5120_v26, 0.0 }
 0x41c   :  { %10017 = vst [vmem:[#allocation20_spill] sm:$0xff] %v8338_v41  ;;  %v1729_v31 = vsel %vm1728_vm15, %v5116_v11, %v1725_v58  ;;  %5123 = vpow2.f32 %v3842_v59  ;;  %v4004_v62 = vsel %vm113_vm0, %v8338_v41, 0.0  ;;  %v2722_v4 = vmul.f32 1.442695, %v2660_v12 }
 0x41d   :  { %v1784_v17 = vmul.f32 %v1729_v31, %v7895_v40  ;;  %v2286_v46 = vpop.f32.mrf.mxu0  ;;  %v4005_v11 = vadd.f32 %v4004_v62, %v8334_v48  ;;  %v10030_v48 = vld [vmem:[#allocation10_spill] sm:$0xff]  ;;  %vm3551_vm15 = vcmask 458112  }
 0x41e   :  { %v8351_v20 = vmul.f32 0.17677669, %v2286_v46  ;;  %v3679_v18 = vpop.xlane.xlu0 %3678 }
 0x41f   :  { %v1812_v59 = vmul.f32 %v8208_v0, %v1784_v17  ;;  %4006 = vadd.xlane.f32.xlu2 %v4005_v11  ;;  %v3784_v26 = vsub.f32 %v7970_v15, %v3679_v18  ;;  %v3785_v61 = vsub.f32 %v10020_v60, %v3679_v18  ;;  %v8367_v15 = vpop.xlane.xlu1 %3686 }
 0x420   :  { %v1417_v34 = vpop.xlane.xlu2 %1416  ;;  %v8361_v46 = vsel %vm2482_vm2, %v8351_v20, -1e+30 }
 0x421   :  { %v1449_v40 = vmul.f32 %v1417_v34, %v5845_v32  ;;  %v5122_v58 = vpop.eup %5121  ;;  %v3844_v14 = vmul.f32 1.442695, %v3784_v26  ;;  %v1840_v37 = vadd.f32 %v8221_v10, %v1812_v59  ;;  %10021 = vst [vmem:[#allocation13_spill] sm:$0xff] %v8361_v46  ;;  %v3846_v62 = vmul.f32 1.442695, %v3785_v61  ;;  %v8381_v59 = vpop.f32.mrf.mxu3  ;;  %v5459_v26 = vld [vmem:[%s9842_s1 + $0xd0] sm:$0xff] }
 0x422   :  { %v5124_v24 = vpop.eup %5123  ;;  %v8365_v17 = vsel %vm3606_vm13, %v5122_v58, 0.0  ;;  %v2611_v34 = vmax.f32 %v8361_v46, %v7730_v2  ;;  %10024 = vst [vmem:[#allocation23_spill] sm:$0xff] %v8381_v59  ;;  %4830 = vmatmul.msk.f32.gmra.mxu3 %vm113_vm0, %v5459_v26 }
 0x423   :  { %v1477_v31 = vadd.f32 1e-05, %v1449_v40  ;;  %10022 = vst [vmem:[#allocation6_spill] sm:$0xff] %v8365_v17  ;;  %4872 = vmatmul.msk.f32.gmra.mxu0 %vm299_vm1, %v1840_v37  ;;  %4912 = vmatmul.msk.f32.gmra.mxu1 %vm299_vm1, %v1840_v37  ;;  %v8373_v60 = vsel %vm3609_vm12, %v5124_v24, 0.0 }
 0x424   :  { %10023 = vst [vmem:[#allocation22_spill] sm:$0xff] %v8373_v60  ;;  %v4008_v12 = vsel %vm113_vm0, %v8373_v60, 0.0 }
 0x425   :  { %5125 = vrsqrt.f32 %v1477_v31  ;;  %v4009_v11 = vadd.f32 %v4008_v12, %v8365_v17  ;;  %vm1736_vm8 = vweird.f32 %v1477_v31 }
 0x426   :  { %5127 = vpow2.f32 %v3844_v14  ;;  %v2561_v18 = vpop.xlane.xlu0 %2560 }
 0x427   :  { %5129 = vpow2.f32 %v3846_v62  ;;  %2612 = vmax.xlane.f32.xlu2 %v2611_v34  ;;  %4010 = vadd.xlane.f32.xlu0 %v4009_v11  ;;  %v8397_v11 = vpop.xlane.xlu1 %2568 }
 0x428   :  { %5131 = vpow2.f32 %v2722_v4  ;;  %v1420_v61 = vpop.xlane.xlu2 %1419 }
 0x429   :  { %v1450_v40 = vmul.f32 %v1420_v61, %v5845_v32  ;;  %v8406_v60 = vpop.f32.mrf.mxu3 }
 0x42a   :  { %10028 = vst [vmem:[#allocation27_spill] sm:$0xff] %v8406_v60  ;;  %v2662_v60 = vsub.f32 %v7988_v28, %v2561_v18 }
 0x42b   :  { %v5126_v4 = vpop.eup %5125  ;;  %v1478_v58 = vadd.f32 1e-05, %v1450_v40 }
 0x42c   :  { %v5128_v24 = vpop.eup %5127  ;;  %v1731_v14 = vmul.f32 %v5126_v4, %v1477_v31  ;;  %vm1737_vm3 = vweird.f32 %v5126_v4  ;;  %v10031_v31 = vld [vmem:[#allocation3_spill] sm:$0xff] }
 0x42d   :  { %v5130_v37 = vpop.eup %5129  ;;  %5133 = vrsqrt.f32 %v1478_v58  ;;  %v8389_v62 = vsel %vm3606_vm13, %v5128_v24, 0.0  ;;  %vm1738_vm6 = vmor %vm1736_vm8, %vm1737_vm3  ;;  %v3788_v28 = vsub.f32 %v10031_v31, %v8367_v15  ;;  %vm1746_vm11 = vweird.f32 %v1478_v58 }
 0x42e   :  { %10025 = vst [vmem:[#allocation24_spill] sm:$0xff] %v8389_v62  ;;  %v5132_v12 = vpop.eup %5131  ;;  %v1732_v61 = vmul.f32 %v5126_v4, %v1731_v14  ;;  %v8393_v59 = vsel %vm3609_vm12, %v5130_v37, 0.0  ;;  %v8404_v24 = vpop.xlane.xlu0 %3690  ;;  %v5460_v14 = vld [vmem:[%s9842_s1 + $0xd8] sm:$0xff]  ;;  %vm3592_vm3 = vcmask 1041409   ;;  %vm3596_vm8 = vcmask 1043459  }
 0x42f   :  { %10026 = vst [vmem:[#allocation25_spill] sm:$0xff] %v8393_v59  ;;  %v4012_v34 = vsel %vm113_vm0, %v8393_v59, 0.0  ;;  %v8402_v46 = vsel %vm2482_vm2, %v5132_v12, 0.0  ;;  %4831 = vmatmul.msk.f32.gmra.mxu3 %vm113_vm0, %v5460_v14  ;;  %v3789_v14 = vsub.f32 %v10029_v52, %v8367_v15 }
 0x430   :  { %v1733_v40 = vmul.f32 0.5, %v1732_v61  ;;  %v4013_v26 = vadd.f32 %v4012_v34, %v8389_v62  ;;  %10027 = vst [vmem:[#allocation26_spill] sm:$0xff] %v8402_v46  ;;  %2892 = vadd.xlane.f32.xlu2 %v8402_v46 }
 0x431   :  { %v3854_v52 = vmul.f32 1.442695, %v3789_v14 }
 0x432   :  { %v1734_v37 = vsub.f32 1.5, %v1733_v40  ;;  %4014 = vadd.xlane.f32.xlu1 %v4013_v26 }
 0x433   :  { %v5134_v61 = vpop.eup %5133 }
 0x434   :  { %v1423_v59 = vpop.xlane.xlu2 %1422  ;;  %v1735_v34 = vmul.f32 %v5126_v4, %v1734_v37  ;;  %v1741_v62 = vmul.f32 %v5134_v61, %v1478_v58  ;;  %vm1747_vm7 = vweird.f32 %v5134_v61 }
 0x435   :  { %v1451_v12 = vmul.f32 %v1423_v59, %v5845_v32  ;;  %v2726_v32 = vmul.f32 1.442695, %v2662_v60  ;;  %v8435_v60 = vpop.xlane.xlu1 %2572  ;;  %vm1748_vm5 = vmor %vm1746_vm11, %vm1747_vm7  ;;  %vm3604_vm7 = vcmask 3072   ;;  %vm4714_vm11 = vcmask 11272  }
 0x436   :  { %v1739_v40 = vsel %vm1738_vm6, %v5126_v4, %v1735_v34  ;;  %v1742_v41 = vmul.f32 %v5134_v61, %v1741_v62  ;;  %v8425_v18 = vpop.xlane.xlu0 %3694  ;;  %vm3599_vm6 = vcmask 453632  }
 0x437   :  { %v8415_v17 = vadd.f32 1e-05, %v1451_v12  ;;  %v1785_v42 = vmul.f32 %v1739_v40, %v10030_v48  ;;  %v2289_v26 = vpop.f32.mrf.mxu0  ;;  %v8428_v12 = vpop.f32.mrf.mxu3 }
 0x438   :  { %v1743_v46 = vmul.f32 0.5, %v1742_v41  ;;  %v8421_v59 = vmul.f32 0.17677669, %v2289_v26  ;;  %10032 = vst [vmem:[#allocation14_spill] sm:$0xff] %v8428_v12  ;;  %v2387_v12 = vpop.f32.mrf.mxu1 }
 0x439   :  { %5135 = vrsqrt.f32 %v8415_v17  ;;  %v1813_v37 = vmul.f32 %v8208_v0, %v1785_v42  ;;  %vm1756_vm4 = vweird.f32 %v8415_v17 }
 0x43a   :  { %v1744_v4 = vsub.f32 1.5, %v1743_v46  ;;  %v8433_v48 = vsel %vm2482_vm2, %v8421_v59, -1e+30  ;;  %5137 = vpow2.f32 %v2726_v32  ;;  %v3852_v46 = vmul.f32 1.442695, %v3788_v28 }
 0x43b   :  { %v1841_v42 = vadd.f32 %v8221_v10, %v1813_v37  ;;  %v2615_v31 = vmax.f32 %v8433_v48, %v7730_v2  ;;  %5139 = vpow2.f32 %v3854_v52 }
 0x43c   :  { %v3683_v41 = vpop.xlane.xlu2 %3682  ;;  %v1745_v34 = vmul.f32 %v5134_v61, %v1744_v4 }
 0x43d   :  { %v3786_v62 = vsub.f32 %v8070_v30, %v3683_v41  ;;  %v3787_v15 = vsub.f32 %v8059_v36, %v3683_v41  ;;  %v3791_v36 = vsub.f32 %v8007_v38, %v8404_v24  ;;  %4873 = vmatmul.msk.f32.gmra.mxu0 %vm299_vm1, %v1841_v42  ;;  %4913 = vmatmul.msk.f32.gmra.mxu1 %vm299_vm1, %v1841_v42 }
 0x43e   :  { %v1749_v25 = vsel %vm1748_vm5, %v5134_v61, %v1745_v34  ;;  %2616 = vmax.xlane.f32.xlu0 %v2615_v31  ;;  %v3790_v61 = vsub.f32 %v8015_v13, %v8404_v24 }
 0x43f   :  { %v5136_v14 = vpop.eup %5135  ;;  %v3848_v40 = vmul.f32 1.442695, %v3786_v62  ;;  %v3850_v26 = vmul.f32 1.442695, %v3787_v15  ;;  %v1786_v58 = vmul.f32 %v1749_v25, %v7979_v35  ;;  %v2292_v32 = vpop.f32.mrf.mxu0  ;;  %v3858_v62 = vmul.f32 1.442695, %v3791_v36 }
 0x440   :  { %v1751_v30 = vmul.f32 %v5136_v14, %v8415_v17  ;;  %v8448_v37 = vmul.f32 0.17677669, %v2292_v32  ;;  %v8453_v38 = vpop.f32.mrf.mxu3  ;;  %v5138_v4 = vpop.eup %5137  ;;  %vm1757_vm9 = vweird.f32 %v5136_v14 }
 0x441   :  { %5141 = vpow2.f32 %v3848_v40  ;;  %v1814_v52 = vmul.f32 %v8208_v0, %v1786_v58  ;;  %10033 = vst [vmem:[#allocation10_spill] sm:$0xff] %v8453_v38  ;;  %v8460_v15 = vpop.xlane.xlu0 %2580  ;;  %v5140_v13 = vpop.eup %5139  ;;  %v8470_v36 = vsel %vm2482_vm2, %v5138_v4, 0.0  ;;  %vm1758_vm10 = vmor %vm1756_vm4, %vm1757_vm9 }
 0x442   :  { %v1752_v28 = vmul.f32 %v5136_v14, %v1751_v30  ;;  %5143 = vpow2.f32 %v3850_v26  ;;  %v8458_v35 = vsel %vm2482_vm2, %v8448_v37, -1e+30  ;;  %v8464_v40 = vpop.xlane.xlu1 %3698  ;;  %v3856_v26 = vmul.f32 1.442695, %v3790_v61 }
 0x443   :  { %5145 = vpow2.f32 %v3852_v46  ;;  %v1842_v42 = vadd.f32 %v8221_v10, %v1814_v52  ;;  %v2619_v30 = vmax.f32 %v8458_v35, %v7730_v2  ;;  %v2455_v52 = vmul.f32 0.17677669, %v2387_v12  ;;  %v10034_v12 = vld [vmem:[#allocation2_spill] sm:$0xff] }
 0x444   :  { %v1753_v41 = vmul.f32 0.5, %v1752_v28  ;;  %v2565_v25 = vpop.xlane.xlu2 %2564  ;;  %5147 = vpow2.f32 %v3858_v62  ;;  %v8487_v4 = vsel %vm3609_vm12, %v5140_v13, 0.0 }
 0x445   :  { %v2664_v34 = vsub.f32 %v8110_v19, %v2565_v25  ;;  %v2390_v19 = vpop.f32.mrf.mxu1  ;;  %4874 = vmatmul.msk.f32.gmra.mxu0 %vm299_vm1, %v1842_v42  ;;  %4914 = vmatmul.msk.f32.gmra.mxu1 %vm299_vm1, %v1842_v42  ;;  %v2666_v25 = vsub.f32 %v10034_v12, %v8397_v11 }
 0x446   :  { %v1754_v24 = vsub.f32 1.5, %v1753_v41  ;;  %2620 = vmax.xlane.f32.xlu1 %v2619_v30  ;;  %2896 = vadd.xlane.f32.xlu0 %v8470_v36 }
 0x447   :  { %v5142_v46 = vpop.eup %5141  ;;  %v2730_v31 = vmul.f32 1.442695, %v2664_v34  ;;  %v2734_v12 = vmul.f32 1.442695, %v2666_v25 }
 0x448   :  { %v5144_v58 = vpop.eup %5143  ;;  %v1755_v32 = vmul.f32 %v5136_v14, %v1754_v24  ;;  %v8477_v28 = vsel %vm3606_vm13, %v5142_v46, 0.0  ;;  %v3793_v24 = vsub.f32 %v8046_v49, %v8425_v18  ;;  %v8512_v30 = vpop.f32.mrf.mxu3 }
 0x449   :  { %v5146_v61 = vpop.eup %5145  ;;  %5149 = vpow2.f32 %v2730_v31  ;;  %v8483_v17 = vsel %vm3609_vm12, %v5144_v58, 0.0  ;;  %v10035_v31 = vld [vmem:[#allocation7_spill] sm:$0xff]  ;;  %10036 = vst [vmem:[#allocation3_spill] sm:$0xff] %v8512_v30 }
 0x44a   :  { %v1759_v41 = vsel %vm1758_vm10, %v5136_v14, %v1755_v32  ;;  %v4016_v62 = vsel %vm113_vm0, %v8483_v17, 0.0  ;;  %5151 = vpow2.f32 %v3856_v26  ;;  %v8501_v13 = vsel %vm3606_vm13, %v5146_v61, 0.0  ;;  %v5148_v58 = vpop.eup %5147  ;;  %v10037_v32 = vld [vmem:[#allocation4_spill] sm:$0xff]  ;;  %v8518_v38 = vpop.xlane.xlu1 %2584 }
 0x44b   :  { %v1787_v34 = vmul.f32 %v1759_v41, %v8026_v57  ;;  %v4017_v42 = vadd.f32 %v4016_v62, %v8477_v28  ;;  %v4020_v14 = vsel %vm113_vm0, %v8487_v4, 0.0  ;;  %v2668_v11 = vsub.f32 %v10035_v31, %v8435_v60  ;;  %v8516_v41 = vpop.xlane.xlu0 %3706 }
 0x44c   :  { %v8497_v46 = vpop.xlane.xlu2 %2576  ;;  %v8509_v57 = vsel %vm3609_vm12, %v2455_v52, -1e+30  ;;  %v2457_v26 = vmul.f32 0.17677669, %v2390_v19  ;;  %v3795_v61 = vsub.f32 %v10037_v32, %v8464_v40  ;;  %v8523_v60 = vsel %vm3606_vm13, %v8351_v20, -1e+30 }
 0x44d   :  { %4018 = vadd.xlane.f32.xlu2 %v4017_v42  ;;  %v1815_v49 = vmul.f32 %v8208_v0, %v1787_v34  ;;  %v3792_v0 = vsub.f32 %v8055_v23, %v8425_v18  ;;  %v4021_v19 = vadd.f32 %v4020_v14, %v8501_v13  ;;  %v3736_v52 = vsel %vm113_vm0, %v8509_v57, -inf  ;;  %v10038_v20 = vld [vmem:[#allocation5_spill] sm:$0xff] }
 0x44e   :  { %v3862_v34 = vmul.f32 1.442695, %v3793_v24  ;;  %v2738_v32 = vmul.f32 1.442695, %v2668_v11  ;;  %v3794_v30 = vsub.f32 %v10038_v20, %v8464_v40  ;;  %v8539_v23 = vsel %vm3609_vm12, %v2457_v26, -1e+30  ;;  %v2393_v24 = vpop.f32.mrf.mxu1 }
 0x44f   :  { %v5150_v62 = vpop.eup %5149  ;;  %v1843_v42 = vadd.f32 %v8221_v10, %v1815_v49  ;;  %4022 = vadd.xlane.f32.xlu0 %v4021_v19  ;;  %v8544_v18 = vsel %vm3609_vm12, %v5148_v58, 0.0  ;;  %v3866_v10 = vmul.f32 1.442695, %v3795_v61  ;;  %5153 = vpow2.f32 %v2734_v12 }
 0x450   :  { %v8533_v25 = vsel %vm2482_vm2, %v5150_v62, 0.0  ;;  %v5152_v31 = vpop.eup %5151  ;;  %10039 = vst [vmem:[#allocation2_spill] sm:$0xff] %v8544_v18  ;;  %v8551_v40 = vsel %vm3606_vm13, %v8421_v59, -1e+30  ;;  %v3860_v14 = vmul.f32 1.442695, %v3792_v0  ;;  %v3737_v11 = vmax.f32 %v8523_v60, %v3736_v52  ;;  %v8562_v59 = vpop.f32.mrf.mxu3 }
 0x451   :  { %2900 = vadd.xlane.f32.xlu1 %v8533_v25  ;;  %4875 = vmatmul.msk.f32.gmra.mxu0 %vm299_vm1, %v1843_v42  ;;  %v3740_v26 = vsel %vm113_vm0, %v8539_v23, -inf  ;;  %5155 = vpow2.f32 %v3862_v34  ;;  %v8558_v58 = vsel %vm3606_vm13, %v5152_v31, 0.0  ;;  %v4024_v61 = vsel %vm113_vm0, %v8544_v18, 0.0  ;;  %10040 = vst [vmem:[#allocation7_spill] sm:$0xff] %v8562_v59 }
 0x452   :  { %4915 = vmatmul.msk.f32.gmra.mxu1 %vm299_vm1, %v1843_v42  ;;  %5157 = vpow2.f32 %v2738_v32  ;;  %v3864_v62 = vmul.f32 1.442695, %v3794_v30  ;;  %v2459_v12 = vmul.f32 0.17677669, %v2393_v24  ;;  %v2670_v0 = vsub.f32 %v8159_v55, %v8497_v46  ;;  %v8571_v30 = vpop.xlane.xlu1 %3710  ;;  %v2295_v46 = vpop.f32.mrf.mxu0 }
 0x453   :  { %5159 = vpow2.f32 %v3866_v10  ;;  %v3741_v19 = vmax.f32 %v8551_v40, %v3740_v26  ;;  %v4025_v52 = vadd.f32 %v4024_v61, %v8558_v58  ;;  %v8569_v42 = vpop.xlane.xlu0 %2592 }
 0x454   :  { %v3703_v49 = vpop.xlane.xlu2 %3702  ;;  %5161 = vpow2.f32 %v3860_v14  ;;  %v8575_v32 = vsel %vm3609_vm12, %v2459_v12, -1e+30  ;;  %v2742_v10 = vmul.f32 1.442695, %v2670_v0 }
 0x455   :  { %3738 = vmax.xlane.f32.xlu2 %v3737_v11  ;;  %v3797_v34 = vsub.f32 %v8178_v33, %v3703_v49  ;;  %v5154_v31 = vpop.eup %5153  ;;  %5163 = vpow2.f32 %v3864_v62  ;;  %v3796_v24 = vsub.f32 %v8190_v47, %v3703_v49  ;;  %v8581_v33 = vsel %vm3606_vm13, %v8448_v37, -1e+30 }
 0x456   :  { %v3744_v11 = vsel %vm113_vm0, %v8575_v32, -inf  ;;  %v8589_v62 = vsel %vm2482_vm2, %v5154_v31, 0.0  ;;  %5165 = vpow2.f32 %v2742_v10 }
 0x457   :  { %3742 = vmax.xlane.f32.xlu0 %v3741_v19  ;;  %v5156_v20 = vpop.eup %5155  ;;  %v3870_v26 = vmul.f32 1.442695, %v3797_v34  ;;  %v3868_v37 = vmul.f32 1.442695, %v3796_v24  ;;  %v3745_v0 = vmax.f32 %v8581_v33, %v3744_v11  ;;  %v2672_v11 = vsub.f32 %v8099_v63, %v8460_v15  ;;  %v10048_v63 = vld [vmem:[#allocation11_spill] sm:$0xff] }
 0x458   :  { %v5158_v55 = vpop.eup %5157  ;;  %v8594_v47 = vsel %vm3609_vm12, %v5156_v20, 0.0  ;;  %v8611_v20 = vpop.f32.mrf.mxu3  ;;  %v3801_v15 = vsub.f32 %v10048_v63, %v8571_v30  ;;  %v10051_v63 = vld [vmem:[#allocation8_spill] sm:$0xff] }
 0x459   :  { %4026 = vadd.xlane.f32.xlu1 %v4025_v52  ;;  %v5160_v14 = vpop.eup %5159  ;;  %10041 = vst [vmem:[#allocation4_spill] sm:$0xff] %v8594_v47  ;;  %5167 = vpow2.f32 %v3870_v26  ;;  %v8603_v52 = vsel %vm2482_vm2, %v5158_v55, 0.0  ;;  %v4028_v31 = vsel %vm113_vm0, %v8594_v47, 0.0  ;;  %v8626_v26 = vmul.f32 0.17677669, %v2295_v46 }
 0x45a   :  { %v5162_v12 = vpop.eup %5161  ;;  %v8599_v19 = vsel %vm3609_vm12, %v5160_v14, 0.0  ;;  %10043 = vst [vmem:[#allocation28_spill] sm:$0xff] %v8603_v52  ;;  %v8613_v10 = vpop.xlane.xlu1 %2596  ;;  %5169 = vpow2.f32 %v3868_v37  ;;  %v2746_v46 = vmul.f32 1.442695, %v2672_v11 }
 0x45b   :  { %v5164_v49 = vpop.eup %5163  ;;  %10042 = vst [vmem:[#allocation5_spill] sm:$0xff] %v8599_v19  ;;  %v8607_v34 = vsel %vm3606_vm13, %v5162_v12, 0.0  ;;  %v8616_v24 = vpop.xlane.xlu0 %3718  ;;  %v4032_v14 = vsel %vm113_vm0, %v8599_v19, 0.0  ;;  %v8641_v37 = vsel %vm2482_vm2, %v8626_v26, -1e+30 }
 0x45c   :  { %v8585_v61 = vpop.xlane.xlu2 %2588  ;;  %10044 = vst [vmem:[#allocation29_spill] sm:$0xff] %v8607_v34  ;;  %v8620_v55 = vsel %vm3606_vm13, %v5164_v49, 0.0  ;;  %v2298_v12 = vpop.f32.mrf.mxu0  ;;  %5171 = vpow2.f32 %v2746_v46 }
 0x45d   :  { %2904 = vadd.xlane.f32.xlu2 %v8589_v62  ;;  %10045 = vst [vmem:[#allocation30_spill] sm:$0xff] %v8611_v20  ;;  %v4029_v20 = vadd.f32 %v4028_v31, %v8607_v34  ;;  %v5166_v47 = vpop.eup %5165  ;;  %v4033_v18 = vadd.f32 %v4032_v14, %v8620_v55 }
 0x45e   :  { %10046 = vst [vmem:[#allocation31_spill] sm:$0xff] %v8620_v55  ;;  %v3800_v55 = vsub.f32 %v10051_v63, %v8571_v30 }
 0x45f   :  { %2908 = vadd.xlane.f32.xlu0 %v8603_v52  ;;  %v5168_v49 = vpop.eup %5167  ;;  %v10047_v52 = vld [vmem:[#allocation9_spill] sm:$0xff] }
 0x460   :  { %v2674_v19 = vsub.f32 %v10047_v52, %v8518_v38  ;;  %v8649_v38 = vsel %vm2482_vm2, %v5166_v47, 0.0  ;;  %v5170_v52 = vpop.eup %5169  ;;  %v8654_v14 = vsel %vm3609_vm12, %v5168_v49, 0.0 }
 0x461   :  { %3746 = vmax.xlane.f32.xlu1 %v3745_v0  ;;  %v3799_v0 = vsub.f32 %v8125_v54, %v8516_v41  ;;  %v3798_v54 = vsub.f32 %v8143_v5, %v8516_v41  ;;  %10049 = vst [vmem:[#allocation9_spill] sm:$0xff] %v8649_v38  ;;  %v8658_v5 = vpop.f32.mrf.mxu3  ;;  %v3878_v41 = vmul.f32 1.442695, %v3801_v15  ;;  %v8675_v30 = vsel %vm3606_vm13, %v5170_v52, 0.0 }
 0x462   :  { %10050 = vst [vmem:[#allocation11_spill] sm:$0xff] %v8654_v14  ;;  %v2750_v11 = vmul.f32 1.442695, %v2674_v19  ;;  %v4036_v15 = vsel %vm113_vm0, %v8654_v14, 0.0  ;;  %v5172_v34 = vpop.eup %5171 }
 0x463   :  { %v3874_v31 = vmul.f32 1.442695, %v3799_v0  ;;  %10052 = vst [vmem:[#allocation8_spill] sm:$0xff] %v8658_v5  ;;  %v3872_v47 = vmul.f32 1.442695, %v3798_v54  ;;  %v8669_v19 = vpop.xlane.xlu0 %2604  ;;  %v4037_v5 = vadd.f32 %v4036_v15, %v8675_v30 }
 0x464   :  { %v8631_v59 = vpop.xlane.xlu2 %3714  ;;  %10053 = vst [vmem:[#allocation32_spill] sm:$0xff] %v8675_v30  ;;  %v2301_v46 = vpop.f32.mrf.mxu0  ;;  %v3876_v54 = vmul.f32 1.442695, %v3800_v55 }
 0x465   :  { %4030 = vadd.xlane.f32.xlu2 %v4029_v20  ;;  %v8645_v20 = vmul.f32 0.17677669, %v2298_v12  ;;  %v8660_v12 = vpop.xlane.xlu1 %3722  ;;  %5173 = vpow2.f32 %v3874_v31  ;;  %v2676_v31 = vsub.f32 %v8226_v51, %v8585_v61  ;;  %v8684_v52 = vmul.f32 0.17677669, %v2301_v46 }
 0x466   :  { %5175 = vpow2.f32 %v2750_v11  ;;  %v3803_v14 = vsub.f32 %v8237_v21, %v8631_v59  ;;  %v3802_v51 = vsub.f32 %v8249_v50, %v8631_v59  ;;  %v8701_v21 = vsel %vm2482_vm2, %v5172_v34, 0.0 }
 0x467   :  { %4034 = vadd.xlane.f32.xlu0 %v4033_v18  ;;  %v2623_v18 = vmax.f32 %v8641_v37, %v7730_v2  ;;  %v8667_v0 = vsel %vm2482_vm2, %v8645_v20, -1e+30  ;;  %5177 = vpow2.f32 %v3872_v47  ;;  %v2754_v11 = vmul.f32 1.442695, %v2676_v31  ;;  %10054 = vst [vmem:[#allocation33_spill] sm:$0xff] %v8701_v21 }
 0x468   :  { %v2627_v63 = vmax.f32 %v8667_v0, %v7730_v2  ;;  %5179 = vpow2.f32 %v3878_v41  ;;  %v8695_v41 = vsel %vm2482_vm2, %v8684_v52, -1e+30 }
 0x469   :  { %2912 = vadd.xlane.f32.xlu1 %v8649_v38  ;;  %v2396_v38 = vpop.f32.mrf.mxu1  ;;  %5181 = vpow2.f32 %v3876_v54  ;;  %v2631_v34 = vmax.f32 %v8695_v41, %v7730_v2 }
 0x46a   :  { %5183 = vpow2.f32 %v2754_v11  ;;  %v2678_v11 = vsub.f32 %v8183_v7, %v8569_v42 }
 0x46b   :  { %v5174_v55 = vpop.eup %5173  ;;  %v8710_v54 = vpop.xlane.xlu0 %3730 }
 0x46c   :  { %v8671_v49 = vpop.xlane.xlu2 %2600  ;;  %v5176_v61 = vpop.eup %5175  ;;  %v8708_v50 = vsel %vm3609_vm12, %v5174_v55, 0.0 }
 0x46d   :  { %2624 = vmax.xlane.f32.xlu2 %v2623_v18  ;;  %v8688_v47 = vpop.xlane.xlu1 %2608  ;;  %v3882_v18 = vmul.f32 1.442695, %v3803_v14  ;;  %v5178_v46 = vpop.eup %5177  ;;  %10056 = vst [vmem:[#allocation35_spill] sm:$0xff] %v8708_v50  ;;  %v3880_v14 = vmul.f32 1.442695, %v3802_v51  ;;  %v8714_v31 = vsel %vm2482_vm2, %v5176_v61, 0.0 }
 0x46e   :  { %v5180_v59 = vpop.eup %5179  ;;  %10057 = vst [vmem:[#allocation36_spill] sm:$0xff] %v8714_v31  ;;  %v8720_v30 = vsel %vm3606_vm13, %v5178_v46, 0.0  ;;  %v4040_v55 = vsel %vm113_vm0, %v8708_v50, 0.0 }
 0x46f   :  { %2628 = vmax.xlane.f32.xlu0 %v2627_v63  ;;  %v2461_v63 = vmul.f32 0.17677669, %v2396_v38  ;;  %5185 = vpow2.f32 %v3882_v18  ;;  %v8729_v51 = vsel %vm3609_vm12, %v5180_v59, 0.0  ;;  %v3805_v38 = vsub.f32 %v8202_v8, %v8616_v24 }
 0x470   :  { %5187 = vpow2.f32 %v3880_v14  ;;  %v4041_v61 = vadd.f32 %v4040_v55, %v8720_v30  ;;  %v4044_v42 = vsel %vm113_vm0, %v8729_v51, 0.0  ;;  %v2680_v8 = vsub.f32 %v8105_v1, %v8613_v10 }
 0x471   :  { %4038 = vadd.xlane.f32.xlu1 %v4037_v5  ;;  %v8703_v5 = vpop.f32.mrf.mxu3  ;;  %v8736_v18 = vsel %vm3609_vm12, %v2461_v63, -1e+30  ;;  %v2758_v14 = vmul.f32 1.442695, %v2678_v11  ;;  %v3807_v63 = vsub.f32 %v8133_v9, %v8660_v12  ;;  %v3804_v10 = vsub.f32 %v8213_v45, %v8616_v24 }
 0x472   :  { %10055 = vst [vmem:[#allocation34_spill] sm:$0xff] %v8703_v5  ;;  %v2399_v5 = vpop.f32.mrf.mxu1  ;;  %v3748_v1 = vsel %vm113_vm0, %v8736_v18, -inf }
 0x473   :  { %v2463_v46 = vmul.f32 0.17677669, %v2399_v5  ;;  %v3886_v5 = vmul.f32 1.442695, %v3805_v38  ;;  %v2885_v11 = vpop.xlane.xlu0 %2884  ;;  %v3890_v24 = vmul.f32 1.442695, %v3807_v63 }
 0x474   :  { %v8697_v15 = vpop.xlane.xlu2 %3726 }
 0x475   :  { %2916 = vadd.xlane.f32.xlu2 %v8701_v21  ;;  %v5182_v21 = vpop.eup %5181  ;;  %v8748_v55 = vpop.xlane.xlu1 %3734  ;;  %v8764_v9 = vsel %vm3609_vm12, %v2463_v46, -1e+30 }
 0x476   :  { %v8740_v7 = vsel %vm3606_vm13, %v5182_v21, 0.0  ;;  %v5184_v59 = vpop.eup %5183  ;;  %v8755_v21 = vsel %vm3606_vm13, %v8626_v26, -1e+30  ;;  %v2762_v26 = vmul.f32 1.442695, %v2680_v8 }
 0x477   :  { %2920 = vadd.xlane.f32.xlu0 %v8714_v31  ;;  %v8768_v38 = vsel %vm2482_vm2, %v5184_v59, 0.0  ;;  %v8781_v8 = vsel %vm3606_vm13, %v8645_v20, -1e+30 }
 0x479   :  { %2632 = vmax.xlane.f32.xlu1 %v2631_v34  ;;  %v5186_v34 = vpop.eup %5185  ;;  %v8750_v31 = vpop.f32.mrf.mxu3 }
 0x47a   :  { %10058 = vst [vmem:[#allocation37_spill] sm:$0xff] %v8750_v31  ;;  %v3806_v31 = vsub.f32 %v8149_v29, %v8660_v12  ;;  %v8775_v45 = vsel %vm3609_vm12, %v5186_v34, 0.0  ;;  %v2402_v46 = vpop.f32.mrf.mxu1  ;;  %v3752_v29 = vsel %vm113_vm0, %v8764_v9, -inf  ;;  %v3884_v12 = vmul.f32 1.442695, %v3804_v10 }
 0x47b   :  { %10059 = vst [vmem:[#allocation38_spill] sm:$0xff] %v8775_v45  ;;  %v3753_v10 = vmax.f32 %v8781_v8, %v3752_v29 }
 0x47c   :  { %v2881_v50 = vpop.xlane.xlu2 %2880 }
 0x47d   :  { %5189 = vrcp.f32 %v2881_v50  ;;  %4042 = vadd.xlane.f32.xlu2 %v4041_v61  ;;  %v4045_v50 = vadd.f32 %v4044_v42, %v8740_v7  ;;  %v5188_v61 = vpop.eup %5187  ;;  %v3749_v42 = vmax.f32 %v8755_v21, %v3748_v1  ;;  %v3888_v1 = vmul.f32 1.442695, %v3806_v31 }
 0x47e   :  { %5191 = vpow2.f32 %v2758_v14  ;;  %v8788_v63 = vsel %vm3606_vm13, %v5188_v61, 0.0 }
 0x47f   :  { %4046 = vadd.xlane.f32.xlu0 %v4045_v50  ;;  %5193 = vpow2.f32 %v3886_v5  ;;  %v4048_v5 = vsel %vm113_vm0, %v8775_v45, 0.0  ;;  %v2465_v50 = vmul.f32 0.17677669, %v2402_v46 }
 0x480   :  { %5195 = vrcp.f32 %v2885_v11  ;;  %v4049_v11 = vadd.f32 %v4048_v5, %v8788_v63 }
 0x481   :  { %2924 = vadd.xlane.f32.xlu1 %v8768_v38  ;;  %5197 = vpow2.f32 %v2762_v26  ;;  %v8797_v45 = vpop.f32.mrf.mxu3  ;;  %v8801_v26 = vsel %vm3609_vm12, %v2465_v50, -1e+30 }
 0x482   :  { %5199 = vpow2.f32 %v3890_v24  ;;  %10060 = vst [vmem:[#allocation39_spill] sm:$0xff] %v8797_v45  ;;  %v3809_v24 = vsub.f32 %v8297_v16, %v8697_v15  ;;  %v3808_v16 = vsub.f32 %v8301_v44, %v8697_v15  ;;  %v10072_v45 = vld [vmem:[#allocation6_spill] sm:$0xff] }
 0x483   :  { %v5190_v59 = vpop.eup %5189  ;;  %5201 = vpow2.f32 %v3884_v12  ;;  %v3756_v12 = vsel %vm113_vm0, %v8801_v26, -inf }
 0x484   :  { %v3018_v14 = vmul.f32 %v5190_v59, %v8318_v22  ;;  %v3019_v34 = vmul.f32 0.0, %v5190_v59  ;;  %v5192_v20 = vpop.eup %5191  ;;  %v2682_v22 = vsub.f32 %v8287_v53, %v8671_v49  ;;  %v2889_v59 = vpop.xlane.xlu1 %2888  ;;  %5203 = vpow2.f32 %v3888_v1 }
 0x485   :  { %3750 = vmax.xlane.f32.xlu2 %v3749_v42  ;;  %v5194_v61 = vpop.eup %5193  ;;  %v8808_v49 = vsel %vm3606_vm13, %v8684_v52, -1e+30  ;;  %5205 = vrcp.f32 %v2889_v59  ;;  %v8812_v42 = vsel %vm2482_vm2, %v5192_v20, 0.0  ;;  %v3894_v1 = vmul.f32 1.442695, %v3809_v24 }
 0x486   :  { %3174 = vmatmul.f32.vlgmr.msra.gmra.mxu2 %v3018_v14  ;;  %4916 = vmatmul.msk.f32.vlgmr.msra.gmra.mxu3 %vm113_vm0, %v3019_v34  ;;  %v5196_v31 = vpop.eup %5195  ;;  %v2766_v46 = vmul.f32 1.442695, %v2682_v22  ;;  %v8822_v52 = vsel %vm3609_vm12, %v5194_v61, 0.0  ;;  %v3757_v44 = vmax.f32 %v8808_v49, %v3756_v12  ;;  %v3892_v15 = vmul.f32 1.442695, %v3808_v16 }
 0x487   :  { %3754 = vmax.xlane.f32.xlu0 %v3753_v10  ;;  %v5198_v53 = vpop.eup %5197  ;;  %v3020_v14 = vmul.f32 %v5196_v31, %v8312_v56  ;;  %v3021_v34 = vmul.f32 0.0, %v5196_v31  ;;  %v2304_v56 = vpop.f32.mrf.mxu0  ;;  %v4052_v10 = vsel %vm113_vm0, %v8822_v52, 0.0  ;;  %v2684_v24 = vsub.f32 %v8241_v43, %v8669_v19 }
 0x488   :  { %v5200_v29 = vpop.eup %5199  ;;  %5207 = vpow2.f32 %v2766_v46  ;;  %v8827_v20 = vsel %vm2482_vm2, %v5198_v53, 0.0  ;;  %v8849_v53 = vmul.f32 0.17677669, %v2304_v56  ;;  %v3811_v12 = vsub.f32 %v8269_v39, %v8710_v54 }
 0x489   :  { %4050 = vadd.xlane.f32.xlu1 %v4049_v11  ;;  %v5202_v5 = vpop.eup %5201  ;;  %v8838_v11 = vsel %vm3609_vm12, %v5200_v29, 0.0  ;;  %5209 = vpow2.f32 %v3894_v1  ;;  %v8841_v59 = vpop.f32.mrf.mxu3  ;;  %v2770_v19 = vmul.f32 1.442695, %v2684_v24 }
 0x48a   :  { %v5204_v50 = vpop.eup %5203  ;;  %v8832_v22 = vsel %vm3606_vm13, %v5202_v5, 0.0  ;;  %10061 = vst [vmem:[#allocation40_spill] sm:$0xff] %v8841_v59  ;;  %v4056_v29 = vsel %vm113_vm0, %v8838_v11, 0.0  ;;  %5211 = vpow2.f32 %v3892_v15  ;;  %v10062_v5 = vld [vmem:[#allocation17_spill] sm:$0xff]  ;;  %v8864_v39 = vsel %vm2482_vm2, %v8849_v53, -1e+30 }
 0x48b   :  { %v5206_v61 = vpop.eup %5205  ;;  %v8845_v31 = vsel %vm3606_vm13, %v5204_v50, 0.0  ;;  %v4053_v46 = vadd.f32 %v4052_v10, %v8832_v22  ;;  %v3810_v1 = vsub.f32 %v10062_v5, %v8710_v54 }
 0x48c   :  { %v3022_v16 = vmul.f32 %v5206_v61, %v8307_v27  ;;  %v3898_v27 = vmul.f32 1.442695, %v3811_v12 }
 0x48d   :  { %2928 = vadd.xlane.f32.xlu2 %v8812_v42  ;;  %v3896_v10 = vmul.f32 1.442695, %v3810_v1 }
 0x48e   :  { %3177 = vmatmul.f32.gmra.mxu2 %v3020_v14  ;;  %4917 = vmatmul.msk.f32.gmra.mxu3 %vm113_vm0, %v3021_v34  ;;  %v3023_v14 = vmul.f32 0.0, %v5206_v61  ;;  %v5208_v34 = vpop.eup %5207  ;;  %v2635_v61 = vmax.f32 %v8864_v39, %v7730_v2 }
 0x48f   :  { %2932 = vadd.xlane.f32.xlu0 %v8827_v20  ;;  %v5210_v43 = vpop.eup %5209  ;;  %v8868_v56 = vsel %vm2482_vm2, %v5208_v34, 0.0  ;;  %v10066_v34 = vld [vmem:[#allocation19_spill] sm:$0xff] }
 0x490   :  { %v5212_v15 = vpop.eup %5211  ;;  %v8873_v54 = vsel %vm3609_vm12, %v5210_v43, 0.0 }
 0x491   :  { %3758 = vmax.xlane.f32.xlu1 %v3757_v44  ;;  %v4057_v44 = vadd.f32 %v4056_v29, %v8845_v31  ;;  %10063 = vst [vmem:[#allocation17_spill] sm:$0xff] %v8873_v54  ;;  %v8877_v24 = vpop.f32.mrf.mxu3  ;;  %v4060_v29 = vsel %vm113_vm0, %v8873_v54, 0.0  ;;  %v10073_v54 = vld [vmem:[#allocation22_spill] sm:$0xff] }
 0x492   :  { %v4007_v50 = vpop.xlane.xlu2 %4006  ;;  %10064 = vst [vmem:[#allocation41_spill] sm:$0xff] %v8877_v24 }
 0x493   :  { %5213 = vrcp.f32 %v4007_v50 }
 0x494   :  { %5215 = vpow2.f32 %v2770_v19  ;;  %v10067_v19 = vld [vmem:[#allocation20_spill] sm:$0xff] }
 0x495   :  { %4054 = vadd.xlane.f32.xlu2 %v4053_v46  ;;  %5217 = vpow2.f32 %v3898_v27  ;;  %v8881_v46 = vsel %vm3606_vm13, %v5212_v15, 0.0 }
 0x496   :  { %3180 = vmatmul.f32.gmra.mxu2 %v3022_v16  ;;  %4918 = vmatmul.msk.f32.gmra.mxu3 %vm113_vm0, %v3023_v14  ;;  %v10065_v16 = vld [vmem:[#allocation12_spill] sm:$0xff]  ;;  %5219 = vpow2.f32 %v3896_v10 }
 0x497   :  { %4058 = vadd.xlane.f32.xlu0 %v4057_v44  ;;  %v2686_v14 = vsub.f32 %v10065_v16, %v8688_v47  ;;  %v4061_v44 = vadd.f32 %v4060_v29, %v8881_v46  ;;  %v10069_v16 = vld [vmem:[#allocation16_spill] sm:$0xff] }
 0x499   :  { %2936 = vadd.xlane.f32.xlu1 %v8868_v56  ;;  %v5214_v12 = vpop.eup %5213  ;;  %v2774_v47 = vmul.f32 1.442695, %v2686_v14 }
 0x49a   :  { %v4144_v43 = vmul.f32 %v5214_v12, %v10066_v34  ;;  %v4145_v5 = vmul.f32 %v5214_v12, %v10067_v19  ;;  %v8889_v1 = vpop.xlane.xlu2 %2612  ;;  %v4011_v50 = vpop.xlane.xlu0 %4010  ;;  %v3812_v34 = vsub.f32 %v10069_v16, %v8748_v55 }
 0x49b   :  { %5221 = vrcp.f32 %v4011_v50  ;;  %v5216_v27 = vpop.eup %5215  ;;  %v2405_v50 = vpop.f32.mrf.mxu1 }
 0x49c   :  { %4300 = vmatmul.f32.vlgmr.msra.gmra.mxu0 %v4144_v43  ;;  %4944 = vmatmul.msk.f32.vlgmr.msra.gmra.mxu1 %vm113_vm0, %v4145_v5  ;;  %v5218_v15 = vpop.eup %5217  ;;  %v8897_v10 = vsel %vm2482_vm2, %v5216_v27, 0.0  ;;  %5223 = vpow2.f32 %v2774_v47  ;;  %v2467_v47 = vmul.f32 0.17677669, %v2405_v50 }
 0x49d   :  { %2636 = vmax.xlane.f32.xlu2 %v2635_v61  ;;  %v10068_v61 = vld [vmem:[#allocation15_spill] sm:$0xff]  ;;  %v5220_v12 = vpop.eup %5219  ;;  %v8904_v43 = vsel %vm3609_vm12, %v5218_v15, 0.0 }
 0x49e   :  { %v3813_v24 = vsub.f32 %v10068_v61, %v8748_v55  ;;  %10070 = vst [vmem:[#allocation12_spill] sm:$0xff] %v8904_v43  ;;  %v8916_v15 = vsel %vm3606_vm13, %v5220_v12, 0.0  ;;  %v8926_v12 = vsel %vm3609_vm12, %v2467_v47, -1e+30 }
 0x4a0   :  { %v2307_v29 = vpop.f32.mrf.mxu0  ;;  %v3902_v5 = vmul.f32 1.442695, %v3813_v24  ;;  %v4064_v24 = vsel %vm113_vm0, %v8904_v43, 0.0 }
 0x4a1   :  { %4062 = vadd.xlane.f32.xlu1 %v4061_v44  ;;  %v5222_v19 = vpop.eup %5221  ;;  %v8906_v44 = vpop.f32.mrf.mxu3  ;;  %v2468_v14 = vmul.f32 0.17677669, %v2307_v29  ;;  %v3900_v29 = vmul.f32 1.442695, %v3812_v34 }
 0x4a2   :  { %10071 = vst [vmem:[#allocation19_spill] sm:$0xff] %v8906_v44  ;;  %v4146_v59 = vmul.f32 %v5222_v19, %v10072_v45  ;;  %v4147_v55 = vmul.f32 %v5222_v19, %v10073_v54  ;;  %v4065_v54 = vadd.f32 %v4064_v24, %v8916_v15  ;;  %v5224_v19 = vpop.eup %5223  ;;  %v3760_v24 = vsel %vm113_vm0, %v8926_v12, -inf  ;;  %v10076_v44 = vld [vmem:[#allocation25_spill] sm:$0xff] }
 0x4a3   :  { %v2893_v27 = vpop.xlane.xlu2 %2892  ;;  %v8912_v16 = vsel %vm2482_vm2, %v2468_v14, -1e+30 }
 0x4a4   :  { %5225 = vrcp.f32 %v2893_v27  ;;  %4303 = vmatmul.f32.gmra.mxu0 %v4146_v59  ;;  %4945 = vmatmul.msk.f32.gmra.mxu1 %vm113_vm0, %v4147_v55  ;;  %v2639_v45 = vmax.f32 %v8912_v16, %v7730_v2  ;;  %v10074_v27 = vld [vmem:[#allocation26_spill] sm:$0xff] }
 0x4a5   :  { %2940 = vadd.xlane.f32.xlu2 %v8897_v10  ;;  %v4015_v61 = vpop.xlane.xlu1 %4014 }
 0x4a6   :  { %5227 = vrcp.f32 %v4015_v61  ;;  %2640 = vmax.xlane.f32.xlu0 %v2639_v45 }
 0x4a7   :  { %5229 = vpow2.f32 %v3902_v5  ;;  %v8932_v5 = vsel %vm3606_vm13, %v8849_v53, -1e+30 }
 0x4a8   :  { %5231 = vpow2.f32 %v3900_v29  ;;  %v10075_v29 = vld [vmem:[#allocation24_spill] sm:$0xff] }
 0x4a9   :  { %v8938_v43 = vpop.f32.mrf.mxu3 }
 0x4aa   :  { %v5226_v34 = vpop.eup %5225  ;;  %10077 = vst [vmem:[#allocation20_spill] sm:$0xff] %v8938_v43 }
 0x4ab   :  { %v3024_v59 = vmul.f32 %v5226_v34, %v10074_v27  ;;  %v3025_v61 = vmul.f32 0.0, %v5226_v34  ;;  %v3761_v34 = vmax.f32 %v8932_v5, %v3760_v24  ;;  %v10079_v24 = vld [vmem:[#allocation13_spill] sm:$0xff] }
 0x4ac   :  { %v5228_v50 = vpop.eup %5227 }
 0x4ad   :  { %4066 = vadd.xlane.f32.xlu2 %v4065_v54  ;;  %v5230_v55 = vpop.eup %5229  ;;  %v4148_v45 = vmul.f32 %v5228_v50, %v10075_v29  ;;  %v4149_v47 = vmul.f32 %v5228_v50, %v10076_v44  ;;  %3183 = vmatmul.f32.gmra.mxu2 %v3024_v59  ;;  %v8944_v54 = vsel %vm2482_vm2, %v5224_v19, 0.0  ;;  %v2408_v50 = vpop.f32.mrf.mxu1 }
 0x4ae   :  { %4919 = vmatmul.msk.f32.gmra.mxu3 %vm113_vm0, %v3025_v61  ;;  %v5232_v53 = vpop.eup %5231  ;;  %2944 = vadd.xlane.f32.xlu0 %v8944_v54  ;;  %v8950_v44 = vsel %vm3609_vm12, %v5230_v55, 0.0  ;;  %v2469_v29 = vmul.f32 0.17677669, %v2408_v50 }
 0x4af   :  { %4306 = vmatmul.f32.gmra.mxu0 %v4148_v45  ;;  %4946 = vmatmul.msk.f32.gmra.mxu1 %vm113_vm0, %v4149_v47  ;;  %10078 = vst [vmem:[#allocation15_spill] sm:$0xff] %v8950_v44  ;;  %v8955_v61 = vsel %vm3606_vm13, %v5232_v53, 0.0  ;;  %v4068_v19 = vsel %vm113_vm0, %v8950_v44, 0.0  ;;  %v2688_v47 = vsub.f32 %v10079_v24, %v8889_v1  ;;  %v8971_v1 = vsel %vm3606_vm13, %v2468_v14, -1e+30 }
 0x4b0   :  { %v4069_v55 = vadd.f32 %v4068_v19, %v8955_v61 }
 0x4b1   :  { %v2617_v27 = vpop.xlane.xlu0 %2616  ;;  %v2778_v53 = vmul.f32 1.442695, %v2688_v47 }
 0x4b2   :  { %v2690_v59 = vsub.f32 %v8433_v48, %v2617_v27  ;;  %v8966_v48 = vpop.f32.mrf.mxu3 }
 0x4b3   :  { %10080 = vst [vmem:[#allocation16_spill] sm:$0xff] %v8966_v48 }
 0x4b4   :  { %v2782_v45 = vmul.f32 1.442695, %v2690_v59 }
 0x4b5   :  { %3762 = vmax.xlane.f32.xlu2 %v3761_v34  ;;  %v8964_v34 = vsel %vm3609_vm12, %v2469_v29, -1e+30 }
 0x4b6   :  { %5233 = vpow2.f32 %v2782_v45  ;;  %4070 = vadd.xlane.f32.xlu0 %v4069_v55  ;;  %v3764_v59 = vsel %vm113_vm0, %v8964_v34, -inf }
 0x4b7   :  { %v3765_v14 = vmax.f32 %v8971_v1, %v3764_v59 }
 0x4b9   :  { %v2621_v27 = vpop.xlane.xlu1 %2620  ;;  %v2897_v43 = vpop.xlane.xlu0 %2896 }
 0x4ba   :  { %v2692_v44 = vsub.f32 %v8458_v35, %v2621_v27  ;;  %5235 = vrcp.f32 %v2897_v43  ;;  %v2310_v50 = vpop.f32.mrf.mxu0 }
 0x4bb   :  { %v8975_v19 = vmul.f32 0.17677669, %v2310_v50  ;;  %5237 = vpow2.f32 %v2778_v53 }
 0x4bc   :  { %v5234_v29 = vpop.eup %5233  ;;  %v2786_v45 = vmul.f32 1.442695, %v2692_v44 }
 0x4bd   :  { %v8980_v24 = vsel %vm2482_vm2, %v8975_v19, -1e+30  ;;  %v8984_v43 = vsel %vm2482_vm2, %v5234_v29, 0.0 }
 0x4be   :  { %5239 = vpow2.f32 %v2786_v45  ;;  %10081 = vst [vmem:[#allocation6_spill] sm:$0xff] %v8984_v43  ;;  %v2643_v47 = vmax.f32 %v8980_v24, %v7730_v2  ;;  %2952 = vadd.xlane.f32.xlu2 %v8984_v43  ;;  %3766 = vmax.xlane.f32.xlu0 %v3765_v14  ;;  %v8991_v45 = vpop.f32.mrf.mxu3 }
 0x4bf   :  { %10082 = vst [vmem:[#allocation22_spill] sm:$0xff] %v8991_v45 }
 0x4c0   :  { %v4019_v35 = vpop.xlane.xlu2 %4018  ;;  %v5236_v44 = vpop.eup %5235  ;;  %2644 = vmax.xlane.f32.xlu1 %v2643_v47 }
 0x4c1   :  { %5241 = vrcp.f32 %v4019_v35  ;;  %v3026_v27 = vmul.f32 %v5236_v44, %v8470_v36  ;;  %v3027_v50 = vmul.f32 0.0, %v5236_v44  ;;  %v5238_v29 = vpop.eup %5237 }
 0x4c2   :  { %v4023_v53 = vpop.xlane.xlu0 %4022 }
 0x4c3   :  { %3186 = vmatmul.f32.gmra.mxu2 %v3026_v27  ;;  %4920 = vmatmul.msk.f32.gmra.mxu3 %vm113_vm0, %v3027_v50 }
 0x4c4   :  { %v2901_v55 = vpop.xlane.xlu1 %2900  ;;  %v5240_v59 = vpop.eup %5239 }
 0x4c5   :  { %5243 = vrcp.f32 %v2901_v55  ;;  %v9000_v44 = vsel %vm2482_vm2, %v5240_v59, 0.0 }
 0x4c6   :  { %5245 = vrcp.f32 %v4023_v53  ;;  %10083 = vst [vmem:[#allocation26_spill] sm:$0xff] %v9000_v44  ;;  %2956 = vadd.xlane.f32.xlu0 %v9000_v44  ;;  %v9005_v53 = vsel %vm2482_vm2, %v5238_v29, 0.0  ;;  %v9013_v29 = vpop.f32.mrf.mxu3 }
 0x4c7   :  { %v5242_v48 = vpop.eup %5241  ;;  %10084 = vst [vmem:[#allocation24_spill] sm:$0xff] %v9013_v29 }
 0x4c8   :  { %v3739_v35 = vpop.xlane.xlu2 %3738  ;;  %v4150_v47 = vmul.f32 %v5242_v48, %v8477_v28  ;;  %v4151_v36 = vmul.f32 %v5242_v48, %v8483_v17  ;;  %2948 = vadd.xlane.f32.xlu1 %v9005_v53 }
 0x4c9   :  { %v3814_v43 = vsub.f32 %v8523_v60, %v3739_v35  ;;  %v3815_v14 = vsub.f32 %v8509_v57, %v3739_v35 }
 0x4ca   :  { %4309 = vmatmul.f32.gmra.mxu0 %v4150_v47  ;;  %4947 = vmatmul.msk.f32.gmra.mxu1 %vm113_vm0, %v4151_v36  ;;  %v3743_v17 = vpop.xlane.xlu0 %3742  ;;  %v2411_v47 = vpop.f32.mrf.mxu1 }
 0x4cb   :  { %v5244_v55 = vpop.eup %5243  ;;  %v3904_v27 = vmul.f32 1.442695, %v3814_v43  ;;  %v3906_v45 = vmul.f32 1.442695, %v3815_v14  ;;  %v3816_v48 = vsub.f32 %v8551_v40, %v3743_v17  ;;  %v3817_v43 = vsub.f32 %v8539_v23, %v3743_v17 }
 0x4cc   :  { %v4027_v28 = vpop.xlane.xlu1 %4026  ;;  %v3028_v57 = vmul.f32 %v5244_v55, %v8533_v25  ;;  %v3029_v60 = vmul.f32 0.0, %v5244_v55  ;;  %v5246_v50 = vpop.eup %5245 }
 0x4cd   :  { %5247 = vpow2.f32 %v3904_v27  ;;  %v3908_v59 = vmul.f32 1.442695, %v3816_v48  ;;  %v3910_v35 = vmul.f32 1.442695, %v3817_v43  ;;  %v4152_v25 = vmul.f32 %v5246_v50, %v8501_v13 }
 0x4ce   :  { %5249 = vpow2.f32 %v3906_v45  ;;  %3189 = vmatmul.f32.gmra.mxu2 %v3028_v57  ;;  %4921 = vmatmul.msk.f32.gmra.mxu3 %vm113_vm0, %v3029_v60  ;;  %v4153_v40 = vmul.f32 %v5246_v50, %v8487_v4 }
 0x4cf   :  { %5251 = vrcp.f32 %v4027_v28  ;;  %v2471_v28 = vmul.f32 0.17677669, %v2411_v47 }
 0x4d0   :  { %v2905_v14 = vpop.xlane.xlu2 %2904  ;;  %5253 = vpow2.f32 %v3908_v59 }
 0x4d1   :  { %5255 = vpow2.f32 %v3910_v35 }
 0x4d2   :  { %5257 = vrcp.f32 %v2905_v14  ;;  %4312 = vmatmul.f32.gmra.mxu0 %v4152_v25  ;;  %4948 = vmatmul.msk.f32.gmra.mxu1 %vm113_vm0, %v4153_v40  ;;  %v2909_v55 = vpop.xlane.xlu0 %2908  ;;  %v2313_v14 = vpop.f32.mrf.mxu0  ;;  %v9037_v25 = vsel %vm3609_vm12, %v2471_v28, -1e+30  ;;  %v10088_v28 = vld [vmem:[#allocation2_spill] sm:$0xff] }
 0x4d3   :  { %v5248_v36 = vpop.eup %5247  ;;  %5259 = vrcp.f32 %v2909_v55  ;;  %v9039_v40 = vpop.f32.mrf.mxu3 }
 0x4d4   :  { %v5250_v23 = vpop.eup %5249  ;;  %v3747_v45 = vpop.xlane.xlu1 %3746  ;;  %v9020_v27 = vsel %vm3606_vm13, %v5248_v36, 0.0  ;;  %10086 = vst [vmem:[#allocation13_spill] sm:$0xff] %v9039_v40  ;;  %v10090_v40 = vld [vmem:[#allocation29_spill] sm:$0xff] }
 0x4d5   :  { %v3818_v17 = vsub.f32 %v8581_v33, %v3747_v45  ;;  %v3819_v13 = vsub.f32 %v8575_v32, %v3747_v45  ;;  %v9026_v4 = vsel %vm3609_vm12, %v5250_v23, 0.0  ;;  %v5252_v57 = vpop.eup %5251 }
 0x4d6   :  { %v4072_v60 = vsel %vm113_vm0, %v9026_v4, 0.0  ;;  %v5254_v48 = vpop.eup %5253  ;;  %v4154_v36 = vmul.f32 %v5252_v57, %v8558_v58  ;;  %v9054_v58 = vsel %vm3606_vm13, %v8975_v19, -1e+30 }
 0x4d7   :  { %v3912_v43 = vmul.f32 1.442695, %v3818_v17  ;;  %v3914_v50 = vmul.f32 1.442695, %v3819_v13  ;;  %v4073_v59 = vadd.f32 %v4072_v60, %v9020_v27  ;;  %v5256_v35 = vpop.eup %5255  ;;  %v9033_v32 = vsel %vm3606_vm13, %v5254_v48, 0.0  ;;  %v2414_v13 = vpop.f32.mrf.mxu1 }
 0x4d8   :  { %v4031_v47 = vpop.xlane.xlu2 %4030  ;;  %10085 = vst [vmem:[#allocation25_spill] sm:$0xff] %v9033_v32  ;;  %v5258_v33 = vpop.eup %5257  ;;  %v9044_v23 = vsel %vm3609_vm12, %v5256_v35, 0.0  ;;  %v4155_v60 = vmul.f32 %v5252_v57, %v10088_v28 }
 0x4d9   :  { %5261 = vpow2.f32 %v3912_v43  ;;  %4074 = vadd.xlane.f32.xlu1 %v4073_v59  ;;  %10087 = vst [vmem:[#allocation42_spill] sm:$0xff] %v9044_v23  ;;  %v3030_v45 = vmul.f32 %v5258_v33, %v8589_v62  ;;  %v3031_v55 = vmul.f32 0.0, %v5258_v33  ;;  %v4076_v17 = vsel %vm113_vm0, %v9044_v23, 0.0  ;;  %v5260_v35 = vpop.eup %5259  ;;  %v10091_v23 = vld [vmem:[#allocation4_spill] sm:$0xff] }
 0x4da   :  { %5263 = vpow2.f32 %v3914_v50  ;;  %4315 = vmatmul.f32.gmra.mxu0 %v4154_v36  ;;  %v4077_v48 = vadd.f32 %v4076_v17, %v9033_v32  ;;  %v3768_v43 = vsel %vm113_vm0, %v9037_v25, -inf  ;;  %v2472_v62 = vmul.f32 0.17677669, %v2313_v14  ;;  %v4035_v59 = vpop.xlane.xlu0 %4034  ;;  %4949 = vmatmul.msk.f32.gmra.mxu1 %vm113_vm0, %v4155_v60  ;;  %v10089_v17 = vld [vmem:[#allocation28_spill] sm:$0xff] }
 0x4db   :  { %5265 = vrcp.f32 %v4031_v47  ;;  %3192 = vmatmul.f32.gmra.mxu2 %v3030_v45  ;;  %4922 = vmatmul.msk.f32.gmra.mxu3 %vm113_vm0, %v3031_v55  ;;  %v3769_v47 = vmax.f32 %v9054_v58, %v3768_v43  ;;  %v3032_v14 = vmul.f32 %v5260_v35, %v10089_v17  ;;  %v3033_v60 = vmul.f32 0.0, %v5260_v35  ;;  %v2316_v43 = vpop.f32.mrf.mxu0  ;;  %v9079_v44 = vpop.f32.mrf.mxu3 }
 0x4dc   :  { %v2913_v50 = vpop.xlane.xlu1 %2912  ;;  %4078 = vadd.xlane.f32.xlu2 %v4077_v48  ;;  %v9063_v19 = vsel %vm2482_vm2, %v2472_v62, -1e+30  ;;  %v2473_v32 = vmul.f32 0.17677669, %v2414_v13  ;;  %10092 = vst [vmem:[#allocation2_spill] sm:$0xff] %v9079_v44 }
 0x4dd   :  { %5267 = vrcp.f32 %v2913_v50 }
 0x4de   :  { %5269 = vrcp.f32 %v4035_v59  ;;  %v2647_v59 = vmax.f32 %v9063_v19, %v7730_v2 }
 0x4df   :  { %v5262_v57 = vpop.eup %5261  ;;  %v2417_v13 = vpop.f32.mrf.mxu1 }
 0x4e0   :  { %v5264_v33 = vpop.eup %5263  ;;  %v2625_v36 = vpop.xlane.xlu2 %2624  ;;  %v9068_v45 = vsel %vm3606_vm13, %v5262_v57, 0.0 }
 0x4e1   :  { %v5266_v55 = vpop.eup %5265  ;;  %3770 = vmax.xlane.f32.xlu1 %v3769_v47  ;;  %v2694_v28 = vsub.f32 %v8641_v37, %v2625_v36  ;;  %v9073_v48 = vsel %vm3609_vm12, %v5264_v33, 0.0  ;;  %v9089_v36 = vsel %vm3609_vm12, %v2473_v32, -1e+30 }
 0x4e2   :  { %v4156_v29 = vmul.f32 %v5266_v55, %v10090_v40  ;;  %v4157_v17 = vmul.f32 %v5266_v55, %v10091_v23  ;;  %v4080_v57 = vsel %vm113_vm0, %v9073_v48, 0.0  ;;  %v2629_v47 = vpop.xlane.xlu0 %2628  ;;  %v2474_v40 = vmul.f32 0.17677669, %v2316_v43 }
 0x4e3   :  { %v2790_v50 = vmul.f32 1.442695, %v2694_v28  ;;  %v4081_v37 = vadd.f32 %v4080_v57, %v9068_v45  ;;  %3195 = vmatmul.f32.gmra.mxu2 %v3032_v14  ;;  %4923 = vmatmul.msk.f32.gmra.mxu3 %vm113_vm0, %v3033_v60  ;;  %v2696_v23 = vsub.f32 %v8667_v0, %v2629_v47  ;;  %v5268_v33 = vpop.eup %5267  ;;  %v9093_v55 = vsel %vm3606_vm13, %v2472_v62, -1e+30  ;;  %v10095_v62 = vld [vmem:[#allocation5_spill] sm:$0xff] }
 0x4e4   :  { %v4039_v35 = vpop.xlane.xlu1 %4038  ;;  %4318 = vmatmul.f32.gmra.mxu0 %v4156_v29  ;;  %4950 = vmatmul.msk.f32.gmra.mxu1 %vm113_vm0, %v4157_v17  ;;  %v5270_v14 = vpop.eup %5269  ;;  %v9097_v29 = vsel %vm2482_vm2, %v2474_v40, -1e+30  ;;  %v2475_v60 = vmul.f32 0.17677669, %v2417_v13  ;;  %v3772_v43 = vsel %vm113_vm0, %v9089_v36, -inf  ;;  %v10093_v17 = vld [vmem:[#allocation9_spill] sm:$0xff] }
 0x4e5   :  { %5271 = vpow2.f32 %v2790_v50  ;;  %4082 = vadd.xlane.f32.xlu0 %v4081_v37  ;;  %2648 = vmax.xlane.f32.xlu2 %v2647_v59  ;;  %v2794_v0 = vmul.f32 1.442695, %v2696_v23  ;;  %v3034_v32 = vmul.f32 %v5268_v33, %v10093_v17  ;;  %v3035_v57 = vmul.f32 0.0, %v5268_v33  ;;  %v10094_v37 = vld [vmem:[#allocation31_spill] sm:$0xff]  ;;  %v9115_v17 = vpop.f32.mrf.mxu3 }
 0x4e6   :  { %5273 = vrcp.f32 %v4039_v35  ;;  %v4158_v59 = vmul.f32 %v5270_v14, %v10094_v37  ;;  %v4159_v47 = vmul.f32 %v5270_v14, %v10095_v62  ;;  %v2651_v13 = vmax.f32 %v9097_v29, %v7730_v2  ;;  %10096 = vst [vmem:[#allocation28_spill] sm:$0xff] %v9115_v17 }
 0x4e7   :  { %v9113_v33 = vsel %vm3609_vm12, %v2475_v60, -1e+30  ;;  %v3773_v2 = vmax.f32 %v9093_v55, %v3772_v43  ;;  %v9123_v60 = vsel %vm3606_vm13, %v2474_v40, -1e+30 }
 0x4e8   :  { %v2917_v28 = vpop.xlane.xlu2 %2916 }
 0x4e9   :  { %5275 = vrcp.f32 %v2917_v28 }
 0x4ea   :  { %v2921_v28 = vpop.xlane.xlu0 %2920  ;;  %5277 = vpow2.f32 %v2794_v0  ;;  %v3776_v0 = vsel %vm113_vm0, %v9113_v33, -inf }
 0x4eb   :  { %v5272_v50 = vpop.eup %5271  ;;  %3198 = vmatmul.f32.gmra.mxu2 %v3034_v32  ;;  %4924 = vmatmul.msk.f32.gmra.mxu3 %vm113_vm0, %v3035_v57  ;;  %5279 = vrcp.f32 %v2921_v28  ;;  %v3777_v40 = vmax.f32 %v9123_v60, %v3776_v0 }
 0x4ec   :  { %v2633_v35 = vpop.xlane.xlu1 %2632  ;;  %v9109_v23 = vsel %vm2482_vm2, %v5272_v50, 0.0  ;;  %4321 = vmatmul.f32.gmra.mxu0 %v4158_v59  ;;  %4951 = vmatmul.msk.f32.gmra.mxu1 %vm113_vm0, %v4159_v47  ;;  %v5274_v32 = vpop.eup %5273  ;;  %v10097_v59 = vld [vmem:[#allocation33_spill] sm:$0xff]  ;;  %v10098_v47 = vld [vmem:[#allocation32_spill] sm:$0xff] }
 0x4ed   :  { %v2698_v14 = vsub.f32 %v8695_v41, %v2633_v35  ;;  %2652 = vmax.xlane.f32.xlu0 %v2651_v13  ;;  %2960 = vadd.xlane.f32.xlu1 %v9109_v23  ;;  %v4160_v13 = vmul.f32 %v5274_v32, %v10098_v47  ;;  %v10099_v35 = vld [vmem:[#allocation11_spill] sm:$0xff]  ;;  %v10102_v47 = vld [vmem:[#allocation36_spill] sm:$0xff] }
 0x4ee   :  { %3774 = vmax.xlane.f32.xlu2 %v3773_v2  ;;  %v4161_v2 = vmul.f32 %v5274_v32, %v10099_v35 }
 0x4ef   :  { %v5276_v57 = vpop.eup %5275  ;;  %v2798_v37 = vmul.f32 1.442695, %v2698_v14 }
 0x4f0   :  { %v4043_v50 = vpop.xlane.xlu2 %4042  ;;  %v3036_v41 = vmul.f32 %v5276_v57, %v10097_v59  ;;  %v3037_v62 = vmul.f32 0.0, %v5276_v57  ;;  %v5278_v43 = vpop.eup %5277 }
 0x4f1   :  { %5281 = vrcp.f32 %v4043_v50  ;;  %v9135_v28 = vsel %vm2482_vm2, %v5278_v43, 0.0  ;;  %v5280_v14 = vpop.eup %5279  ;;  %v9137_v57 = vpop.f32.mrf.mxu3 }
 0x4f2   :  { %v4047_v44 = vpop.xlane.xlu0 %4046  ;;  %5283 = vpow2.f32 %v2798_v37  ;;  %10100 = vst [vmem:[#allocation29_spill] sm:$0xff] %v9137_v57  ;;  %v3038_v43 = vmul.f32 %v5280_v14, %v10102_v47 }
 0x4f3   :  { %3201 = vmatmul.f32.gmra.mxu2 %v3036_v41  ;;  %4925 = vmatmul.msk.f32.gmra.mxu3 %vm113_vm0, %v3037_v62  ;;  %v10101_v41 = vld [vmem:[#allocation35_spill] sm:$0xff] }
 0x4f4   :  { %v2925_v17 = vpop.xlane.xlu1 %2924  ;;  %4324 = vmatmul.f32.gmra.mxu0 %v4160_v13  ;;  %4952 = vmatmul.msk.f32.gmra.mxu1 %vm113_vm0, %v4161_v2  ;;  %v3039_v13 = vmul.f32 0.0, %v5280_v14 }
 0x4f5   :  { %3778 = vmax.xlane.f32.xlu0 %v3777_v40  ;;  %5285 = vrcp.f32 %v2925_v17 }
 0x4f6   :  { %2964 = vadd.xlane.f32.xlu2 %v9135_v28  ;;  %5287 = vrcp.f32 %v4047_v44 }
 0x4f7   :  { %v5282_v32 = vpop.eup %5281 }
 0x4f8   :  { %v3751_v50 = vpop.xlane.xlu2 %3750  ;;  %v4162_v59 = vmul.f32 %v5282_v32, %v8720_v30  ;;  %v4163_v62 = vmul.f32 %v5282_v32, %v10101_v41  ;;  %v5284_v35 = vpop.eup %5283 }
 0x4f9   :  { %v3820_v0 = vsub.f32 %v8755_v21, %v3751_v50  ;;  %v3821_v37 = vsub.f32 %v8736_v18, %v3751_v50  ;;  %v9151_v44 = vsel %vm2482_vm2, %v5284_v35, 0.0 }
 0x4fa   :  { %v3755_v57 = vpop.xlane.xlu0 %3754 }
 0x4fb   :  { %v3916_v2 = vmul.f32 1.442695, %v3820_v0  ;;  %v3918_v40 = vmul.f32 1.442695, %v3821_v37  ;;  %3204 = vmatmul.f32.gmra.mxu2 %v3038_v43  ;;  %4926 = vmatmul.msk.f32.gmra.mxu3 %vm113_vm0, %v3039_v13  ;;  %v3822_v30 = vsub.f32 %v8781_v8, %v3755_v57  ;;  %v3823_v18 = vsub.f32 %v8764_v9, %v3755_v57  ;;  %v5286_v21 = vpop.eup %5285  ;;  %v9154_v37 = vpop.f32.mrf.mxu3 }
 0x4fc   :  { %v4051_v17 = vpop.xlane.xlu1 %4050  ;;  %4327 = vmatmul.f32.gmra.mxu0 %v4162_v59  ;;  %4953 = vmatmul.msk.f32.gmra.mxu1 %vm113_vm0, %v4163_v62  ;;  %v5288_v50 = vpop.eup %5287  ;;  %10103 = vst [vmem:[#allocation4_spill] sm:$0xff] %v9154_v37  ;;  %v3040_v8 = vmul.f32 %v5286_v21, %v8768_v38  ;;  %v3041_v9 = vmul.f32 0.0, %v5286_v21 }
 0x4fd   :  { %5289 = vpow2.f32 %v3916_v2  ;;  %v3920_v14 = vmul.f32 1.442695, %v3822_v30  ;;  %v3922_v32 = vmul.f32 1.442695, %v3823_v18  ;;  %v4164_v59 = vmul.f32 %v5288_v50, %v8740_v7 }
 0x4fe   :  { %5291 = vpow2.f32 %v3918_v40  ;;  %2968 = vadd.xlane.f32.xlu2 %v9151_v44  ;;  %v4165_v41 = vmul.f32 %v5288_v50, %v8729_v51 }
 0x4ff   :  { %5293 = vrcp.f32 %v4051_v17 }
 0x500   :  { %v2929_v0 = vpop.xlane.xlu2 %2928  ;;  %5295 = vpow2.f32 %v3920_v14 }
 0x501   :  { %5297 = vpow2.f32 %v3922_v32 }
 0x502   :  { %5299 = vrcp.f32 %v2929_v0  ;;  %v2933_v43 = vpop.xlane.xlu0 %2932 }
 0x503   :  { %v5290_v57 = vpop.eup %5289  ;;  %3207 = vmatmul.f32.gmra.mxu2 %v3040_v8  ;;  %4927 = vmatmul.msk.f32.gmra.mxu3 %vm113_vm0, %v3041_v9  ;;  %5301 = vrcp.f32 %v2933_v43  ;;  %v9179_v0 = vpop.f32.mrf.mxu3  ;;  %v10105_v9 = vld [vmem:[#allocation38_spill] sm:$0xff] }
 0x504   :  { %v5292_v62 = vpop.eup %5291  ;;  %v3759_v47 = vpop.xlane.xlu1 %3758  ;;  %v9162_v13 = vsel %vm3606_vm13, %v5290_v57, 0.0  ;;  %4330 = vmatmul.f32.gmra.mxu0 %v4164_v59  ;;  %4954 = vmatmul.msk.f32.gmra.mxu1 %vm113_vm0, %v4165_v41  ;;  %10104 = vst [vmem:[#allocation9_spill] sm:$0xff] %v9179_v0 }
 0x505   :  { %v3824_v38 = vsub.f32 %v8808_v49, %v3759_v47  ;;  %v3825_v35 = vsub.f32 %v8801_v26, %v3759_v47  ;;  %v9169_v51 = vsel %vm3609_vm12, %v5292_v62, 0.0  ;;  %v5294_v7 = vpop.eup %5293 }
 0x506   :  { %v4084_v2 = vsel %vm113_vm0, %v9169_v51, 0.0  ;;  %v5296_v40 = vpop.eup %5295  ;;  %v4166_v8 = vmul.f32 %v5294_v7, %v8788_v63  ;;  %v4167_v57 = vmul.f32 %v5294_v7, %v10105_v9 }
 0x507   :  { %v3924_v17 = vmul.f32 1.442695, %v3824_v38  ;;  %v3926_v30 = vmul.f32 1.442695, %v3825_v35  ;;  %v4085_v18 = vadd.f32 %v4084_v2, %v9162_v13  ;;  %v5298_v21 = vpop.eup %5297  ;;  %v9186_v59 = vsel %vm3606_vm13, %v5296_v40, 0.0 }
 0x508   :  { %v4055_v14 = vpop.xlane.xlu2 %4054  ;;  %v5300_v32 = vpop.eup %5299  ;;  %v9176_v26 = vsel %vm3609_vm12, %v5298_v21, 0.0 }
 0x509   :  { %5303 = vpow2.f32 %v3924_v17  ;;  %4086 = vadd.xlane.f32.xlu1 %v4085_v18  ;;  %v3042_v49 = vmul.f32 %v5300_v32, %v8812_v42  ;;  %v3043_v50 = vmul.f32 0.0, %v5300_v32  ;;  %v4088_v41 = vsel %vm113_vm0, %v9176_v26, 0.0  ;;  %v5302_v62 = vpop.eup %5301 }
 0x50a   :  { %5305 = vpow2.f32 %v3926_v30  ;;  %v4059_v43 = vpop.xlane.xlu0 %4058  ;;  %v4089_v63 = vadd.f32 %v4088_v41, %v9186_v59  ;;  %v3044_v7 = vmul.f32 %v5302_v62, %v8827_v20  ;;  %v3045_v30 = vmul.f32 0.0, %v5302_v62 }
 0x50b   :  { %5307 = vrcp.f32 %v4055_v14  ;;  %3210 = vmatmul.f32.gmra.mxu2 %v3042_v49  ;;  %4928 = vmatmul.msk.f32.gmra.mxu3 %vm113_vm0, %v3043_v50 }
 0x50c   :  { %4333 = vmatmul.f32.gmra.mxu0 %v4166_v8  ;;  %4955 = vmatmul.msk.f32.gmra.mxu1 %vm113_vm0, %v4167_v57  ;;  %v2937_v42 = vpop.xlane.xlu1 %2936 }
 0x50d   :  { %5309 = vrcp.f32 %v2937_v42 }
 0x50e   :  { %5311 = vrcp.f32 %v4059_v43 }
 0x50f   :  { %v5304_v47 = vpop.eup %5303 }
 0x510   :  { %v5306_v38 = vpop.eup %5305  ;;  %v2637_v35 = vpop.xlane.xlu2 %2636  ;;  %v9195_v2 = vsel %vm3606_vm13, %v5304_v47, 0.0 }
 0x511   :  { %v5308_v40 = vpop.eup %5307  ;;  %v2700_v17 = vsub.f32 %v8864_v39, %v2637_v35  ;;  %4090 = vadd.xlane.f32.xlu1 %v4089_v63  ;;  %v9200_v18 = vsel %vm3609_vm12, %v5306_v38, 0.0  ;;  %v9208_v39 = vpop.f32.mrf.mxu3 }
 0x512   :  { %v4168_v21 = vmul.f32 %v5308_v40, %v8832_v22  ;;  %v4169_v14 = vmul.f32 %v5308_v40, %v8822_v52  ;;  %v4092_v20 = vsel %vm113_vm0, %v9200_v18, 0.0  ;;  %10106 = vst [vmem:[#allocation31_spill] sm:$0xff] %v9208_v39 }
 0x513   :  { %v2802_v32 = vmul.f32 1.442695, %v2700_v17  ;;  %v4093_v49 = vadd.f32 %v4092_v20, %v9195_v2  ;;  %3213 = vmatmul.f32.gmra.mxu2 %v3044_v7  ;;  %4929 = vmatmul.msk.f32.gmra.mxu3 %vm113_vm0, %v3045_v30  ;;  %v5310_v50 = vpop.eup %5309  ;;  %v10108_v30 = vld [vmem:[#allocation17_spill] sm:$0xff] }
 0x514   :  { %4336 = vmatmul.f32.gmra.mxu0 %v4168_v21  ;;  %4956 = vmatmul.msk.f32.gmra.mxu1 %vm113_vm0, %v4169_v14  ;;  %v4063_v22 = vpop.xlane.xlu1 %4062  ;;  %v5312_v8 = vpop.eup %5311  ;;  %v3046_v9 = vmul.f32 %v5310_v50, %v8868_v56  ;;  %v3047_v57 = vmul.f32 0.0, %v5310_v50 }
 0x515   :  { %5313 = vpow2.f32 %v2802_v32  ;;  %4094 = vadd.xlane.f32.xlu0 %v4093_v49  ;;  %v4170_v62 = vmul.f32 %v5312_v8, %v8845_v31  ;;  %v4171_v42 = vmul.f32 %v5312_v8, %v8838_v11 }
 0x518   :  { %v2941_v52 = vpop.xlane.xlu2 %2940 }
 0x519   :  { %5315 = vrcp.f32 %v2941_v52  ;;  %v9221_v56 = vpop.f32.mrf.mxu3  ;;  %v2641_v63 = vpop.xlane.xlu0 %2640 }
 0x51a   :  { %5317 = vrcp.f32 %v4063_v22  ;;  %10107 = vst [vmem:[#allocation5_spill] sm:$0xff] %v9221_v56  ;;  %v2702_v11 = vsub.f32 %v8912_v16, %v2641_v63  ;;  %v9229_v16 = vpop.f32.mrf.mxu2  ;;  %v10109_v22 = vld [vmem:[#allocation12_spill] sm:$0xff] }
 0x51b   :  { %v5314_v41 = vpop.eup %5313  ;;  %3216 = vmatmul.f32.gmra.mxu2 %v3046_v9  ;;  %4930 = vmatmul.msk.f32.gmra.mxu3 %vm113_vm0, %v3047_v57 }
 0x51c   :  { %v9217_v47 = vsel %vm2482_vm2, %v5314_v41, 0.0  ;;  %4339 = vmatmul.f32.gmra.mxu0 %v4170_v62  ;;  %4957 = vmatmul.msk.f32.gmra.mxu1 %vm113_vm0, %v4171_v42  ;;  %v2806_v40 = vmul.f32 1.442695, %v2702_v11  ;;  %v9241_v62 = vpop.f32.mrf.mxu0  ;;  %v9244_v42 = vpop.f32.mrf.mxu1 }
 0x51d   :  { %2972 = vadd.xlane.f32.xlu1 %v9217_v47 }
 0x51f   :  { %v5316_v43 = vpop.eup %5315 }
 0x520   :  { %v5318_v38 = vpop.eup %5317  ;;  %v4067_v31 = vpop.xlane.xlu2 %4066  ;;  %v3048_v35 = vmul.f32 %v5316_v43, %v8897_v10  ;;  %v3049_v7 = vmul.f32 0.0, %v5316_v43 }
 0x521   :  { %5319 = vrcp.f32 %v4067_v31  ;;  %v4172_v17 = vmul.f32 %v5318_v38, %v8881_v46  ;;  %v4173_v21 = vmul.f32 %v5318_v38, %v10108_v30  ;;  %v2945_v20 = vpop.xlane.xlu0 %2944  ;;  %v9231_v10 = vpop.f32.mrf.mxu3 }
 0x522   :  { %5321 = vpow2.f32 %v2806_v40  ;;  %v9249_v38 = vpop.f32.mrf.mxu2 }
 0x523   :  { %3219 = vmatmul.f32.gmra.mxu2 %v3048_v35  ;;  %4931 = vmatmul.msk.f32.gmra.mxu3 %vm113_vm0, %v3049_v7  ;;  %5323 = vrcp.f32 %v2945_v20 }
 0x524   :  { %4342 = vmatmul.f32.gmra.mxu0 %v4172_v17  ;;  %4958 = vmatmul.msk.f32.gmra.mxu1 %vm113_vm0, %v4173_v21  ;;  %v9265_v21 = vpop.f32.mrf.mxu1 }
 0x527   :  { %v5320_v14 = vpop.eup %5319 }
 0x528   :  { %v3763_v32 = vpop.xlane.xlu2 %3762  ;;  %v4174_v50 = vmul.f32 %v5320_v14, %v8916_v15  ;;  %v4175_v8 = vmul.f32 %v5320_v14, %v10109_v22  ;;  %v5322_v52 = vpop.eup %5321 }
 0x529   :  { %v3826_v49 = vsub.f32 %v8932_v5, %v3763_v32  ;;  %v3827_v46 = vsub.f32 %v8926_v12, %v3763_v32  ;;  %v9239_v41 = vsel %vm2482_vm2, %v5322_v52, 0.0  ;;  %v5324_v15 = vpop.eup %5323  ;;  %v4071_v43 = vpop.xlane.xlu0 %4070 }
 0x52a   :  { %2976 = vadd.xlane.f32.xlu0 %v9239_v41  ;;  %v3050_v12 = vmul.f32 %v5324_v15, %v8944_v54  ;;  %v3051_v5 = vmul.f32 0.0, %v5324_v15  ;;  %v9251_v31 = vpop.f32.mrf.mxu3  ;;  %v9261_v54 = vpop.f32.mrf.mxu0 }
 0x52b   :  { %v3928_v9 = vmul.f32 1.442695, %v3826_v49  ;;  %v3930_v57 = vmul.f32 1.442695, %v3827_v46  ;;  %v10110_v46 = vld [vmem:[#allocation15_spill] sm:$0xff] }
 0x52c   :  { %4345 = vmatmul.f32.gmra.mxu0 %v4174_v50  ;;  %4959 = vmatmul.msk.f32.gmra.mxu1 %vm113_vm0, %v4175_v8 }
 0x52d   :  { %5325 = vpow2.f32 %v3928_v9  ;;  %3222 = vmatmul.f32.gmra.mxu2 %v3050_v12  ;;  %4932 = vmatmul.msk.f32.gmra.mxu3 %vm113_vm0, %v3051_v5 }
 0x52e   :  { %5327 = vpow2.f32 %v3930_v57 }
 0x52f   :  { %5329 = vrcp.f32 %v4071_v43 }
 0x531   :  { %v3767_v32 = vpop.xlane.xlu0 %3766 }
 0x532   :  { %v3828_v8 = vsub.f32 %v8971_v1, %v3767_v32  ;;  %v3829_v52 = vsub.f32 %v8964_v34, %v3767_v32  ;;  %v9276_v15 = vpop.f32.mrf.mxu3  ;;  %v9278_v12 = vpop.f32.mrf.mxu0 }
 0x533   :  { %v5326_v63 = vpop.eup %5325  ;;  %v2645_v40 = vpop.xlane.xlu1 %2644 }
 0x534   :  { %v5328_v11 = vpop.eup %5327  ;;  %v9255_v35 = vsel %vm3606_vm13, %v5326_v63, 0.0  ;;  %v2704_v14 = vsub.f32 %v8980_v24, %v2645_v40  ;;  %v3932_v9 = vmul.f32 1.442695, %v3828_v8  ;;  %v3934_v57 = vmul.f32 1.442695, %v3829_v52  ;;  %v9274_v24 = vpop.f32.mrf.mxu2 }
 0x535   :  { %v9259_v7 = vsel %vm3609_vm12, %v5328_v11, 0.0  ;;  %v5330_v30 = vpop.eup %5329  ;;  %v9280_v1 = vpop.f32.mrf.mxu1 }
 0x536   :  { %v4096_v17 = vsel %vm113_vm0, %v9259_v7, 0.0  ;;  %v4176_v49 = vmul.f32 %v5330_v30, %v8955_v61  ;;  %v4177_v50 = vmul.f32 %v5330_v30, %v10110_v46  ;;  %v2810_v22 = vmul.f32 1.442695, %v2704_v14  ;;  %v2953_v63 = vpop.xlane.xlu2 %2952 }
 0x537   :  { %v4097_v20 = vadd.f32 %v4096_v17, %v9255_v35 }
 0x538   :  { %4348 = vmatmul.f32.gmra.mxu0 %v4176_v49  ;;  %4960 = vmatmul.msk.f32.gmra.mxu1 %vm113_vm0, %v4177_v50  ;;  %5331 = vpow2.f32 %v2810_v22 }
 0x539   :  { %4098 = vadd.xlane.f32.xlu2 %v4097_v20  ;;  %5333 = vpow2.f32 %v3932_v9  ;;  %v2957_v52 = vpop.xlane.xlu0 %2956 }
 0x53a   :  { %5335 = vpow2.f32 %v3934_v57  ;;  %v9293_v30 = vpop.f32.mrf.mxu3 }
 0x53b   :  { %v2949_v61 = vpop.xlane.xlu1 %2948 }
 0x53c   :  { %5337 = vrcp.f32 %v2949_v61  ;;  %v9291_v17 = vpop.f32.mrf.mxu2 }
 0x53d   :  { %5339 = vrcp.f32 %v2953_v63 }
 0x53e   :  { %v5332_v5 = vpop.eup %5331 }
 0x53f   :  { %v9284_v34 = vsel %vm2482_vm2, %v5332_v5, 0.0  ;;  %v5334_v43 = vpop.eup %5333 }
 0x540   :  { %10111 = vst [vmem:[#allocation33_spill] sm:$0xff] %v9284_v34  ;;  %v5336_v11 = vpop.eup %5335  ;;  %v9289_v40 = vsel %vm3606_vm13, %v5334_v43, 0.0  ;;  %v10114_v43 = vld [vmem:[#allocation6_spill] sm:$0xff] }
 0x541   :  { %2980 = vadd.xlane.f32.xlu2 %v9284_v34  ;;  %10112 = vst [vmem:[#allocation32_spill] sm:$0xff] %v9289_v40  ;;  %v9297_v14 = vsel %vm3609_vm12, %v5336_v11, 0.0 }
 0x542   :  { %10113 = vst [vmem:[#allocation11_spill] sm:$0xff] %v9297_v14  ;;  %v5338_v20 = vpop.eup %5337  ;;  %v4100_v32 = vsel %vm113_vm0, %v9297_v14, 0.0 }
 0x543   :  { %v4101_v49 = vadd.f32 %v4100_v32, %v9289_v40  ;;  %v3052_v46 = vmul.f32 %v5338_v20, %v9005_v53  ;;  %v3053_v50 = vmul.f32 0.0, %v5338_v20  ;;  %v5340_v9 = vpop.eup %5339 }
 0x544   :  { %v3054_v53 = vmul.f32 %v5340_v9, %v10114_v43  ;;  %v3055_v20 = vmul.f32 0.0, %v5340_v9 }
 0x545   :  { %4102 = vadd.xlane.f32.xlu1 %v4101_v49  ;;  %3225 = vmatmul.f32.gmra.mxu2 %v3052_v46 }
 0x546   :  { %4933 = vmatmul.msk.f32.gmra.mxu3 %vm113_vm0, %v3053_v50  ;;  %v9308_v61 = vpop.f32.mrf.mxu2  ;;  %v9310_v5 = vpop.f32.mrf.mxu3 }
 0x547   :  { %v9303_v22 = vpop.f32.mrf.mxu0  ;;  %v9305_v8 = vpop.f32.mrf.mxu1 }
 0x54c   :  { %v4075_v57 = vpop.xlane.xlu1 %4074 }
 0x54d   :  { %5341 = vrcp.f32 %v4075_v57  ;;  %3228 = vmatmul.f32.gmra.mxu2 %v3054_v53 }
 0x54e   :  { %5343 = vrcp.f32 %v2957_v52  ;;  %4934 = vmatmul.msk.f32.gmra.mxu3 %vm113_vm0, %v3055_v20 }
 0x54f   :  { %v9313_v63 = vpop.f32.mrf.mxu0  ;;  %v4079_v11 = vpop.xlane.xlu2 %4078 }
 0x550   :  { %v9315_v32 = vpop.f32.mrf.mxu1  ;;  %5345 = vrcp.f32 %v4079_v11  ;;  %v10115_v11 = vld [vmem:[#allocation26_spill] sm:$0xff] }
 0x551   :  { %v9323_v9 = vpop.f32.mrf.mxu2  ;;  %v9325_v53 = vpop.f32.mrf.mxu3 }
 0x553   :  { %v5342_v49 = vpop.eup %5341 }
 0x554   :  { %v5344_v46 = vpop.eup %5343  ;;  %v3771_v50 = vpop.xlane.xlu1 %3770  ;;  %v4178_v56 = vmul.f32 %v5342_v49, %v9020_v27  ;;  %v4179_v57 = vmul.f32 %v5342_v49, %v9026_v4 }
 0x555   :  { %v3830_v52 = vsub.f32 %v9054_v58, %v3771_v50  ;;  %v3831_v43 = vsub.f32 %v9037_v25, %v3771_v50  ;;  %v3056_v0 = vmul.f32 %v5344_v46, %v10115_v11  ;;  %v3057_v27 = vmul.f32 0.0, %v5344_v46  ;;  %v10116_v50 = vld [vmem:[#allocation25_spill] sm:$0xff] }
 0x556   :  { %4351 = vmatmul.f32.gmra.mxu0 %v4178_v56  ;;  %4961 = vmatmul.msk.f32.gmra.mxu1 %vm113_vm0, %v4179_v57  ;;  %v5346_v14 = vpop.eup %5345 }
 0x557   :  { %v3936_v20 = vmul.f32 1.442695, %v3830_v52  ;;  %v3938_v39 = vmul.f32 1.442695, %v3831_v43  ;;  %v9328_v37 = vpop.f32.mrf.mxu0  ;;  %3231 = vmatmul.f32.gmra.mxu2 %v3056_v0  ;;  %4935 = vmatmul.msk.f32.gmra.mxu3 %vm113_vm0, %v3057_v27  ;;  %v4180_v57 = vmul.f32 %v5346_v14, %v10116_v50  ;;  %v10117_v52 = vld [vmem:[#allocation42_spill] sm:$0xff] }
 0x558   :  { %v2649_v4 = vpop.xlane.xlu2 %2648  ;;  %v4083_v58 = vpop.xlane.xlu0 %4082  ;;  %v4181_v43 = vmul.f32 %v5346_v14, %v10117_v52 }
 0x559   :  { %5347 = vpow2.f32 %v3936_v20  ;;  %v9330_v25 = vpop.f32.mrf.mxu1  ;;  %v2706_v56 = vsub.f32 %v9063_v19, %v2649_v4 }
 0x55a   :  { %5349 = vpow2.f32 %v3938_v39 }
 0x55b   :  { %5351 = vrcp.f32 %v4083_v58  ;;  %v2814_v49 = vmul.f32 1.442695, %v2706_v56 }
 0x55d   :  { %5353 = vpow2.f32 %v2814_v49 }
 0x55e   :  { %4354 = vmatmul.f32.gmra.mxu0 %v4180_v57  ;;  %4962 = vmatmul.msk.f32.gmra.mxu1 %vm113_vm0, %v4181_v43  ;;  %v9337_v20 = vpop.f32.mrf.mxu2  ;;  %v9339_v0 = vpop.f32.mrf.mxu3 }
 0x55f   :  { %v5348_v46 = vpop.eup %5347 }
 0x560   :  { %v5350_v39 = vpop.eup %5349  ;;  %v9343_v19 = vsel %vm3606_vm13, %v5348_v46, 0.0  ;;  %v2961_v27 = vpop.xlane.xlu1 %2960 }
 0x561   :  { %v5352_v11 = vpop.eup %5351  ;;  %v2653_v4 = vpop.xlane.xlu0 %2652  ;;  %v9347_v14 = vsel %vm3609_vm12, %v5350_v39, 0.0  ;;  %5355 = vrcp.f32 %v2961_v27 }
 0x562   :  { %10118 = vst [vmem:[#allocation35_spill] sm:$0xff] %v9347_v14  ;;  %v9349_v58 = vpop.f32.mrf.mxu0  ;;  %v9351_v56 = vpop.f32.mrf.mxu1  ;;  %v2708_v49 = vsub.f32 %v9097_v29, %v2653_v4  ;;  %v4104_v50 = vsel %vm113_vm0, %v9347_v14, 0.0  ;;  %v4182_v34 = vmul.f32 %v5352_v11, %v9068_v45  ;;  %v4183_v29 = vmul.f32 %v5352_v11, %v9073_v48 }
 0x563   :  { %v3775_v57 = vpop.xlane.xlu2 %3774  ;;  %v4105_v52 = vadd.f32 %v4104_v50, %v9343_v19  ;;  %v5354_v43 = vpop.eup %5353 }
 0x564   :  { %v3832_v46 = vsub.f32 %v9093_v55, %v3775_v57  ;;  %v3833_v40 = vsub.f32 %v9089_v36, %v3775_v57  ;;  %v2818_v39 = vmul.f32 1.442695, %v2708_v49  ;;  %v9362_v27 = vsel %vm2482_vm2, %v5354_v43, 0.0  ;;  %v9383_v43 = vld [vmem:[%s9846_s5] ss:$0 sm:$0xff] }
 0x565   :  { %4106 = vadd.xlane.f32.xlu0 %v4105_v52  ;;  %10119 = vst [vmem:[#allocation36_spill] sm:$0xff] %v9362_v27  ;;  %2984 = vadd.xlane.f32.xlu1 %v9362_v27  ;;  %v4406_v36 = vadd.f32 %v9265_v21, %v9261_v54 }
 0x566   :  { %v3940_v4 = vmul.f32 1.442695, %v3832_v46  ;;  %v3942_v14 = vmul.f32 1.442695, %v3833_v40  ;;  %5357 = vpow2.f32 %v2818_v39  ;;  %4357 = vmatmul.f32.gmra.mxu0 %v4182_v34  ;;  %v9366_v50 = vpop.f32.mrf.mxu2  ;;  %v9368_v55 = vpop.f32.mrf.mxu3  ;;  %4963 = vmatmul.msk.f32.gmra.mxu1 %vm113_vm0, %v4183_v29  ;;  %v10120_v46 = vld [vmem:[#allocation21_spill] sm:$0xff] }
 0x567   :  { %v5356_v45 = vpop.eup %5355  ;;  %v1970_v54 = vadd.f32 %v9383_v43, %v10120_v46  ;;  %v3280_v46 = vadd.f32 %v9251_v31, %v9249_v38 }
 0x568   :  { %5359 = vpow2.f32 %v3940_v4  ;;  %v3058_v48 = vmul.f32 %v5356_v45, %v9109_v23  ;;  %v3059_v40 = vmul.f32 0.0, %v5356_v45  ;;  %v4403_v45 = vadd.f32 %v9244_v42, %v9241_v62 }
 0x569   :  { %5361 = vpow2.f32 %v3942_v14  ;;  %v3779_v49 = vpop.xlane.xlu0 %3778  ;;  %v4487_v29 = vsub.f32 %v1970_v54, %v4406_v36  ;;  %v3361_v31 = vsub.f32 %v1970_v54, %v3280_v46 }
 0x56a   :  { %v9374_v11 = vpop.f32.mrf.mxu0  ;;  %v9376_v57 = vpop.f32.mrf.mxu1  ;;  %v3834_v34 = vsub.f32 %v9123_v60, %v3779_v49  ;;  %v3835_v52 = vsub.f32 %v9113_v33, %v3779_v49  ;;  %3234 = vmatmul.f32.gmra.mxu2 %v3058_v48  ;;  %4936 = vmatmul.msk.f32.gmra.mxu3 %vm113_vm0, %v3059_v40 }
 0x56b   :  { %v2965_v21 = vpop.xlane.xlu2 %2964  ;;  %v4515_v42 = vmul.f32 %v4487_v29, %v4487_v29  ;;  %v3283_v29 = vadd.f32 %v9276_v15, %v9274_v24  ;;  %v3277_v24 = vadd.f32 %v9231_v10, %v9229_v16  ;;  %v3389_v3 = vmul.f32 %v3361_v31, %v3361_v31 }
 0x56c   :  { %v5358_v23 = vpop.eup %5357  ;;  %5363 = vrcp.f32 %v2965_v21  ;;  %v3944_v14 = vmul.f32 1.442695, %v3834_v34  ;;  %v3946_v39 = vmul.f32 1.442695, %v3835_v52  ;;  %v10123_v34 = vld [vmem:[#allocation18_spill] sm:$0xff]  ;;  %v4412_v31 = vadd.f32 %v9305_v8, %v9303_v22 }
 0x56d   :  { %v9390_v33 = vsel %vm2482_vm2, %v5358_v23, 0.0  ;;  %v1967_v52 = vadd.f32 %v9383_v43, %v10123_v34  ;;  %v4415_v22 = vadd.f32 %v9315_v32, %v9313_v63  ;;  %vm3531_vm2 = vcmask 130112  }
 0x56e   :  { %10121 = vst [vmem:[#allocation38_spill] sm:$0xff] %v9390_v33  ;;  %v5360_v60 = vpop.eup %5359  ;;  %5365 = vpow2.f32 %v3944_v14  ;;  %2988 = vadd.xlane.f32.xlu0 %v9390_v33  ;;  %v9395_v49 = vpop.f32.mrf.mxu2 }
 0x56f   :  { %v5362_v4 = vpop.eup %5361  ;;  %5367 = vpow2.f32 %v3946_v39  ;;  %v9397_v48 = vpop.f32.mrf.mxu3  ;;  %v9401_v36 = vsel %vm3606_vm13, %v5360_v60, 0.0  ;;  %v4486_v60 = vsub.f32 %v1967_v52, %v4403_v45  ;;  %v3360_v16 = vsub.f32 %v1967_v52, %v3277_v24  ;;  %v10125_v52 = vld [vmem:[#allocation27_spill] sm:$0xff] }
 0x570   :  { %v9405_v40 = vsel %vm3609_vm12, %v5362_v4, 0.0  ;;  %v1976_v24 = vadd.f32 %v9383_v43, %v10125_v52  ;;  %v4421_v52 = vadd.f32 %v9351_v56, %v9349_v58 }
 0x571   :  { %10122 = vst [vmem:[#allocation17_spill] sm:$0xff] %v9405_v40  ;;  %v4108_v62 = vsel %vm113_vm0, %v9405_v40, 0.0  ;;  %v4545_v40 = vsel %vm299_vm1, %v4515_v42, 0.0  ;;  %v4514_v15 = vmul.f32 %v4486_v60, %v4486_v60 }
 0x572   :  { %v5364_v21 = vpop.eup %5363  ;;  %v9413_v23 = vpop.f32.mrf.mxu0  ;;  %v4109_v39 = vadd.f32 %v4108_v62, %v9401_v36  ;;  %v10124_v62 = vld [vmem:[#allocation23_spill] sm:$0xff] }
 0x573   :  { %v9415_v14 = vpop.f32.mrf.mxu1  ;;  %v2969_v4 = vpop.xlane.xlu2 %2968  ;;  %v3060_v33 = vmul.f32 %v5364_v21, %v9135_v28  ;;  %v3061_v27 = vmul.f32 0.0, %v5364_v21  ;;  %v1973_v54 = vadd.f32 %v9383_v43, %v10124_v62  ;;  %v4542_v10 = vsel %vm299_vm1, %v4514_v15, 0.0 }
 0x574   :  { %v5366_v34 = vpop.eup %5365  ;;  %4110 = vadd.xlane.f32.xlu2 %v4109_v39  ;;  %5369 = vrcp.f32 %v2969_v4  ;;  %v4409_v39 = vadd.f32 %v9280_v1, %v9278_v12  ;;  %v3419_v12 = vsel %vm299_vm1, %v3389_v3, 0.0  ;;  %v3388_v15 = vmul.f32 %v3360_v16, %v3360_v16 }
 0x575   :  { %v5368_v38 = vpop.eup %5367  ;;  %3237 = vmatmul.f32.gmra.mxu2 %v3060_v33  ;;  %4937 = vmatmul.msk.f32.gmra.mxu3 %vm113_vm0, %v3061_v27  ;;  %v9425_v45 = vsel %vm3606_vm13, %v5366_v34, 0.0  ;;  %v3362_v46 = vsub.f32 %v1973_v54, %v3283_v29  ;;  %vm3539_vm13 = vcmask 261312  }
 0x576   :  { %4546 = vadd.xlane.f32.xlu0 %v4545_v40  ;;  %v9429_v28 = vsel %vm3609_vm12, %v5368_v38, 0.0  ;;  %v9438_v42 = vpop.f32.mrf.mxu2  ;;  %v4488_v62 = vsub.f32 %v1973_v54, %v4409_v39  ;;  %vm3535_vm12 = vcmask 195712  }
 0x577   :  { %v4112_v27 = vsel %vm113_vm0, %v9429_v28, 0.0  ;;  %v9440_v40 = vpop.f32.mrf.mxu3  ;;  %v3390_v1 = vmul.f32 %v3362_v46, %v3362_v46 }
 0x578   :  { %v4113_v33 = vadd.f32 %v4112_v27, %v9425_v45  ;;  %v4489_v27 = vsub.f32 %v1976_v24, %v4412_v31  ;;  %v4516_v54 = vmul.f32 %v4488_v62, %v4488_v62 }
 0x57a   :  { %v5370_v21 = vpop.eup %5369  ;;  %v9444_v4 = vpop.f32.mrf.mxu0  ;;  %4114 = vadd.xlane.f32.xlu1 %v4113_v33  ;;  %v3422_v33 = vsel %vm299_vm1, %v3390_v1, 0.0  ;;  %v10127_v1 = vld [vmem:[#allocation10_spill] sm:$0xff] }
 0x57b   :  { %v9446_v34 = vpop.f32.mrf.mxu1  ;;  %v3062_v60 = vmul.f32 %v5370_v21, %v9151_v44  ;;  %v3063_v38 = vmul.f32 0.0, %v5370_v21  ;;  %v3286_v44 = vadd.f32 %v9293_v30, %v9291_v17  ;;  %v10126_v17 = vld [vmem:[#allocation14_spill] sm:$0xff]  ;;  %v1982_v62 = vadd.f32 %v9383_v43, %v10127_v1 }
 0x57c   :  { %4543 = vadd.xlane.f32.xlu2 %v4542_v10  ;;  %v4087_v29 = vpop.xlane.xlu1 %4086  ;;  %v3416_v10 = vsel %vm299_vm1, %v3388_v15, 0.0  ;;  %v1979_v30 = vadd.f32 %v9383_v43, %v10126_v17  ;;  %v3289_v15 = vadd.f32 %v9310_v5, %v9308_v61 }
 0x57d   :  { %3240 = vmatmul.f32.gmra.mxu2 %v3062_v60  ;;  %4938 = vmatmul.msk.f32.gmra.mxu3 %vm113_vm0, %v3063_v38  ;;  %5371 = vrcp.f32 %v4087_v29  ;;  %v3363_v3 = vsub.f32 %v1976_v24, %v3286_v44  ;;  %v4418_v38 = vadd.f32 %v9330_v25, %v9328_v37  ;;  %v4517_v29 = vmul.f32 %v4489_v27, %v4489_v27 }
 0x57e   :  { %3420 = vadd.xlane.f32.xlu0 %v3419_v12  ;;  %v9465_v39 = vpop.f32.mrf.mxu2  ;;  %v4490_v31 = vsub.f32 %v1979_v30, %v4415_v22  ;;  %v4548_v12 = vsel %vm299_vm1, %v4516_v54, 0.0  ;;  %v3364_v17 = vsub.f32 %v1979_v30, %v3289_v15  ;;  %v3298_v30 = vadd.f32 %v9368_v55, %v9366_v50  ;;  %v10130_v15 = vld [vmem:[#allocation30_spill] sm:$0xff] }
 0x57f   :  { %v9470_v16 = vpop.f32.mrf.mxu3  ;;  %v4491_v37 = vsub.f32 %v1982_v62, %v4418_v38  ;;  %v4551_v25 = vsel %vm299_vm1, %v4517_v29, 0.0  ;;  %v4424_v50 = vadd.f32 %v9376_v57, %v9374_v11 }
 0x580   :  { %v4518_v27 = vmul.f32 %v4490_v31, %v4490_v31 }
 0x581   :  { %v4519_v61 = vmul.f32 %v4491_v37, %v4491_v37 }
 0x582   :  { %v9461_v8 = vpop.f32.mrf.mxu0  ;;  %3423 = vadd.xlane.f32.xlu1 %v3422_v33 }
 0x583   :  { %v9463_v21 = vpop.f32.mrf.mxu1  ;;  %v5372_v46 = vpop.eup %5371 }
 0x584   :  { %3417 = vadd.xlane.f32.xlu2 %v3416_v10  ;;  %v4091_v60 = vpop.xlane.xlu1 %4090  ;;  %v4184_v63 = vmul.f32 %v5372_v46, %v9162_v13  ;;  %v4185_v32 = vmul.f32 %v5372_v46, %v9169_v51  ;;  %v3391_v13 = vmul.f32 %v3363_v3, %v3363_v3  ;;  %v10128_v51 = vld [vmem:[#allocation3_spill] sm:$0xff]  ;;  %v3292_v10 = vadd.f32 %v9325_v53, %v9323_v9 }
 0x585   :  { %5373 = vrcp.f32 %v4091_v60  ;;  %v1985_v24 = vadd.f32 %v9383_v43, %v10128_v51  ;;  %v4557_v9 = vsel %vm299_vm1, %v4519_v61, 0.0  ;;  %v3392_v53 = vmul.f32 %v3364_v17, %v3364_v17  ;;  %v10131_v61 = vld [vmem:[#allocation34_spill] sm:$0xff] }
 0x586   :  { %4360 = vmatmul.f32.gmra.mxu0 %v4184_v63  ;;  %4964 = vmatmul.msk.f32.gmra.mxu1 %vm113_vm0, %v4185_v32  ;;  %v3425_v56 = vsel %vm299_vm1, %v3391_v13, 0.0  ;;  %v9496_v5 = vpop.f32.mrf.mxu2  ;;  %v4554_v63 = vsel %vm299_vm1, %v4518_v27, 0.0  ;;  %v3295_v32 = vadd.f32 %v9339_v0, %v9337_v20  ;;  %v3365_v38 = vsub.f32 %v1982_v62, %v3292_v10  ;;  %v10129_v0 = vld [vmem:[#allocation7_spill] sm:$0xff] }
 0x587   :  { %4549 = vadd.xlane.f32.xlu0 %v4548_v12  ;;  %v4492_v58 = vsub.f32 %v1985_v24, %v4421_v52  ;;  %v9498_v60 = vpop.f32.mrf.mxu3  ;;  %v1988_v52 = vadd.f32 %v9383_v43, %v10129_v0  ;;  %v3428_v37 = vsel %vm299_vm1, %v3392_v53, 0.0  ;;  %v1997_v17 = vadd.f32 %v9383_v43, %v10131_v61 }
 0x588   :  { %v4095_v44 = vpop.xlane.xlu0 %4094  ;;  %v3366_v1 = vsub.f32 %v1985_v24, %v3295_v32  ;;  %v3393_v51 = vmul.f32 %v3365_v38, %v3365_v38  ;;  %v10132_v38 = vld [vmem:[#allocation8_spill] sm:$0xff] }
 0x589   :  { %5375 = vrcp.f32 %v4095_v44  ;;  %v3367_v55 = vsub.f32 %v1988_v52, %v3298_v30  ;;  %v4493_v11 = vsub.f32 %v1988_v52, %v4424_v50  ;;  %v10133_v52 = vld [vmem:[#allocation40_spill] sm:$0xff] }
 0x58a   :  { %v9487_v33 = vpop.f32.mrf.mxu0  ;;  %4552 = vadd.xlane.f32.xlu1 %v4551_v25  ;;  %v3394_v24 = vmul.f32 %v3366_v1, %v3366_v1  ;;  %v4427_v25 = vadd.f32 %v9415_v14, %v9413_v23  ;;  %v3431_v57 = vsel %vm299_vm1, %v3393_v51, 0.0 }
 0x58b   :  { %v9489_v22 = vpop.f32.mrf.mxu1  ;;  %v5374_v54 = vpop.eup %5373 }
 0x58c   :  { %3426 = vadd.xlane.f32.xlu2 %v3425_v56  ;;  %v4186_v46 = vmul.f32 %v5374_v54, %v9186_v59  ;;  %v4187_v3 = vmul.f32 %v5374_v54, %v9176_v26  ;;  %v4520_v59 = vmul.f32 %v4492_v58, %v4492_v58  ;;  %v3395_v56 = vmul.f32 %v3367_v55, %v3367_v55 }
 0x58d   :  { %v3434_v10 = vsel %vm299_vm1, %v3394_v24, 0.0 }
 0x58e   :  { %4363 = vmatmul.f32.gmra.mxu0 %v4186_v46  ;;  %4965 = vmatmul.msk.f32.gmra.mxu1 %vm113_vm0, %v4187_v3  ;;  %v4560_v20 = vsel %vm299_vm1, %v4520_v59, 0.0  ;;  %v9522_v44 = vpop.f32.mrf.mxu2  ;;  %v3307_v46 = vadd.f32 %v9470_v16, %v9465_v39  ;;  %v3437_v39 = vsel %vm299_vm1, %v3395_v56, 0.0  ;;  %v3304_v59 = vadd.f32 %v9440_v40, %v9438_v42 }
 0x58f   :  { %4555 = vadd.xlane.f32.xlu0 %v4554_v63  ;;  %v5376_v26 = vpop.eup %5375  ;;  %v9526_v27 = vpop.f32.mrf.mxu3  ;;  %v4521_v63 = vmul.f32 %v4493_v11, %v4493_v11  ;;  %v2006_v42 = vadd.f32 %v9383_v43, %v10133_v52 }
 0x590   :  { %v2973_v29 = vpop.xlane.xlu1 %2972  ;;  %v4188_v62 = vmul.f32 %v5376_v26, %v9195_v2  ;;  %v4189_v13 = vmul.f32 %v5376_v26, %v9200_v18  ;;  %v1991_v18 = vadd.f32 %v9383_v43, %v10130_v15  ;;  %v3370_v32 = vsub.f32 %v1997_v17, %v3307_v46 }
 0x591   :  { %5377 = vrcp.f32 %v2973_v29  ;;  %v1994_v29 = vadd.f32 %v9383_v43, %v10132_v38  ;;  %v4563_v30 = vsel %vm299_vm1, %v4521_v63, 0.0  ;;  %v3313_v52 = vadd.f32 %v9526_v27, %v9522_v44 }
 0x592   :  { %v9507_v31 = vpop.f32.mrf.mxu0  ;;  %4558 = vadd.xlane.f32.xlu1 %v4557_v9  ;;  %v4494_v23 = vsub.f32 %v1991_v18, %v4427_v25  ;;  %v3398_v1 = vmul.f32 %v3370_v32, %v3370_v32  ;;  %v4433_v25 = vadd.f32 %v9463_v21, %v9461_v8 }
 0x593   :  { %v9509_v12 = vpop.f32.mrf.mxu1 }
 0x594   :  { %4561 = vadd.xlane.f32.xlu2 %v4560_v20  ;;  %v4522_v16 = vmul.f32 %v4494_v23, %v4494_v23  ;;  %v3446_v55 = vsel %vm299_vm1, %v3398_v1, 0.0  ;;  %v4439_v61 = vadd.f32 %v9509_v12, %v9507_v31 }
 0x596   :  { %4366 = vmatmul.f32.gmra.mxu0 %v4188_v62  ;;  %4966 = vmatmul.msk.f32.gmra.mxu1 %vm113_vm0, %v4189_v13  ;;  %v3214_v53 = vpop.f32.mrf.mxu2  ;;  %v4566_v0 = vsel %vm299_vm1, %v4522_v16, 0.0  ;;  %v4430_v62 = vadd.f32 %v9446_v34, %v9444_v4 }
 0x597   :  { %3429 = vadd.xlane.f32.xlu0 %v3428_v37  ;;  %v5378_v2 = vpop.eup %5377  ;;  %v3315_v20 = vpop.f32.mrf.mxu3 }
 0x598   :  { %v3064_v54 = vmul.f32 %v5378_v2, %v9217_v47  ;;  %v3065_v58 = vmul.f32 0.0, %v5378_v2  ;;  %v3301_v47 = vadd.f32 %v9397_v48, %v9395_v49  ;;  %v3369_v48 = vsub.f32 %v1994_v29, %v3304_v59 }
 0x599   :  { %v3316_v4 = vadd.f32 %v3315_v20, %v3214_v53  ;;  %v3310_v53 = vadd.f32 %v9498_v60, %v9496_v5 }
 0x59a   :  { %3432 = vadd.xlane.f32.xlu1 %v3431_v57  ;;  %v4340_v14 = vpop.f32.mrf.mxu0  ;;  %3243 = vmatmul.f32.gmra.mxu2 %v3064_v54  ;;  %v3368_v9 = vsub.f32 %v1991_v18, %v3301_v47  ;;  %v3397_v24 = vmul.f32 %v3369_v48, %v3369_v48  ;;  %v4495_v18 = vsub.f32 %v1994_v29, %v4430_v62  ;;  %v10135_v47 = vld [vmem:[#allocation39_spill] sm:$0xff] }
 0x59b   :  { %v4441_v3 = vpop.f32.mrf.mxu1  ;;  %4939 = vmatmul.msk.f32.gmra.mxu3 %vm113_vm0, %v3065_v58  ;;  %v4496_v57 = vsub.f32 %v1997_v17, %v4433_v25  ;;  %v3373_v46 = vsub.f32 %v2006_v42, %v3316_v4  ;;  %v2003_v32 = vadd.f32 %v9383_v43, %v10135_v47  ;;  %v10136_v29 = vld [vmem:[#allocation19_spill] sm:$0xff] }
 0x59c   :  { %3435 = vadd.xlane.f32.xlu2 %v3434_v10  ;;  %v4442_v49 = vadd.f32 %v4441_v3, %v4340_v14  ;;  %v3396_v40 = vmul.f32 %v3368_v9, %v3368_v9  ;;  %v3443_v58 = vsel %vm299_vm1, %v3397_v24, 0.0  ;;  %v4523_v21 = vmul.f32 %v4495_v18, %v4495_v18  ;;  %v10134_v14 = vld [vmem:[#allocation37_spill] sm:$0xff] }
 0x59d   :  { %v2977_v26 = vpop.xlane.xlu0 %2976  ;;  %v2000_v3 = vadd.f32 %v9383_v43, %v10134_v14  ;;  %v4524_v10 = vmul.f32 %v4496_v57, %v4496_v57  ;;  %v9573_v9 = vadd.f32 %v9383_v43, %v10136_v29  ;;  %v10139_v57 = vld [vmem:[#allocation41_spill] sm:$0xff] }
 0x59e   :  { %5379 = vrcp.f32 %v2977_v26  ;;  %v4499_v50 = vsub.f32 %v2006_v42, %v4442_v49  ;;  %v3440_v11 = vsel %vm299_vm1, %v3396_v40, 0.0  ;;  %v3217_v54 = vpop.f32.mrf.mxu2  ;;  %v4498_v26 = vsub.f32 %v2003_v32, %v4439_v61 }
 0x59f   :  { %3438 = vadd.xlane.f32.xlu0 %v3437_v39  ;;  %v3318_v56 = vpop.f32.mrf.mxu3  ;;  %v4572_v38 = vsel %vm299_vm1, %v4524_v10, 0.0  ;;  %v3371_v5 = vsub.f32 %v2000_v3, %v3310_v53 }
 0x5a0   :  { %v4527_v34 = vmul.f32 %v4499_v50, %v4499_v50  ;;  %v3372_v50 = vsub.f32 %v2003_v32, %v3313_v52 }
 0x5a1   :  { %v3399_v27 = vmul.f32 %v3371_v5, %v3371_v5 }
 0x5a2   :  { %4564 = vadd.xlane.f32.xlu1 %v4563_v30  ;;  %v9549_v13 = vpop.f32.mrf.mxu0  ;;  %v4581_v23 = vsel %vm299_vm1, %v4527_v34, 0.0 }
 0x5a3   :  { %v9551_v51 = vpop.f32.mrf.mxu1 }
 0x5a4   :  { %4567 = vadd.xlane.f32.xlu2 %v4566_v0  ;;  %v5380_v37 = vpop.eup %5379 }
 0x5a5   :  { %v3066_v2 = vmul.f32 %v5380_v37, %v9239_v41  ;;  %v3067_v15 = vmul.f32 0.0, %v5380_v37  ;;  %v4436_v41 = vadd.f32 %v9489_v22, %v9487_v33  ;;  %v4569_v33 = vsel %vm299_vm1, %v4523_v21, 0.0  ;;  %v10137_v37 = vld [vmem:[#allocation20_spill] sm:$0xff] }
 0x5a6   :  { %v3401_v22 = vmul.f32 %v3373_v46, %v3373_v46  ;;  %v3220_v1 = vpop.f32.mrf.mxu2  ;;  %v2015_v24 = vadd.f32 %v9383_v43, %v10137_v37  ;;  %v4445_v21 = vadd.f32 %v9551_v51, %v9549_v13  ;;  %v10141_v13 = vld [vmem:[#allocation11_spill] sm:$0xff] }
 0x5a7   :  { %3447 = vadd.xlane.f32.xlu0 %v3446_v55  ;;  %3246 = vmatmul.f32.gmra.mxu2 %v3066_v2  ;;  %v4497_v39 = vsub.f32 %v2000_v3, %v4436_v41  ;;  %v3321_v20 = vpop.f32.mrf.mxu3  ;;  %v3319_v2 = vadd.f32 %v3318_v56, %v3217_v54  ;;  %v3449_v56 = vsel %vm299_vm1, %v3399_v27, 0.0 }
 0x5a8   :  { %4940 = vmatmul.msk.f32.gmra.mxu3 %vm113_vm0, %v3067_v15  ;;  %v3455_v48 = vsel %vm299_vm1, %v3401_v22, 0.0  ;;  %v3322_v22 = vadd.f32 %v3321_v20, %v3220_v1 }
 0x5a9   :  { %v4525_v30 = vmul.f32 %v4497_v39, %v4497_v39 }
 0x5aa   :  { %3441 = vadd.xlane.f32.xlu1 %v3440_v11  ;;  %v4346_v17 = vpop.f32.mrf.mxu0  ;;  %v10138_v11 = vld [vmem:[#allocation33_spill] sm:$0xff] }
 0x5ab   :  { %v4447_v63 = vpop.f32.mrf.mxu1  ;;  %v4575_v60 = vsel %vm299_vm1, %v4525_v30, 0.0 }
 0x5ac   :  { %3444 = vadd.xlane.f32.xlu2 %v3443_v58  ;;  %v4099_v8 = vpop.xlane.xlu2 %4098  ;;  %v4448_v16 = vadd.f32 %v4447_v63, %v4346_v17  ;;  %v2009_v58 = vadd.f32 %v9383_v43, %v10139_v57  ;;  %v10140_v17 = vld [vmem:[#allocation32_spill] sm:$0xff] }
 0x5ad   :  { %5381 = vrcp.f32 %v4099_v8  ;;  %v3400_v8 = vmul.f32 %v3372_v50, %v3372_v50 }
 0x5ae   :  { %v4501_v49 = vsub.f32 %v9573_v9, %v4448_v16  ;;  %v3374_v54 = vsub.f32 %v2009_v58, %v3319_v2  ;;  %v4500_v10 = vsub.f32 %v2009_v58, %v4445_v21  ;;  %v10144_v21 = vld [vmem:[#allocation24_spill] sm:$0xff] }
 0x5af   :  { %4582 = vadd.xlane.f32.xlu0 %v4581_v23  ;;  %v3452_v61 = vsel %vm299_vm1, %v3400_v8, 0.0 }
 0x5b0   :  { %v4529_v40 = vmul.f32 %v4501_v49, %v4501_v49  ;;  %v3223_v41 = vpop.f32.mrf.mxu2  ;;  %v3324_v46 = vpop.f32.mrf.mxu3  ;;  %v3402_v47 = vmul.f32 %v3374_v54, %v3374_v54 }
 0x5b1   :  { %v3325_v23 = vadd.f32 %v3324_v46, %v3223_v41  ;;  %v2024_v41 = vadd.f32 %v9383_v43, %v10144_v21  ;;  %v9653_v21 = vadd.s32 4294967272, %v7697_v6 }
 0x5b2   :  { %4570 = vadd.xlane.f32.xlu1 %v4569_v33  ;;  %v4587_v18 = vsel %vm299_vm1, %v4529_v40, 0.0  ;;  %v4528_v33 = vmul.f32 %v4500_v10, %v4500_v10  ;;  %v3458_v16 = vsel %vm299_vm1, %v3402_v47, 0.0 }
 0x5b3   :  { %v5382_v59 = vpop.eup %5381  ;;  %v3376_v32 = vsub.f32 %v2015_v24, %v3325_v23 }
 0x5b4   :  { %4573 = vadd.xlane.f32.xlu2 %v4572_v38  ;;  %v4190_v31 = vmul.f32 %v5382_v59, %v9255_v35  ;;  %v4191_v12 = vmul.f32 %v5382_v59, %v9259_v7  ;;  %v2981_v0 = vpop.xlane.xlu2 %2980  ;;  %v4526_v35 = vmul.f32 %v4498_v26, %v4498_v26  ;;  %v3375_v26 = vsub.f32 %v9573_v9, %v3322_v22 }
 0x5b5   :  { %v4349_v7 = vpop.f32.mrf.mxu0  ;;  %v4450_v42 = vpop.f32.mrf.mxu1  ;;  %5383 = vrcp.f32 %v2981_v0  ;;  %v3404_v59 = vmul.f32 %v3376_v32, %v3376_v32  ;;  %v4584_v38 = vsel %vm299_vm1, %v4528_v33, 0.0 }
 0x5b6   :  { %4369 = vmatmul.f32.gmra.mxu0 %v4190_v31  ;;  %4967 = vmatmul.msk.f32.gmra.mxu1 %vm113_vm0, %v4191_v12  ;;  %v4451_v62 = vadd.f32 %v4450_v42, %v4349_v7  ;;  %v4578_v55 = vsel %vm299_vm1, %v4526_v35, 0.0  ;;  %v10142_v12 = vld [vmem:[#allocation16_spill] sm:$0xff] }
 0x5b7   :  { %3456 = vadd.xlane.f32.xlu0 %v3455_v48  ;;  %v2018_v53 = vadd.f32 %v9383_v43, %v10142_v12  ;;  %v3464_v49 = vsel %vm299_vm1, %v3404_v59, 0.0  ;;  %v3403_v48 = vmul.f32 %v3375_v26, %v3375_v26  ;;  %v10147_v26 = vld [vmem:[#allocation38_spill] sm:$0xff] }
 0x5b8   :  { %v4103_v25 = vpop.xlane.xlu1 %4102  ;;  %v4502_v15 = vsub.f32 %v2015_v24, %v4451_v62 }
 0x5b9   :  { %5385 = vrcp.f32 %v4103_v25  ;;  %v3461_v0 = vsel %vm299_vm1, %v3403_v48, 0.0  ;;  %v10148_v48 = vld [vmem:[#allocation13_spill] sm:$0xff] }
 0x5ba   :  { %4576 = vadd.xlane.f32.xlu1 %v4575_v60  ;;  %v4530_v14 = vmul.f32 %v4502_v15, %v4502_v15 }
 0x5bb   :  { %v5384_v44 = vpop.eup %5383 }
 0x5bc   :  { %4579 = vadd.xlane.f32.xlu2 %v4578_v55  ;;  %v3068_v4 = vmul.f32 %v5384_v44, %v10138_v11  ;;  %v3069_v34 = vmul.f32 0.0, %v5384_v44  ;;  %v4590_v39 = vsel %vm299_vm1, %v4530_v14, 0.0  ;;  %v10143_v55 = vld [vmem:[#allocation22_spill] sm:$0xff] }
 0x5bd   :  { %v2021_v37 = vadd.f32 %v9383_v43, %v10143_v55 }
 0x5be   :  { %3249 = vmatmul.f32.gmra.mxu2 %v3068_v4  ;;  %4941 = vmatmul.msk.f32.gmra.mxu3 %vm113_vm0, %v3069_v34 }
 0x5bf   :  { %4588 = vadd.xlane.f32.xlu0 %v4587_v18  ;;  %v5386_v3 = vpop.eup %5385 }
 0x5c0   :  { %v4192_v63 = vmul.f32 %v5386_v3, %v10140_v17  ;;  %v4193_v51 = vmul.f32 %v5386_v3, %v10141_v13  ;;  %v10146_v3 = vld [vmem:[#allocation36_spill] sm:$0xff] }
 0x5c2   :  { %3450 = vadd.xlane.f32.xlu1 %v3449_v56  ;;  %4372 = vmatmul.f32.gmra.mxu0 %v4192_v63  ;;  %v10145_v56 = vld [vmem:[#allocation35_spill] sm:$0xff] }
 0x5c3   :  { %4968 = vmatmul.msk.f32.gmra.mxu1 %vm113_vm0, %v4193_v51 }
 0x5c4   :  { %3453 = vadd.xlane.f32.xlu2 %v3452_v61 }
 0x5c7   :  { %4591 = vadd.xlane.f32.xlu0 %v4590_v39 }
 0x5c8   :  { %v3226_v29 = vpop.f32.mrf.mxu2 }
 0x5c9   :  { %v3327_v31 = vpop.f32.mrf.mxu3 }
 0x5ca   :  { %3459 = vadd.xlane.f32.xlu1 %v3458_v16  ;;  %v3328_v30 = vadd.f32 %v3327_v31, %v3226_v29 }
 0x5cc   :  { %4585 = vadd.xlane.f32.xlu2 %v4584_v38  ;;  %v3377_v1 = vsub.f32 %v2018_v53, %v3328_v30 }
 0x5ce   :  { %v3405_v20 = vmul.f32 %v3377_v1, %v3377_v1  ;;  %v9630_v1 = vadd.f32 %v9383_v43, %v10148_v48 }
 0x5cf   :  { %3465 = vadd.xlane.f32.xlu0 %v3464_v49 }
 0x5d0   :  { %v3229_v7 = vpop.f32.mrf.mxu2  ;;  %v3467_v42 = vsel %vm299_vm1, %v3405_v20, 0.0 }
 0x5d1   :  { %v3330_v5 = vpop.f32.mrf.mxu3 }
 0x5d2   :  { %3468 = vadd.xlane.f32.xlu1 %v3467_v42  ;;  %v3331_v40 = vadd.f32 %v3330_v5, %v3229_v7  ;;  %v10149_v7 = vld [vmem:[#allocation17_spill] sm:$0xff] }
 0x5d3   :  { %v4352_v52 = vpop.f32.mrf.mxu0  ;;  %v4453_v35 = vpop.f32.mrf.mxu1 }
 0x5d4   :  { %3462 = vadd.xlane.f32.xlu2 %v3461_v0  ;;  %v4454_v9 = vadd.f32 %v4453_v35, %v4352_v52  ;;  %v3378_v44 = vsub.f32 %v2021_v37, %v3331_v40 }
 0x5d6   :  { %v4503_v60 = vsub.f32 %v2018_v53, %v4454_v9  ;;  %v3406_v58 = vmul.f32 %v3378_v44, %v3378_v44  ;;  %v9625_v53 = vadd.s32 4294967288, %v7697_v6 }
 0x5d8   :  { %v4531_v62 = vmul.f32 %v4503_v60, %v4503_v60  ;;  %v4107_v50 = vpop.xlane.xlu0 %4106  ;;  %v2985_v24 = vpop.xlane.xlu1 %2984  ;;  %v3470_v13 = vsel %vm299_vm1, %v3406_v58, 0.0 }
 0x5d9   :  { %5387 = vrcp.f32 %v4107_v50 }
 0x5da   :  { %5389 = vrcp.f32 %v2985_v24  ;;  %v4593_v25 = vsel %vm299_vm1, %v4531_v62, 0.0  ;;  %v3232_v18 = vpop.f32.mrf.mxu2  ;;  %v3333_v11 = vpop.f32.mrf.mxu3 }
 0x5db   :  { %v4456_v27 = vpop.f32.mrf.mxu1  ;;  %v4355_v2 = vpop.f32.mrf.mxu0  ;;  %v3334_v34 = vadd.f32 %v3333_v11, %v3232_v18 }
 0x5dc   :  { %4594 = vadd.xlane.f32.xlu2 %v4593_v25  ;;  %v4457_v15 = vadd.f32 %v4456_v27, %v4355_v2 }
 0x5dd   :  { %v3379_v17 = vsub.f32 %v2024_v41, %v3334_v34 }
 0x5de   :  { %v4504_v4 = vsub.f32 %v2021_v37, %v4457_v15  ;;  %v9640_v37 = vadd.s32 4294967280, %v7697_v6 }
 0x5df   :  { %v5388_v57 = vpop.eup %5387  ;;  %v3407_v32 = vmul.f32 %v3379_v17, %v3379_v17  ;;  %v9661_v17 = vadd.s32 4294967264, %v7697_v6 }
 0x5e0   :  { %v5390_v8 = vpop.eup %5389  ;;  %v4532_v46 = vmul.f32 %v4504_v4, %v4504_v4  ;;  %v4194_v54 = vmul.f32 %v5388_v57, %v9343_v19  ;;  %v4195_v23 = vmul.f32 %v5388_v57, %v10145_v56  ;;  %v10150_v57 = vld [vmem:[#allocation2_spill] sm:$0xff] }
 0x5e1   :  { %v2989_v14 = vpop.xlane.xlu0 %2988  ;;  %v3070_v10 = vmul.f32 %v5390_v8, %v10146_v3  ;;  %v3071_v61 = vmul.f32 0.0, %v5390_v8  ;;  %v3473_v31 = vsel %vm299_vm1, %v3407_v32, 0.0  ;;  %v2030_v58 = vadd.f32 %v9383_v43, %v10150_v57 }
 0x5e2   :  { %4375 = vmatmul.f32.gmra.mxu0 %v4194_v54  ;;  %4969 = vmatmul.msk.f32.gmra.mxu1 %vm113_vm0, %v4195_v23  ;;  %5391 = vrcp.f32 %v2989_v14  ;;  %v4596_v63 = vsel %vm299_vm1, %v4532_v46, 0.0 }
 0x5e3   :  { %v4358_v51 = vpop.f32.mrf.mxu0  ;;  %4597 = vadd.xlane.f32.xlu0 %v4596_v63  ;;  %3252 = vmatmul.f32.gmra.mxu2 %v3070_v10  ;;  %v4459_v19 = vpop.f32.mrf.mxu1 }
 0x5e4   :  { %3471 = vadd.xlane.f32.xlu2 %v3470_v13  ;;  %4942 = vmatmul.msk.f32.gmra.mxu3 %vm113_vm0, %v3071_v61  ;;  %v4460_v47 = vadd.f32 %v4459_v19, %v4358_v51 }
 0x5e6   :  { %v4505_v39 = vsub.f32 %v2024_v41, %v4460_v47  ;;  %v10151_v47 = vld [vmem:[#allocation28_spill] sm:$0xff] }
 0x5e7   :  { %v4111_v33 = vpop.xlane.xlu2 %4110  ;;  %v2033_v32 = vadd.f32 %v9383_v43, %v10151_v47 }
 0x5e8   :  { %v5392_v22 = vpop.eup %5391  ;;  %5393 = vrcp.f32 %v4111_v33  ;;  %v4533_v16 = vmul.f32 %v4505_v39, %v4505_v39 }
 0x5e9   :  { %v4547_v59 = vpop.xlane.xlu0 %4546  ;;  %v3072_v38 = vmul.f32 %v5392_v22, %v10147_v26  ;;  %v3073_v29 = vmul.f32 0.0, %v5392_v22 }
 0x5ea   :  { %v4599_v12 = vsel %vm299_vm1, %v4533_v16, 0.0  ;;  %v4655_v5 = vperm.slane %v4547_v59, %v9625_v53  ;;  %v9669_v16 = vadd.s32 4294967256, %v7697_v6 }
 0x5eb   :  { %3474 = vadd.xlane.f32.xlu0 %v3473_v31  ;;  %3255 = vmatmul.f32.gmra.mxu2 %v3072_v38 }
 0x5ec   :  { %4600 = vadd.xlane.f32.xlu1 %v4599_v12  ;;  %4943 = vmatmul.msk.f32.gmra.mxu3 %vm113_vm0, %v3073_v29  ;;  %v9673_v12 = vadd.s32 4294967248, %v7697_v6 }
 0x5ed   :  { %v4115_v30 = vpop.xlane.xlu1 %4114  ;;  %v3235_v20 = vpop.f32.mrf.mxu2 }
 0x5ee   :  { %v5394_v49 = vpop.eup %5393  ;;  %5395 = vrcp.f32 %v4115_v30  ;;  %v3336_v0 = vpop.f32.mrf.mxu3 }
 0x5ef   :  { %v4544_v52 = vpop.xlane.xlu2 %4543  ;;  %v3337_v35 = vadd.f32 %v3336_v0, %v3235_v20  ;;  %v4196_v9 = vmul.f32 %v5394_v49, %v9401_v36  ;;  %v4197_v42 = vmul.f32 %v5394_v49, %v10149_v7 }
 0x5f0   :  { %v4654_v60 = vperm.slane %v4544_v52, %v7697_v6 }
 0x5f1   :  { %v3380_v40 = vsub.f32 %v9630_v1, %v3337_v35  ;;  %4378 = vmatmul.f32.gmra.mxu0 %v4196_v9  ;;  %4970 = vmatmul.msk.f32.gmra.mxu1 %vm113_vm0, %v4197_v42  ;;  %v3421_v62 = vpop.xlane.xlu0 %3420 }
 0x5f2   :  { %v4656_v50 = vsel %vm3531_vm2, %v4655_v5, %v4654_v60  ;;  %v3530_v18 = vperm.slane %v3421_v62, %v9625_v53 }
 0x5f3   :  { %v3408_v55 = vmul.f32 %v3380_v40, %v3380_v40 }
 0x5f4   :  { %v5396_v24 = vpop.eup %5395 }
 0x5f5   :  { %v3424_v36 = vpop.xlane.xlu1 %3423  ;;  %v3476_v25 = vsel %vm299_vm1, %v3408_v55, 0.0  ;;  %v4198_v44 = vmul.f32 %v5396_v24, %v9425_v45  ;;  %v4199_v27 = vmul.f32 %v5396_v24, %v9429_v28 }
 0x5f6   :  { %3477 = vadd.xlane.f32.xlu1 %v3476_v25  ;;  %v3534_v15 = vperm.slane %v3424_v36, %v9640_v37 }
 0x5f7   :  { %v3418_v2 = vpop.xlane.xlu2 %3417 }
 0x5f8   :  { %v3528_v11 = vperm.slane %v3418_v2, %v7697_v6  ;;  %v3238_v4 = vpop.f32.mrf.mxu2  ;;  %v3339_v34 = vpop.f32.mrf.mxu3 }
 0x5f9   :  { %v3340_v8 = vadd.f32 %v3339_v34, %v3238_v4  ;;  %4381 = vmatmul.f32.gmra.mxu0 %v4198_v44  ;;  %4971 = vmatmul.msk.f32.gmra.mxu1 %vm113_vm0, %v4199_v27  ;;  %vm3543_vm0 = vcmask 326912  }
 0x5fa   :  { %v3532_v45 = vsel %vm3531_vm2, %v3530_v18, %v3528_v11  ;;  %v4550_v28 = vpop.xlane.xlu0 %4549 }
 0x5fb   :  { %v3536_v41 = vsel %vm3535_vm12, %v3534_v15, %v3532_v45  ;;  %v3381_v46 = vsub.f32 %v2030_v58, %v3340_v8  ;;  %v4657_v54 = vperm.slane %v4550_v28, %v9640_v37 }
 0x5fd   :  { %v3409_v56 = vmul.f32 %v3381_v46, %v3381_v46  ;;  %v4658_v23 = vsel %vm3535_vm12, %v4657_v54, %v4656_v50  ;;  %v4553_v14 = vpop.xlane.xlu1 %4552 }
 0x5fe   :  { %v4659_v3 = vperm.slane %v4553_v14, %v9653_v21 }
 0x5ff   :  { %v3427_v10 = vpop.xlane.xlu2 %3426  ;;  %v3479_v61 = vsel %vm299_vm1, %v3409_v56, 0.0 }
 0x600   :  { %v3538_v63 = vperm.slane %v3427_v10, %v9653_v21  ;;  %v4660_v13 = vsel %vm3539_vm13, %v4659_v3, %v4658_v23  ;;  %v3342_v51 = vpop.f32.mrf.mxu3  ;;  %3480 = vadd.xlane.f32.xlu2 %v3479_v61  ;;  %v3241_v19 = vpop.f32.mrf.mxu2 }
 0x601   :  { %v3343_v39 = vadd.f32 %v3342_v51, %v3241_v19 }
 0x602   :  { %v3540_v33 = vsel %vm3539_vm13, %v3538_v63, %v3536_v41  ;;  %v4556_v22 = vpop.xlane.xlu0 %4555 }
 0x603   :  { %v3382_v59 = vsub.f32 %v2033_v32, %v3343_v39  ;;  %v4661_v26 = vperm.slane %v4556_v22, %v9661_v17  ;;  %v4361_v38 = vpop.f32.mrf.mxu0  ;;  %v4462_v29 = vpop.f32.mrf.mxu1 }
 0x604   :  { %v4463_v31 = vadd.f32 %v4462_v29, %v4361_v38 }
 0x605   :  { %v3410_v30 = vmul.f32 %v3382_v59, %v3382_v59  ;;  %v4662_v49 = vsel %vm3543_vm0, %v4661_v26, %v4660_v13  ;;  %v4559_v48 = vpop.xlane.xlu1 %4558  ;;  %v10152_v13 = vld [vmem:[#allocation29_spill] sm:$0xff] }
 0x606   :  { %v9677_v20 = vsub.f32 %v9630_v1, %v4463_v31  ;;  %v4663_v0 = vperm.slane %v4559_v48, %v9669_v16  ;;  %v2036_v51 = vadd.f32 %v9383_v43, %v10152_v13 }
 0x607   :  { %v4562_v52 = vpop.xlane.xlu2 %4561  ;;  %v3482_v35 = vsel %vm299_vm1, %v3410_v30, 0.0 }
 0x608   :  { %v4665_v9 = vperm.slane %v4562_v52, %v9673_v12  ;;  %v4664_v7 = vsel %vm3547_vm14, %v4663_v0, %v4662_v49  ;;  %3483 = vadd.xlane.f32.xlu0 %v3482_v35 }
 0x60a   :  { %v9684_v42 = vsel %vm3551_vm15, %v4665_v9, %v4664_v7  ;;  %v3430_v5 = vpop.xlane.xlu0 %3429 }
 0x60b   :  { %v3542_v60 = vperm.slane %v3430_v5, %v9661_v17  ;;  %v4364_v40 = vpop.f32.mrf.mxu0  ;;  %v4465_v1 = vpop.f32.mrf.mxu1 }
 0x60c   :  { %v4466_v62 = vadd.f32 %v4465_v1, %v4364_v40  ;;  %v10153_v40 = vld [vmem:[#allocation4_spill] sm:$0xff] }
 0x60d   :  { %v3544_v50 = vsel %vm3543_vm0, %v3542_v60, %v3540_v33  ;;  %v3433_v55 = vpop.xlane.xlu1 %3432  ;;  %v9717_v60 = vld [vmem:[%s9846_s5] ss:$0 sm:$0xff] }
 0x60e   :  { %v4507_v24 = vsub.f32 %v2030_v58, %v4466_v62  ;;  %v3546_v36 = vperm.slane %v3433_v55, %v9669_v16  ;;  %v2039_v1 = vadd.f32 %v9717_v60, %v10153_v40 }
 0x60f   :  { %v3436_v25 = vpop.xlane.xlu2 %3435 }
 0x610   :  { %v4535_v44 = vmul.f32 %v4507_v24, %v4507_v24  ;;  %v3550_v27 = vperm.slane %v3436_v25, %v9673_v12  ;;  %v3548_v2 = vsel %vm3547_vm14, %v3546_v36, %v3544_v50 }
 0x612   :  { %v9692_v15 = vsel %vm3551_vm15, %v3550_v27, %v3548_v2  ;;  %v3439_v18 = vpop.xlane.xlu0 %3438  ;;  %v4605_v11 = vsel %vm299_vm1, %v4535_v44, 0.0 }
 0x613   :  { %4606 = vadd.xlane.f32.xlu1 %v4605_v11  ;;  %v4367_v4 = vpop.f32.mrf.mxu0  ;;  %v4468_v34 = vpop.f32.mrf.mxu1  ;;  %v3553_v3 = vperm.slane %v3439_v18, %v7697_v6 }
 0x614   :  { %v4469_v57 = vadd.f32 %v4468_v34, %v4367_v4 }
 0x615   :  { %v4565_v8 = vpop.xlane.xlu1 %4564 }
 0x616   :  { %v4508_v58 = vsub.f32 %v2033_v32, %v4469_v57  ;;  %v4667_v45 = vperm.slane %v4565_v8, %v7697_v6 }
 0x617   :  { %v4568_v28 = vpop.xlane.xlu2 %4567 }
 0x618   :  { %v4536_v41 = vmul.f32 %v4508_v58, %v4508_v58  ;;  %v4668_v46 = vperm.slane %v4568_v28, %v9625_v53 }
 0x61a   :  { %v4669_v54 = vsel %vm3531_vm2, %v4668_v46, %v4667_v45  ;;  %v4608_v56 = vsel %vm299_vm1, %v4536_v41, 0.0  ;;  %v3448_v23 = vpop.xlane.xlu0 %3447 }
 0x61b   :  { %4609 = vadd.xlane.f32.xlu2 %v4608_v56  ;;  %v3558_v33 = vperm.slane %v3448_v23, %v9653_v21 }
 0x61d   :  { %v3442_v14 = vpop.xlane.xlu1 %3441  ;;  %v3244_v61 = vpop.f32.mrf.mxu2 }
 0x61e   :  { %v3554_v10 = vperm.slane %v3442_v14, %v9625_v53  ;;  %v3345_v63 = vpop.f32.mrf.mxu3 }
 0x61f   :  { %v3445_v19 = vpop.xlane.xlu2 %3444  ;;  %v3346_v47 = vadd.f32 %v3345_v63, %v3244_v61 }
 0x620   :  { %v3556_v32 = vperm.slane %v3445_v19, %v9640_v37  ;;  %v3555_v39 = vsel %vm3531_vm2, %v3554_v10, %v3553_v3 }
 0x621   :  { %v3383_v22 = vsub.f32 %v2036_v51, %v3346_v47  ;;  %v10154_v47 = vld [vmem:[#allocation9_spill] sm:$0xff] }
 0x622   :  { %v3557_v59 = vsel %vm3535_vm12, %v3556_v32, %v3555_v39  ;;  %v4583_v52 = vpop.xlane.xlu0 %4582  ;;  %v2042_v32 = vadd.f32 %v9717_v60, %v10154_v47 }
 0x623   :  { %v3411_v26 = vmul.f32 %v3383_v22, %v3383_v22  ;;  %v3559_v38 = vsel %vm3539_vm13, %v3558_v33, %v3557_v59  ;;  %v4678_v36 = vperm.slane %v4583_v52, %v9673_v12 }
 0x625   :  { %v4571_v29 = vpop.xlane.xlu1 %4570  ;;  %v3485_v31 = vsel %vm299_vm1, %v3411_v26, 0.0 }
 0x626   :  { %v4670_v30 = vperm.slane %v4571_v29, %v9640_v37  ;;  %3486 = vadd.xlane.f32.xlu1 %v3485_v31 }
 0x627   :  { %v4574_v43 = vpop.xlane.xlu2 %4573 }
 0x628   :  { %v4672_v49 = vperm.slane %v4574_v43, %v9653_v21  ;;  %v4671_v48 = vsel %vm3535_vm12, %v4670_v30, %v4669_v54 }
 0x62a   :  { %v4673_v0 = vsel %vm3539_vm13, %v4672_v49, %v4671_v48  ;;  %v3247_v9 = vpop.f32.mrf.mxu2  ;;  %v3457_v58 = vpop.xlane.xlu0 %3456 }
 0x62b   :  { %v3348_v5 = vpop.f32.mrf.mxu3  ;;  %v3564_v23 = vperm.slane %v3457_v58, %v9673_v12 }
 0x62c   :  { %v3349_v50 = vadd.f32 %v3348_v5, %v3247_v9 }
 0x62d   :  { %v4577_v35 = vpop.xlane.xlu1 %4576 }
 0x62e   :  { %v4674_v7 = vperm.slane %v4577_v35, %v9661_v17  ;;  %v3384_v25 = vsub.f32 %v2039_v1, %v3349_v50  ;;  %v10155_v35 = vld [vmem:[#allocation31_spill] sm:$0xff] }
 0x62f   :  { %v4580_v62 = vpop.xlane.xlu2 %4579  ;;  %v2045_v9 = vadd.f32 %v9717_v60, %v10155_v35 }
 0x630   :  { %v4676_v55 = vperm.slane %v4580_v62, %v9669_v16  ;;  %v4675_v24 = vsel %vm3543_vm0, %v4674_v7, %v4673_v0  ;;  %v3412_v27 = vmul.f32 %v3384_v25, %v3384_v25  ;;  %v10156_v25 = vld [vmem:[#allocation5_spill] sm:$0xff] }
 0x632   :  { %v4677_v44 = vsel %vm3547_vm14, %v4676_v55, %v4675_v24  ;;  %v3488_v8 = vsel %vm299_vm1, %v3412_v27, 0.0 }
 0x633   :  { %v4370_v2 = vpop.f32.mrf.mxu0  ;;  %v4471_v18 = vpop.f32.mrf.mxu1  ;;  %v4679_v11 = vsel %vm3551_vm15, %v4678_v36, %v4677_v44  ;;  %3489 = vadd.xlane.f32.xlu2 %v3488_v8  ;;  %v2048_v44 = vadd.f32 %v9717_v60, %v10156_v25 }
 0x634   :  { %v4472_v4 = vadd.f32 %v4471_v18, %v4370_v2  ;;  %v9728_v34 = vsel %vm3592_vm3, %v4679_v11, %v9684_v42  ;;  %v4534_v18 = vmul.f32 %v9677_v20, %v9677_v20  ;;  %v4589_v20 = vpop.xlane.xlu0 %4588 }
 0x635   :  { %v3451_v57 = vpop.xlane.xlu1 %3450 }
 0x636   :  { %v4509_v45 = vsub.f32 %v2036_v51, %v4472_v4  ;;  %v3560_v28 = vperm.slane %v3451_v57, %v9661_v17 }
 0x637   :  { %v3454_v41 = vpop.xlane.xlu2 %3453 }
 0x638   :  { %v4537_v46 = vmul.f32 %v4509_v45, %v4509_v45  ;;  %v3562_v54 = vperm.slane %v3454_v41, %v9669_v16  ;;  %v3561_v56 = vsel %vm3543_vm0, %v3560_v28, %v3559_v38  ;;  %v4602_v28 = vsel %vm299_vm1, %v4534_v18, 0.0 }
 0x63a   :  { %v3563_v14 = vsel %vm3547_vm14, %v3562_v54, %v3561_v56  ;;  %v4611_v42 = vsel %vm299_vm1, %v4537_v46, 0.0 }
 0x63b   :  { %4612 = vadd.xlane.f32.xlu0 %v4611_v42  ;;  %v3565_v3 = vsel %vm3551_vm15, %v3564_v23, %v3563_v14 }
 0x63c   :  { %v9740_v10 = vsel %vm3592_vm3, %v3565_v3, %v9692_v15  ;;  %v4592_v42 = vpop.xlane.xlu0 %4591 }
 0x63d   :  { %v3460_v14 = vpop.xlane.xlu1 %3459 }
 0x63f   :  { %v4373_v61 = vpop.f32.mrf.mxu0  ;;  %v4586_v23 = vpop.xlane.xlu2 %4585 }
 0x640   :  { %v4474_v63 = vpop.f32.mrf.mxu1 }
 0x641   :  { %v4475_v13 = vadd.f32 %v4474_v63, %v4373_v61  ;;  %v3250_v51 = vpop.f32.mrf.mxu2  ;;  %v3351_v19 = vpop.f32.mrf.mxu3 }
 0x642   :  { %v3352_v39 = vadd.f32 %v3351_v19, %v3250_v51 }
 0x643   :  { %v4510_v33 = vsub.f32 %v2039_v1, %v4475_v13 }
 0x644   :  { %v3385_v22 = vsub.f32 %v2042_v32, %v3352_v39  ;;  %v3466_v63 = vpop.xlane.xlu0 %3465 }
 0x645   :  { %v4538_v59 = vmul.f32 %v4510_v33, %v4510_v33  ;;  %v3469_v3 = vpop.xlane.xlu1 %3468 }
 0x646   :  { %v3413_v26 = vmul.f32 %v3385_v22, %v3385_v22 }
 0x647   :  { %v4614_v38 = vsel %vm299_vm1, %v4538_v59, 0.0  ;;  %v3463_v61 = vpop.xlane.xlu2 %3462 }
 0x648   :  { %4615 = vadd.xlane.f32.xlu1 %v4614_v38  ;;  %v3491_v29 = vsel %vm299_vm1, %v3413_v26, 0.0 }
 0x649   :  { %3492 = vadd.xlane.f32.xlu0 %v3491_v29  ;;  %v5465_v29 = vmov 0.0  }
 0x64a   :  { %2479 = vst [vmem:[%s9847_s8] sm:$0xff] %v5465_v29 }
 0x64f   :  { %v4595_v51 = vpop.xlane.xlu2 %4594 }
 0x656   :  { %v4598_v19 = vpop.xlane.xlu0 %4597 }
 0x65e   :  { %v3475_v39 = vpop.xlane.xlu0 %3474 }
 0x65f   :  { %v4376_v15 = vpop.f32.mrf.mxu0  ;;  %v4477_v31 = vpop.f32.mrf.mxu1 }
 0x660   :  { %v4478_v30 = vadd.f32 %v4477_v31, %v4376_v15  ;;  %v4601_v13 = vpop.xlane.xlu1 %4600 }
 0x662   :  { %v4511_v43 = vsub.f32 %v2042_v32, %v4478_v30  ;;  %v3472_v32 = vpop.xlane.xlu2 %3471 }
 0x664   :  { %v4539_v49 = vmul.f32 %v4511_v43, %v4511_v43  ;;  %v3567_v43 = vperm.slane %v3463_v61, %v9625_v53 }
 0x666   :  { %v3253_v48 = vpop.f32.mrf.mxu2  ;;  %v4617_v52 = vsel %vm299_vm1, %v4539_v49, 0.0  ;;  %v4680_v49 = vperm.slane %v4586_v23, %v7697_v6 }
 0x667   :  { %v3354_v0 = vpop.f32.mrf.mxu3  ;;  %4618 = vadd.xlane.f32.xlu2 %v4617_v52 }
 0x668   :  { %v3355_v7 = vadd.f32 %v3354_v0, %v3253_v48  ;;  %v3566_v48 = vperm.slane %v3460_v14, %v7697_v6  ;;  %v4681_v0 = vperm.slane %v4589_v20, %v9625_v53 }
 0x669   :  { %v3478_v47 = vpop.xlane.xlu1 %3477 }
 0x66a   :  { %v3386_v5 = vsub.f32 %v2045_v9, %v3355_v7  ;;  %v3568_v52 = vsel %vm3531_vm2, %v3567_v43, %v3566_v48  ;;  %v3569_v7 = vperm.slane %v3466_v63, %v9640_v37 }
 0x66c   :  { %v3414_v40 = vmul.f32 %v3386_v5, %v3386_v5  ;;  %v3571_v5 = vperm.slane %v3469_v3, %v9653_v21 }
 0x66e   :  { %v4379_v1 = vpop.f32.mrf.mxu0  ;;  %v4480_v62 = vpop.f32.mrf.mxu1  ;;  %v3494_v50 = vsel %vm299_vm1, %v3414_v40, 0.0  ;;  %v4683_v40 = vperm.slane %v4592_v42, %v9640_v37 }
 0x66f   :  { %v4481_v55 = vadd.f32 %v4480_v62, %v4379_v1  ;;  %3495 = vadd.xlane.f32.xlu1 %v3494_v50  ;;  %v3256_v24 = vpop.f32.mrf.mxu2  ;;  %v3357_v36 = vpop.f32.mrf.mxu3  ;;  %v4682_v1 = vsel %vm3531_vm2, %v4681_v0, %v4680_v49  ;;  %v3573_v62 = vperm.slane %v3472_v32, %v9661_v17 }
 0x670   :  { %v3358_v27 = vadd.f32 %v3357_v36, %v3256_v24  ;;  %v4685_v24 = vperm.slane %v4595_v51, %v9653_v21  ;;  %v3575_v36 = vperm.slane %v3475_v39, %v9669_v16 }
 0x671   :  { %v4512_v2 = vsub.f32 %v2045_v9, %v4481_v55  ;;  %v3570_v55 = vsel %vm3535_vm12, %v3569_v7, %v3568_v52 }
 0x672   :  { %v3387_v11 = vsub.f32 %v2048_v44, %v3358_v27  ;;  %v4687_v27 = vperm.slane %v4598_v19, %v9661_v17 }
 0x673   :  { %v4540_v4 = vmul.f32 %v4512_v2, %v4512_v2  ;;  %v3481_v22 = vpop.xlane.xlu2 %3480  ;;  %v3577_v2 = vperm.slane %v3478_v47, %v9673_v12 }
 0x674   :  { %v3415_v57 = vmul.f32 %v3387_v11, %v3387_v11  ;;  %v3579_v18 = vperm.slane %v3481_v22, %v7697_v6 }
 0x675   :  { %v4620_v8 = vsel %vm299_vm1, %v4540_v4, 0.0  ;;  %v3572_v4 = vsel %vm3539_vm13, %v3571_v5, %v3570_v55 }
 0x676   :  { %v4483_v58 = vpop.f32.mrf.mxu1  ;;  %4621 = vadd.xlane.f32.xlu2 %v4620_v8  ;;  %v4382_v45 = vpop.f32.mrf.mxu0  ;;  %v3497_v41 = vsel %vm299_vm1, %v3415_v57, 0.0  ;;  %v4684_v57 = vsel %vm3535_vm12, %v4683_v40, %v4682_v1 }
 0x677   :  { %v4484_v46 = vadd.f32 %v4483_v58, %v4382_v45  ;;  %4603 = vadd.xlane.f32.xlu1 %v4602_v28  ;;  %3498 = vadd.xlane.f32.xlu0 %v3497_v41  ;;  %v3574_v58 = vsel %vm3543_vm0, %v3573_v62, %v3572_v4  ;;  %v4689_v45 = vperm.slane %v4601_v13, %v9669_v16 }
 0x679   :  { %v4513_v60 = vsub.f32 %v2048_v44, %v4484_v46  ;;  %v4686_v46 = vsel %vm3539_vm13, %v4685_v24, %v4684_v57 }
 0x67b   :  { %v4541_v54 = vmul.f32 %v4513_v60, %v4513_v60  ;;  %v3484_v59 = vpop.xlane.xlu0 %3483  ;;  %v3576_v60 = vsel %vm3547_vm14, %v3575_v36, %v3574_v58 }
 0x67c   :  { %v3580_v50 = vperm.slane %v3484_v59, %v9625_v53  ;;  %v3578_v20 = vsel %vm3551_vm15, %v3577_v2, %v3576_v60 }
 0x67d   :  { %v4623_v56 = vsel %vm299_vm1, %v4541_v54, 0.0  ;;  %vm3594_vm1 = vcmask 1042434  }
 0x67e   :  { %v3581_v28 = vsel %vm3531_vm2, %v3580_v50, %v3579_v18  ;;  %v3595_v59 = vsel %vm3594_vm1, %v3578_v20, %v9740_v10 }
 0x67f   :  { %4624 = vadd.xlane.f32.xlu0 %v4623_v56  ;;  %v4688_v56 = vsel %vm3543_vm0, %v4687_v27, %v4686_v46 }
 0x680   :  { %v4690_v13 = vsel %vm3547_vm14, %v4689_v45, %v4688_v56 }
 0x686   :  { %v9758_v33 = vpop.xlane.xlu1 %4606 }
 0x68e   :  { %v9760_v38 = vpop.xlane.xlu2 %4609 }
 0x68f   :  { %v4694_v51 = vperm.slane %v9760_v38, %v9625_v53 }
 0x699   :  { %v3487_v26 = vpop.xlane.xlu1 %3486 }
 0x69a   :  { %v3582_v25 = vperm.slane %v3487_v26, %v9640_v37  ;;  %v4693_v26 = vperm.slane %v9758_v33, %v7697_v6 }
 0x69c   :  { %v3583_v54 = vsel %vm3535_vm12, %v3582_v25, %v3581_v28 }
 0x6a6   :  { %v3490_v30 = vpop.xlane.xlu2 %3489 }
 0x6a7   :  { %v3584_v11 = vperm.slane %v3490_v30, %v9653_v21  ;;  %v4695_v30 = vsel %vm3531_vm2, %v4694_v51, %v4693_v26 }
 0x6a9   :  { %v3585_v23 = vsel %vm3539_vm13, %v3584_v11, %v3583_v54 }
 0x6ae   :  { %v9765_v15 = vpop.xlane.xlu0 %4612 }
 0x6af   :  { %v4696_v47 = vperm.slane %v9765_v15, %v9640_v37 }
 0x6b1   :  { %v4697_v10 = vsel %vm3535_vm12, %v4696_v47, %v4695_v30 }
 0x6bb   :  { %v9767_v31 = vpop.xlane.xlu1 %4615 }
 0x6bc   :  { %v3493_v35 = vpop.xlane.xlu0 %3492  ;;  %v4698_v53 = vperm.slane %v9767_v31, %v9653_v21 }
 0x6bd   :  { %v3586_v8 = vperm.slane %v3493_v35, %v9661_v17 }
 0x6be   :  { %v4699_v6 = vsel %vm3539_vm13, %v4698_v53, %v4697_v10 }
 0x6bf   :  { %v3587_v3 = vsel %vm3543_vm0, %v3586_v8, %v3585_v23 }
 0x6da   :  { %v4619_v44 = vpop.xlane.xlu2 %4618 }
 0x6db   :  { %v4700_v37 = vperm.slane %v4619_v44, %v9661_v17 }
 0x6dd   :  { %v4701_v21 = vsel %vm3543_vm0, %v4700_v37, %v4699_v6 }
 0x6e2   :  { %v3496_v9 = vpop.xlane.xlu1 %3495 }
 0x6e3   :  { %v3588_v41 = vperm.slane %v3496_v9, %v9669_v16 }
 0x6e5   :  { %v3589_v19 = vsel %vm3547_vm14, %v3588_v41, %v3587_v3 }
 0x6e9   :  { %v4622_v32 = vpop.xlane.xlu2 %4621 }
 0x6ea   :  { %v4604_v14 = vpop.xlane.xlu1 %4603  ;;  %v3499_v42 = vpop.xlane.xlu0 %3498  ;;  %v4702_v43 = vperm.slane %v4622_v32, %v9669_v16 }
 0x6eb   :  { %v4691_v61 = vperm.slane %v4604_v14, %v9673_v12  ;;  %v3590_v63 = vperm.slane %v3499_v42, %v9673_v12 }
 0x6ed   :  { %v4692_v39 = vsel %vm3551_vm15, %v4691_v61, %v4690_v13  ;;  %v3591_v22 = vsel %vm3551_vm15, %v3590_v63, %v3589_v19 }
 0x6ee   :  { %v3597_v38 = vsel %vm3596_vm8, %v3591_v22, %v3595_v59  ;;  %v4707_v29 = vsel %vm3594_vm1, %v4692_v39, %v9728_v34  ;;  %v4703_v34 = vsel %vm3547_vm14, %v4702_v43, %v4701_v21 }
 0x6ef   :  { %v3600_v15 = vsel %vm3599_vm6, %v3597_v38, 0.0 }
 0x6f0   :  { %3601 = vadd.xlane.f32.xlu1 %v3600_v15 }
 0x6f2   :  { %v4625_v33 = vpop.xlane.xlu0 %4624 }
 0x6f3   :  { %v4704_v31 = vperm.slane %v4625_v33, %v9673_v12 }
 0x6f5   :  { %v4705_v17 = vsel %vm3551_vm15, %v4704_v31, %v4703_v34 }
 0x6f6   :  { %v4708_v49 = vsel %vm3596_vm8, %v4705_v17, %v4707_v29 }
 0x6f7   :  { %v4710_v48 = vsel %vm3599_vm6, %v4708_v49, 0.0 }
 0x6f8   :  { %4711 = vadd.xlane.f32.xlu2 %v4710_v48 }
 0x763   :  { %v3602_v16 = vpop.xlane.xlu1 %3601 }
 0x764   :  { %v3603_v0 = vmul.f32 -0.017857144, %v3602_v16 }
 0x766   :  { %3605 = vst.msk [vmem:[%s9847_s8] sm:$0xf] %vm3604_vm7, %v3603_v0 }
 0x76b   :  { %v4712_v52 = vpop.xlane.xlu2 %4711 }
 0x76c   :  { %v4713_v35 = vmul.f32 -0.017857144, %v4712_v52 }
 0x76e   :  { %4715 = vst.msk [vmem:[%s9847_s8] sm:$0xf] %vm4714_vm11, %v4713_v35 }

</bundles_post_ra>
